<compile_context>
chip_gen: v5e
topology: v5e:2x2
jax: 0.10.0
libtpu: 0.0.40
codegen_flags: <defaults>
</compile_context>

<pallas_src>
import functools

import jax
import jax.numpy as jnp
from jax.experimental import pallas as pl
from jax.experimental.pallas import tpu as pltpu


def conv_subpixel_kernel(x_ref, w_ref, y_ref, s1_ref, s2_ref, *, TH, W, Cin, Cout):
    """Fused (nearest-2x upsample -> 3x3 conv) for one (batch, row-tile).

    x_ref : (1, 1, TH+2, W+2, Cin)   bf16  padded input row-tile (with halo)
    w_ref : (2, 2, 4*Cin, Cout)      bf16  folded sub-pixel weights, all parities
    y_ref : (1, 1, 2, 2, TH*W, Cout) bf16  conv output for all 4 output parities
    s1_ref: (1, 1, 1, Cout)          f32   per-channel sum   over this tile
    s2_ref: (1, 1, 1, Cout)          f32   per-channel sum^2 over this tile
    """
    slab_cache = {}

    def slab(r, c):
        # 9 distinct (row-offset, col-offset) slabs, shared across parities.
        if (r, c) not in slab_cache:
            s = x_ref[0, 0, r:r + TH, c:c + W, :]            # (TH, W, Cin)
            slab_cache[(r, c)] = s.reshape(TH * W, Cin)
        return slab_cache[(r, c)]

    s1 = jnp.zeros((1, Cout), jnp.float32)
    s2 = jnp.zeros((1, Cout), jnp.float32)
    for py in range(2):                                      # row parity (static)
        for px in range(2):                                  # col parity (static)
            patches = jnp.concatenate(
                [slab(py + a, px + b) for a in range(2) for b in range(2)],
                axis=1)                                      # (TH*W, 4*Cin) bf16
            acc = jnp.dot(patches, w_ref[py, px],
                          preferred_element_type=jnp.float32)  # (TH*W, Cout) f32
            y_ref[0, 0, py, px] = acc.astype(y_ref.dtype)
            # BatchNorm partial statistics in f32 (pre bf16 rounding of y).
            s1 = s1 + jnp.sum(acc, axis=0, keepdims=True)
            s2 = s2 + jnp.sum(acc * acc, axis=0, keepdims=True)
    s1_ref[0, 0] = s1
    s2_ref[0, 0] = s2


def bn_relu_kernel(y_ref, scale_ref, shift_ref, o_ref):
    """Affine batch-norm + ReLU on a lane-dense (rows, Cout) tile (bf16 -> f32)."""
    y = y_ref[...].astype(jnp.float32)
    o_ref[...] = jnp.maximum(
        y * scale_ref[...] + shift_ref[...], 0.0).astype(o_ref.dtype)


def _fold_upsample_into_weights(w_oihw):
    """Fold nearest-2x upsample into the 3x3 conv -> four sub-pixel 2x2 kernels.

    Returns (2, 2, 4*Cin, Cout) f32, indexed [py, px, (a*2+b)*Cin+i, cout].
    Built with exact adds only.
    """
    cout, cin = w_oihw.shape[0], w_oihw.shape[1]
    w = w_oihw.astype(jnp.float32)                              # (o, i, ky, kx)
    wr = jnp.stack([
        jnp.stack([w[:, :, 0, :], w[:, :, 1, :] + w[:, :, 2, :]], axis=0),
        jnp.stack([w[:, :, 0, :] + w[:, :, 1, :], w[:, :, 2, :]], axis=0),
    ], axis=0)                                                  # (py, a, o, i, kx)
    wf = jnp.stack([
        jnp.stack([wr[..., 0], wr[..., 1] + wr[..., 2]], axis=2),
        jnp.stack([wr[..., 0] + wr[..., 1], wr[..., 2]], axis=2),
    ], axis=1)                                                  # (py, px, a, b, o, i)
    wf = jnp.transpose(wf, (0, 1, 2, 3, 5, 4))                  # (py, px, a, b, i, o)
    return wf.reshape(2, 2, 4 * cin, cout)


def _pick_row_tile(H, W, Cin, Cout, budget_bytes=16 << 20):
    """Largest divisor of H whose per-step VMEM working set fits the budget."""
    def cost(th):
        hw = th * W
        x_blk = (th + 2) * (W + 2) * Cin * 2                 # bf16 input block
        y_blk = 4 * hw * Cout * 2                            # bf16 output block
        scratch = hw * (9 * Cin * 2 + 4 * Cin * 2 + 2 * Cout * 4)  # slabs/patch/acc
        return 2 * x_blk + 2 * y_blk + scratch               # x2 for double-buffer
    for th in sorted((d for d in range(1, H + 1) if H % d == 0), reverse=True):
        if cost(th) <= budget_bytes:
            return th
    return 1


@jax.jit
def up_conv_forward(x_nchw, w_oihw, bias, gamma, beta, eps=1e-5):
    """Matches up_conv.forward (training-mode BatchNorm)."""
    N, Cin, H, W = x_nchw.shape
    Cout = w_oihw.shape[0]

    # The conv bias shifts the batch mean by the same per-channel constant and
    # leaves the variance unchanged, so it cancels exactly in training-mode BN.
    del bias

    TH = _pick_row_tile(H, W, Cin, Cout)
    nrt = H // TH
    THW = TH * W

    # ---- small XLA prologue over x: NCHW->NHWC, zero-pad, bf16 cast, halo tiles
    x_nhwc = jnp.transpose(x_nchw, (0, 2, 3, 1)).astype(jnp.float32)
    x_pad = jnp.pad(x_nhwc, ((0, 0), (1, 1), (1, 1), (0, 0))).astype(jnp.bfloat16)
    if nrt == 1:
        x_tiles = x_pad[:, None]                              # (N, 1, H+2, W+2, Cin)
    else:
        row_idx = jnp.arange(nrt)[:, None] * TH + jnp.arange(TH + 2)[None, :]
        x_tiles = x_pad[:, row_idx]                           # (N, nrt, TH+2, W+2, Cin)

    w_fold = _fold_upsample_into_weights(w_oihw).astype(jnp.bfloat16)

    flops = 2 * N * 4 * H * W * Cout * 4 * Cin
    bytes_accessed = (x_tiles.size * 2 + w_fold.size * 2
                      + N * nrt * 4 * THW * Cout * 2 + 2 * N * nrt * Cout * 4)

    # ---- Pallas kernel 1: fused upsample + conv3x3 (+ BN partial stats) ----
    y, s1, s2 = pl.pallas_call(
        functools.partial(conv_subpixel_kernel, TH=TH, W=W, Cin=Cin, Cout=Cout),
        grid=(N, nrt),
        in_specs=[
            pl.BlockSpec((1, 1, TH + 2, W + 2, Cin), lambda n, r: (n, r, 0, 0, 0)),
            pl.BlockSpec((2, 2, 4 * Cin, Cout), lambda n, r: (0, 0, 0, 0)),
        ],
        out_specs=(
            pl.BlockSpec((1, 1, 2, 2, THW, Cout), lambda n, r: (n, r, 0, 0, 0, 0)),
            pl.BlockSpec((1, 1, 1, Cout), lambda n, r: (n, r, 0, 0)),
            pl.BlockSpec((1, 1, 1, Cout), lambda n, r: (n, r, 0, 0)),
        ),
        out_shape=(
            jax.ShapeDtypeStruct((N, nrt, 2, 2, THW, Cout), jnp.bfloat16),
            jax.ShapeDtypeStruct((N, nrt, 1, Cout), jnp.float32),
            jax.ShapeDtypeStruct((N, nrt, 1, Cout), jnp.float32),
        ),
        compiler_params=pltpu.CompilerParams(
            dimension_semantics=("parallel", "parallel"),
            vmem_limit_bytes=40 * 1024 * 1024),
        cost_estimate=pl.CostEstimate(flops=flops, transcendentals=0,
                                      bytes_accessed=bytes_accessed),
    )(x_tiles, w_fold)

    # ---- BatchNorm2d training-mode stats from the fused partial sums (tiny) ----
    cnt = jnp.float32(N * 4 * H * W)                          # = N * (2H) * (2W)
    mean = jnp.sum(s1, axis=(0, 1, 2)) / cnt
    # E[y^2]-E[y]^2 in f32; clamp tiny negative values from cancellation.
    var = jnp.maximum(jnp.sum(s2, axis=(0, 1, 2)) / cnt - mean * mean, 0.0)
    scale = gamma.astype(jnp.float32) * jax.lax.rsqrt(var + eps)
    shift = beta.astype(jnp.float32) - mean * scale

    # ---- Pallas kernel 2: lane-dense BN affine + ReLU (bf16 in, f32 out) ----
    NB = N * nrt
    R = 4 * THW                                               # rows per tile
    y3 = y.reshape(NB, R, Cout)                               # free (contiguous)
    out3 = pl.pallas_call(
        bn_relu_kernel,
        grid=(NB,),
        in_specs=[
            pl.BlockSpec((1, R, Cout), lambda b: (b, 0, 0)),
            pl.BlockSpec((1, Cout), lambda b: (0, 0)),
            pl.BlockSpec((1, Cout), lambda b: (0, 0)),
        ],
        out_specs=pl.BlockSpec((1, R, Cout), lambda b: (b, 0, 0)),
        out_shape=jax.ShapeDtypeStruct((NB, R, Cout), jnp.float32),
        compiler_params=pltpu.CompilerParams(
            dimension_semantics=("parallel",),
            vmem_limit_bytes=40 * 1024 * 1024),
    )(y3, scale.reshape(1, Cout), shift.reshape(1, Cout))

    # ---- single remaining XLA pass: parity interleave + NCHW (Cout lanes only) ----
    out = out3.reshape(N, nrt, 2, 2, TH, W, Cout)             # (n,rt,py,px,i,j,c)
    out = jnp.transpose(out, (0, 6, 1, 4, 2, 5, 3))           # (n,c,rt,i,py,j,px)
    return out.reshape(N, Cout, 2 * H, 2 * W)


def _reference(x_nchw, w_oihw, bias, gamma, beta, eps=1e-5):
    """Pure-JAX f32 reference of the same forward pass (for validation)."""
    xu = jnp.repeat(jnp.repeat(x_nchw, 2, axis=2), 2, axis=3)
    x_nhwc = jnp.transpose(xu, (0, 2, 3, 1)).astype(jnp.float32)
    w_hwio = jnp.transpose(w_oihw, (2, 3, 1, 0)).astype(jnp.float32)
    y = jax.lax.conv_general_dilated(
        x_nhwc, w_hwio, window_strides=(1, 1), padding="SAME",
        dimension_numbers=("NHWC", "HWIO", "NHWC"))
    y = y + bias[None, None, None, :]
    mean = jnp.mean(y, axis=(0, 1, 2))
    var = jnp.mean(jnp.square(y - mean), axis=(0, 1, 2))
    y = (y - mean) / jnp.sqrt(var + eps) * gamma + beta
    y = jnp.maximum(y, 0.0)
    return jnp.transpose(y, (0, 3, 1, 2))


if __name__ == "__main__":
    key = jax.random.PRNGKey(0)
    k_x, k_w, k_b, k_g, k_be = jax.random.split(key, 5)

    N, C_IN, C_OUT, H, W = 2, 4, 8, 16, 16

    x = jax.random.normal(k_x, (N, C_IN, H, W), dtype=jnp.float32)
    w = 0.1 * jax.random.normal(k_w, (C_OUT, C_IN, 3, 3), dtype=jnp.float32)
    b = 0.1 * jax.random.normal(k_b, (C_OUT,), dtype=jnp.float32)
    gamma = 1.0 + 0.1 * jax.random.normal(k_g, (C_OUT,), dtype=jnp.float32)
    beta = 0.1 * jax.random.normal(k_be, (C_OUT,), dtype=jnp.float32)

    out = jax.block_until_ready(up_conv_forward(x, w, b, gamma, beta))
    ref = jax.block_until_ready(_reference(x, w, b, gamma, beta))

    assert out.shape == (N, C_OUT, 2 * H, 2 * W), out.shape
    max_err = float(jnp.max(jnp.abs(out - ref)))
    # bf16 MXU inputs + bf16 intermediate (per perf review) -> widened tolerance.
    assert jnp.allclose(out, ref, atol=8e-2, rtol=8e-2), max_err

    print("KERNEL_OK")
</pallas_src>

<mosaic_0001>
module attributes {stable_mosaic.version = 11 : i64} {
  func.func @bn_relu_kernel(%arg0: i32, %arg1: memref<1x1024x8xbf16, #tpu.memory_space<vmem>>, %arg2: memref<1x8xf32, #tpu.memory_space<vmem>>, %arg3: memref<1x8xf32, #tpu.memory_space<vmem>>, %arg4: memref<1x1024x8xf32, #tpu.memory_space<vmem>>) attributes {dimension_semantics = [#tpu.dimension_semantics<parallel>], iteration_bounds = array<i64: 2>, scalar_prefetch = 0 : i64, scratch_operands = 0 : i64, tpu.core_type = #tpu.core_type<tc>, window_params = [{transform_indices = @transform_0, window_bounds = array<i64: 1, 1024, 8>}, {pipeline_mode = #tpu.pipeline_mode<synchronous>, transform_indices = @transform_1, window_bounds = array<i64: 1, 8>}, {pipeline_mode = #tpu.pipeline_mode<synchronous>, transform_indices = @transform_2, window_bounds = array<i64: 1, 8>}, {transform_indices = @transform_3, window_bounds = array<i64: 1, 1024, 8>}]} {
    %c0 = arith.constant 0 : index
    %c0_0 = arith.constant 0 : index
    %c0_1 = arith.constant 0 : index
    %0 = vector.load %arg1[%c0, %c0_0, %c0_1] : memref<1x1024x8xbf16, #tpu.memory_space<vmem>>, vector<1x1024x8xbf16>
    %1 = arith.extf %0 : vector<1x1024x8xbf16> to vector<1x1024x8xf32>
    %c0_2 = arith.constant 0 : index
    %c0_3 = arith.constant 0 : index
    %2 = vector.load %arg2[%c0_2, %c0_3] : memref<1x8xf32, #tpu.memory_space<vmem>>, vector<1x8xf32>
    %3 = vector.shape_cast %2 : vector<1x8xf32> to vector<1x1x8xf32>
    %4 = vector.broadcast %3 : vector<1x1x8xf32> to vector<1x1024x8xf32>
    %5 = arith.mulf %1, %4 : vector<1x1024x8xf32>
    %c0_4 = arith.constant 0 : index
    %c0_5 = arith.constant 0 : index
    %6 = vector.load %arg3[%c0_4, %c0_5] : memref<1x8xf32, #tpu.memory_space<vmem>>, vector<1x8xf32>
    %7 = vector.shape_cast %6 : vector<1x8xf32> to vector<1x1x8xf32>
    %8 = vector.broadcast %7 : vector<1x1x8xf32> to vector<1x1024x8xf32>
    %9 = arith.addf %5, %8 : vector<1x1024x8xf32>
    %cst = arith.constant 0.000000e+00 : f32
    %10 = vector.broadcast %cst : f32 to vector<1x1024x8xf32>
    %11 = arith.maximumf %9, %10 : vector<1x1024x8xf32>
    %c0_6 = arith.constant 0 : index
    %c0_7 = arith.constant 0 : index
    %c0_8 = arith.constant 0 : index
    %12 = vector.load %arg4[%c0_6, %c0_7, %c0_8] : memref<1x1024x8xf32, #tpu.memory_space<vmem>>, vector<1x1024x8xf32>
    tpu.vector_store %arg4[%c0_6, %c0_7, %c0_8], %11 {strides = array<i32>} : memref<1x1024x8xf32, #tpu.memory_space<vmem>>, vector<1x1024x8xf32>,
    return
  }
  func.func @transform_0(%arg0: i32) -> (i32, i32, i32) {
    %c0_i32 = arith.constant 0 : i32
    %c0_i32_0 = arith.constant 0 : i32
    %c0_i32_1 = arith.constant 0 : i32
    return %arg0, %c0_i32, %c0_i32_0 : i32, i32, i32
  }
  func.func @transform_1(%arg0: i32) -> (i32, i32) {
    %c0_i32 = arith.constant 0 : i32
    %c0_i32_0 = arith.constant 0 : i32
    %c0_i32_1 = arith.constant 0 : i32
    return %c0_i32, %c0_i32_0 : i32, i32
  }
  func.func @transform_2(%arg0: i32) -> (i32, i32) {
    %c0_i32 = arith.constant 0 : i32
    %c0_i32_0 = arith.constant 0 : i32
    %c0_i32_1 = arith.constant 0 : i32
    return %c0_i32, %c0_i32_0 : i32, i32
  }
  func.func @transform_3(%arg0: i32) -> (i32, i32, i32) {
    %c0_i32 = arith.constant 0 : i32
    %c0_i32_0 = arith.constant 0 : i32
    %c0_i32_1 = arith.constant 0 : i32
    return %arg0, %c0_i32, %c0_i32_0 : i32, i32, i32
  }
}

module attributes {stable_mosaic.version = 11 : i64} {
  func.func @conv_subpixel_kernel(%arg0: i32, %arg1: i32, %arg2: memref<1x1x18x18x4xbf16, #tpu.memory_space<vmem>>, %arg3: memref<2x2x16x8xbf16, #tpu.memory_space<vmem>>, %arg4: memref<1x1x2x2x256x8xbf16, #tpu.memory_space<vmem>>, %arg5: memref<1x1x1x8xf32, #tpu.memory_space<vmem>>, %arg6: memref<1x1x1x8xf32, #tpu.memory_space<vmem>>) attributes {dimension_semantics = [#tpu.dimension_semantics<parallel>, #tpu.dimension_semantics<parallel>], iteration_bounds = array<i64: 2, 1>, scalar_prefetch = 0 : i64, scratch_operands = 0 : i64, tpu.core_type = #tpu.core_type<tc>, window_params = [{transform_indices = @transform_0, window_bounds = array<i64: 1, 1, 18, 18, 4>}, {pipeline_mode = #tpu.pipeline_mode<synchronous>, transform_indices = @transform_1, window_bounds = array<i64: 2, 2, 16, 8>}, {transform_indices = @transform_2, window_bounds = array<i64: 1, 1, 2, 2, 256, 8>}, {transform_indices = @transform_3, window_bounds = array<i64: 1, 1, 1, 8>}, {transform_indices = @transform_4, window_bounds = array<i64: 1, 1, 1, 8>}]} {
    %cst = arith.constant 0.000000e+00 : f32
    %0 = vector.broadcast %cst : f32 to vector<1x8xf32>
    %cst_0 = arith.constant 0.000000e+00 : f32
    %1 = vector.broadcast %cst_0 : f32 to vector<1x8xf32>
    %c0 = arith.constant 0 : index
    %c0_1 = arith.constant 0 : index
    %c0_2 = arith.constant 0 : index
    %c0_3 = arith.constant 0 : index
    %c0_4 = arith.constant 0 : index
    %2 = vector.load %arg2[%c0, %c0_1, %c0_2, %c0_3, %c0_4] : memref<1x1x18x18x4xbf16, #tpu.memory_space<vmem>>, vector<1x1x16x16x4xbf16>
    %3 = vector.shape_cast %2 : vector<1x1x16x16x4xbf16> to vector<16x16x4xbf16>
    %4 = vector.shape_cast %3 : vector<16x16x4xbf16> to vector<256x4xbf16>
    %c0_5 = arith.constant 0 : index
    %c0_6 = arith.constant 0 : index
    %c0_7 = arith.constant 0 : index
    %c1 = arith.constant 1 : index
    %c0_8 = arith.constant 0 : index
    %5 = vector.load %arg2[%c0_5, %c0_6, %c0_7, %c1, %c0_8] : memref<1x1x18x18x4xbf16, #tpu.memory_space<vmem>>, vector<1x1x16x16x4xbf16>
    %6 = vector.shape_cast %5 : vector<1x1x16x16x4xbf16> to vector<16x16x4xbf16>
    %7 = vector.shape_cast %6 : vector<16x16x4xbf16> to vector<256x4xbf16>
    %c0_9 = arith.constant 0 : index
    %c0_10 = arith.constant 0 : index
    %c1_11 = arith.constant 1 : index
    %c0_12 = arith.constant 0 : index
    %c0_13 = arith.constant 0 : index
    %8 = vector.load %arg2[%c0_9, %c0_10, %c1_11, %c0_12, %c0_13] : memref<1x1x18x18x4xbf16, #tpu.memory_space<vmem>>, vector<1x1x16x16x4xbf16>
    %9 = vector.shape_cast %8 : vector<1x1x16x16x4xbf16> to vector<16x16x4xbf16>
    %10 = vector.shape_cast %9 : vector<16x16x4xbf16> to vector<256x4xbf16>
    %c0_14 = arith.constant 0 : index
    %c0_15 = arith.constant 0 : index
    %c1_16 = arith.constant 1 : index
    %c1_17 = arith.constant 1 : index
    %c0_18 = arith.constant 0 : index
    %11 = vector.load %arg2[%c0_14, %c0_15, %c1_16, %c1_17, %c0_18] : memref<1x1x18x18x4xbf16, #tpu.memory_space<vmem>>, vector<1x1x16x16x4xbf16>
    %12 = vector.shape_cast %11 : vector<1x1x16x16x4xbf16> to vector<16x16x4xbf16>
    %13 = vector.shape_cast %12 : vector<16x16x4xbf16> to vector<256x4xbf16>
    %14 = tpu.concatenate %4, %7, %10, %13 in 1 : vector<256x4xbf16>, vector<256x4xbf16>, vector<256x4xbf16>, vector<256x4xbf16> -> vector<256x16xbf16>
    %c0_19 = arith.constant 0 : index
    %c0_20 = arith.constant 0 : index
    %c0_21 = arith.constant 0 : index
    %c0_22 = arith.constant 0 : index
    %15 = vector.load %arg3[%c0_19, %c0_20, %c0_21, %c0_22] : memref<2x2x16x8xbf16, #tpu.memory_space<vmem>>, vector<1x1x16x8xbf16>
    %16 = vector.shape_cast %15 : vector<1x1x16x8xbf16> to vector<16x8xbf16>
    %cst_23 = arith.constant dense<0.000000e+00> : vector<256x8xf32>
    %17 = tpu.matmul %14, %16, %cst_23 {dimension_numbers = #tpu.dot_dimension_numbers<[1], [0], [0], [1], [0, 0, 1, 1], [], []>} : vector<256x16xbf16>, vector<16x8xbf16>, vector<256x8xf32> -> vector<256x8xf32>
    %18 = arith.truncf %17 : vector<256x8xf32> to vector<256x8xbf16>
    %c0_24 = arith.constant 0 : index
    %c0_25 = arith.constant 0 : index
    %c0_26 = arith.constant 0 : index
    %c0_27 = arith.constant 0 : index
    %c0_28 = arith.constant 0 : index
    %c0_29 = arith.constant 0 : index
    %19 = vector.load %arg4[%c0_24, %c0_25, %c0_26, %c0_27, %c0_28, %c0_29] : memref<1x1x2x2x256x8xbf16, #tpu.memory_space<vmem>>, vector<1x1x1x1x256x8xbf16>
    %20 = vector.shape_cast %19 : vector<1x1x1x1x256x8xbf16> to vector<256x8xbf16>
    %21 = vector.shape_cast %18 : vector<256x8xbf16> to vector<1x1x1x1x256x8xbf16>
    tpu.vector_store %arg4[%c0_24, %c0_25, %c0_26, %c0_27, %c0_28, %c0_29], %21 {strides = array<i32>} : memref<1x1x2x2x256x8xbf16, #tpu.memory_space<vmem>>, vector<1x1x1x1x256x8xbf16>,
    %cst_30 = arith.constant dense<0.000000e+00> : vector<8xf32>
    %22 = vector.multi_reduction <add>, %17, %cst_30 [0] : vector<256x8xf32> to vector<8xf32>
    %23 = vector.shape_cast %22 : vector<8xf32> to vector<1x8xf32>
    %24 = arith.addf %0, %23 : vector<1x8xf32>
    %25 = arith.mulf %17, %17 : vector<256x8xf32>
    %cst_31 = arith.constant dense<0.000000e+00> : vector<8xf32>
    %26 = vector.multi_reduction <add>, %25, %cst_31 [0] : vector<256x8xf32> to vector<8xf32>
    %27 = vector.shape_cast %26 : vector<8xf32> to vector<1x8xf32>
    %28 = arith.addf %1, %27 : vector<1x8xf32>
    %c0_32 = arith.constant 0 : index
    %c0_33 = arith.constant 0 : index
    %c0_34 = arith.constant 0 : index
    %c2 = arith.constant 2 : index
    %c0_35 = arith.constant 0 : index
    %29 = vector.load %arg2[%c0_32, %c0_33, %c0_34, %c2, %c0_35] : memref<1x1x18x18x4xbf16, #tpu.memory_space<vmem>>, vector<1x1x16x16x4xbf16>
    %30 = vector.shape_cast %29 : vector<1x1x16x16x4xbf16> to vector<16x16x4xbf16>
    %31 = vector.shape_cast %30 : vector<16x16x4xbf16> to vector<256x4xbf16>
    %c0_36 = arith.constant 0 : index
    %c0_37 = arith.constant 0 : index
    %c1_38 = arith.constant 1 : index
    %c2_39 = arith.constant 2 : index
    %c0_40 = arith.constant 0 : index
    %32 = vector.load %arg2[%c0_36, %c0_37, %c1_38, %c2_39, %c0_40] : memref<1x1x18x18x4xbf16, #tpu.memory_space<vmem>>, vector<1x1x16x16x4xbf16>
    %33 = vector.shape_cast %32 : vector<1x1x16x16x4xbf16> to vector<16x16x4xbf16>
    %34 = vector.shape_cast %33 : vector<16x16x4xbf16> to vector<256x4xbf16>
    %35 = tpu.concatenate %7, %31, %13, %34 in 1 : vector<256x4xbf16>, vector<256x4xbf16>, vector<256x4xbf16>, vector<256x4xbf16> -> vector<256x16xbf16>
    %c0_41 = arith.constant 0 : index
    %c1_42 = arith.constant 1 : index
    %c0_43 = arith.constant 0 : index
    %c0_44 = arith.constant 0 : index
    %36 = vector.load %arg3[%c0_41, %c1_42, %c0_43, %c0_44] : memref<2x2x16x8xbf16, #tpu.memory_space<vmem>>, vector<1x1x16x8xbf16>
    %37 = vector.shape_cast %36 : vector<1x1x16x8xbf16> to vector<16x8xbf16>
    %cst_45 = arith.constant dense<0.000000e+00> : vector<256x8xf32>
    %38 = tpu.matmul %35, %37, %cst_45 {dimension_numbers = #tpu.dot_dimension_numbers<[1], [0], [0], [1], [0, 0, 1, 1], [], []>} : vector<256x16xbf16>, vector<16x8xbf16>, vector<256x8xf32> -> vector<256x8xf32>
    %39 = arith.truncf %38 : vector<256x8xf32> to vector<256x8xbf16>
    %c0_46 = arith.constant 0 : index
    %c0_47 = arith.constant 0 : index
    %c0_48 = arith.constant 0 : index
    %c1_49 = arith.constant 1 : index
    %c0_50 = arith.constant 0 : index
    %c0_51 = arith.constant 0 : index
    %40 = vector.load %arg4[%c0_46, %c0_47, %c0_48, %c1_49, %c0_50, %c0_51] : memref<1x1x2x2x256x8xbf16, #tpu.memory_space<vmem>>, vector<1x1x1x1x256x8xbf16>
    %41 = vector.shape_cast %40 : vector<1x1x1x1x256x8xbf16> to vector<256x8xbf16>
    %42 = vector.shape_cast %39 : vector<256x8xbf16> to vector<1x1x1x1x256x8xbf16>
    tpu.vector_store %arg4[%c0_46, %c0_47, %c0_48, %c1_49, %c0_50, %c0_51], %42 {strides = array<i32>} : memref<1x1x2x2x256x8xbf16, #tpu.memory_space<vmem>>, vector<1x1x1x1x256x8xbf16>,
    %cst_52 = arith.constant dense<0.000000e+00> : vector<8xf32>
    %43 = vector.multi_reduction <add>, %38, %cst_52 [0] : vector<256x8xf32> to vector<8xf32>
    %44 = vector.shape_cast %43 : vector<8xf32> to vector<1x8xf32>
    %45 = arith.addf %24, %44 : vector<1x8xf32>
    %46 = arith.mulf %38, %38 : vector<256x8xf32>
    %cst_53 = arith.constant dense<0.000000e+00> : vector<8xf32>
    %47 = vector.multi_reduction <add>, %46, %cst_53 [0] : vector<256x8xf32> to vector<8xf32>
    %48 = vector.shape_cast %47 : vector<8xf32> to vector<1x8xf32>
    %49 = arith.addf %28, %48 : vector<1x8xf32>
    %c0_54 = arith.constant 0 : index
    %c0_55 = arith.constant 0 : index
    %c2_56 = arith.constant 2 : index
    %c0_57 = arith.constant 0 : index
    %c0_58 = arith.constant 0 : index
    %50 = vector.load %arg2[%c0_54, %c0_55, %c2_56, %c0_57, %c0_58] : memref<1x1x18x18x4xbf16, #tpu.memory_space<vmem>>, vector<1x1x16x16x4xbf16>
    %51 = vector.shape_cast %50 : vector<1x1x16x16x4xbf16> to vector<16x16x4xbf16>
    %52 = vector.shape_cast %51 : vector<16x16x4xbf16> to vector<256x4xbf16>
    %c0_59 = arith.constant 0 : index
    %c0_60 = arith.constant 0 : index
    %c2_61 = arith.constant 2 : index
    %c1_62 = arith.constant 1 : index
    %c0_63 = arith.constant 0 : index
    %53 = vector.load %arg2[%c0_59, %c0_60, %c2_61, %c1_62, %c0_63] : memref<1x1x18x18x4xbf16, #tpu.memory_space<vmem>>, vector<1x1x16x16x4xbf16>
    %54 = vector.shape_cast %53 : vector<1x1x16x16x4xbf16> to vector<16x16x4xbf16>
    %55 = vector.shape_cast %54 : vector<16x16x4xbf16> to vector<256x4xbf16>
    %56 = tpu.concatenate %10, %13, %52, %55 in 1 : vector<256x4xbf16>, vector<256x4xbf16>, vector<256x4xbf16>, vector<256x4xbf16> -> vector<256x16xbf16>
    %c1_64 = arith.constant 1 : index
    %c0_65 = arith.constant 0 : index
    %c0_66 = arith.constant 0 : index
    %c0_67 = arith.constant 0 : index
    %57 = vector.load %arg3[%c1_64, %c0_65, %c0_66, %c0_67] : memref<2x2x16x8xbf16, #tpu.memory_space<vmem>>, vector<1x1x16x8xbf16>
    %58 = vector.shape_cast %57 : vector<1x1x16x8xbf16> to vector<16x8xbf16>
    %cst_68 = arith.constant dense<0.000000e+00> : vector<256x8xf32>
    %59 = tpu.matmul %56, %58, %cst_68 {dimension_numbers = #tpu.dot_dimension_numbers<[1], [0], [0], [1], [0, 0, 1, 1], [], []>} : vector<256x16xbf16>, vector<16x8xbf16>, vector<256x8xf32> -> vector<256x8xf32>
    %60 = arith.truncf %59 : vector<256x8xf32> to vector<256x8xbf16>
    %c0_69 = arith.constant 0 : index
    %c0_70 = arith.constant 0 : index
    %c1_71 = arith.constant 1 : index
    %c0_72 = arith.constant 0 : index
    %c0_73 = arith.constant 0 : index
    %c0_74 = arith.constant 0 : index
    %61 = vector.load %arg4[%c0_69, %c0_70, %c1_71, %c0_72, %c0_73, %c0_74] : memref<1x1x2x2x256x8xbf16, #tpu.memory_space<vmem>>, vector<1x1x1x1x256x8xbf16>
    %62 = vector.shape_cast %61 : vector<1x1x1x1x256x8xbf16> to vector<256x8xbf16>
    %63 = vector.shape_cast %60 : vector<256x8xbf16> to vector<1x1x1x1x256x8xbf16>
    tpu.vector_store %arg4[%c0_69, %c0_70, %c1_71, %c0_72, %c0_73, %c0_74], %63 {strides = array<i32>} : memref<1x1x2x2x256x8xbf16, #tpu.memory_space<vmem>>, vector<1x1x1x1x256x8xbf16>,
    %cst_75 = arith.constant dense<0.000000e+00> : vector<8xf32>
    %64 = vector.multi_reduction <add>, %59, %cst_75 [0] : vector<256x8xf32> to vector<8xf32>
    %65 = vector.shape_cast %64 : vector<8xf32> to vector<1x8xf32>
    %66 = arith.addf %45, %65 : vector<1x8xf32>
    %67 = arith.mulf %59, %59 : vector<256x8xf32>
    %cst_76 = arith.constant dense<0.000000e+00> : vector<8xf32>
    %68 = vector.multi_reduction <add>, %67, %cst_76 [0] : vector<256x8xf32> to vector<8xf32>
    %69 = vector.shape_cast %68 : vector<8xf32> to vector<1x8xf32>
    %70 = arith.addf %49, %69 : vector<1x8xf32>
    %c0_77 = arith.constant 0 : index
    %c0_78 = arith.constant 0 : index
    %c2_79 = arith.constant 2 : index
    %c2_80 = arith.constant 2 : index
    %c0_81 = arith.constant 0 : index
    %71 = vector.load %arg2[%c0_77, %c0_78, %c2_79, %c2_80, %c0_81] : memref<1x1x18x18x4xbf16, #tpu.memory_space<vmem>>, vector<1x1x16x16x4xbf16>
    %72 = vector.shape_cast %71 : vector<1x1x16x16x4xbf16> to vector<16x16x4xbf16>
    %73 = vector.shape_cast %72 : vector<16x16x4xbf16> to vector<256x4xbf16>
    %74 = tpu.concatenate %13, %34, %55, %73 in 1 : vector<256x4xbf16>, vector<256x4xbf16>, vector<256x4xbf16>, vector<256x4xbf16> -> vector<256x16xbf16>
    %c1_82 = arith.constant 1 : index
    %c1_83 = arith.constant 1 : index
    %c0_84 = arith.constant 0 : index
    %c0_85 = arith.constant 0 : index
    %75 = vector.load %arg3[%c1_82, %c1_83, %c0_84, %c0_85] : memref<2x2x16x8xbf16, #tpu.memory_space<vmem>>, vector<1x1x16x8xbf16>
    %76 = vector.shape_cast %75 : vector<1x1x16x8xbf16> to vector<16x8xbf16>
    %cst_86 = arith.constant dense<0.000000e+00> : vector<256x8xf32>
    %77 = tpu.matmul %74, %76, %cst_86 {dimension_numbers = #tpu.dot_dimension_numbers<[1], [0], [0], [1], [0, 0, 1, 1], [], []>} : vector<256x16xbf16>, vector<16x8xbf16>, vector<256x8xf32> -> vector<256x8xf32>
    %78 = arith.truncf %77 : vector<256x8xf32> to vector<256x8xbf16>
    %c0_87 = arith.constant 0 : index
    %c0_88 = arith.constant 0 : index
    %c1_89 = arith.constant 1 : index
    %c1_90 = arith.constant 1 : index
    %c0_91 = arith.constant 0 : index
    %c0_92 = arith.constant 0 : index
    %79 = vector.load %arg4[%c0_87, %c0_88, %c1_89, %c1_90, %c0_91, %c0_92] : memref<1x1x2x2x256x8xbf16, #tpu.memory_space<vmem>>, vector<1x1x1x1x256x8xbf16>
    %80 = vector.shape_cast %79 : vector<1x1x1x1x256x8xbf16> to vector<256x8xbf16>
    %81 = vector.shape_cast %78 : vector<256x8xbf16> to vector<1x1x1x1x256x8xbf16>
    tpu.vector_store %arg4[%c0_87, %c0_88, %c1_89, %c1_90, %c0_91, %c0_92], %81 {strides = array<i32>} : memref<1x1x2x2x256x8xbf16, #tpu.memory_space<vmem>>, vector<1x1x1x1x256x8xbf16>,
    %cst_93 = arith.constant dense<0.000000e+00> : vector<8xf32>
    %82 = vector.multi_reduction <add>, %77, %cst_93 [0] : vector<256x8xf32> to vector<8xf32>
    %83 = vector.shape_cast %82 : vector<8xf32> to vector<1x8xf32>
    %84 = arith.addf %66, %83 : vector<1x8xf32>
    %85 = arith.mulf %77, %77 : vector<256x8xf32>
    %cst_94 = arith.constant dense<0.000000e+00> : vector<8xf32>
    %86 = vector.multi_reduction <add>, %85, %cst_94 [0] : vector<256x8xf32> to vector<8xf32>
    %87 = vector.shape_cast %86 : vector<8xf32> to vector<1x8xf32>
    %88 = arith.addf %70, %87 : vector<1x8xf32>
    %c0_95 = arith.constant 0 : index
    %c0_96 = arith.constant 0 : index
    %c0_97 = arith.constant 0 : index
    %c0_98 = arith.constant 0 : index
    %89 = vector.load %arg5[%c0_95, %c0_96, %c0_97, %c0_98] : memref<1x1x1x8xf32, #tpu.memory_space<vmem>>, vector<1x1x1x8xf32>
    %90 = vector.shape_cast %89 : vector<1x1x1x8xf32> to vector<1x8xf32>
    %91 = vector.shape_cast %84 : vector<1x8xf32> to vector<1x1x1x8xf32>
    tpu.vector_store %arg5[%c0_95, %c0_96, %c0_97, %c0_98], %91 {strides = array<i32>} : memref<1x1x1x8xf32, #tpu.memory_space<vmem>>, vector<1x1x1x8xf32>,
    %c0_99 = arith.constant 0 : index
    %c0_100 = arith.constant 0 : index
    %c0_101 = arith.constant 0 : index
    %c0_102 = arith.constant 0 : index
    %92 = vector.load %arg6[%c0_99, %c0_100, %c0_101, %c0_102] : memref<1x1x1x8xf32, #tpu.memory_space<vmem>>, vector<1x1x1x8xf32>
    %93 = vector.shape_cast %92 : vector<1x1x1x8xf32> to vector<1x8xf32>
    %94 = vector.shape_cast %88 : vector<1x8xf32> to vector<1x1x1x8xf32>
    tpu.vector_store %arg6[%c0_99, %c0_100, %c0_101, %c0_102], %94 {strides = array<i32>} : memref<1x1x1x8xf32, #tpu.memory_space<vmem>>, vector<1x1x1x8xf32>,
    return
  }
  func.func @transform_0(%arg0: i32, %arg1: i32) -> (i32, i32, i32, i32, i32) {
    %c0_i32 = arith.constant 0 : i32
    %c0_i32_0 = arith.constant 0 : i32
    %c0_i32_1 = arith.constant 0 : i32
    %c0_i32_2 = arith.constant 0 : i32
    return %arg0, %arg1, %c0_i32, %c0_i32_0, %c0_i32_1 : i32, i32, i32, i32, i32
  }
  func.func @transform_1(%arg0: i32, %arg1: i32) -> (i32, i32, i32, i32) {
    %c0_i32 = arith.constant 0 : i32
    %c0_i32_0 = arith.constant 0 : i32
    %c0_i32_1 = arith.constant 0 : i32
    %c0_i32_2 = arith.constant 0 : i32
    %c0_i32_3 = arith.constant 0 : i32
    return %c0_i32, %c0_i32_0, %c0_i32_1, %c0_i32_2 : i32, i32, i32, i32
  }
  func.func @transform_2(%arg0: i32, %arg1: i32) -> (i32, i32, i32, i32, i32, i32) {
    %c0_i32 = arith.constant 0 : i32
    %c0_i32_0 = arith.constant 0 : i32
    %c0_i32_1 = arith.constant 0 : i32
    %c0_i32_2 = arith.constant 0 : i32
    %c0_i32_3 = arith.constant 0 : i32
    return %arg0, %arg1, %c0_i32, %c0_i32_0, %c0_i32_1, %c0_i32_2 : i32, i32, i32, i32, i32, i32
  }
  func.func @transform_3(%arg0: i32, %arg1: i32) -> (i32, i32, i32, i32) {
    %c0_i32 = arith.constant 0 : i32
    %c0_i32_0 = arith.constant 0 : i32
    %c0_i32_1 = arith.constant 0 : i32
    return %arg0, %arg1, %c0_i32, %c0_i32_0 : i32, i32, i32, i32
  }
  func.func @transform_4(%arg0: i32, %arg1: i32) -> (i32, i32, i32, i32) {
    %c0_i32 = arith.constant 0 : i32
    %c0_i32_0 = arith.constant 0 : i32
    %c0_i32_1 = arith.constant 0 : i32
    return %arg0, %arg1, %c0_i32, %c0_i32_0 : i32, i32, i32, i32
  }
}

</mosaic_0001>

<bundles_post_ra>
// kernel: up_conv_forward.3
= control target key start
LH: loop header
LB: loop body
LE: loop exit
PB: predicated region body
PF: predicated region fallthrough
CT: control target
= control target key end

     0   :  { %s1375_s12 = smov 0   ;;  %s1996_s0 = inlined_call_operand.vmem [shape: bf16[2,1024,8], index: 0, kind: input, shape index: {}]   ;;  %s1997_s1 = inlined_call_operand.vmem [shape: f32[1,8], index: 1, kind: input, shape index: {}]   ;;  %s1998_s2 = inlined_call_operand.vmem [shape: f32[1,8], index: 2, kind: input, shape index: {}]   ;;  %s1999_s3 = inlined_call_operand.vmem [shape: f32[2,1024,8], index: 3, kind: output, shape index: {}]  }
   0x1 LB: > { %s1003_s13 = sadd.s32 4294967295, %s1353_s12   ;;  %p1007_p0 = scmp.ge.s32.totalorder %s1353_s12, 1  ;;  %s1353_s12 = sphi %s1375_s12, %s13_s12  }
   0x2   : > { %p137_p1 = scmp.lt.s32.totalorder %s1353_s12, 3 }
   0x4   : > { %p138_p2 = pnand %p1007_p0, %p137_p1 }
   0x5   : > { %p161_p3 = scmp.lt.s32.totalorder (!%p138_p2), %s1003_s13, 1 }
   0x6   : > { %141 = sbr.rel (%p138_p2) target bundleno = 151 (0x97), region = 32 }
   0xb   : > { %s2001_s13 = smov (!%p161_p3, %s1003_s13), 1  ;;  %v1394_v0 = vld [vmem:[%s1997_s1] ss:$0 sm:$0xff]  ;;  %vm819_vm0 = vcmask 64512  }
   0xc   : > { %s1014_s14 = sshll.u32 %s2001_s13, 9  ;;  %v1402_v5 = vld [vmem:[%s1998_s2] ss:$0 sm:$0xff]  ;;  %s1015_s22 = sshll.u32 %s2001_s13, 10 }
   0xd   : > { %s1389_s17 = scalar_lea.vmem %s1996_s0, %s1014_s14  ;;  %s1421_s25 = scalar_lea.vmem %s1999_s3, %s1015_s22 }
   0xe   : > { %v1017_v1 = vld [vmem:[%s1389_s17] sm:$0xff]   ;;  %v1272_v2 = vld [vmem:[%s1389_s17 + $0x8] sm:$0xff]   ;;  %v1273_v3 = vld [vmem:[%s1389_s17 + $0x10] sm:$0xff]  }
   0xf   : > { %v1018_v4 = vunpack.c.l.bf16 %v1017_v1  ;;  %v1019_v6 = vunpack.c.h.bf16 %v1017_v1  ;;  %v1022_v7 = vunpack.c.l.bf16 %v1272_v2  ;;  %v1023_v8 = vunpack.c.h.bf16 %v1272_v2  ;;  %v1274_v9 = vld [vmem:[%s1389_s17 + $0x18] sm:$0xff]   ;;  %v1275_v30 = vld [vmem:[%s1389_s17 + $0x20] sm:$0xff]   ;;  %v1276_v31 = vld [vmem:[%s1389_s17 + $0x28] sm:$0xff]  }
  0x10   : > { %v1026_v10 = vunpack.c.l.bf16 %v1273_v3  ;;  %v1027_v11 = vunpack.c.h.bf16 %v1273_v3  ;;  %v1030_v12 = vunpack.c.l.bf16 %v1274_v9  ;;  %v1031_v13 = vunpack.c.h.bf16 %v1274_v9  ;;  %v1277_v36 = vld [vmem:[%s1389_s17 + $0x30] sm:$0xff]   ;;  %v1278_v37 = vld [vmem:[%s1389_s17 + $0x38] sm:$0xff]   ;;  %v1279_v3 = vld [vmem:[%s1389_s17 + $0x40] sm:$0xff]  }
  0x11   : > { %v431_v14 = vmul.f32 %v1394_v0, %v1018_v4  ;;  %v432_v15 = vmul.f32 %v1394_v0, %v1019_v6  ;;  %v433_v16 = vmul.f32 %v1394_v0, %v1022_v7  ;;  %v434_v17 = vmul.f32 %v1394_v0, %v1023_v8  ;;  %v1280_v4 = vld [vmem:[%s1389_s17 + $0x48] sm:$0xff]   ;;  %v1281_v6 = vld [vmem:[%s1389_s17 + $0x50] sm:$0xff]  }
  0x12   : > { %v435_v18 = vmul.f32 %v1394_v0, %v1026_v10  ;;  %v436_v19 = vmul.f32 %v1394_v0, %v1027_v11  ;;  %v437_v20 = vmul.f32 %v1394_v0, %v1030_v12  ;;  %v438_v21 = vmul.f32 %v1394_v0, %v1031_v13  ;;  %v1282_v11 = vld [vmem:[%s1389_s17 + $0x58] sm:$0xff]  }
  0x13   : > { %v563_v22 = vadd.f32 %v1402_v5, %v431_v14  ;;  %v564_v23 = vadd.f32 %v1402_v5, %v432_v15  ;;  %v565_v24 = vadd.f32 %v1402_v5, %v433_v16  ;;  %v566_v25 = vadd.f32 %v1402_v5, %v434_v17 }
  0x14   : > { %v567_v26 = vadd.f32 %v1402_v5, %v435_v18  ;;  %v568_v27 = vadd.f32 %v1402_v5, %v436_v19  ;;  %v569_v28 = vadd.f32 %v1402_v5, %v437_v20  ;;  %v570_v29 = vadd.f32 %v1402_v5, %v438_v21 }
  0x15   : > { %v691_v32 = vmax.f32 %v563_v22, 0.0  ;;  %v692_v33 = vmax.f32 %v564_v23, 0.0  ;;  %v693_v34 = vmax.f32 %v565_v24, 0.0  ;;  %v694_v35 = vmax.f32 %v566_v25, 0.0 }
  0x16   : > { %v695_v38 = vmax.f32 %v567_v26, 0.0  ;;  %v696_v39 = vmax.f32 %v568_v27, 0.0  ;;  %v697_v40 = vmax.f32 %v569_v28, 0.0  ;;  %v698_v41 = vmax.f32 %v570_v29, 0.0 }
  0x17   : > { %820 = vst.msk [vmem:[%s1421_s25] sm:$0xff] %vm819_vm0, %v691_v32  ;;  %v1034_v42 = vunpack.c.l.bf16 %v1275_v30  ;;  %v1035_v43 = vunpack.c.h.bf16 %v1275_v30  ;;  %v1038_v44 = vunpack.c.l.bf16 %v1276_v31  ;;  %v1039_v45 = vunpack.c.h.bf16 %v1276_v31 }
  0x18   : > { %821 = vst.msk [vmem:[%s1421_s25 + $0x8] sm:$0xff] %vm819_vm0, %v692_v33  ;;  %v1042_v46 = vunpack.c.l.bf16 %v1277_v36  ;;  %v1043_v47 = vunpack.c.h.bf16 %v1277_v36  ;;  %v1046_v48 = vunpack.c.l.bf16 %v1278_v37  ;;  %v1047_v49 = vunpack.c.h.bf16 %v1278_v37 }
  0x19   : > { %822 = vst.msk [vmem:[%s1421_s25 + $0x10] sm:$0xff] %vm819_vm0, %v693_v34  ;;  %v439_v50 = vmul.f32 %v1394_v0, %v1034_v42  ;;  %v440_v51 = vmul.f32 %v1394_v0, %v1035_v43  ;;  %v441_v52 = vmul.f32 %v1394_v0, %v1038_v44  ;;  %v442_v53 = vmul.f32 %v1394_v0, %v1039_v45  ;;  %v1285_v42 = vld [vmem:[%s1389_s17 + $0x70] sm:$0xff]  }
  0x1a   : > { %823 = vst.msk [vmem:[%s1421_s25 + $0x18] sm:$0xff] %vm819_vm0, %v694_v35  ;;  %v443_v54 = vmul.f32 %v1394_v0, %v1042_v46  ;;  %v444_v55 = vmul.f32 %v1394_v0, %v1043_v47  ;;  %v445_v56 = vmul.f32 %v1394_v0, %v1046_v48  ;;  %v446_v57 = vmul.f32 %v1394_v0, %v1047_v49  ;;  %v1286_v47 = vld [vmem:[%s1389_s17 + $0x78] sm:$0xff]  }
  0x1b   : > { %824 = vst.msk [vmem:[%s1421_s25 + $0x20] sm:$0xff] %vm819_vm0, %v695_v38  ;;  %v571_v58 = vadd.f32 %v1402_v5, %v439_v50  ;;  %v572_v59 = vadd.f32 %v1402_v5, %v440_v51  ;;  %v573_v60 = vadd.f32 %v1402_v5, %v441_v52  ;;  %v574_v61 = vadd.f32 %v1402_v5, %v442_v53 }
  0x1c   : > { %825 = vst.msk [vmem:[%s1421_s25 + $0x28] sm:$0xff] %vm819_vm0, %v696_v39  ;;  %v575_v62 = vadd.f32 %v1402_v5, %v443_v54  ;;  %v576_v63 = vadd.f32 %v1402_v5, %v444_v55  ;;  %v577_v1 = vadd.f32 %v1402_v5, %v445_v56  ;;  %v578_v2 = vadd.f32 %v1402_v5, %v446_v57 }
  0x1d   : > { %826 = vst.msk [vmem:[%s1421_s25 + $0x30] sm:$0xff] %vm819_vm0, %v697_v40  ;;  %v699_v7 = vmax.f32 %v571_v58, 0.0  ;;  %v700_v8 = vmax.f32 %v572_v59, 0.0  ;;  %v701_v9 = vmax.f32 %v573_v60, 0.0  ;;  %v702_v10 = vmax.f32 %v574_v61, 0.0  ;;  %v1283_v40 = vld [vmem:[%s1389_s17 + $0x60] sm:$0xff]  }
  0x1e   : > { %827 = vst.msk [vmem:[%s1421_s25 + $0x38] sm:$0xff] %vm819_vm0, %v698_v41  ;;  %v703_v12 = vmax.f32 %v575_v62, 0.0  ;;  %v704_v13 = vmax.f32 %v576_v63, 0.0  ;;  %v705_v14 = vmax.f32 %v577_v1, 0.0  ;;  %v706_v15 = vmax.f32 %v578_v2, 0.0  ;;  %v1284_v41 = vld [vmem:[%s1389_s17 + $0x68] sm:$0xff]  }
  0x1f   : > { %828 = vst.msk [vmem:[%s1421_s25 + $0x40] sm:$0xff] %vm819_vm0, %v699_v7  ;;  %v1050_v16 = vunpack.c.l.bf16 %v1279_v3  ;;  %v1051_v17 = vunpack.c.h.bf16 %v1279_v3  ;;  %v1054_v18 = vunpack.c.l.bf16 %v1280_v4  ;;  %v1055_v19 = vunpack.c.h.bf16 %v1280_v4 }
  0x20   : > { %829 = vst.msk [vmem:[%s1421_s25 + $0x48] sm:$0xff] %vm819_vm0, %v700_v8  ;;  %v1058_v20 = vunpack.c.l.bf16 %v1281_v6  ;;  %v1059_v21 = vunpack.c.h.bf16 %v1281_v6  ;;  %v1062_v22 = vunpack.c.l.bf16 %v1282_v11  ;;  %v1063_v23 = vunpack.c.h.bf16 %v1282_v11 }
  0x21   : > { %830 = vst.msk [vmem:[%s1421_s25 + $0x50] sm:$0xff] %vm819_vm0, %v701_v9  ;;  %v447_v24 = vmul.f32 %v1394_v0, %v1050_v16  ;;  %v448_v25 = vmul.f32 %v1394_v0, %v1051_v17  ;;  %v449_v26 = vmul.f32 %v1394_v0, %v1054_v18  ;;  %v450_v27 = vmul.f32 %v1394_v0, %v1055_v19  ;;  %v1289_v16 = vld [vmem:[%s1389_s17 + $0x90] sm:$0xff]  }
  0x22   : > { %831 = vst.msk [vmem:[%s1421_s25 + $0x58] sm:$0xff] %vm819_vm0, %v702_v10  ;;  %v451_v28 = vmul.f32 %v1394_v0, %v1058_v20  ;;  %v452_v29 = vmul.f32 %v1394_v0, %v1059_v21  ;;  %v453_v30 = vmul.f32 %v1394_v0, %v1062_v22  ;;  %v454_v31 = vmul.f32 %v1394_v0, %v1063_v23  ;;  %v1290_v21 = vld [vmem:[%s1389_s17 + $0x98] sm:$0xff]  }
  0x23   : > { %832 = vst.msk [vmem:[%s1421_s25 + $0x60] sm:$0xff] %vm819_vm0, %v703_v12  ;;  %v579_v32 = vadd.f32 %v1402_v5, %v447_v24  ;;  %v580_v33 = vadd.f32 %v1402_v5, %v448_v25  ;;  %v581_v34 = vadd.f32 %v1402_v5, %v449_v26  ;;  %v582_v35 = vadd.f32 %v1402_v5, %v450_v27 }
  0x24   : > { %833 = vst.msk [vmem:[%s1421_s25 + $0x68] sm:$0xff] %vm819_vm0, %v704_v13  ;;  %v583_v36 = vadd.f32 %v1402_v5, %v451_v28  ;;  %v584_v37 = vadd.f32 %v1402_v5, %v452_v29  ;;  %v585_v38 = vadd.f32 %v1402_v5, %v453_v30  ;;  %v586_v39 = vadd.f32 %v1402_v5, %v454_v31 }
  0x25   : > { %834 = vst.msk [vmem:[%s1421_s25 + $0x70] sm:$0xff] %vm819_vm0, %v705_v14  ;;  %v707_v43 = vmax.f32 %v579_v32, 0.0  ;;  %v708_v44 = vmax.f32 %v580_v33, 0.0  ;;  %v709_v45 = vmax.f32 %v581_v34, 0.0  ;;  %v710_v46 = vmax.f32 %v582_v35, 0.0  ;;  %v1287_v14 = vld [vmem:[%s1389_s17 + $0x80] sm:$0xff]  }
  0x26   : > { %835 = vst.msk [vmem:[%s1421_s25 + $0x78] sm:$0xff] %vm819_vm0, %v706_v15  ;;  %v711_v48 = vmax.f32 %v583_v36, 0.0  ;;  %v712_v49 = vmax.f32 %v584_v37, 0.0  ;;  %v713_v50 = vmax.f32 %v585_v38, 0.0  ;;  %v714_v51 = vmax.f32 %v586_v39, 0.0  ;;  %v1288_v15 = vld [vmem:[%s1389_s17 + $0x88] sm:$0xff]  }
  0x27   : > { %836 = vst.msk [vmem:[%s1421_s25 + $0x80] sm:$0xff] %vm819_vm0, %v707_v43  ;;  %v1066_v52 = vunpack.c.l.bf16 %v1283_v40  ;;  %v1067_v53 = vunpack.c.h.bf16 %v1283_v40  ;;  %v1070_v54 = vunpack.c.l.bf16 %v1284_v41  ;;  %v1071_v55 = vunpack.c.h.bf16 %v1284_v41 }
  0x28   : > { %837 = vst.msk [vmem:[%s1421_s25 + $0x88] sm:$0xff] %vm819_vm0, %v708_v44  ;;  %v1074_v56 = vunpack.c.l.bf16 %v1285_v42  ;;  %v1075_v57 = vunpack.c.h.bf16 %v1285_v42  ;;  %v1078_v58 = vunpack.c.l.bf16 %v1286_v47  ;;  %v1079_v59 = vunpack.c.h.bf16 %v1286_v47 }
  0x29   : > { %838 = vst.msk [vmem:[%s1421_s25 + $0x90] sm:$0xff] %vm819_vm0, %v709_v45  ;;  %v455_v60 = vmul.f32 %v1394_v0, %v1066_v52  ;;  %v456_v61 = vmul.f32 %v1394_v0, %v1067_v53  ;;  %v457_v62 = vmul.f32 %v1394_v0, %v1070_v54  ;;  %v458_v63 = vmul.f32 %v1394_v0, %v1071_v55  ;;  %v1293_v52 = vld [vmem:[%s1389_s17 + $0xb0] sm:$0xff]  }
  0x2a   : > { %839 = vst.msk [vmem:[%s1421_s25 + $0x98] sm:$0xff] %vm819_vm0, %v710_v46  ;;  %v459_v1 = vmul.f32 %v1394_v0, %v1074_v56  ;;  %v460_v2 = vmul.f32 %v1394_v0, %v1075_v57  ;;  %v461_v3 = vmul.f32 %v1394_v0, %v1078_v58  ;;  %v462_v4 = vmul.f32 %v1394_v0, %v1079_v59  ;;  %v1294_v57 = vld [vmem:[%s1389_s17 + $0xb8] sm:$0xff]  }
  0x2b   : > { %840 = vst.msk [vmem:[%s1421_s25 + $0xa0] sm:$0xff] %vm819_vm0, %v711_v48  ;;  %v587_v6 = vadd.f32 %v1402_v5, %v455_v60  ;;  %v588_v7 = vadd.f32 %v1402_v5, %v456_v61  ;;  %v589_v8 = vadd.f32 %v1402_v5, %v457_v62  ;;  %v590_v9 = vadd.f32 %v1402_v5, %v458_v63 }
  0x2c   : > { %841 = vst.msk [vmem:[%s1421_s25 + $0xa8] sm:$0xff] %vm819_vm0, %v712_v49  ;;  %v591_v10 = vadd.f32 %v1402_v5, %v459_v1  ;;  %v592_v11 = vadd.f32 %v1402_v5, %v460_v2  ;;  %v593_v12 = vadd.f32 %v1402_v5, %v461_v3  ;;  %v594_v13 = vadd.f32 %v1402_v5, %v462_v4 }
  0x2d   : > { %842 = vst.msk [vmem:[%s1421_s25 + $0xb0] sm:$0xff] %vm819_vm0, %v713_v50  ;;  %v715_v17 = vmax.f32 %v587_v6, 0.0  ;;  %v716_v18 = vmax.f32 %v588_v7, 0.0  ;;  %v717_v19 = vmax.f32 %v589_v8, 0.0  ;;  %v718_v20 = vmax.f32 %v590_v9, 0.0  ;;  %v1291_v50 = vld [vmem:[%s1389_s17 + $0xa0] sm:$0xff]  }
  0x2e   : > { %843 = vst.msk [vmem:[%s1421_s25 + $0xb8] sm:$0xff] %vm819_vm0, %v714_v51  ;;  %v719_v22 = vmax.f32 %v591_v10, 0.0  ;;  %v720_v23 = vmax.f32 %v592_v11, 0.0  ;;  %v721_v24 = vmax.f32 %v593_v12, 0.0  ;;  %v722_v25 = vmax.f32 %v594_v13, 0.0  ;;  %v1292_v51 = vld [vmem:[%s1389_s17 + $0xa8] sm:$0xff]  }
  0x2f   : > { %844 = vst.msk [vmem:[%s1421_s25 + $0xc0] sm:$0xff] %vm819_vm0, %v715_v17  ;;  %v1082_v26 = vunpack.c.l.bf16 %v1287_v14  ;;  %v1083_v27 = vunpack.c.h.bf16 %v1287_v14  ;;  %v1086_v28 = vunpack.c.l.bf16 %v1288_v15  ;;  %v1087_v29 = vunpack.c.h.bf16 %v1288_v15 }
  0x30   : > { %845 = vst.msk [vmem:[%s1421_s25 + $0xc8] sm:$0xff] %vm819_vm0, %v716_v18  ;;  %v1090_v30 = vunpack.c.l.bf16 %v1289_v16  ;;  %v1091_v31 = vunpack.c.h.bf16 %v1289_v16  ;;  %v1094_v32 = vunpack.c.l.bf16 %v1290_v21  ;;  %v1095_v33 = vunpack.c.h.bf16 %v1290_v21 }
  0x31   : > { %846 = vst.msk [vmem:[%s1421_s25 + $0xd0] sm:$0xff] %vm819_vm0, %v717_v19  ;;  %v463_v34 = vmul.f32 %v1394_v0, %v1082_v26  ;;  %v464_v35 = vmul.f32 %v1394_v0, %v1083_v27  ;;  %v465_v36 = vmul.f32 %v1394_v0, %v1086_v28  ;;  %v466_v37 = vmul.f32 %v1394_v0, %v1087_v29  ;;  %v1297_v26 = vld [vmem:[%s1389_s17 + $0xd0] sm:$0xff]  }
  0x32   : > { %847 = vst.msk [vmem:[%s1421_s25 + $0xd8] sm:$0xff] %vm819_vm0, %v718_v20  ;;  %v467_v38 = vmul.f32 %v1394_v0, %v1090_v30  ;;  %v468_v39 = vmul.f32 %v1394_v0, %v1091_v31  ;;  %v469_v40 = vmul.f32 %v1394_v0, %v1094_v32  ;;  %v470_v41 = vmul.f32 %v1394_v0, %v1095_v33  ;;  %v1298_v31 = vld [vmem:[%s1389_s17 + $0xd8] sm:$0xff]  }
  0x33   : > { %848 = vst.msk [vmem:[%s1421_s25 + $0xe0] sm:$0xff] %vm819_vm0, %v719_v22  ;;  %v595_v42 = vadd.f32 %v1402_v5, %v463_v34  ;;  %v596_v43 = vadd.f32 %v1402_v5, %v464_v35  ;;  %v597_v44 = vadd.f32 %v1402_v5, %v465_v36  ;;  %v598_v45 = vadd.f32 %v1402_v5, %v466_v37 }
  0x34   : > { %849 = vst.msk [vmem:[%s1421_s25 + $0xe8] sm:$0xff] %vm819_vm0, %v720_v23  ;;  %v599_v46 = vadd.f32 %v1402_v5, %v467_v38  ;;  %v600_v47 = vadd.f32 %v1402_v5, %v468_v39  ;;  %v601_v48 = vadd.f32 %v1402_v5, %v469_v40  ;;  %v602_v49 = vadd.f32 %v1402_v5, %v470_v41 }
  0x35   : > { %850 = vst.msk [vmem:[%s1421_s25 + $0xf0] sm:$0xff] %vm819_vm0, %v721_v24  ;;  %v723_v53 = vmax.f32 %v595_v42, 0.0  ;;  %v724_v54 = vmax.f32 %v596_v43, 0.0  ;;  %v725_v55 = vmax.f32 %v597_v44, 0.0  ;;  %v726_v56 = vmax.f32 %v598_v45, 0.0  ;;  %v1295_v24 = vld [vmem:[%s1389_s17 + $0xc0] sm:$0xff]  }
  0x36   : > { %851 = vst.msk [vmem:[%s1421_s25 + $0xf8] sm:$0xff] %vm819_vm0, %v722_v25  ;;  %v727_v58 = vmax.f32 %v599_v46, 0.0  ;;  %v728_v59 = vmax.f32 %v600_v47, 0.0  ;;  %v729_v60 = vmax.f32 %v601_v48, 0.0  ;;  %v730_v61 = vmax.f32 %v602_v49, 0.0  ;;  %v1296_v25 = vld [vmem:[%s1389_s17 + $0xc8] sm:$0xff]  }
  0x37   : > { %852 = vst.msk [vmem:[%s1421_s25 + $0x100] sm:$0xff] %vm819_vm0, %v723_v53  ;;  %v1098_v62 = vunpack.c.l.bf16 %v1291_v50  ;;  %v1099_v63 = vunpack.c.h.bf16 %v1291_v50  ;;  %v1102_v1 = vunpack.c.l.bf16 %v1292_v51  ;;  %v1103_v2 = vunpack.c.h.bf16 %v1292_v51 }
  0x38   : > { %853 = vst.msk [vmem:[%s1421_s25 + $0x108] sm:$0xff] %vm819_vm0, %v724_v54  ;;  %v1106_v3 = vunpack.c.l.bf16 %v1293_v52  ;;  %v1107_v4 = vunpack.c.h.bf16 %v1293_v52  ;;  %v1110_v6 = vunpack.c.l.bf16 %v1294_v57  ;;  %v1111_v7 = vunpack.c.h.bf16 %v1294_v57 }
  0x39   : > { %854 = vst.msk [vmem:[%s1421_s25 + $0x110] sm:$0xff] %vm819_vm0, %v725_v55  ;;  %v471_v8 = vmul.f32 %v1394_v0, %v1098_v62  ;;  %v472_v9 = vmul.f32 %v1394_v0, %v1099_v63  ;;  %v473_v10 = vmul.f32 %v1394_v0, %v1102_v1  ;;  %v474_v11 = vmul.f32 %v1394_v0, %v1103_v2  ;;  %v1301_v62 = vld [vmem:[%s1389_s17 + $0xf0] sm:$0xff]  }
  0x3a   : > { %855 = vst.msk [vmem:[%s1421_s25 + $0x118] sm:$0xff] %vm819_vm0, %v726_v56  ;;  %v475_v12 = vmul.f32 %v1394_v0, %v1106_v3  ;;  %v476_v13 = vmul.f32 %v1394_v0, %v1107_v4  ;;  %v477_v14 = vmul.f32 %v1394_v0, %v1110_v6  ;;  %v478_v15 = vmul.f32 %v1394_v0, %v1111_v7  ;;  %v1302_v4 = vld [vmem:[%s1389_s17 + $0xf8] sm:$0xff]  }
  0x3b   : > { %856 = vst.msk [vmem:[%s1421_s25 + $0x120] sm:$0xff] %vm819_vm0, %v727_v58  ;;  %v603_v16 = vadd.f32 %v1402_v5, %v471_v8  ;;  %v604_v17 = vadd.f32 %v1402_v5, %v472_v9  ;;  %v605_v18 = vadd.f32 %v1402_v5, %v473_v10  ;;  %v606_v19 = vadd.f32 %v1402_v5, %v474_v11 }
  0x3c   : > { %857 = vst.msk [vmem:[%s1421_s25 + $0x128] sm:$0xff] %vm819_vm0, %v728_v59  ;;  %v607_v20 = vadd.f32 %v1402_v5, %v475_v12  ;;  %v608_v21 = vadd.f32 %v1402_v5, %v476_v13  ;;  %v609_v22 = vadd.f32 %v1402_v5, %v477_v14  ;;  %v610_v23 = vadd.f32 %v1402_v5, %v478_v15 }
  0x3d   : > { %858 = vst.msk [vmem:[%s1421_s25 + $0x130] sm:$0xff] %vm819_vm0, %v729_v60  ;;  %v731_v27 = vmax.f32 %v603_v16, 0.0  ;;  %v732_v28 = vmax.f32 %v604_v17, 0.0  ;;  %v733_v29 = vmax.f32 %v605_v18, 0.0  ;;  %v734_v30 = vmax.f32 %v606_v19, 0.0  ;;  %v1299_v60 = vld [vmem:[%s1389_s17 + $0xe0] sm:$0xff]  }
  0x3e   : > { %859 = vst.msk [vmem:[%s1421_s25 + $0x138] sm:$0xff] %vm819_vm0, %v730_v61  ;;  %v735_v32 = vmax.f32 %v607_v20, 0.0  ;;  %v736_v33 = vmax.f32 %v608_v21, 0.0  ;;  %v737_v34 = vmax.f32 %v609_v22, 0.0  ;;  %v738_v35 = vmax.f32 %v610_v23, 0.0  ;;  %v1300_v61 = vld [vmem:[%s1389_s17 + $0xe8] sm:$0xff]  }
  0x3f   : > { %860 = vst.msk [vmem:[%s1421_s25 + $0x140] sm:$0xff] %vm819_vm0, %v731_v27  ;;  %v1114_v36 = vunpack.c.l.bf16 %v1295_v24  ;;  %v1115_v37 = vunpack.c.h.bf16 %v1295_v24  ;;  %v1118_v38 = vunpack.c.l.bf16 %v1296_v25  ;;  %v1119_v39 = vunpack.c.h.bf16 %v1296_v25 }
  0x40   : > { %861 = vst.msk [vmem:[%s1421_s25 + $0x148] sm:$0xff] %vm819_vm0, %v732_v28  ;;  %v1122_v40 = vunpack.c.l.bf16 %v1297_v26  ;;  %v1123_v41 = vunpack.c.h.bf16 %v1297_v26  ;;  %v1126_v42 = vunpack.c.l.bf16 %v1298_v31  ;;  %v1127_v43 = vunpack.c.h.bf16 %v1298_v31 }
  0x41   : > { %862 = vst.msk [vmem:[%s1421_s25 + $0x150] sm:$0xff] %vm819_vm0, %v733_v29  ;;  %v479_v44 = vmul.f32 %v1394_v0, %v1114_v36  ;;  %v480_v45 = vmul.f32 %v1394_v0, %v1115_v37  ;;  %v481_v46 = vmul.f32 %v1394_v0, %v1118_v38  ;;  %v482_v47 = vmul.f32 %v1394_v0, %v1119_v39  ;;  %v1305_v36 = vld [vmem:[%s1389_s17 + $0x110] sm:$0xff]  }
  0x42   : > { %863 = vst.msk [vmem:[%s1421_s25 + $0x158] sm:$0xff] %vm819_vm0, %v734_v30  ;;  %v483_v48 = vmul.f32 %v1394_v0, %v1122_v40  ;;  %v484_v49 = vmul.f32 %v1394_v0, %v1123_v41  ;;  %v485_v50 = vmul.f32 %v1394_v0, %v1126_v42  ;;  %v486_v51 = vmul.f32 %v1394_v0, %v1127_v43  ;;  %v1306_v41 = vld [vmem:[%s1389_s17 + $0x118] sm:$0xff]  }
  0x43   : > { %864 = vst.msk [vmem:[%s1421_s25 + $0x160] sm:$0xff] %vm819_vm0, %v735_v32  ;;  %v611_v52 = vadd.f32 %v1402_v5, %v479_v44  ;;  %v612_v53 = vadd.f32 %v1402_v5, %v480_v45  ;;  %v613_v54 = vadd.f32 %v1402_v5, %v481_v46  ;;  %v614_v55 = vadd.f32 %v1402_v5, %v482_v47 }
  0x44   : > { %865 = vst.msk [vmem:[%s1421_s25 + $0x168] sm:$0xff] %vm819_vm0, %v736_v33  ;;  %v615_v56 = vadd.f32 %v1402_v5, %v483_v48  ;;  %v616_v57 = vadd.f32 %v1402_v5, %v484_v49  ;;  %v617_v58 = vadd.f32 %v1402_v5, %v485_v50  ;;  %v618_v59 = vadd.f32 %v1402_v5, %v486_v51 }
  0x45   : > { %866 = vst.msk [vmem:[%s1421_s25 + $0x170] sm:$0xff] %vm819_vm0, %v737_v34  ;;  %v739_v63 = vmax.f32 %v611_v52, 0.0  ;;  %v740_v1 = vmax.f32 %v612_v53, 0.0  ;;  %v741_v2 = vmax.f32 %v613_v54, 0.0  ;;  %v742_v3 = vmax.f32 %v614_v55, 0.0  ;;  %v1303_v34 = vld [vmem:[%s1389_s17 + $0x100] sm:$0xff]  }
  0x46   : > { %867 = vst.msk [vmem:[%s1421_s25 + $0x178] sm:$0xff] %vm819_vm0, %v738_v35  ;;  %v743_v6 = vmax.f32 %v615_v56, 0.0  ;;  %v744_v7 = vmax.f32 %v616_v57, 0.0  ;;  %v745_v8 = vmax.f32 %v617_v58, 0.0  ;;  %v746_v9 = vmax.f32 %v618_v59, 0.0  ;;  %v1304_v35 = vld [vmem:[%s1389_s17 + $0x108] sm:$0xff]  }
  0x47   : > { %868 = vst.msk [vmem:[%s1421_s25 + $0x180] sm:$0xff] %vm819_vm0, %v739_v63  ;;  %v1130_v10 = vunpack.c.l.bf16 %v1299_v60  ;;  %v1131_v11 = vunpack.c.h.bf16 %v1299_v60  ;;  %v1134_v12 = vunpack.c.l.bf16 %v1300_v61  ;;  %v1135_v13 = vunpack.c.h.bf16 %v1300_v61 }
  0x48   : > { %869 = vst.msk [vmem:[%s1421_s25 + $0x188] sm:$0xff] %vm819_vm0, %v740_v1  ;;  %v1138_v14 = vunpack.c.l.bf16 %v1301_v62  ;;  %v1139_v15 = vunpack.c.h.bf16 %v1301_v62  ;;  %v1142_v16 = vunpack.c.l.bf16 %v1302_v4  ;;  %v1143_v17 = vunpack.c.h.bf16 %v1302_v4 }
  0x49   : > { %870 = vst.msk [vmem:[%s1421_s25 + $0x190] sm:$0xff] %vm819_vm0, %v741_v2  ;;  %v487_v18 = vmul.f32 %v1394_v0, %v1130_v10  ;;  %v488_v19 = vmul.f32 %v1394_v0, %v1131_v11  ;;  %v489_v20 = vmul.f32 %v1394_v0, %v1134_v12  ;;  %v490_v21 = vmul.f32 %v1394_v0, %v1135_v13  ;;  %v1309_v10 = vld [vmem:[%s1389_s17 + $0x130] sm:$0xff]  }
  0x4a   : > { %871 = vst.msk [vmem:[%s1421_s25 + $0x198] sm:$0xff] %vm819_vm0, %v742_v3  ;;  %v491_v22 = vmul.f32 %v1394_v0, %v1138_v14  ;;  %v492_v23 = vmul.f32 %v1394_v0, %v1139_v15  ;;  %v493_v24 = vmul.f32 %v1394_v0, %v1142_v16  ;;  %v494_v25 = vmul.f32 %v1394_v0, %v1143_v17  ;;  %v1310_v15 = vld [vmem:[%s1389_s17 + $0x138] sm:$0xff]  }
  0x4b   : > { %872 = vst.msk [vmem:[%s1421_s25 + $0x1a0] sm:$0xff] %vm819_vm0, %v743_v6  ;;  %v619_v26 = vadd.f32 %v1402_v5, %v487_v18  ;;  %v620_v27 = vadd.f32 %v1402_v5, %v488_v19  ;;  %v621_v28 = vadd.f32 %v1402_v5, %v489_v20  ;;  %v622_v29 = vadd.f32 %v1402_v5, %v490_v21 }
  0x4c   : > { %873 = vst.msk [vmem:[%s1421_s25 + $0x1a8] sm:$0xff] %vm819_vm0, %v744_v7  ;;  %v623_v30 = vadd.f32 %v1402_v5, %v491_v22  ;;  %v624_v31 = vadd.f32 %v1402_v5, %v492_v23  ;;  %v625_v32 = vadd.f32 %v1402_v5, %v493_v24  ;;  %v626_v33 = vadd.f32 %v1402_v5, %v494_v25 }
  0x4d   : > { %874 = vst.msk [vmem:[%s1421_s25 + $0x1b0] sm:$0xff] %vm819_vm0, %v745_v8  ;;  %v747_v37 = vmax.f32 %v619_v26, 0.0  ;;  %v748_v38 = vmax.f32 %v620_v27, 0.0  ;;  %v749_v39 = vmax.f32 %v621_v28, 0.0  ;;  %v750_v40 = vmax.f32 %v622_v29, 0.0  ;;  %v1307_v8 = vld [vmem:[%s1389_s17 + $0x120] sm:$0xff]  }
  0x4e   : > { %875 = vst.msk [vmem:[%s1421_s25 + $0x1b8] sm:$0xff] %vm819_vm0, %v746_v9  ;;  %v751_v42 = vmax.f32 %v623_v30, 0.0  ;;  %v752_v43 = vmax.f32 %v624_v31, 0.0  ;;  %v753_v44 = vmax.f32 %v625_v32, 0.0  ;;  %v754_v45 = vmax.f32 %v626_v33, 0.0  ;;  %v1308_v9 = vld [vmem:[%s1389_s17 + $0x128] sm:$0xff]  }
  0x4f   : > { %876 = vst.msk [vmem:[%s1421_s25 + $0x1c0] sm:$0xff] %vm819_vm0, %v747_v37  ;;  %v1146_v46 = vunpack.c.l.bf16 %v1303_v34  ;;  %v1147_v47 = vunpack.c.h.bf16 %v1303_v34  ;;  %v1150_v48 = vunpack.c.l.bf16 %v1304_v35  ;;  %v1151_v49 = vunpack.c.h.bf16 %v1304_v35 }
  0x50   : > { %877 = vst.msk [vmem:[%s1421_s25 + $0x1c8] sm:$0xff] %vm819_vm0, %v748_v38  ;;  %v1154_v50 = vunpack.c.l.bf16 %v1305_v36  ;;  %v1155_v51 = vunpack.c.h.bf16 %v1305_v36  ;;  %v1158_v52 = vunpack.c.l.bf16 %v1306_v41  ;;  %v1159_v53 = vunpack.c.h.bf16 %v1306_v41 }
  0x51   : > { %878 = vst.msk [vmem:[%s1421_s25 + $0x1d0] sm:$0xff] %vm819_vm0, %v749_v39  ;;  %v495_v54 = vmul.f32 %v1394_v0, %v1146_v46  ;;  %v496_v55 = vmul.f32 %v1394_v0, %v1147_v47  ;;  %v497_v56 = vmul.f32 %v1394_v0, %v1150_v48  ;;  %v498_v57 = vmul.f32 %v1394_v0, %v1151_v49  ;;  %v1313_v46 = vld [vmem:[%s1389_s17 + $0x150] sm:$0xff]  }
  0x52   : > { %879 = vst.msk [vmem:[%s1421_s25 + $0x1d8] sm:$0xff] %vm819_vm0, %v750_v40  ;;  %v499_v58 = vmul.f32 %v1394_v0, %v1154_v50  ;;  %v500_v59 = vmul.f32 %v1394_v0, %v1155_v51  ;;  %v501_v60 = vmul.f32 %v1394_v0, %v1158_v52  ;;  %v502_v61 = vmul.f32 %v1394_v0, %v1159_v53  ;;  %v1314_v51 = vld [vmem:[%s1389_s17 + $0x158] sm:$0xff]  }
  0x53   : > { %880 = vst.msk [vmem:[%s1421_s25 + $0x1e0] sm:$0xff] %vm819_vm0, %v751_v42  ;;  %v627_v62 = vadd.f32 %v1402_v5, %v495_v54  ;;  %v628_v63 = vadd.f32 %v1402_v5, %v496_v55  ;;  %v629_v1 = vadd.f32 %v1402_v5, %v497_v56  ;;  %v630_v2 = vadd.f32 %v1402_v5, %v498_v57 }
  0x54   : > { %881 = vst.msk [vmem:[%s1421_s25 + $0x1e8] sm:$0xff] %vm819_vm0, %v752_v43  ;;  %v631_v3 = vadd.f32 %v1402_v5, %v499_v58  ;;  %v632_v4 = vadd.f32 %v1402_v5, %v500_v59  ;;  %v633_v6 = vadd.f32 %v1402_v5, %v501_v60  ;;  %v634_v7 = vadd.f32 %v1402_v5, %v502_v61 }
  0x55   : > { %882 = vst.msk [vmem:[%s1421_s25 + $0x1f0] sm:$0xff] %vm819_vm0, %v753_v44  ;;  %v755_v11 = vmax.f32 %v627_v62, 0.0  ;;  %v756_v12 = vmax.f32 %v628_v63, 0.0  ;;  %v757_v13 = vmax.f32 %v629_v1, 0.0  ;;  %v758_v14 = vmax.f32 %v630_v2, 0.0  ;;  %v1311_v44 = vld [vmem:[%s1389_s17 + $0x140] sm:$0xff]  }
  0x56   : > { %883 = vst.msk [vmem:[%s1421_s25 + $0x1f8] sm:$0xff] %vm819_vm0, %v754_v45  ;;  %v759_v16 = vmax.f32 %v631_v3, 0.0  ;;  %v760_v17 = vmax.f32 %v632_v4, 0.0  ;;  %v761_v18 = vmax.f32 %v633_v6, 0.0  ;;  %v762_v19 = vmax.f32 %v634_v7, 0.0  ;;  %v1312_v45 = vld [vmem:[%s1389_s17 + $0x148] sm:$0xff]  }
  0x57   : > { %884 = vst.msk [vmem:[%s1421_s25 + $0x200] sm:$0xff] %vm819_vm0, %v755_v11  ;;  %v1162_v20 = vunpack.c.l.bf16 %v1307_v8  ;;  %v1163_v21 = vunpack.c.h.bf16 %v1307_v8  ;;  %v1166_v22 = vunpack.c.l.bf16 %v1308_v9  ;;  %v1167_v23 = vunpack.c.h.bf16 %v1308_v9 }
  0x58   : > { %885 = vst.msk [vmem:[%s1421_s25 + $0x208] sm:$0xff] %vm819_vm0, %v756_v12  ;;  %v1170_v24 = vunpack.c.l.bf16 %v1309_v10  ;;  %v1171_v25 = vunpack.c.h.bf16 %v1309_v10  ;;  %v1174_v26 = vunpack.c.l.bf16 %v1310_v15  ;;  %v1175_v27 = vunpack.c.h.bf16 %v1310_v15 }
  0x59   : > { %886 = vst.msk [vmem:[%s1421_s25 + $0x210] sm:$0xff] %vm819_vm0, %v757_v13  ;;  %v503_v28 = vmul.f32 %v1394_v0, %v1162_v20  ;;  %v504_v29 = vmul.f32 %v1394_v0, %v1163_v21  ;;  %v505_v30 = vmul.f32 %v1394_v0, %v1166_v22  ;;  %v506_v31 = vmul.f32 %v1394_v0, %v1167_v23  ;;  %v1317_v20 = vld [vmem:[%s1389_s17 + $0x170] sm:$0xff]  }
  0x5a   : > { %887 = vst.msk [vmem:[%s1421_s25 + $0x218] sm:$0xff] %vm819_vm0, %v758_v14  ;;  %v507_v32 = vmul.f32 %v1394_v0, %v1170_v24  ;;  %v508_v33 = vmul.f32 %v1394_v0, %v1171_v25  ;;  %v509_v34 = vmul.f32 %v1394_v0, %v1174_v26  ;;  %v510_v35 = vmul.f32 %v1394_v0, %v1175_v27  ;;  %v1318_v25 = vld [vmem:[%s1389_s17 + $0x178] sm:$0xff]  }
  0x5b   : > { %888 = vst.msk [vmem:[%s1421_s25 + $0x220] sm:$0xff] %vm819_vm0, %v759_v16  ;;  %v635_v36 = vadd.f32 %v1402_v5, %v503_v28  ;;  %v636_v37 = vadd.f32 %v1402_v5, %v504_v29  ;;  %v637_v38 = vadd.f32 %v1402_v5, %v505_v30  ;;  %v638_v39 = vadd.f32 %v1402_v5, %v506_v31 }
  0x5c   : > { %889 = vst.msk [vmem:[%s1421_s25 + $0x228] sm:$0xff] %vm819_vm0, %v760_v17  ;;  %v639_v40 = vadd.f32 %v1402_v5, %v507_v32  ;;  %v640_v41 = vadd.f32 %v1402_v5, %v508_v33  ;;  %v641_v42 = vadd.f32 %v1402_v5, %v509_v34  ;;  %v642_v43 = vadd.f32 %v1402_v5, %v510_v35 }
  0x5d   : > { %890 = vst.msk [vmem:[%s1421_s25 + $0x230] sm:$0xff] %vm819_vm0, %v761_v18  ;;  %v763_v47 = vmax.f32 %v635_v36, 0.0  ;;  %v764_v48 = vmax.f32 %v636_v37, 0.0  ;;  %v765_v49 = vmax.f32 %v637_v38, 0.0  ;;  %v766_v50 = vmax.f32 %v638_v39, 0.0  ;;  %v1315_v18 = vld [vmem:[%s1389_s17 + $0x160] sm:$0xff]  }
  0x5e   : > { %891 = vst.msk [vmem:[%s1421_s25 + $0x238] sm:$0xff] %vm819_vm0, %v762_v19  ;;  %v767_v52 = vmax.f32 %v639_v40, 0.0  ;;  %v768_v53 = vmax.f32 %v640_v41, 0.0  ;;  %v769_v54 = vmax.f32 %v641_v42, 0.0  ;;  %v770_v55 = vmax.f32 %v642_v43, 0.0  ;;  %v1316_v19 = vld [vmem:[%s1389_s17 + $0x168] sm:$0xff]  }
  0x5f   : > { %892 = vst.msk [vmem:[%s1421_s25 + $0x240] sm:$0xff] %vm819_vm0, %v763_v47  ;;  %v1178_v56 = vunpack.c.l.bf16 %v1311_v44  ;;  %v1179_v57 = vunpack.c.h.bf16 %v1311_v44  ;;  %v1182_v58 = vunpack.c.l.bf16 %v1312_v45  ;;  %v1183_v59 = vunpack.c.h.bf16 %v1312_v45 }
  0x60   : > { %893 = vst.msk [vmem:[%s1421_s25 + $0x248] sm:$0xff] %vm819_vm0, %v764_v48  ;;  %v1186_v60 = vunpack.c.l.bf16 %v1313_v46  ;;  %v1187_v61 = vunpack.c.h.bf16 %v1313_v46  ;;  %v1190_v62 = vunpack.c.l.bf16 %v1314_v51  ;;  %v1191_v63 = vunpack.c.h.bf16 %v1314_v51 }
  0x61   : > { %894 = vst.msk [vmem:[%s1421_s25 + $0x250] sm:$0xff] %vm819_vm0, %v765_v49  ;;  %v511_v1 = vmul.f32 %v1394_v0, %v1178_v56  ;;  %v512_v2 = vmul.f32 %v1394_v0, %v1179_v57  ;;  %v513_v3 = vmul.f32 %v1394_v0, %v1182_v58  ;;  %v514_v4 = vmul.f32 %v1394_v0, %v1183_v59 }
  0x62   : > { %895 = vst.msk [vmem:[%s1421_s25 + $0x258] sm:$0xff] %vm819_vm0, %v766_v50  ;;  %v515_v6 = vmul.f32 %v1394_v0, %v1186_v60  ;;  %v516_v7 = vmul.f32 %v1394_v0, %v1187_v61  ;;  %v517_v8 = vmul.f32 %v1394_v0, %v1190_v62  ;;  %v518_v9 = vmul.f32 %v1394_v0, %v1191_v63  ;;  %v1322_v60 = vld [vmem:[%s1389_s17 + $0x198] sm:$0xff]  }
  0x63   : > { %896 = vst.msk [vmem:[%s1421_s25 + $0x260] sm:$0xff] %vm819_vm0, %v767_v52  ;;  %v643_v10 = vadd.f32 %v1402_v5, %v511_v1  ;;  %v644_v11 = vadd.f32 %v1402_v5, %v512_v2  ;;  %v645_v12 = vadd.f32 %v1402_v5, %v513_v3  ;;  %v646_v13 = vadd.f32 %v1402_v5, %v514_v4 }
  0x64   : > { %897 = vst.msk [vmem:[%s1421_s25 + $0x268] sm:$0xff] %vm819_vm0, %v768_v53  ;;  %v647_v14 = vadd.f32 %v1402_v5, %v515_v6  ;;  %v648_v15 = vadd.f32 %v1402_v5, %v516_v7  ;;  %v649_v16 = vadd.f32 %v1402_v5, %v517_v8  ;;  %v650_v17 = vadd.f32 %v1402_v5, %v518_v9  ;;  %v1319_v53 = vld [vmem:[%s1389_s17 + $0x180] sm:$0xff]  }
  0x65   : > { %898 = vst.msk [vmem:[%s1421_s25 + $0x270] sm:$0xff] %vm819_vm0, %v769_v54  ;;  %v771_v21 = vmax.f32 %v643_v10, 0.0  ;;  %v772_v22 = vmax.f32 %v644_v11, 0.0  ;;  %v773_v23 = vmax.f32 %v645_v12, 0.0  ;;  %v774_v24 = vmax.f32 %v646_v13, 0.0  ;;  %v1320_v54 = vld [vmem:[%s1389_s17 + $0x188] sm:$0xff]  }
  0x66   : > { %899 = vst.msk [vmem:[%s1421_s25 + $0x278] sm:$0xff] %vm819_vm0, %v770_v55  ;;  %v775_v26 = vmax.f32 %v647_v14, 0.0  ;;  %v776_v27 = vmax.f32 %v648_v15, 0.0  ;;  %v777_v28 = vmax.f32 %v649_v16, 0.0  ;;  %v778_v29 = vmax.f32 %v650_v17, 0.0  ;;  %v1321_v55 = vld [vmem:[%s1389_s17 + $0x190] sm:$0xff]  }
  0x67   : > { %900 = vst.msk [vmem:[%s1421_s25 + $0x280] sm:$0xff] %vm819_vm0, %v771_v21  ;;  %v1194_v30 = vunpack.c.l.bf16 %v1315_v18  ;;  %v1195_v31 = vunpack.c.h.bf16 %v1315_v18  ;;  %v1198_v32 = vunpack.c.l.bf16 %v1316_v19  ;;  %v1199_v33 = vunpack.c.h.bf16 %v1316_v19  ;;  %v1836_v10 = vld [vmem:[%s1997_s1] ss:$0 sm:$0xff] }
  0x68   : > { %901 = vst.msk [vmem:[%s1421_s25 + $0x288] sm:$0xff] %vm819_vm0, %v772_v22  ;;  %v1202_v34 = vunpack.c.l.bf16 %v1317_v20  ;;  %v1203_v35 = vunpack.c.h.bf16 %v1317_v20  ;;  %v1206_v36 = vunpack.c.l.bf16 %v1318_v25  ;;  %v1207_v37 = vunpack.c.h.bf16 %v1318_v25  ;;  %v1853_v19 = vld [vmem:[%s1998_s2] ss:$0 sm:$0xff] }
  0x69   : > { %902 = vst.msk [vmem:[%s1421_s25 + $0x290] sm:$0xff] %vm819_vm0, %v773_v23  ;;  %v519_v38 = vmul.f32 %v1394_v0, %v1194_v30  ;;  %v520_v39 = vmul.f32 %v1394_v0, %v1195_v31  ;;  %v521_v40 = vmul.f32 %v1394_v0, %v1198_v32  ;;  %v522_v41 = vmul.f32 %v1394_v0, %v1199_v33  ;;  %v1325_v30 = vld [vmem:[%s1389_s17 + $0x1b0] sm:$0xff]  }
  0x6a   : > { %903 = vst.msk [vmem:[%s1421_s25 + $0x298] sm:$0xff] %vm819_vm0, %v774_v24  ;;  %v523_v42 = vmul.f32 %v1394_v0, %v1202_v34  ;;  %v524_v43 = vmul.f32 %v1394_v0, %v1203_v35  ;;  %v525_v44 = vmul.f32 %v1394_v0, %v1206_v36  ;;  %v526_v45 = vmul.f32 %v1394_v0, %v1207_v37  ;;  %v1326_v35 = vld [vmem:[%s1389_s17 + $0x1b8] sm:$0xff]  }
  0x6b   : > { %904 = vst.msk [vmem:[%s1421_s25 + $0x2a0] sm:$0xff] %vm819_vm0, %v775_v26  ;;  %v651_v46 = vadd.f32 %v1402_v5, %v519_v38  ;;  %v652_v47 = vadd.f32 %v1402_v5, %v520_v39  ;;  %v653_v48 = vadd.f32 %v1402_v5, %v521_v40  ;;  %v654_v49 = vadd.f32 %v1402_v5, %v522_v41 }
  0x6c   : > { %905 = vst.msk [vmem:[%s1421_s25 + $0x2a8] sm:$0xff] %vm819_vm0, %v776_v27  ;;  %v655_v50 = vadd.f32 %v1402_v5, %v523_v42  ;;  %v656_v51 = vadd.f32 %v1402_v5, %v524_v43  ;;  %v657_v0 = vadd.f32 %v1402_v5, %v525_v44  ;;  %v658_v52 = vadd.f32 %v1402_v5, %v526_v45 }
  0x6d   : > { %906 = vst.msk [vmem:[%s1421_s25 + $0x2b0] sm:$0xff] %vm819_vm0, %v777_v28  ;;  %v779_v56 = vmax.f32 %v651_v46, 0.0  ;;  %v780_v57 = vmax.f32 %v652_v47, 0.0  ;;  %v781_v58 = vmax.f32 %v653_v48, 0.0  ;;  %v782_v59 = vmax.f32 %v654_v49, 0.0  ;;  %v1323_v28 = vld [vmem:[%s1389_s17 + $0x1a0] sm:$0xff]  }
  0x6e   : > { %907 = vst.msk [vmem:[%s1421_s25 + $0x2b8] sm:$0xff] %vm819_vm0, %v778_v29  ;;  %v783_v61 = vmax.f32 %v655_v50, 0.0  ;;  %v784_v62 = vmax.f32 %v656_v51, 0.0  ;;  %v785_v63 = vmax.f32 %v657_v0, 0.0  ;;  %v786_v1 = vmax.f32 %v658_v52, 0.0  ;;  %v1324_v29 = vld [vmem:[%s1389_s17 + $0x1a8] sm:$0xff]  }
  0x6f   : > { %908 = vst.msk [vmem:[%s1421_s25 + $0x2c0] sm:$0xff] %vm819_vm0, %v779_v56  ;;  %v1210_v5 = vunpack.c.l.bf16 %v1319_v53  ;;  %v1211_v2 = vunpack.c.h.bf16 %v1319_v53  ;;  %v1214_v3 = vunpack.c.l.bf16 %v1320_v54  ;;  %v1215_v4 = vunpack.c.h.bf16 %v1320_v54 }
  0x70   : > { %909 = vst.msk [vmem:[%s1421_s25 + $0x2c8] sm:$0xff] %vm819_vm0, %v780_v57  ;;  %v1218_v6 = vunpack.c.l.bf16 %v1321_v55  ;;  %v1219_v7 = vunpack.c.h.bf16 %v1321_v55  ;;  %v1222_v8 = vunpack.c.l.bf16 %v1322_v60  ;;  %v1223_v9 = vunpack.c.h.bf16 %v1322_v60 }
  0x71   : > { %910 = vst.msk [vmem:[%s1421_s25 + $0x2d0] sm:$0xff] %vm819_vm0, %v781_v58  ;;  %v527_v11 = vmul.f32 %v1836_v10, %v1210_v5  ;;  %v528_v12 = vmul.f32 %v1836_v10, %v1211_v2  ;;  %v529_v13 = vmul.f32 %v1836_v10, %v1214_v3  ;;  %v530_v14 = vmul.f32 %v1836_v10, %v1215_v4  ;;  %v1329_v5 = vld [vmem:[%s1389_s17 + $0x1d0] sm:$0xff]  }
  0x72   : > { %911 = vst.msk [vmem:[%s1421_s25 + $0x2d8] sm:$0xff] %vm819_vm0, %v782_v59  ;;  %v531_v15 = vmul.f32 %v1836_v10, %v1218_v6  ;;  %v532_v16 = vmul.f32 %v1836_v10, %v1219_v7  ;;  %v533_v17 = vmul.f32 %v1836_v10, %v1222_v8  ;;  %v534_v18 = vmul.f32 %v1836_v10, %v1223_v9  ;;  %v1330_v7 = vld [vmem:[%s1389_s17 + $0x1d8] sm:$0xff]  }
  0x73   : > { %912 = vst.msk [vmem:[%s1421_s25 + $0x2e0] sm:$0xff] %vm819_vm0, %v783_v61  ;;  %v659_v20 = vadd.f32 %v1853_v19, %v527_v11  ;;  %v660_v21 = vadd.f32 %v1853_v19, %v528_v12  ;;  %v661_v22 = vadd.f32 %v1853_v19, %v529_v13  ;;  %v662_v23 = vadd.f32 %v1853_v19, %v530_v14 }
  0x74   : > { %913 = vst.msk [vmem:[%s1421_s25 + $0x2e8] sm:$0xff] %vm819_vm0, %v784_v62  ;;  %v663_v24 = vadd.f32 %v1853_v19, %v531_v15  ;;  %v664_v25 = vadd.f32 %v1853_v19, %v532_v16  ;;  %v665_v26 = vadd.f32 %v1853_v19, %v533_v17  ;;  %v666_v27 = vadd.f32 %v1853_v19, %v534_v18 }
  0x75   : > { %914 = vst.msk [vmem:[%s1421_s25 + $0x2f0] sm:$0xff] %vm819_vm0, %v785_v63  ;;  %v787_v31 = vmax.f32 %v659_v20, 0.0  ;;  %v788_v32 = vmax.f32 %v660_v21, 0.0  ;;  %v789_v33 = vmax.f32 %v661_v22, 0.0  ;;  %v790_v34 = vmax.f32 %v662_v23, 0.0  ;;  %v1327_v63 = vld [vmem:[%s1389_s17 + $0x1c0] sm:$0xff]  }
  0x76   : > { %915 = vst.msk [vmem:[%s1421_s25 + $0x2f8] sm:$0xff] %vm819_vm0, %v786_v1  ;;  %v791_v36 = vmax.f32 %v663_v24, 0.0  ;;  %v792_v37 = vmax.f32 %v664_v25, 0.0  ;;  %v793_v38 = vmax.f32 %v665_v26, 0.0  ;;  %v794_v39 = vmax.f32 %v666_v27, 0.0  ;;  %v1328_v1 = vld [vmem:[%s1389_s17 + $0x1c8] sm:$0xff]  }
  0x77   : > { %916 = vst.msk [vmem:[%s1421_s25 + $0x300] sm:$0xff] %vm819_vm0, %v787_v31  ;;  %v1226_v40 = vunpack.c.l.bf16 %v1323_v28  ;;  %v1227_v41 = vunpack.c.h.bf16 %v1323_v28  ;;  %v1230_v42 = vunpack.c.l.bf16 %v1324_v29  ;;  %v1231_v43 = vunpack.c.h.bf16 %v1324_v29 }
  0x78   : > { %917 = vst.msk [vmem:[%s1421_s25 + $0x308] sm:$0xff] %vm819_vm0, %v788_v32  ;;  %v1234_v44 = vunpack.c.l.bf16 %v1325_v30  ;;  %v1235_v45 = vunpack.c.h.bf16 %v1325_v30  ;;  %v1238_v46 = vunpack.c.l.bf16 %v1326_v35  ;;  %v1239_v47 = vunpack.c.h.bf16 %v1326_v35 }
  0x79   : > { %918 = vst.msk [vmem:[%s1421_s25 + $0x310] sm:$0xff] %vm819_vm0, %v789_v33  ;;  %v535_v48 = vmul.f32 %v1836_v10, %v1226_v40  ;;  %v536_v49 = vmul.f32 %v1836_v10, %v1227_v41  ;;  %v537_v50 = vmul.f32 %v1836_v10, %v1230_v42  ;;  %v538_v51 = vmul.f32 %v1836_v10, %v1231_v43  ;;  %v1333_v40 = vld [vmem:[%s1389_s17 + $0x1f0] sm:$0xff]  }
  0x7a   : > { %919 = vst.msk [vmem:[%s1421_s25 + $0x318] sm:$0xff] %vm819_vm0, %v790_v34  ;;  %v539_v0 = vmul.f32 %v1836_v10, %v1234_v44  ;;  %v540_v52 = vmul.f32 %v1836_v10, %v1235_v45  ;;  %v541_v53 = vmul.f32 %v1836_v10, %v1238_v46  ;;  %v542_v54 = vmul.f32 %v1836_v10, %v1239_v47  ;;  %v1334_v45 = vld [vmem:[%s1389_s17 + $0x1f8] sm:$0xff]  }
  0x7b   : > { %920 = vst.msk [vmem:[%s1421_s25 + $0x320] sm:$0xff] %vm819_vm0, %v791_v36  ;;  %v667_v55 = vadd.f32 %v1853_v19, %v535_v48  ;;  %v668_v56 = vadd.f32 %v1853_v19, %v536_v49  ;;  %v669_v57 = vadd.f32 %v1853_v19, %v537_v50  ;;  %v670_v58 = vadd.f32 %v1853_v19, %v538_v51 }
  0x7c   : > { %921 = vst.msk [vmem:[%s1421_s25 + $0x328] sm:$0xff] %vm819_vm0, %v792_v37  ;;  %v671_v59 = vadd.f32 %v1853_v19, %v539_v0  ;;  %v672_v60 = vadd.f32 %v1853_v19, %v540_v52  ;;  %v673_v61 = vadd.f32 %v1853_v19, %v541_v53  ;;  %v674_v62 = vadd.f32 %v1853_v19, %v542_v54 }
  0x7d   : > { %922 = vst.msk [vmem:[%s1421_s25 + $0x330] sm:$0xff] %vm819_vm0, %v793_v38  ;;  %v795_v2 = vmax.f32 %v667_v55, 0.0  ;;  %v796_v3 = vmax.f32 %v668_v56, 0.0  ;;  %v797_v4 = vmax.f32 %v669_v57, 0.0  ;;  %v798_v6 = vmax.f32 %v670_v58, 0.0  ;;  %v1331_v38 = vld [vmem:[%s1389_s17 + $0x1e0] sm:$0xff]  }
  0x7e   : > { %923 = vst.msk [vmem:[%s1421_s25 + $0x338] sm:$0xff] %vm819_vm0, %v794_v39  ;;  %v799_v8 = vmax.f32 %v671_v59, 0.0  ;;  %v800_v9 = vmax.f32 %v672_v60, 0.0  ;;  %v801_v11 = vmax.f32 %v673_v61, 0.0  ;;  %v802_v12 = vmax.f32 %v674_v62, 0.0  ;;  %v1332_v39 = vld [vmem:[%s1389_s17 + $0x1e8] sm:$0xff]  }
  0x7f   : > { %924 = vst.msk [vmem:[%s1421_s25 + $0x340] sm:$0xff] %vm819_vm0, %v795_v2  ;;  %v1242_v13 = vunpack.c.l.bf16 %v1327_v63  ;;  %v1243_v14 = vunpack.c.h.bf16 %v1327_v63  ;;  %v1246_v15 = vunpack.c.l.bf16 %v1328_v1  ;;  %v1247_v16 = vunpack.c.h.bf16 %v1328_v1 }
  0x80   : > { %925 = vst.msk [vmem:[%s1421_s25 + $0x348] sm:$0xff] %vm819_vm0, %v796_v3  ;;  %v1250_v17 = vunpack.c.l.bf16 %v1329_v5  ;;  %v1251_v18 = vunpack.c.h.bf16 %v1329_v5  ;;  %v1254_v20 = vunpack.c.l.bf16 %v1330_v7  ;;  %v1255_v21 = vunpack.c.h.bf16 %v1330_v7 }
  0x81   : > { %926 = vst.msk [vmem:[%s1421_s25 + $0x350] sm:$0xff] %vm819_vm0, %v797_v4  ;;  %v543_v22 = vmul.f32 %v1836_v10, %v1242_v13  ;;  %v544_v23 = vmul.f32 %v1836_v10, %v1243_v14  ;;  %v545_v24 = vmul.f32 %v1836_v10, %v1246_v15  ;;  %v546_v25 = vmul.f32 %v1836_v10, %v1247_v16 }
  0x82   : > { %927 = vst.msk [vmem:[%s1421_s25 + $0x358] sm:$0xff] %vm819_vm0, %v798_v6  ;;  %v547_v26 = vmul.f32 %v1836_v10, %v1250_v17  ;;  %v548_v27 = vmul.f32 %v1836_v10, %v1251_v18  ;;  %v549_v28 = vmul.f32 %v1836_v10, %v1254_v20  ;;  %v550_v29 = vmul.f32 %v1836_v10, %v1255_v21 }
  0x83   : > { %928 = vst.msk [vmem:[%s1421_s25 + $0x360] sm:$0xff] %vm819_vm0, %v799_v8  ;;  %v675_v30 = vadd.f32 %v1853_v19, %v543_v22  ;;  %v676_v31 = vadd.f32 %v1853_v19, %v544_v23  ;;  %v677_v32 = vadd.f32 %v1853_v19, %v545_v24  ;;  %v678_v33 = vadd.f32 %v1853_v19, %v546_v25 }
  0x84   : > { %929 = vst.msk [vmem:[%s1421_s25 + $0x368] sm:$0xff] %vm819_vm0, %v800_v9  ;;  %v679_v34 = vadd.f32 %v1853_v19, %v547_v26  ;;  %v680_v35 = vadd.f32 %v1853_v19, %v548_v27  ;;  %v681_v36 = vadd.f32 %v1853_v19, %v549_v28  ;;  %v682_v37 = vadd.f32 %v1853_v19, %v550_v29 }
  0x85   : > { %930 = vst.msk [vmem:[%s1421_s25 + $0x370] sm:$0xff] %vm819_vm0, %v801_v11  ;;  %v803_v41 = vmax.f32 %v675_v30, 0.0  ;;  %v804_v42 = vmax.f32 %v676_v31, 0.0  ;;  %v805_v43 = vmax.f32 %v677_v32, 0.0  ;;  %v806_v44 = vmax.f32 %v678_v33, 0.0 }
  0x86   : > { %931 = vst.msk [vmem:[%s1421_s25 + $0x378] sm:$0xff] %vm819_vm0, %v802_v12  ;;  %v807_v46 = vmax.f32 %v679_v34, 0.0  ;;  %v808_v47 = vmax.f32 %v680_v35, 0.0  ;;  %v809_v48 = vmax.f32 %v681_v36, 0.0  ;;  %v810_v49 = vmax.f32 %v682_v37, 0.0 }
  0x87   : > { %932 = vst.msk [vmem:[%s1421_s25 + $0x380] sm:$0xff] %vm819_vm0, %v803_v41  ;;  %v1258_v50 = vunpack.c.l.bf16 %v1331_v38  ;;  %v1259_v51 = vunpack.c.h.bf16 %v1331_v38  ;;  %v1262_v0 = vunpack.c.l.bf16 %v1332_v39  ;;  %v1263_v52 = vunpack.c.h.bf16 %v1332_v39 }
  0x88   : > { %933 = vst.msk [vmem:[%s1421_s25 + $0x388] sm:$0xff] %vm819_vm0, %v804_v42  ;;  %v1266_v53 = vunpack.c.l.bf16 %v1333_v40  ;;  %v1267_v54 = vunpack.c.h.bf16 %v1333_v40  ;;  %v1270_v55 = vunpack.c.l.bf16 %v1334_v45  ;;  %v1271_v56 = vunpack.c.h.bf16 %v1334_v45 }
  0x89   : > { %934 = vst.msk [vmem:[%s1421_s25 + $0x390] sm:$0xff] %vm819_vm0, %v805_v43  ;;  %v551_v57 = vmul.f32 %v1836_v10, %v1258_v50  ;;  %v552_v58 = vmul.f32 %v1836_v10, %v1259_v51  ;;  %v553_v59 = vmul.f32 %v1836_v10, %v1262_v0  ;;  %v554_v60 = vmul.f32 %v1836_v10, %v1263_v52 }
  0x8a   : > { %935 = vst.msk [vmem:[%s1421_s25 + $0x398] sm:$0xff] %vm819_vm0, %v806_v44  ;;  %v555_v61 = vmul.f32 %v1836_v10, %v1266_v53  ;;  %v556_v62 = vmul.f32 %v1836_v10, %v1267_v54  ;;  %v557_v63 = vmul.f32 %v1836_v10, %v1270_v55  ;;  %v558_v1 = vmul.f32 %v1836_v10, %v1271_v56 }
  0x8b   : > { %936 = vst.msk [vmem:[%s1421_s25 + $0x3a0] sm:$0xff] %vm819_vm0, %v807_v46  ;;  %v683_v5 = vadd.f32 %v1853_v19, %v551_v57  ;;  %v684_v2 = vadd.f32 %v1853_v19, %v552_v58  ;;  %v685_v3 = vadd.f32 %v1853_v19, %v553_v59  ;;  %v686_v4 = vadd.f32 %v1853_v19, %v554_v60 }
  0x8c   : > { %937 = vst.msk [vmem:[%s1421_s25 + $0x3a8] sm:$0xff] %vm819_vm0, %v808_v47  ;;  %v687_v6 = vadd.f32 %v1853_v19, %v555_v61  ;;  %v688_v10 = vadd.f32 %v1853_v19, %v556_v62  ;;  %v689_v11 = vadd.f32 %v1853_v19, %v557_v63  ;;  %v690_v13 = vadd.f32 %v1853_v19, %v558_v1 }
  0x8d   : > { %938 = vst.msk [vmem:[%s1421_s25 + $0x3b0] sm:$0xff] %vm819_vm0, %v809_v48  ;;  %v811_v7 = vmax.f32 %v683_v5, 0.0  ;;  %v812_v8 = vmax.f32 %v684_v2, 0.0  ;;  %v813_v9 = vmax.f32 %v685_v3, 0.0  ;;  %v814_v12 = vmax.f32 %v686_v4, 0.0 }
  0x8e   : > { %939 = vst.msk [vmem:[%s1421_s25 + $0x3b8] sm:$0xff] %vm819_vm0, %v810_v49  ;;  %v815_v14 = vmax.f32 %v687_v6, 0.0  ;;  %v816_v15 = vmax.f32 %v688_v10, 0.0  ;;  %v817_v16 = vmax.f32 %v689_v11, 0.0  ;;  %v818_v17 = vmax.f32 %v690_v13, 0.0 }
  0x8f   : > { %940 = vst.msk [vmem:[%s1421_s25 + $0x3c0] sm:$0xff] %vm819_vm0, %v811_v7 }
  0x90   : > { %941 = vst.msk [vmem:[%s1421_s25 + $0x3c8] sm:$0xff] %vm819_vm0, %v812_v8 }
  0x91   : > { %942 = vst.msk [vmem:[%s1421_s25 + $0x3d0] sm:$0xff] %vm819_vm0, %v813_v9 }
  0x92   : > { %943 = vst.msk [vmem:[%s1421_s25 + $0x3d8] sm:$0xff] %vm819_vm0, %v814_v12 }
  0x93   : > { %944 = vst.msk [vmem:[%s1421_s25 + $0x3e0] sm:$0xff] %vm819_vm0, %v815_v14 }
  0x94   : > { %945 = vst.msk [vmem:[%s1421_s25 + $0x3e8] sm:$0xff] %vm819_vm0, %v816_v15 }
  0x95   : > { %946 = vst.msk [vmem:[%s1421_s25 + $0x3f0] sm:$0xff] %vm819_vm0, %v817_v16 }
  0x96   : > { %947 = vst.msk [vmem:[%s1421_s25 + $0x3f8] sm:$0xff] %vm819_vm0, %v818_v17 }
  0x97 PF: > { %s13_s12 = sadd.s32 1, %s1353_s12  }
  0x98   : > { %p10_p4 = scmp.ge.s32.totalorder %s13_s12, 4  }
  0x9a   :  { %12 = sbr.rel (!%p10_p4) target bundleno = 1 (0x1), region = 62 }

// kernel: up_conv_forward.2
= control target key start
LH: loop header
LB: loop body
LE: loop exit
PB: predicated region body
PF: predicated region fallthrough
CT: control target
= control target key end

     0   :  { %s5965_s15 = smov 0   ;;  %s5967_s16 = smov 0   ;;  %s8574_s0 = inlined_call_operand.vmem [shape: bf16[2,1,18,18,4], index: 0, kind: input, shape index: {}]   ;;  %s8575_s1 = inlined_call_operand.vmem [shape: bf16[2,2,16,8], index: 1, kind: input, shape index: {}]   ;;  %s8576_s2 = inlined_call_operand.vmem [shape: bf16[2,1,2,2,256,8], index: 2, kind: output, shape index: {0}]   ;;  %s8577_s3 = inlined_call_operand.vmem [shape: f32[2,1,1,8], index: 3, kind: output, shape index: {1}]   ;;  %s8578_s4 = inlined_call_operand.vmem [shape: f32[2,1,1,8], index: 4, kind: output, shape index: {2}]  }
   0x1   :  { %s5969_s17 = smov 0  }
   0x2 LB: > { %s27_s18 = sadd.s32 1, %s5931_s16  ;;  %p5196_p0 = scmp.ge.s32.totalorder %s5935_s17, 1  ;;  %s5935_s17 = sphi %s5969_s17, %s15_s17   ;;  %s5931_s16 = sphi %s5967_s16, %s8672_s16   ;;  %s5927_s15 = sphi %s5965_s15, %s8671_s15  }
   0x3   : > { %p29_p1 = scmp.ge.s32.totalorder %s27_s18, 2  ;;  %p191_p2 = scmp.lt.s32.totalorder %s5935_s17, 3 }
   0x5   : > { %s8674_s18 = smov (%p29_p1, %s27_s18), 0  ;;  %p192_p3 = pnand %p5196_p0, %p191_p2 }
   0x7   : > { %195 = sbr.rel (%p192_p3) target bundleno = 864 (0x360), region = 28 }
   0xc   : > { %p237_p4 = scmp.lt.s32.totalorder %s5927_s15, 1  ;;  %vm316_vm0 = vsmask.f32 3328  ;;  %vm317_vm1 = vsmask.f32 7440  ;;  %s5937_s23 = smov 4  }
   0xd   : > { %vm6001_vm2 = vmor %vm316_vm0, %vm317_vm1  ;;  %s5938_s24 = smov 8   ;;  %s5939_s25 = smov 12   ;;  %vm2066_vm3 = vcmask 1042432   ;;  %vm2067_vm4 = vcmask 1046532   ;;  %vm1488_vm6 = vcmask 31744   ;;  %vm1537_vm7 = vcmask 64512  }
   0xe   : > { %s8676_s15 = smov (!%p237_p4, %s5927_s15), 1  ;;  %vm6370_vm5 = vmor %vm2066_vm3, %vm2067_vm4  ;;  %vm1570_vm8 = vcmask 97280   ;;  %vm1611_vm9 = vcmask 130048   ;;  %vm1765_vm10 = vcmask 60416   ;;  %vm5027_vm11 = vcmask 57344  }
   0xf   : > { %s5869_s19 = smul.u32 216, %s8676_s15  ;;  %s5816_s8 = sshll.u32 %s8676_s15, 9 }
  0x10   : > { %s6882_s11 = scalar_lea.vmem %s8576_s2, %s5816_s8  ;;  %s260_s14 = scalar_lea.vmem %s8577_s3, %s8676_s15 }
  0x11   : > { %s5989_s22 = scalar_lea.vmem %s8574_s0, %s5869_s19  ;;  %s266_s21 = scalar_lea.vmem %s8578_s4, %s8676_s15 }
  0x12   : > { %v276_v0 = vld [vmem:[%s5989_s22 + $0x30] sm:$0xf]  ;;  %v277_v1 = vld [vmem:[%s5989_s22 + $0x34] sm:$0xf]  ;;  %v304_v2 = vld [vmem:[%s5989_s22 + $0x38] sm:$0x1] }
  0x13   : > { %v416_v3 = vshrl.u32 %v276_v0, 16  ;;  %v419_v4 = vshll.u32 %v276_v0, 16  ;;  %v425_v5 = vshll.u32 %v277_v1, 16  ;;  %v429_v6 = vshrl.u32 %v277_v1, 16  ;;  %v272_v7 = vld [vmem:[%s5989_s22 + $0x18] sm:$0xf] }
  0x14   : > { %v435_v8 = vshll.u32 %v304_v2, 16  ;;  %v273_v9 = vld [vmem:[%s5989_s22 + $0x1c] sm:$0xf]  ;;  %v302_v10 = vld [vmem:[%s5989_s22 + $0x20] sm:$0x1]  ;;  %v368_v11 = vshrl.u32 %v272_v7, 16 }
  0x15   : > { %v418_v12 = vrot.slane %v416_v3, 4  ;;  %v421_v13 = vrot.slane %v419_v4, 5  ;;  %v427_v14 = vrot.slane %v425_v5, 5  ;;  %v431_v15 = vrot.slane %v429_v6, 4  ;;  %v268_v16 = vld [vmem:[%s5989_s22] sm:$0xf] }
  0x16   : > { %v437_v17 = vrot.slane %v435_v8, 5  ;;  %v370_v18 = vrot.slane %v368_v11, 4  ;;  %v371_v19 = vshll.u32 %v272_v7, 16  ;;  %v377_v20 = vshll.u32 %v273_v9, 16  ;;  %v269_v25 = vld [vmem:[%s5989_s22 + $0x4] sm:$0xf] }
  0x17   : > { %v422_v21 = vor.u32 %v421_v13, %v418_v12  ;;  %v432_v22 = vor.u32 %v431_v15, %v427_v14  ;;  %v381_v23 = vshrl.u32 %v273_v9, 16  ;;  %v387_v24 = vshll.u32 %v302_v10, 16  ;;  %v300_v36 = vld [vmem:[%s5989_s22 + $0x8] sm:$0x1]  ;;  %v278_v44 = vld [vmem:[%s5989_s22 + $0x3c] sm:$0xf] }
  0x18   : > { %v373_v27 = vrot.slane %v371_v19, 5  ;;  %v379_v28 = vrot.slane %v377_v20, 5  ;;  %v320_v29 = vshrl.u32 %v268_v16, 16  ;;  %v323_v30 = vshll.u32 %v268_v16, 16  ;;  %v279_v56 = vld [vmem:[%s5989_s22 + $0x40] sm:$0xf] }
  0x19   : > { %v423_v31 = vrot.slane %v422_v21, 4  ;;  %v433_v32 = vrot.slane %v432_v22, 4  ;;  %v383_v33 = vrot.slane %v381_v23, 4  ;;  %v389_v34 = vrot.slane %v387_v24, 5  ;;  %v305_v62 = vld [vmem:[%s5989_s22 + $0x44] sm:$0x1] }
  0x1a   : > { %v374_v35 = vor.u32 %v373_v27, %v370_v18  ;;  %v322_v37 = vrot.slane %v320_v29, 4  ;;  %v325_v38 = vrot.slane %v323_v30, 5  ;;  %v329_v39 = vshll.u32 %v269_v25, 16  ;;  %v274_v63 = vld [vmem:[%s5989_s22 + $0x24] sm:$0xf] }
  0x1b   : > { %v428_v40 = vsel %vm6001_vm2, %v423_v31, %v427_v14  ;;  %v438_v41 = vsel %vm6001_vm2, %v433_v32, %v437_v17  ;;  %v384_v42 = vor.u32 %v383_v33, %v379_v28  ;;  %v333_v43 = vshrl.u32 %v269_v25, 16  ;;  %v275_v8 = vld [vmem:[%s5989_s22 + $0x28] sm:$0xf]  ;;  %v303_v12 = vld [vmem:[%s5989_s22 + $0x2c] sm:$0x1] }
  0x1c   : > { %v1224_v45 = vunpack.c.l.b16 %v428_v40  ;;  %v1225_v46 = vunpack.c.l.b16 %v438_v41  ;;  %v375_v47 = vrot.slane %v374_v35, 4  ;;  %v326_v48 = vor.u32 %v325_v38, %v322_v37  ;;  %v270_v18 = vld [vmem:[%s5989_s22 + $0xc] sm:$0xf]  ;;  %v271_v31 = vld [vmem:[%s5989_s22 + $0x10] sm:$0xf] }
  0x1d   : > { %v385_v49 = vrot.slane %v384_v42, 4  ;;  %v331_v50 = vrot.slane %v329_v39, 5  ;;  %v335_v51 = vrot.slane %v333_v43, 4  ;;  %v339_v52 = vshll.u32 %v300_v36, 16  ;;  %v301_v37 = vld [vmem:[%s5989_s22 + $0x14] sm:$0x1] }
  0x1e   : > { %v6011_v53 = vpack.c.b16 %v1225_v46, %v1224_v45  ;;  %v380_v54 = vsel %vm6001_vm2, %v375_v47, %v379_v28  ;;  %v327_v55 = vrot.slane %v326_v48, 4  ;;  %v440_v57 = vshrl.u32 %v278_v44, 16  ;;  %v284_v42 = vld [vmem:[%s5989_s22 + $0x60] sm:$0xf] }
  0x1f   : > { %v390_v58 = vsel %vm6001_vm2, %v385_v49, %v389_v34  ;;  %v1220_v59 = vunpack.c.l.b16 %v380_v54  ;;  %v336_v60 = vor.u32 %v335_v51, %v331_v50  ;;  %v341_v61 = vrot.slane %v339_v52, 5 }
  0x20   : > { %8603 = vst [vmem:[#allocation2_spill] sm:$0xff] %v6011_v53  ;;  %1272 = vrot.lane.b32.xlu2 %v6011_v53, %s5937_s23  ;;  %v1221_v0 = vunpack.c.l.b16 %v390_v58  ;;  %v332_v1 = vsel %vm6001_vm2, %v327_v55, %v331_v50  ;;  %v442_v2 = vrot.slane %v440_v57, 4  ;;  %v443_v3 = vshll.u32 %v278_v44, 16  ;;  %v285_v55 = vld [vmem:[%s5989_s22 + $0x64] sm:$0xf] }
  0x21   : > { %v337_v4 = vrot.slane %v336_v60, 4  ;;  %v1216_v5 = vunpack.c.l.b16 %v332_v1  ;;  %v449_v6 = vshll.u32 %v279_v56, 16  ;;  %v453_v7 = vshrl.u32 %v279_v56, 16 }
  0x22   : > { %v6025_v9 = vpack.c.b16 %v1221_v0, %v1220_v59  ;;  %v445_v10 = vrot.slane %v443_v3, 5  ;;  %v459_v11 = vshll.u32 %v305_v62, 16  ;;  %v392_v13 = vshrl.u32 %v274_v63, 16  ;;  %v282_v62 = vld [vmem:[%s5989_s22 + $0x54] sm:$0xf] }
  0x23   : > { %v342_v14 = vsel %vm6001_vm2, %v337_v4, %v341_v61  ;;  %v451_v15 = vrot.slane %v449_v6, 5  ;;  %v455_v16 = vrot.slane %v453_v7, 4  ;;  %v395_v17 = vshll.u32 %v274_v63, 16  ;;  %v308_v61 = vld [vmem:[%s5989_s22 + $0x68] sm:$0x1] }
  0x24   : > { %1268 = vrot.lane.b32.xlu1 %v6025_v9, %s5937_s23  ;;  %v1217_v19 = vunpack.c.l.b16 %v342_v14  ;;  %v446_v20 = vor.u32 %v445_v10, %v442_v2  ;;  %v461_v21 = vrot.slane %v459_v11, 5  ;;  %v394_v22 = vrot.slane %v392_v13, 4  ;;  %v283_v11 = vld [vmem:[%s5989_s22 + $0x58] sm:$0xf] }
  0x25   : > { %v456_v23 = vor.u32 %v455_v16, %v451_v15  ;;  %v397_v24 = vrot.slane %v395_v17, 5  ;;  %v401_v25 = vshll.u32 %v275_v8, 16  ;;  %v405_v27 = vshrl.u32 %v275_v8, 16  ;;  %v307_v17 = vld [vmem:[%s5989_s22 + $0x5c] sm:$0x1] }
  0x26   : > { %v6033_v28 = vpack.c.b16 %v1217_v19, %v1216_v5  ;;  %v447_v29 = vrot.slane %v446_v20, 4  ;;  %v411_v30 = vshll.u32 %v303_v12, 16  ;;  %v344_v32 = vshrl.u32 %v270_v18, 16 }
  0x27   : > { %v457_v33 = vrot.slane %v456_v23, 4  ;;  %v398_v34 = vor.u32 %v397_v24, %v394_v22  ;;  %v403_v35 = vrot.slane %v401_v25, 5  ;;  %v407_v36 = vrot.slane %v405_v27, 4  ;;  %v280_v27 = vld [vmem:[%s5989_s22 + $0x48] sm:$0xf] }
  0x28   : > { %1264 = vrot.lane.b32.xlu0 %v6033_v28, %s5937_s23  ;;  %v452_v38 = vsel %vm6001_vm2, %v447_v29, %v451_v15  ;;  %v413_v39 = vrot.slane %v411_v30, 5  ;;  %v346_v40 = vrot.slane %v344_v32, 4  ;;  %v347_v41 = vshll.u32 %v270_v18, 16 }
  0x29   : > { %v462_v43 = vsel %vm6001_vm2, %v457_v33, %v461_v21  ;;  %v1226_v44 = vunpack.c.l.b16 %v452_v38  ;;  %v399_v45 = vrot.slane %v398_v34, 4  ;;  %v408_v46 = vor.u32 %v407_v36, %v403_v35 }
  0x2a   : > { %v1227_v47 = vunpack.c.l.b16 %v462_v43  ;;  %v349_v48 = vrot.slane %v347_v41, 5  ;;  %v353_v49 = vshll.u32 %v271_v31, 16  ;;  %v357_v50 = vshrl.u32 %v271_v31, 16 }
  0x2b   : > { %v404_v51 = vsel %vm6001_vm2, %v399_v45, %v403_v35  ;;  %v409_v52 = vrot.slane %v408_v46, 4  ;;  %v363_v54 = vshll.u32 %v301_v37, 16  ;;  %v512_v56 = vshrl.u32 %v284_v42, 16  ;;  %v306_v45 = vld [vmem:[%s5989_s22 + $0x50] sm:$0x1] }
  0x2c   : > { %v6047_v57 = vpack.c.b16 %v1227_v47, %v1226_v44  ;;  %v1222_v58 = vunpack.c.l.b16 %v404_v51  ;;  %v350_v59 = vor.u32 %v349_v48, %v346_v40  ;;  %v355_v60 = vrot.slane %v353_v49, 5  ;;  %v281_v40 = vld [vmem:[%s5989_s22 + $0x4c] sm:$0xf]  ;;  %v290_v47 = vld [vmem:[%s5989_s22 + $0x84] sm:$0xf] }
  0x2d   : > { %v414_v63 = vsel %vm6001_vm2, %v409_v52, %v413_v39  ;;  %v359_v0 = vrot.slane %v357_v50, 4  ;;  %v365_v1 = vrot.slane %v363_v54, 5  ;;  %v514_v2 = vrot.slane %v512_v56, 4 }
  0x2e   : > { %8604 = vst [vmem:[#allocation3_spill] sm:$0xff] %v6047_v57  ;;  %1274 = vrot.lane.b32.xlu2 %v6047_v57, %s5937_s23  ;;  %v1223_v3 = vunpack.c.l.b16 %v414_v63  ;;  %v351_v4 = vrot.slane %v350_v59, 4  ;;  %v515_v5 = vshll.u32 %v284_v42, 16  ;;  %v521_v6 = vshll.u32 %v285_v55, 16 }
  0x2f   : > { %v360_v7 = vor.u32 %v359_v0, %v355_v60  ;;  %v525_v8 = vshrl.u32 %v285_v55, 16  ;;  %v531_v10 = vshll.u32 %v308_v61, 16  ;;  %v488_v12 = vshrl.u32 %v282_v62, 16 }
  0x30   : > { %v6056_v13 = vpack.c.b16 %v1223_v3, %v1222_v58  ;;  %v356_v14 = vsel %vm6001_vm2, %v351_v4, %v355_v60  ;;  %v517_v15 = vrot.slane %v515_v5, 5  ;;  %v523_v16 = vrot.slane %v521_v6, 5  ;;  %v311_v3 = vld [vmem:[%s5989_s22 + $0x8c] sm:$0x1] }
  0x31   : > { %v361_v18 = vrot.slane %v360_v7, 4  ;;  %v1218_v19 = vunpack.c.l.b16 %v356_v14  ;;  %v527_v20 = vrot.slane %v525_v8, 4  ;;  %v533_v21 = vrot.slane %v531_v10, 5  ;;  %v288_v8 = vld [vmem:[%s5989_s22 + $0x78] sm:$0xf] }
  0x32   : > { %1270 = vrot.lane.b32.xlu1 %v6056_v13, %s5937_s23  ;;  %v518_v22 = vor.u32 %v517_v15, %v514_v2  ;;  %v490_v23 = vrot.slane %v488_v12, 4  ;;  %v491_v24 = vshll.u32 %v282_v62, 16  ;;  %v497_v25 = vshll.u32 %v283_v11, 16  ;;  %v291_v2 = vld [vmem:[%s5989_s22 + $0x88] sm:$0xf] }
  0x33   : > { %v366_v29 = vsel %vm6001_vm2, %v361_v18, %v365_v1  ;;  %v528_v30 = vor.u32 %v527_v20, %v523_v16  ;;  %v501_v31 = vshrl.u32 %v283_v11, 16  ;;  %v507_v32 = vshll.u32 %v307_v17, 16 }
  0x34   : > { %v1219_v33 = vunpack.c.l.b16 %v366_v29  ;;  %v519_v34 = vrot.slane %v518_v22, 4  ;;  %v493_v35 = vrot.slane %v491_v24, 5  ;;  %v499_v36 = vrot.slane %v497_v25, 5  ;;  %v289_v22 = vld [vmem:[%s5989_s22 + $0x7c] sm:$0xf] }
  0x35   : > { %v529_v37 = vrot.slane %v528_v30, 4  ;;  %v503_v38 = vrot.slane %v501_v31, 4  ;;  %v509_v39 = vrot.slane %v507_v32, 5  ;;  %v464_v41 = vshrl.u32 %v280_v27, 16  ;;  %v310_v30 = vld [vmem:[%s5989_s22 + $0x80] sm:$0x1] }
  0x36   : > { %v6067_v42 = vpack.c.b16 %v1219_v33, %v1218_v19  ;;  %v524_v43 = vsel %vm6001_vm2, %v519_v34, %v523_v16  ;;  %v494_v44 = vor.u32 %v493_v35, %v490_v23  ;;  %v467_v46 = vshll.u32 %v280_v27, 16  ;;  %v286_v35 = vld [vmem:[%s5989_s22 + $0x6c] sm:$0xf] }
  0x37   : > { %v534_v48 = vsel %vm6001_vm2, %v529_v37, %v533_v21  ;;  %v1232_v49 = vunpack.c.l.b16 %v524_v43  ;;  %v504_v50 = vor.u32 %v503_v38, %v499_v36  ;;  %v466_v51 = vrot.slane %v464_v41, 4 }
  0x38   : > { %1266 = vrot.lane.b32.xlu0 %v6067_v42, %s5937_s23  ;;  %v1233_v52 = vunpack.c.l.b16 %v534_v48  ;;  %v495_v54 = vrot.slane %v494_v44, 4  ;;  %v469_v55 = vrot.slane %v467_v46, 5  ;;  %v473_v56 = vshll.u32 %v281_v40, 16  ;;  %v287_v48 = vld [vmem:[%s5989_s22 + $0x70] sm:$0xf] }
  0x39   : > { %v505_v58 = vrot.slane %v504_v50, 4  ;;  %v477_v59 = vshrl.u32 %v281_v40, 16  ;;  %v483_v60 = vshll.u32 %v306_v45, 16  ;;  %v584_v61 = vshrl.u32 %v290_v47, 16 }
  0x3a   : > { %v6077_v62 = vpack.c.b16 %v1233_v52, %v1232_v49  ;;  %v500_v63 = vsel %vm6001_vm2, %v495_v54, %v499_v36  ;;  %v470_v0 = vor.u32 %v469_v55, %v466_v51  ;;  %v475_v1 = vrot.slane %v473_v56, 5  ;;  %v309_v55 = vld [vmem:[%s5989_s22 + $0x74] sm:$0x1]  ;;  %v296_v56 = vld [vmem:[%s5989_s22 + $0xa8] sm:$0xf] }
  0x3b   : > { %v510_v4 = vsel %vm6001_vm2, %v505_v58, %v509_v39  ;;  %v1230_v5 = vunpack.c.l.b16 %v500_v63  ;;  %v479_v6 = vrot.slane %v477_v59, 4  ;;  %v485_v7 = vrot.slane %v483_v60, 5 }
  0x3c   : > { %8605 = vst [vmem:[#allocation4_spill] sm:$0xff] %v6077_v62  ;;  %1280 = vrot.lane.b32.xlu2 %v6077_v62, %s5937_s23  ;;  %v1231_v10 = vunpack.c.l.b16 %v510_v4  ;;  %v471_v11 = vrot.slane %v470_v0, 4  ;;  %v586_v12 = vrot.slane %v584_v61, 4  ;;  %v587_v14 = vshll.u32 %v290_v47, 16 }
  0x3d   : > { %v480_v15 = vor.u32 %v479_v6, %v475_v1  ;;  %v593_v16 = vshll.u32 %v291_v2, 16  ;;  %v597_v17 = vshrl.u32 %v291_v2, 16  ;;  %v603_v18 = vshll.u32 %v311_v3, 16 }
  0x3e   : > { %v6088_v19 = vpack.c.b16 %v1231_v10, %v1230_v5  ;;  %v476_v20 = vsel %vm6001_vm2, %v471_v11, %v475_v1  ;;  %v589_v21 = vrot.slane %v587_v14, 5  ;;  %v560_v23 = vshrl.u32 %v288_v8, 16  ;;  %v314_v14 = vld [vmem:[%s5989_s22 + $0xb0] sm:$0x1] }
  0x3f   : > { %v481_v24 = vrot.slane %v480_v15, 4  ;;  %v1228_v25 = vunpack.c.l.b16 %v476_v20  ;;  %v595_v27 = vrot.slane %v593_v16, 5  ;;  %v599_v29 = vrot.slane %v597_v17, 4  ;;  %v294_v20 = vld [vmem:[%s5989_s22 + $0x9c] sm:$0xf] }
  0x40   : > { %8606 = vst [vmem:[#allocation5_spill] sm:$0xff] %v6088_v19  ;;  %1278 = vrot.lane.b32.xlu1 %v6088_v19, %s5937_s23  ;;  %v590_v31 = vor.u32 %v589_v21, %v586_v12  ;;  %v605_v32 = vrot.slane %v603_v18, 5  ;;  %v562_v33 = vrot.slane %v560_v23, 4  ;;  %v563_v34 = vshll.u32 %v288_v8, 16  ;;  %v297_v12 = vld [vmem:[%s5989_s22 + $0xac] sm:$0xf] }
  0x41   : > { %v486_v36 = vsel %vm6001_vm2, %v481_v24, %v485_v7  ;;  %v600_v37 = vor.u32 %v599_v29, %v595_v27  ;;  %v569_v38 = vshll.u32 %v289_v22, 16  ;;  %v573_v39 = vshrl.u32 %v289_v22, 16 }
  0x42   : > { %v1229_v40 = vunpack.c.l.b16 %v486_v36  ;;  %v591_v41 = vrot.slane %v590_v31, 4  ;;  %v565_v43 = vrot.slane %v563_v34, 5  ;;  %v579_v44 = vshll.u32 %v310_v30, 16  ;;  %v295_v34 = vld [vmem:[%s5989_s22 + $0xa0] sm:$0xf] }
  0x43   : > { %v601_v45 = vrot.slane %v600_v37, 4  ;;  %v571_v46 = vrot.slane %v569_v38, 5  ;;  %v575_v47 = vrot.slane %v573_v39, 4  ;;  %v536_v49 = vshrl.u32 %v286_v35, 16 }
  0x44   : > { %v6100_v50 = vpack.c.b16 %v1229_v40, %v1228_v25  ;;  %v596_v51 = vsel %vm6001_vm2, %v591_v41, %v595_v27  ;;  %v566_v52 = vor.u32 %v565_v43, %v562_v33  ;;  %v581_v54 = vrot.slane %v579_v44, 5  ;;  %v313_v43 = vld [vmem:[%s5989_s22 + $0xa4] sm:$0x1] }
  0x45   : > { %v606_v58 = vsel %vm6001_vm2, %v601_v45, %v605_v32  ;;  %v1238_v59 = vunpack.c.l.b16 %v596_v51  ;;  %v576_v60 = vor.u32 %v575_v47, %v571_v46  ;;  %v538_v61 = vrot.slane %v536_v49, 4 }
  0x46   : > { %8607 = vst [vmem:[#allocation6_spill] sm:$0xff] %v6100_v50  ;;  %1276 = vrot.lane.b32.xlu0 %v6100_v50, %s5937_s23  ;;  %v1239_v63 = vunpack.c.l.b16 %v606_v58  ;;  %v567_v0 = vrot.slane %v566_v52, 4  ;;  %v539_v1 = vshll.u32 %v286_v35, 16  ;;  %v545_v2 = vshll.u32 %v287_v48, 16 }
  0x47   : > { %v577_v3 = vrot.slane %v576_v60, 4  ;;  %v549_v4 = vshrl.u32 %v287_v48, 16  ;;  %v555_v5 = vshll.u32 %v309_v55, 16  ;;  %v656_v6 = vshrl.u32 %v296_v56, 16 }
  0x48   : > { %v6110_v7 = vpack.c.b16 %v1239_v63, %v1238_v59  ;;  %v572_v8 = vsel %vm6001_vm2, %v567_v0, %v571_v46  ;;  %v541_v10 = vrot.slane %v539_v1, 5  ;;  %v547_v11 = vrot.slane %v545_v2, 5  ;;  %v292_v46 = vld [vmem:[%s5989_s22 + $0x90] sm:$0xf] }
  0x49   : > { %v582_v15 = vsel %vm6001_vm2, %v577_v3, %v581_v54  ;;  %v1236_v16 = vunpack.c.l.b16 %v572_v8  ;;  %v551_v17 = vrot.slane %v549_v4, 4  ;;  %v557_v18 = vrot.slane %v555_v5, 5  ;;  %v312_v4 = vld [vmem:[%s5989_s22 + $0x98] sm:$0x1]  ;;  %v298_v5 = vld [vmem:[%s5989_s22 + $0xb4] sm:$0xf] }
  0x4a   : > { %8608 = vst [vmem:[#allocation7_spill] sm:$0xff] %v6110_v7  ;;  %1286 = vrot.lane.b32.xlu2 %v6110_v7, %s5937_s23  ;;  %v1237_v21 = vunpack.c.l.b16 %v582_v15  ;;  %v542_v22 = vor.u32 %v541_v10, %v538_v61  ;;  %v658_v23 = vrot.slane %v656_v6, 4  ;;  %v659_v24 = vshll.u32 %v296_v56, 16  ;;  %v293_v61 = vld [vmem:[%s5989_s22 + $0x94] sm:$0xf] }
  0x4b   : > { %v552_v25 = vor.u32 %v551_v17, %v547_v11  ;;  %v665_v27 = vshll.u32 %v297_v12, 16  ;;  %v669_v29 = vshrl.u32 %v297_v12, 16  ;;  %v675_v30 = vshll.u32 %v314_v14, 16 }
  0x4c   : > { %v6121_v31 = vpack.c.b16 %v1237_v21, %v1236_v16  ;;  %v543_v32 = vrot.slane %v542_v22, 4  ;;  %v661_v33 = vrot.slane %v659_v24, 5  ;;  %v632_v35 = vshrl.u32 %v294_v20, 16 }
  0x4d   : > { %v553_v36 = vrot.slane %v552_v25, 4  ;;  %v667_v37 = vrot.slane %v665_v27, 5  ;;  %v671_v38 = vrot.slane %v669_v29, 4  ;;  %v677_v39 = vrot.slane %v675_v30, 5  ;;  %v299_v27 = vld [vmem:[%s5989_s22 + $0xb8] sm:$0xf] }
  0x4e   : > { %8609 = vst [vmem:[#allocation8_spill] sm:$0xff] %v6121_v31  ;;  %1284 = vrot.lane.b32.xlu1 %v6121_v31, %s5937_s23  ;;  %v548_v40 = vsel %vm6001_vm2, %v543_v32, %v547_v11  ;;  %v662_v41 = vor.u32 %v661_v33, %v658_v23  ;;  %v634_v44 = vrot.slane %v632_v35, 4  ;;  %v635_v45 = vshll.u32 %v294_v20, 16  ;;  %v5564_v31 = vld [vmem:[%s5989_s22 + $0x38] sm:$0x1] }
  0x4f   : > { %v558_v47 = vsel %vm6001_vm2, %v553_v36, %v557_v18  ;;  %v1234_v48 = vunpack.c.l.b16 %v548_v40  ;;  %v672_v49 = vor.u32 %v671_v38, %v667_v37  ;;  %v641_v51 = vshll.u32 %v295_v34, 16 }
  0x50   : > { %v1235_v52 = vunpack.c.l.b16 %v558_v47  ;;  %v663_v54 = vrot.slane %v662_v41, 4  ;;  %v637_v55 = vrot.slane %v635_v45, 5  ;;  %v645_v56 = vshrl.u32 %v295_v34, 16  ;;  %v315_v34 = vld [vmem:[%s5989_s22 + $0xbc] sm:$0x1] }
  0x51   : > { %v673_v58 = vrot.slane %v672_v49, 4  ;;  %v643_v59 = vrot.slane %v641_v51, 5  ;;  %v651_v60 = vshll.u32 %v313_v43, 16  ;;  %v608_v63 = vshrl.u32 %v292_v46, 16 }
  0x52   : > { %v6133_v0 = vpack.c.b16 %v1235_v52, %v1234_v48  ;;  %v668_v1 = vsel %vm6001_vm2, %v663_v54, %v667_v37  ;;  %v638_v2 = vor.u32 %v637_v55, %v634_v44  ;;  %v647_v3 = vrot.slane %v645_v56, 4  ;;  %v5834_v54 = vld [vmem:[%s5989_s22 + $0x18] sm:$0xff] }
  0x53   : > { %v678_v6 = vsel %vm6001_vm2, %v673_v58, %v677_v39  ;;  %v1244_v8 = vunpack.c.l.b16 %v668_v1  ;;  %v653_v10 = vrot.slane %v651_v60, 5  ;;  %v610_v11 = vrot.slane %v608_v63, 4 }
  0x54   : > { %8610 = vst [vmem:[#allocation9_spill] sm:$0xff] %v6133_v0  ;;  %1282 = vrot.lane.b32.xlu0 %v6133_v0, %s5937_s23  ;;  %v1245_v12 = vunpack.c.l.b16 %v678_v6  ;;  %v639_v14 = vrot.slane %v638_v2, 4  ;;  %v648_v15 = vor.u32 %v647_v3, %v643_v59  ;;  %v611_v16 = vshll.u32 %v292_v46, 16  ;;  %v5699_v0 = vld [vmem:[%s5989_s22 + $0x24] sm:$0xe] }
  0x55   : > { %v617_v17 = vshll.u32 %v293_v61, 16  ;;  %v621_v18 = vshrl.u32 %v293_v61, 16  ;;  %v627_v20 = vshll.u32 %v312_v4, 16  ;;  %v680_v21 = vshrl.u32 %v298_v5, 16  ;;  %v5833_v4 = vld [vmem:[%s5989_s22 + $0xc] sm:$0xff] }
  0x56   : > { %v6143_v22 = vpack.c.b16 %v1245_v12, %v1244_v8  ;;  %v644_v23 = vsel %vm6001_vm2, %v639_v14, %v643_v59  ;;  %v649_v24 = vrot.slane %v648_v15, 4  ;;  %v613_v25 = vrot.slane %v611_v16, 5  ;;  %v5201_v12 = vld [vmem:[%s5989_s22 + $0x10] sm:$0xf] }
  0x57   : > { %v1242_v29 = vunpack.c.l.b16 %v644_v23  ;;  %v619_v30 = vrot.slane %v617_v17, 5  ;;  %v623_v32 = vrot.slane %v621_v18, 4  ;;  %v629_v33 = vrot.slane %v627_v20, 5 }
  0x58   : > { %8611 = vst [vmem:[#allocation10_spill] sm:$0xff] %v6143_v22  ;;  %1292 = vrot.lane.b32.xlu2 %v6143_v22, %s5937_s23  ;;  %v654_v35 = vsel %vm6001_vm2, %v649_v24, %v653_v10  ;;  %v614_v36 = vor.u32 %v613_v25, %v610_v11  ;;  %v682_v37 = vrot.slane %v680_v21, 4  ;;  %v683_v38 = vshll.u32 %v298_v5, 16  ;;  %v5837_v10 = vld [vmem:[%s5989_s22 + $0x3c] sm:$0xff]  ;;  %v5200_v11 = vld [vmem:[%s5989_s22 + $0xc] sm:$0xf] }
  0x59   : > { %v1243_v39 = vunpack.c.l.b16 %v654_v35  ;;  %v624_v40 = vor.u32 %v623_v32, %v619_v30  ;;  %v689_v41 = vshll.u32 %v299_v27, 16  ;;  %v693_v43 = vshrl.u32 %v299_v27, 16  ;;  %v5232_v25 = vld [vmem:[%s5989_s22 + $0x14] sm:$0x1] }
  0x5a   : > { %v615_v44 = vrot.slane %v614_v36, 4  ;;  %v685_v45 = vrot.slane %v683_v38, 5  ;;  %v699_v46 = vshll.u32 %v315_v34, 16  ;;  %v753_v14 = vshrl.u32 %v5200_v11, 16  ;;  %v5836_v27 = vld [vmem:[%s5989_s22 + $0x30] sm:$0xff] }
  0x5b   : > { %v6153_v47 = vpack.c.b16 %v1243_v39, %v1242_v29  ;;  %v625_v48 = vrot.slane %v624_v40, 4  ;;  %v691_v49 = vrot.slane %v689_v41, 5  ;;  %v695_v51 = vrot.slane %v693_v43, 4  ;;  %v5207_v38 = vld [vmem:[%s5989_s22 + $0x34] sm:$0xf]  ;;  %v5835_v43 = vld [vmem:[%s5989_s22 + $0x24] sm:$0xff] }
  0x5c   : > { %v620_v52 = vsel %vm6001_vm2, %v615_v44, %v619_v30  ;;  %v686_v55 = vor.u32 %v685_v45, %v682_v37  ;;  %v701_v60 = vrot.slane %v699_v46, 5  ;;  %v756_v15 = vshll.u32 %v5200_v11, 16  ;;  %v5206_v37 = vld [vmem:[%s5989_s22 + $0x30] sm:$0xf]  ;;  %v5204_v39 = vld [vmem:[%s5989_s22 + $0x24] sm:$0xf] }
  0x5d   : > { %8612 = vst [vmem:[#allocation11_spill] sm:$0xff] %v6153_v47  ;;  %1290 = vrot.lane.b32.xlu1 %v6153_v47, %s5937_s23  ;;  %v630_v56 = vsel %vm6001_vm2, %v625_v48, %v629_v33  ;;  %v1240_v58 = vunpack.c.l.b16 %v620_v52  ;;  %v696_v59 = vor.u32 %v695_v51, %v691_v49  ;;  %v762_v16 = vshll.u32 %v5201_v12, 16  ;;  %v5840_v33 = vld [vmem:[%s5989_s22 + $0x60] sm:$0xff]  ;;  %v5205_v46 = vld [vmem:[%s5989_s22 + $0x28] sm:$0xf] }
  0x5e   : > { %v1241_v61 = vunpack.c.l.b16 %v630_v56  ;;  %v687_v63 = vrot.slane %v686_v55, 4  ;;  %v766_v17 = vshrl.u32 %v5201_v12, 16  ;;  %v755_v20 = vrot.slane %v753_v14, 4 }
  0x5f   : > { %v697_v1 = vrot.slane %v696_v59, 4  ;;  %v758_v21 = vrot.slane %v756_v15, 5  ;;  %v764_v23 = vrot.slane %v762_v16, 5  ;;  %v772_v32 = vshll.u32 %v5232_v25, 16  ;;  %v5203_v15 = vld [vmem:[%s5989_s22 + $0x1c] sm:$0xf] }
  0x60   : > { %v6162_v2 = vpack.c.b16 %v1241_v61, %v1240_v58  ;;  %1378 = vrot.lane.b32.xlu2 %v5834_v54, %s5938_s24  ;;  %v692_v3 = vsel %vm6001_vm2, %v687_v63, %v691_v49  ;;  %v768_v24 = vrot.slane %v766_v17, 4  ;;  %v825_v40 = vshrl.u32 %v5206_v37, 16  ;;  %v5202_v54 = vld [vmem:[%s5989_s22 + $0x18] sm:$0xf]  ;;  %v5234_v61 = vld [vmem:[%s5989_s22 + $0x2c] sm:$0x1] }
  0x61   : > { %v702_v5 = vsel %vm6001_vm2, %v697_v1, %v701_v60  ;;  %v1246_v6 = vunpack.c.l.b16 %v692_v3  ;;  %v759_v29 = vor.u32 %v758_v21, %v755_v20  ;;  %v774_v36 = vrot.slane %v772_v32, 5  ;;  %v5235_v58 = vld [vmem:[%s5989_s22 + $0x38] sm:$0x1]  ;;  %v5843_v17 = vld [vmem:[%s5989_s22 + $0x84] sm:$0xff] }
  0x62   : > { %8613 = vst [vmem:[#allocation12_spill] sm:$0xff] %v6162_v2  ;;  %1288 = vrot.lane.b32.xlu0 %v6162_v2, %s5937_s23  ;;  %v1247_v8 = vunpack.c.l.b16 %v702_v5  ;;  %v769_v30 = vor.u32 %v768_v24, %v764_v23  ;;  %v828_v41 = vshll.u32 %v5206_v37, 16  ;;  %v834_v44 = vshll.u32 %v5207_v38, 16  ;;  %v5839_v63 = vld [vmem:[%s5989_s22 + $0x54] sm:$0xff] }
  0x63   : > { %v760_v34 = vrot.slane %v759_v29, 4  ;;  %v838_v45 = vshrl.u32 %v5207_v38, 16  ;;  %v827_v48 = vrot.slane %v825_v40, 4  ;;  %v801_v51 = vshrl.u32 %v5204_v39, 16  ;;  %v5233_v29 = vld [vmem:[%s5989_s22 + $0x20] sm:$0x1] }
  0x64   : > { %v6176_v18 = vpack.c.b16 %v1247_v8, %v1246_v6  ;;  %v770_v35 = vrot.slane %v769_v30, 4  ;;  %v830_v49 = vrot.slane %v828_v41, 5  ;;  %v804_v52 = vshll.u32 %v5204_v39, 16  ;;  %v5212_v38 = vld [vmem:[%s5989_s22 + $0x54] sm:$0xf] }
  0x65   : > { %1376 = vrot.lane.b32.xlu1 %v5833_v4, %s5938_s24  ;;  %v765_v55 = vsel %vm6001_vm2, %v760_v34, %v764_v23  ;;  %v836_v59 = vrot.slane %v834_v44, 5  ;;  %v840_v60 = vrot.slane %v838_v45, 4  ;;  %v844_v3 = vshll.u32 %v5235_v58, 16 }
  0x66   : > { %8614 = vst [vmem:[#allocation13_spill] sm:$0xff] %v6176_v18  ;;  %v775_v56 = vsel %vm6001_vm2, %v770_v35, %v774_v36  ;;  %v831_v1 = vor.u32 %v830_v49, %v827_v48  ;;  %v803_v4 = vrot.slane %v801_v51, 4  ;;  %v806_v5 = vrot.slane %v804_v52, 5  ;;  %v5842_v48 = vld [vmem:[%s5989_s22 + $0x78] sm:$0xff] }
  0x67   : > { %v841_v6 = vor.u32 %v840_v60, %v836_v59  ;;  %v810_v8 = vshll.u32 %v5205_v46, 16  ;;  %v820_v11 = vshll.u32 %v5234_v61, 16  ;;  %v777_v16 = vshrl.u32 %v5202_v54, 16  ;;  %v5238_v60 = vld [vmem:[%s5989_s22 + $0x5c] sm:$0x1] }
  0x68   : > { %1384 = vrot.lane.b32.xlu2 %v5837_v10, %s5938_s24  ;;  %v814_v10 = vshrl.u32 %v5205_v46, 16  ;;  %v832_v12 = vrot.slane %v831_v1, 4  ;;  %v807_v14 = vor.u32 %v806_v5, %v803_v4  ;;  %v1408_v20 = vunpack.c.l.b16 %v765_v55  ;;  %v5846_v5 = vld [vmem:[%s5989_s22 + $0xa8] sm:$0xff] }
  0x69   : > { %v1409_v21 = vunpack.c.l.b16 %v775_v56  ;;  %v812_v23 = vrot.slane %v810_v8, 5  ;;  %v842_v25 = vrot.slane %v841_v6, 4  ;;  %v779_v30 = vrot.slane %v777_v16, 4 }
  0x6a   : > { %1294 = vrot.lane.b32.xlu0 %v6176_v18, %s5937_s23  ;;  %v816_v24 = vrot.slane %v814_v10, 4  ;;  %v780_v32 = vshll.u32 %v5202_v54, 16  ;;  %v808_v34 = vrot.slane %v807_v14, 4  ;;  %v822_v36 = vrot.slane %v820_v11, 5  ;;  %v5213_v54 = vld [vmem:[%s5989_s22 + $0x58] sm:$0xf] }
  0x6b   : > { %v786_v37 = vshll.u32 %v5203_v15, 16  ;;  %v837_v39 = vsel %vm6001_vm2, %v832_v12, %v836_v59  ;;  %v790_v41 = vshrl.u32 %v5203_v15, 16  ;;  %v796_v46 = vshll.u32 %v5233_v29, 16  ;;  %v5210_v12 = vld [vmem:[%s5989_s22 + $0x48] sm:$0xf] }
  0x6c   : > { %v817_v35 = vor.u32 %v816_v24, %v812_v23  ;;  %v782_v40 = vrot.slane %v780_v32, 5  ;;  %v897_v55 = vshrl.u32 %v5212_v38, 16  ;;  %v6216_v56 = vunpack.c.l.b16 %v837_v39  ;;  %v5237_v29 = vld [vmem:[%s5989_s22 + $0x50] sm:$0x1] }
  0x6d   : > { %1382 = vrot.lane.b32.xlu1 %v5836_v27, %s5938_s24  ;;  %v846_v27 = vrot.slane %v844_v3, 5  ;;  %v788_v45 = vrot.slane %v786_v37, 5  ;;  %v792_v52 = vrot.slane %v790_v41, 4  ;;  %v813_v58 = vsel %vm6001_vm2, %v808_v34, %v812_v23 }
  0x6e   : > { %v818_v44 = vrot.slane %v817_v35, 4  ;;  %v783_v51 = vor.u32 %v782_v40, %v779_v30  ;;  %v900_v61 = vshll.u32 %v5212_v38, 16  ;;  %v798_v3 = vrot.slane %v796_v46, 5  ;;  %v5845_v35 = vld [vmem:[%s5989_s22 + $0x9c] sm:$0xff] }
  0x6f   : > { %v847_v49 = vsel %vm6001_vm2, %v842_v25, %v846_v27  ;;  %v793_v1 = vor.u32 %v792_v52, %v788_v45  ;;  %v899_v4 = vrot.slane %v897_v55, 4  ;;  %v906_v10 = vshll.u32 %v5213_v54, 16  ;;  %v5208_v40 = vld [vmem:[%s5989_s22 + $0x3c] sm:$0xf] }
  0x70   : > { %1390 = vrot.lane.b32.xlu2 %v5840_v33, %s5938_s24  ;;  %v5838_v33 = vld [vmem:[%s5989_s22 + $0x48] sm:$0xff]  ;;  %v823_v59 = vsel %vm6001_vm2, %v818_v44, %v822_v36  ;;  %v1415_v6 = vunpack.c.l.b16 %v847_v49  ;;  %v902_v8 = vrot.slane %v900_v61, 5  ;;  %v910_v11 = vshrl.u32 %v5213_v54, 16  ;;  %v5236_v61 = vld [vmem:[%s5989_s22 + $0x44] sm:$0x1] }
  0x71   : > { %v1412_v14 = vunpack.c.l.b16 %v813_v58  ;;  %v794_v16 = vrot.slane %v793_v1, 4  ;;  %v1413_v23 = vunpack.c.l.b16 %v823_v59  ;;  %v908_v25 = vrot.slane %v906_v10, 5 }
  0x72   : > { %1380 = vrot.lane.b32.xlu0 %v5835_v43, %s5938_s24  ;;  %v6209_v43 = vpack.c.b16 %v1409_v21, %v1408_v20  ;;  %v5211_v20 = vld [vmem:[%s5989_s22 + $0x4c] sm:$0xf]  ;;  %v903_v24 = vor.u32 %v902_v8, %v899_v4  ;;  %v912_v27 = vrot.slane %v910_v11, 4  ;;  %v876_v34 = vshll.u32 %v5210_v12, 16 }
  0x73   : > { %v5841_v21 = vld [vmem:[%s5989_s22 + $0x6c] sm:$0xff]  ;;  %v799_v30 = vsel %vm6001_vm2, %v794_v16, %v798_v3  ;;  %v882_v39 = vshll.u32 %v5211_v20, 16  ;;  %v892_v46 = vshll.u32 %v5237_v29, 16  ;;  %v849_v1 = vshrl.u32 %v5208_v40, 16 }
  0x74   : > { %v904_v36 = vrot.slane %v903_v24, 4  ;;  %v913_v37 = vor.u32 %v912_v27, %v908_v25  ;;  %v878_v44 = vrot.slane %v876_v34, 5  ;;  %v1411_v49 = vunpack.c.l.b16 %v799_v30  ;;  %v5219_v30 = vld [vmem:[%s5989_s22 + $0x7c] sm:$0xf] }
  0x75   : > { %1388 = vrot.lane.b32.xlu1 %v5839_v63, %s5938_s24  ;;  %v784_v63 = vrot.slane %v783_v51, 4  ;;  %v884_v54 = vrot.slane %v882_v39, 5  ;;  %v852_v3 = vshll.u32 %v5208_v40, 16  ;;  %v851_v16 = vrot.slane %v849_v1, 4  ;;  %v5216_v39 = vld [vmem:[%s5989_s22 + $0x6c] sm:$0xf] }
  0x76   : > { %v909_v51 = vsel %vm6001_vm2, %v904_v36, %v908_v25  ;;  %v914_v52 = vrot.slane %v913_v37, 4  ;;  %v6247_v24 = vpack.c.b16 %v1415_v6, %v6216_v56  ;;  %v6249_v25 = vpack.c.b16 %v1413_v23, %v1412_v14  ;;  %v5241_v36 = vld [vmem:[%s5989_s22 + $0x80] sm:$0x1] }
  0x77   : > { %v789_v15 = vsel %vm6001_vm2, %v784_v63, %v788_v45  ;;  %v886_v45 = vshrl.u32 %v5211_v20, 16  ;;  %v1420_v55 = vunpack.c.l.b16 %v909_v51  ;;  %v988_v51 = vshll.u32 %v5241_v36, 16 }
  0x78   : > { %1396 = vrot.lane.b32.xlu2 %v5843_v17, %s5938_s24  ;;  %v916_v17 = vshll.u32 %v5238_v60, 16  ;;  %v1410_v32 = vunpack.c.l.b16 %v789_v15  ;;  %v894_v60 = vrot.slane %v892_v46, 5  ;;  %v5844_v15 = vld [vmem:[%s5989_s22 + $0x90] sm:$0xff]  ;;  %8615 = vst [vmem:[#allocation14_spill] sm:$0xff] %v6247_v24 }
  0x79   : > { %v888_v59 = vrot.slane %v886_v45, 4  ;;  %v978_v45 = vshll.u32 %v5219_v30, 16 }
  0x7a   : > { %1386 = vrot.lane.b32.xlu0 %v5838_v33, %s5938_s24  ;;  %v873_v33 = vshrl.u32 %v5210_v12, 16  ;;  %v918_v38 = vrot.slane %v916_v17, 5  ;;  %v5218_v12 = vld [vmem:[%s5989_s22 + $0x78] sm:$0xf]  ;;  %v854_v17 = vrot.slane %v852_v3, 5  ;;  %v6264_v40 = vpop.permute.xlu2 %1272 }
  0x7b   : > { %v889_v10 = vor.u32 %v888_v59, %v884_v54  ;;  %v969_v37 = vshrl.u32 %v5218_v12, 16  ;;  %v972_v23 = vshll.u32 %v5218_v12, 16  ;;  %v945_v59 = vshrl.u32 %v5216_v39, 16  ;;  %v5240_v3 = vld [vmem:[%s5989_s22 + $0x74] sm:$0x1] }
  0x7c   : > { %v875_v41 = vrot.slane %v873_v33, 4  ;;  %v919_v63 = vsel %vm6001_vm2, %v914_v52, %v918_v38  ;;  %v6254_v33 = vpack.c.b16 %v1411_v49, %v1410_v32  ;;  %v5848_v38 = vld [vmem:[%s5989_s22 + $0xc0] sm:$0xff]  ;;  %v982_v49 = vshrl.u32 %v5219_v30, 16 }
  0x7d   : > { %1394 = vrot.lane.b32.xlu1 %v5842_v48, %s5938_s24  ;;  %v5209_v48 = vld [vmem:[%s5989_s22 + $0x40] sm:$0xf]  ;;  %v890_v27 = vrot.slane %v889_v10, 4  ;;  %v990_v10 = vrot.slane %v988_v51, 5  ;;  %v948_v12 = vshll.u32 %v5216_v39, 16 }
  0x7e   : > { %v879_v58 = vor.u32 %v878_v44, %v875_v41  ;;  %v858_v4 = vshll.u32 %v5209_v48, 16  ;;  %v862_v11 = vshrl.u32 %v5209_v48, 16  ;;  %v971_v44 = vrot.slane %v969_v37, 4  ;;  %v5215_v30 = vld [vmem:[%s5989_s22 + $0x64] sm:$0xf] }
  0x7f   : > { %v895_v32 = vsel %vm6001_vm2, %v890_v27, %v894_v60  ;;  %v974_v48 = vrot.slane %v972_v23, 5  ;;  %v984_v1 = vrot.slane %v982_v49, 4  ;;  %v950_v27 = vrot.slane %v948_v12, 5 }
  0x80   : > { %1402 = vrot.lane.b32.xlu2 %v5846_v5, %s5938_s24  ;;  %v1421_v5 = vunpack.c.l.b16 %v919_v63  ;;  %v880_v8 = vrot.slane %v879_v58, 4  ;;  %v860_v20 = vrot.slane %v858_v4, 5  ;;  %v864_v29 = vrot.slane %v862_v11, 4  ;;  %v5217_v58 = vld [vmem:[%s5989_s22 + $0x70] sm:$0xf] }
  0x81   : > { %v1419_v60 = vunpack.c.l.b16 %v895_v32  ;;  %v975_v63 = vor.u32 %v974_v48, %v971_v44  ;;  %v5214_v4 = vld [vmem:[%s5989_s22 + $0x60] sm:$0xf]  ;;  %v947_v11 = vrot.slane %v945_v59, 4  ;;  %v930_v48 = vshll.u32 %v5215_v30, 16 }
  0x82   : > { %1392 = vrot.lane.b32.xlu0 %v5841_v21, %s5938_s24  ;;  %v868_v21 = vshll.u32 %v5236_v61, 16  ;;  %v6256_v34 = vpack.c.b16 %v1421_v5, %v1420_v55  ;;  %v885_v56 = vsel %vm6001_vm2, %v880_v8, %v884_v54  ;;  %v865_v6 = vor.u32 %v864_v29, %v860_v20  ;;  %v5847_v5 = vld [vmem:[%s5989_s22 + $0xb4] sm:$0xff] }
  0x83   : > { %v1418_v52 = vunpack.c.l.b16 %v885_v56  ;;  %v980_v55 = vrot.slane %v978_v45, 5  ;;  %v964_v29 = vshll.u32 %v5240_v3, 16  ;;  %v951_v23 = vor.u32 %v950_v27, %v947_v11 }
  0x84   : > { %v870_v14 = vrot.slane %v868_v21, 5  ;;  %v866_v46 = vrot.slane %v865_v6, 4  ;;  %v5239_v6 = vld [vmem:[%s5989_s22 + $0x68] sm:$0x1] }
  0x85   : > { %1400 = vrot.lane.b32.xlu1 %v5845_v35, %s5938_s24  ;;  %v855_v35 = vor.u32 %v854_v17, %v851_v16  ;;  %v985_v16 = vor.u32 %v984_v1, %v980_v55  ;;  %v954_v17 = vshll.u32 %v5217_v58, 16  ;;  %v6280_v36 = vpack.c.b16 %v1419_v60, %v1418_v52 }
  0x86   : > { %v871_v61 = vsel %vm6001_vm2, %v866_v46, %v870_v14  ;;  %v966_v39 = vrot.slane %v964_v29, 5  ;;  %v924_v46 = vshll.u32 %v5214_v4, 16  ;;  %v952_v52 = vrot.slane %v951_v23, 4 }
  0x87   : > { %v856_v41 = vrot.slane %v855_v35, 4  ;;  %v1417_v21 = vunpack.c.l.b16 %v871_v61  ;;  %v921_v35 = vshrl.u32 %v5214_v4, 16  ;;  %v986_v37 = vrot.slane %v985_v16, 4  ;;  %v5222_v16 = vld [vmem:[%s5989_s22 + $0x90] sm:$0xf] }
  0x88   : > { %1456 = vrot.lane.b32.xlu2 %v6209_v43, %s5939_s25  ;;  %v6291_v51 = vpop.permute.xlu2 %1274  ;;  %v926_v59 = vrot.slane %v924_v46, 5  ;;  %v932_v60 = vrot.slane %v930_v48, 5  ;;  %v1017_v23 = vshrl.u32 %v5222_v16, 16  ;;  %v5220_v46 = vld [vmem:[%s5989_s22 + $0x84] sm:$0xf] }
  0x89   : > { %v861_v54 = vsel %vm6001_vm2, %v856_v41, %v860_v20  ;;  %v958_v20 = vshrl.u32 %v5217_v58, 16  ;;  %v923_v32 = vrot.slane %v921_v35, 4  ;;  %v5224_v41 = vld [vmem:[%s5989_s22 + $0x9c] sm:$0xf]  ;;  %v991_v44 = vsel %vm6001_vm2, %v986_v37, %v990_v10 }
  0x8a   : > { %1398 = vrot.lane.b32.xlu0 %v5844_v15, %s5938_s24  ;;  %v1416_v8 = vunpack.c.l.b16 %v861_v54  ;;  %v976_v15 = vrot.slane %v975_v63, 4  ;;  %v934_v54 = vshrl.u32 %v5215_v30, 16  ;;  %v940_v58 = vshll.u32 %v5239_v6, 16 }
  0x8b   : > { %v960_v56 = vrot.slane %v958_v20, 4  ;;  %v1041_v61 = vshrl.u32 %v5224_v41, 16  ;;  %v1427_v1 = vunpack.c.l.b16 %v991_v44  ;;  %v927_v12 = vor.u32 %v926_v59, %v923_v32 }
  0x8c   : > { %v981_v14 = vsel %vm6001_vm2, %v976_v15, %v980_v55  ;;  %v6289_v49 = vpack.c.b16 %v1417_v21, %v1416_v8  ;;  %v936_v4 = vrot.slane %v934_v54, 4  ;;  %v5244_v8 = vld [vmem:[%s5989_s22 + $0xa4] sm:$0x1]  ;;  %v942_v15 = vrot.slane %v940_v58, 5 }
  0x8d   : > { %1406 = vrot.lane.b32.xlu1 %v5848_v38, %s5938_s24  ;;  %v956_v38 = vrot.slane %v954_v17, 5  ;;  %v1426_v63 = vunpack.c.l.b16 %v981_v14  ;;  %v1043_v21 = vrot.slane %v1041_v61, 4  ;;  %v1044_v27 = vshll.u32 %v5224_v41, 16  ;;  %v5223_v14 = vld [vmem:[%s5989_s22 + $0x94] sm:$0xf] }
  0x8e   : > { %8616 = vst [vmem:[#allocation15_spill] sm:$0xff] %v6289_v49  ;;  %v937_v20 = vor.u32 %v936_v4, %v932_v60  ;;  %v928_v29 = vrot.slane %v927_v12, 4  ;;  %v1060_v37 = vshll.u32 %v5244_v8, 16  ;;  %v1019_v59 = vrot.slane %v1017_v23, 4 }
  0x8f   : > { %v961_v45 = vor.u32 %v960_v56, %v956_v38  ;;  %v957_v3 = vsel %vm6001_vm2, %v952_v52, %v956_v38  ;;  %v6306_v38 = vpack.c.b16 %v1427_v1, %v1426_v63  ;;  %v1046_v6 = vrot.slane %v1044_v27, 5 }
  0x90   : > { %1462 = vrot.lane.b32.xlu2 %v6247_v24, %s5939_s25  ;;  %v1424_v11 = vunpack.c.l.b16 %v957_v3  ;;  %v938_v56 = vrot.slane %v937_v20, 4  ;;  %v933_v32 = vsel %vm6001_vm2, %v928_v29, %v932_v60  ;;  %v1062_v58 = vrot.slane %v1060_v37, 5 }
  0x91   : > { %v962_v55 = vrot.slane %v961_v45, 4  ;;  %8617 = vst [vmem:[#allocation16_spill] sm:$0xff] %v6306_v38  ;;  %v5243_v45 = vld [vmem:[%s5989_s22 + $0x98] sm:$0x1]  ;;  %v1422_v52 = vunpack.c.l.b16 %v933_v32  ;;  %v1047_v54 = vor.u32 %v1046_v6, %v1043_v21  ;;  %v1020_v61 = vshll.u32 %v5222_v16, 16 }
  0x92   : > { %1404 = vrot.lane.b32.xlu0 %v5847_v5, %s5938_s24  ;;  %v5225_v5 = vld [vmem:[%s5989_s22 + $0xa0] sm:$0xf]  ;;  %v943_v48 = vsel %vm6001_vm2, %v938_v56, %v942_v15  ;;  %v1026_v63 = vshll.u32 %v5223_v14, 16  ;;  %v1030_v3 = vshrl.u32 %v5223_v14, 16  ;;  %v1036_v4 = vshll.u32 %v5243_v45, 16 }
  0x93   : > { %v967_v10 = vsel %vm6001_vm2, %v962_v55, %v966_v39  ;;  %v1050_v30 = vshll.u32 %v5225_v5, 16  ;;  %v1054_v35 = vshrl.u32 %v5225_v5, 16  ;;  %v1048_v1 = vrot.slane %v1047_v54, 4  ;;  %v5221_v15 = vld [vmem:[%s5989_s22 + $0x88] sm:$0xf] }
  0x94   : > { %v1425_v17 = vunpack.c.l.b16 %v967_v10  ;;  %v993_v5 = vshrl.u32 %v5220_v46, 16  ;;  %v1423_v8 = vunpack.c.l.b16 %v943_v48  ;;  %v1028_v12 = vrot.slane %v1026_v63, 5  ;;  %v5242_v21 = vld [vmem:[%s5989_s22 + $0x8c] sm:$0x1]  ;;  %v5531_v63 = vld [vmem:[%s5989_s22 + $0x1c] sm:$0xf] }
  0x95   : > { %1460 = vrot.lane.b32.xlu1 %v6249_v25, %s5939_s25  ;;  %v1052_v41 = vrot.slane %v1050_v30, 5  ;;  %v1056_v44 = vrot.slane %v1054_v35, 4  ;;  %v1032_v16 = vrot.slane %v1030_v3, 4  ;;  %v1038_v20 = vrot.slane %v1036_v4, 5 }
  0x96   : > { %v6309_v39 = vpack.c.b16 %v1425_v17, %v1424_v11  ;;  %v6319_v60 = vpop.permute.xlu2 %1280  ;;  %v1022_v11 = vrot.slane %v1020_v61, 5  ;;  %v995_v27 = vrot.slane %v993_v5, 4  ;;  %v996_v37 = vshll.u32 %v5220_v46, 16 }
  0x97   : > { %v1057_v55 = vor.u32 %v1056_v44, %v1052_v41  ;;  %v1053_v17 = vsel %vm6001_vm2, %v1048_v1, %v1052_v41  ;;  %v1033_v6 = vor.u32 %v1032_v16, %v1028_v12  ;;  %v1002_v14 = vshll.u32 %v5221_v15, 16  ;;  %v5562_v1 = vld [vmem:[%s5989_s22 + $0x20] sm:$0x1] }
  0x98   : > { %1468 = vrot.lane.b32.xlu2 %v6256_v34, %s5939_s25  ;;  %v1432_v30 = vunpack.c.l.b16 %v1053_v17  ;;  %v1023_v35 = vor.u32 %v1022_v11, %v1019_v59  ;;  %v1006_v23 = vshrl.u32 %v5221_v15, 16  ;;  %v998_v41 = vrot.slane %v996_v37, 5  ;;  %v6344_v17 = vpop.permute.xlu1 %1268 }
  0x99   : > { %v1058_v10 = vrot.slane %v1057_v55, 4  ;;  %v1012_v44 = vshll.u32 %v5242_v21, 16  ;;  %v1034_v48 = vrot.slane %v1033_v6, 4  ;;  %v1004_v54 = vrot.slane %v1002_v14, 5  ;;  %v5530_v55 = vld [vmem:[%s5989_s22 + $0x18] sm:$0xf] }
  0x9a   : > { %1458 = vrot.lane.b32.xlu0 %v6254_v33, %s5939_s25  ;;  %v1024_v32 = vrot.slane %v1023_v35, 4  ;;  %v6336_v46 = vpack.c.b16 %v1423_v8, %v1422_v52  ;;  %v999_v61 = vor.u32 %v998_v41, %v995_v27  ;;  %v3110_v16 = vshrl.u32 %v5530_v55, 16 }
  0x9b   : > { %v1063_v29 = vsel %vm6001_vm2, %v1058_v10, %v1062_v58  ;;  %v1008_v58 = vrot.slane %v1006_v23, 4  ;;  %v1039_v3 = vsel %vm6001_vm2, %v1034_v48, %v1038_v20  ;;  %v1014_v10 = vrot.slane %v1012_v44, 5  ;;  %v1970_v48 = vld [vmem:[%s5989_s22] sm:$0xe] }
  0x9c   : > { %v1433_v56 = vunpack.c.l.b16 %v1063_v29  ;;  %v1029_v59 = vsel %vm6001_vm2, %v1024_v32, %v1028_v12  ;;  %v1431_v11 = vunpack.c.l.b16 %v1039_v3  ;;  %v1000_v15 = vrot.slane %v999_v61, 4  ;;  %v1971_v32 = vld [vmem:[%s5989_s22 + $0x4] sm:$0xf]  ;;  %v5413_v61 = vld [vmem:[%s5989_s22 + $0x10] sm:$0xf] }
  0x9d   : > { %1466 = vrot.lane.b32.xlu1 %v6280_v36, %s5939_s25  ;;  %v1430_v4 = vunpack.c.l.b16 %v1029_v59  ;;  %v1009_v5 = vor.u32 %v1008_v58, %v1004_v54  ;;  %v3113_v21 = vshll.u32 %v5530_v55, 16  ;;  %v3119_v12 = vshll.u32 %v5531_v63, 16  ;;  %v1972_v58 = vld [vmem:[%s5989_s22 + $0x8] sm:$0x1]  ;;  %v6361_v55 = vpop.permute.xlu0 %1264 }
  0x9e   : > { %v6331_v45 = vpack.c.b16 %v1433_v56, %v1432_v30  ;;  %v3123_v20 = vshrl.u32 %v5531_v63, 16  ;;  %v3129_v27 = vshll.u32 %v5562_v1, 16  ;;  %v1005_v30 = vsel %vm6001_vm2, %v1000_v15, %v1004_v54 }
  0x9f   : > { %v1010_v52 = vrot.slane %v1009_v5, 4  ;;  %v6350_v29 = vpack.c.b16 %v1431_v11, %v1430_v4  ;;  %v3112_v35 = vrot.slane %v3110_v16, 4  ;;  %v3115_v37 = vrot.slane %v3113_v21, 5  ;;  %v5412_v21 = vld [vmem:[%s5989_s22 + $0xc] sm:$0xe] }
  0xa0   : > { %1474 = vrot.lane.b32.xlu2 %v6306_v38, %s5939_s25  ;;  %8618 = vst [vmem:[#allocation17_spill] sm:$0xff] %v6331_v45  ;;  %v1428_v6 = vunpack.c.l.b16 %v1005_v30  ;;  %v3121_v14 = vrot.slane %v3119_v12, 5  ;;  %v3125_v23 = vrot.slane %v3123_v20, 4  ;;  %v3131_v59 = vrot.slane %v3129_v27, 5  ;;  %v5414_v27 = vld [vmem:[%s5989_s22 + $0x14] sm:$0x1] }
  0xa1   : > { %8620 = vst [vmem:[#allocation19_spill] sm:$0xff] %v6350_v29  ;;  %v1015_v56 = vsel %vm6001_vm2, %v1010_v52, %v1014_v10  ;;  %v3116_v44 = vor.u32 %v3115_v37, %v3112_v35  ;;  %v2071_v1 = vrot.slane %v1971_v32, 5  ;;  %v5396_v5 = vrot.slane %v1970_v48, 9  ;;  %v5851_v35 = vld [vmem:[%s5989_s22 + $0x18] sm:$0xff]  ;;  %v5532_v32 = vld [vmem:[%s5989_s22 + $0x24] sm:$0xf] }
  0xa2   : > { %1464 = vrot.lane.b32.xlu0 %v6289_v49, %s5939_s25  ;;  %v1429_v41 = vunpack.c.l.b16 %v1015_v56  ;;  %v3126_v54 = vor.u32 %v3125_v23, %v3121_v14  ;;  %v2074_v10 = vrot.slane %v1972_v58, 5  ;;  %v2279_v52 = vrot.slane %v5413_v61, 5  ;;  %v5533_v58 = vld [vmem:[%s5989_s22 + $0x28] sm:$0xf] }
  0xa3   : > { %v3117_v63 = vrot.slane %v3116_v44, 4  ;;  %v2073_v16 = vrot.slane %v2071_v1, 4  ;;  %v5460_v23 = vrot.slane %v5412_v21, 9  ;;  %v2282_v48 = vrot.slane %v5414_v27, 5  ;;  %v5708_v38 = vld [vmem:[%s5989_s22 + $0x48] sm:$0xe] }
  0xa4   : > { %v6348_v8 = vpop.permute.xlu2 %1286  ;;  %v6366_v3 = vpack.c.b16 %v1429_v41, %v1428_v6  ;;  %v3127_v4 = vrot.slane %v3126_v54, 4  ;;  %v6379_v37 = vpop.permute.xlu1 %1270  ;;  %v2072_v6 = vsel %vm6370_vm5, %v5396_v5, %v2071_v1  ;;  %v2281_v44 = vrot.slane %v2279_v52, 4  ;;  %v5697_v54 = vld [vmem:[%s5989_s22 + $0x1c] sm:$0xf] }
  0xa5   : > { %1472 = vrot.lane.b32.xlu1 %v6309_v39, %s5939_s25  ;;  %8619 = vst [vmem:[#allocation18_spill] sm:$0xff] %v6348_v8  ;;  %v3122_v11 = vsel %vm6001_vm2, %v3117_v63, %v3121_v14  ;;  %v2075_v14 = vsel %vm6370_vm5, %v2073_v16, %v2074_v10  ;;  %v3134_v63 = vshrl.u32 %v5532_v32, 16  ;;  %v3137_v1 = vshll.u32 %v5532_v32, 16 }
  0xa6   : > { %8621 = vst [vmem:[#allocation20_spill] sm:$0xff] %v6366_v3  ;;  %v3132_v12 = vsel %vm6001_vm2, %v3127_v4, %v3131_v59  ;;  %v3637_v20 = vunpack.c.l.b16 %v3122_v11  ;;  %v2389_v59 = vunpack.c.l.b16 %v2072_v6  ;;  %v2390_v61 = vunpack.c.l.b16 %v2075_v14 }
  0xa7   : > { %v3638_v30 = vunpack.c.l.b16 %v3132_v12  ;;  %v2280_v5 = vsel %vm6370_vm5, %v5460_v23, %v2279_v52  ;;  %v3143_v10 = vshll.u32 %v5533_v58, 16  ;;  %v3147_v11 = vshrl.u32 %v5533_v58, 16  ;;  %v5563_v12 = vld [vmem:[%s5989_s22 + $0x2c] sm:$0x1] }
  0xa8   : > { %1480 = vrot.lane.b32.xlu2 %v6331_v45, %s5939_s25  ;;  %v2283_v16 = vsel %vm6370_vm5, %v2281_v44, %v2282_v48  ;;  %v4294_v21 = vrot.slane %v5697_v54, 5  ;;  %v3139_v27 = vrot.slane %v3137_v1, 5  ;;  %v2421_v18 = vpack.c.b16 %v2390_v61, %v2389_v59  ;;  %v5701_v45 = vld [vmem:[%s5989_s22 + $0x2c] sm:$0x1] }
  0xa9   : > { %v3669_v41 = vpack.c.b16 %v3638_v30, %v3637_v20  ;;  %v3136_v20 = vrot.slane %v3134_v63, 4  ;;  %v5696_v30 = vld [vmem:[%s5989_s22 + $0x18] sm:$0xe]  ;;  %v3145_v6 = vrot.slane %v3143_v10, 5  ;;  %v3149_v14 = vrot.slane %v3147_v11, 4 }
  0xaa   : > { %1470 = vrot.lane.b32.xlu0 %v6336_v46, %s5939_s25  ;;  %v6394_v4 = vpop.permute.xlu0 %1266  ;;  %v2501_v32 = vunpack.c.l.b16 %v2280_v5  ;;  %v2502_v52 = vunpack.c.l.b16 %v2283_v16  ;;  %v3153_v44 = vshll.u32 %v5563_v12, 16  ;;  %v5744_v54 = vrot.slane %v5696_v30, 9  ;;  %v1974_v11 = vld [vmem:[%s5989_s22 + $0x10] sm:$0xf] }
  0xab   : > { %v3140_v58 = vor.u32 %v3139_v27, %v3136_v20  ;;  %v4296_v63 = vrot.slane %v4294_v21, 4  ;;  %v1973_v27 = vld [vmem:[%s5989_s22 + $0xc] sm:$0xe]  ;;  %v2078_v30 = vrot.slane %v1974_v11, 5 }
  0xac   : > { %v2533_v59 = vpack.c.b16 %v2502_v52, %v2501_v32  ;;  %v3155_v10 = vrot.slane %v3153_v44, 5  ;;  %v4295_v16 = vsel %vm6370_vm5, %v5744_v54, %v4294_v21  ;;  %v5397_v32 = vrot.slane %v1973_v27, 9  ;;  %v5416_v52 = vld [vmem:[%s5989_s22 + $0x1c] sm:$0xf]  ;;  %v5852_v27 = vld [vmem:[%s5989_s22 + $0x24] sm:$0xff] }
  0xad   : > { %1478 = vrot.lane.b32.xlu1 %v6350_v29, %s5939_s25  ;;  %v3141_v61 = vrot.slane %v3140_v58, 4  ;;  %v2286_v11 = vrot.slane %v5416_v52, 5 }
  0xb0   : > { %3685 = vrot.lane.b32.xlu2 %v3669_v41, %s5939_s25 }
  0xb2   : > { %1476 = vrot.lane.b32.xlu0 %v6366_v3, %s5939_s25  ;;  %v6383_v56 = vpop.permute.xlu2 %1292  ;;  %v6407_v48 = vpop.permute.xlu1 %1278 }
  0xb3   : > { %8624 = vst [vmem:[#allocation21_spill] sm:$0xff] %v6383_v56  ;;  %v3150_v56 = vor.u32 %v3149_v14, %v3145_v6  ;;  %v1975_v14 = vld [vmem:[%s5989_s22 + $0x14] sm:$0x1] }
  0xb5   : > { %3605 = vrot.lane.b32.xlu1 %v5851_v35, %s5938_s24  ;;  %v5698_v35 = vld [vmem:[%s5989_s22 + $0x20] sm:$0x1]  ;;  %v3151_v5 = vrot.slane %v3150_v56, 4  ;;  %v3146_v56 = vsel %vm6001_vm2, %v3141_v61, %v3145_v6  ;;  %v2081_v6 = vrot.slane %v1975_v14, 5  ;;  %v5415_v61 = vld [vmem:[%s5989_s22 + $0x18] sm:$0xe] }
  0xb6   : > { %v4297_v1 = vrot.slane %v5698_v35, 5  ;;  %v3639_v44 = vunpack.c.l.b16 %v3146_v56  ;;  %v5461_v47 = vrot.slane %v5415_v61, 9  ;;  %v5849_v56 = vld [vmem:[%s8575_s1] sm:$0xff] }
  0xb7   : > { %v3156_v21 = vsel %vm6001_vm2, %v3151_v5, %v3155_v10  ;;  %v5534_v5 = vld [vmem:[%s5989_s22 + $0x30] sm:$0xf]  ;;  %v5535_v10 = vld [vmem:[%s5989_s22 + $0x34] sm:$0xf]  ;;  %1651 = vmatpush.bf16.msra.mxu0 %v5849_v56 }
  0xb8   : > { %2437 = vrot.lane.b32.xlu2 %v2421_v18, %s5937_s23  ;;  %v4298_v12 = vsel %vm6370_vm5, %v4296_v63, %v4297_v1  ;;  %v6416_v20 = vpop.permute.xlu0 %1276  ;;  %v4468_v18 = vunpack.c.l.b16 %v4295_v16  ;;  %v3640_v54 = vunpack.c.l.b16 %v3156_v21  ;;  %v2080_v63 = vrot.slane %v2078_v30, 4  ;;  %v5417_v16 = vld [vmem:[%s5989_s22 + $0x20] sm:$0x1] }
  0xb9   : > { %v3158_v21 = vshrl.u32 %v5534_v5, 16  ;;  %v3161_v14 = vshll.u32 %v5534_v5, 16  ;;  %v3167_v52 = vshll.u32 %v5535_v10, 16 }
  0xba   : > { %3493 = vrot.lane.b32.xlu0 %v6209_v43, %s5937_s23  ;;  %v6405_v23 = vpop.permute.xlu2 %1378  ;;  %v2082_v22 = vsel %vm6370_vm5, %v2080_v63, %v2081_v6 }
  0xbb   : > { %v2392_v6 = vunpack.c.l.b16 %v2082_v22  ;;  %v3160_v61 = vrot.slane %v3158_v21, 4  ;;  %v3163_v5 = vrot.slane %v3161_v14, 5  ;;  %v3169_v2 = vrot.slane %v3167_v52, 5 }
  0xbc   : > { %v3177_v21 = vshll.u32 %v5564_v31, 16  ;;  %v5745_v14 = vrot.slane %v5699_v0, 9 }
  0xbd   : > { %4436 = vrot.lane.b32.xlu1 %v3669_v41, %s5938_s24  ;;  %v4469_v41 = vunpack.c.l.b16 %v4298_v12  ;;  %v3670_v12 = vpack.c.b16 %v3640_v54, %v3639_v44  ;;  %v3171_v44 = vshrl.u32 %v5535_v10, 16  ;;  %v2288_v54 = vrot.slane %v2286_v11, 4 }
  0xbf   : > { %v4500_v1 = vpack.c.b16 %v4469_v41, %v4468_v18  ;;  %v3173_v10 = vrot.slane %v3171_v44, 4  ;;  %v4304_v44 = vrot.slane %v5701_v45, 5  ;;  %v1976_v45 = vld [vmem:[%s5989_s22 + $0x18] sm:$0xe] }
  0xc0   : > { %2549 = vrot.lane.b32.xlu2 %v2533_v59, %s5939_s25  ;;  %v6431_v58 = vpop.permute.xlu1 %1284 }
  0xc1   : > { %8625 = vst [vmem:[#allocation22_spill] sm:$0xff] %v6431_v58  ;;  %v5710_v58 = vld [vmem:[%s5989_s22 + $0x50] sm:$0x1] }
  0xc2   : > { %4404 = vrot.lane.b32.xlu0 %v2533_v59, %s5937_s23  ;;  %v6420_v35 = vpop.permute.xlu2 %1384  ;;  %v2079_v59 = vsel %vm6370_vm5, %v5397_v32, %v2078_v30  ;;  %v2289_v30 = vrot.slane %v5417_v16, 5  ;;  %v5700_v32 = vld [vmem:[%s5989_s22 + $0x28] sm:$0xf] }
  0xc3   : > { %v2391_v63 = vunpack.c.l.b16 %v2079_v59  ;;  %v4301_v56 = vrot.slane %v5700_v32, 5  ;;  %v3174_v59 = vor.u32 %v3173_v10, %v3169_v2  ;;  %v5419_v10 = vld [vmem:[%s5989_s22 + $0x28] sm:$0xf] }
  0xc4   : > { %v2290_v16 = vsel %vm6370_vm5, %v2288_v54, %v2289_v30 }
  0xc5   : > { %2469 = vrot.lane.b32.xlu1 %v6209_v43, %s5938_s24  ;;  %v2422_v62 = vpack.c.b16 %v2392_v6, %v2391_v63  ;;  %v2504_v22 = vunpack.c.l.b16 %v2290_v16  ;;  %v4303_v52 = vrot.slane %v4301_v56, 4  ;;  %v3175_v63 = vrot.slane %v3174_v59, 4 }
  0xc6   : > { %v6446_v18 = vpop.permute.xlu0 %1282  ;;  %v3179_v6 = vrot.slane %v3177_v21, 5  ;;  %v4302_v31 = vsel %vm6370_vm5, %v5745_v14, %v4301_v56  ;;  %v5398_v21 = vrot.slane %v1976_v45, 9  ;;  %v2293_v14 = vrot.slane %v5419_v10, 5 }
  0xc7   : > { %v4305_v0 = vsel %vm6370_vm5, %v4303_v52, %v4304_v44 }
  0xc8   : > { %3687 = vrot.lane.b32.xlu2 %v3670_v12, %s5939_s25  ;;  %v3180_v56 = vsel %vm6001_vm2, %v3175_v63, %v3179_v6  ;;  %v5418_v63 = vld [vmem:[%s5989_s22 + $0x24] sm:$0xe] }
  0xca   : > { %4516 = vrot.lane.b32.xlu0 %v4500_v1, %s5939_s25  ;;  %v6448_v41 = vpop.permute.xlu2 %1390  ;;  %v2287_v1 = vsel %vm6370_vm5, %v5461_v47, %v2286_v11  ;;  %v3164_v11 = vor.u32 %v3163_v5, %v3160_v61 }
  0xcc   : > { %v3165_v32 = vrot.slane %v3164_v11, 4  ;;  %v5817_v11 = vld [vmem:[%s5989_s22] sm:$0xff] }
  0xcd   : > { %3607 = vrot.lane.b32.xlu1 %v5852_v27, %s5938_s24  ;;  %v2503_v27 = vunpack.c.l.b16 %v2287_v1  ;;  %v1977_v1 = vld [vmem:[%s5989_s22 + $0x1c] sm:$0xf] }
  0xce   : > { %v2085_v5 = vrot.slane %v1977_v1, 5  ;;  %v5420_v1 = vld [vmem:[%s5989_s22 + $0x2c] sm:$0x1] }
  0xcf   : > { %v6455_v7 = vpop.permute.xlu1 %1290  ;;  %v2534_v30 = vpack.c.b16 %v2504_v22, %v2503_v27  ;;  %v3170_v27 = vsel %vm6001_vm2, %v3165_v32, %v3169_v2  ;;  %v1978_v22 = vld [vmem:[%s5989_s22 + $0x20] sm:$0x1]  ;;  %v3642_v2 = vunpack.c.l.b16 %v3180_v56  ;;  %v2295_v56 = vrot.slane %v2293_v14, 4 }
  0xd0   : > { %8626 = vst [vmem:[#allocation23_spill] sm:$0xff] %v6455_v7  ;;  %2439 = vrot.lane.b32.xlu2 %v2422_v62, %s5937_s23  ;;  %v4470_v62 = vunpack.c.l.b16 %v4302_v31  ;;  %v3641_v52 = vunpack.c.l.b16 %v3170_v27  ;;  %v2087_v44 = vrot.slane %v2085_v5, 4  ;;  %v2088_v32 = vrot.slane %v1978_v22, 5  ;;  %v5536_v31 = vld [vmem:[%s5989_s22 + $0x3c] sm:$0xf] }
  0xd1   : > { %v2086_v10 = vsel %vm6370_vm5, %v5398_v21, %v2085_v5  ;;  %v5462_v27 = vrot.slane %v5418_v63, 9  ;;  %v3185_v7 = vshll.u32 %v5536_v31, 16 }
  0xd2   : > { %3495 = vrot.lane.b32.xlu0 %v6254_v33, %s5937_s23  ;;  %v6464_v47 = vpop.permute.xlu2 %1396  ;;  %v3671_v22 = vpack.c.b16 %v3642_v2, %v3641_v52  ;;  %v5703_v52 = vld [vmem:[%s5989_s22 + $0x34] sm:$0xf] }
  0xd3   : > { %8627 = vst [vmem:[#allocation24_spill] sm:$0xff] %v6464_v47 }
  0xd4   : > { %v6466_v54 = vpop.permute.xlu0 %1288 }
  0xd5   : > { %8628 = vst [vmem:[#allocation25_spill] sm:$0xff] %v6466_v54  ;;  %4438 = vrot.lane.b32.xlu1 %v3670_v12, %s5938_s24  ;;  %v4471_v12 = vunpack.c.l.b16 %v4305_v0  ;;  %v1491_v0 = vsel %vm1488_vm6, %v5817_v11, %v6361_v55  ;;  %v5854_v54 = vld [vmem:[%s5989_s22 + $0x3c] sm:$0xff] }
  0xd7   : > { %v1377_v61 = vpop.permute.xlu1 %1376  ;;  %v4501_v6 = vpack.c.b16 %v4471_v12, %v4470_v62  ;;  %v2089_v62 = vsel %vm6370_vm5, %v2087_v44, %v2088_v32  ;;  %v2296_v12 = vrot.slane %v5420_v1, 5  ;;  %v2294_v44 = vsel %vm6370_vm5, %v5462_v27, %v2293_v14 }
  0xd8   : > { %2551 = vrot.lane.b32.xlu2 %v2534_v30, %s5939_s25  ;;  %v1539_v55 = vsel %vm1537_vm7, %v1491_v0, %v1377_v61  ;;  %v2393_v61 = vunpack.c.l.b16 %v2086_v10  ;;  %v2394_v2 = vunpack.c.l.b16 %v2089_v62 }
  0xd9   : > { %v2297_v32 = vsel %vm6370_vm5, %v2295_v56, %v2296_v12 }
  0xda   : > { %4406 = vrot.lane.b32.xlu0 %v2534_v30, %s5937_s23  ;;  %v6478_v16 = vpop.permute.xlu2 %1402  ;;  %v5537_v30 = vld [vmem:[%s5989_s22 + $0x40] sm:$0xf]  ;;  %v2423_v50 = vpack.c.b16 %v2394_v2, %v2393_v61  ;;  %v2506_v10 = vunpack.c.l.b16 %v2297_v32 }
  0xdb   : > { %8629 = vst [vmem:[#allocation26_spill] sm:$0xff] %v6478_v16  ;;  %v3182_v16 = vshrl.u32 %v5536_v31, 16  ;;  %v3191_v29 = vshll.u32 %v5537_v30, 16  ;;  %v3195_v19 = vshrl.u32 %v5537_v30, 16  ;;  %v5702_v30 = vld [vmem:[%s5989_s22 + $0x30] sm:$0xe] }
  0xdc   : > { %v6486_v59 = vpop.permute.xlu0 %1294  ;;  %v5746_v27 = vrot.slane %v5702_v30, 9 }
  0xdd   : > { %8630 = vst [vmem:[#allocation27_spill] sm:$0xff] %v6486_v59  ;;  %2471 = vrot.lane.b32.xlu1 %v6254_v33, %s5938_s24  ;;  %v5853_v59 = vld [vmem:[%s5989_s22 + $0x30] sm:$0xff]  ;;  %v3184_v63 = vrot.slane %v3182_v16, 4  ;;  %v3193_v1 = vrot.slane %v3191_v29, 5  ;;  %v3197_v31 = vrot.slane %v3195_v19, 4 }
  0xdf   : > { %v6496_v45 = vpop.permute.xlu1 %1382 }
  0xe0   : > { %3689 = vrot.lane.b32.xlu2 %v3671_v22, %s5939_s25 }
  0xe2   : > { %4518 = vrot.lane.b32.xlu0 %v4501_v6, %s5939_s25  ;;  %v1457_v11 = vpop.permute.xlu2 %1456  ;;  %v3187_v6 = vrot.slane %v3185_v7, 5  ;;  %v3198_v7 = vor.u32 %v3197_v31, %v3193_v1 }
  0xe3   : > { %v1572_v5 = vsel %vm1570_vm8, %v1539_v55, %v1457_v11  ;;  %v4308_v55 = vrot.slane %v5703_v52, 5  ;;  %v5565_v11 = vld [vmem:[%s5989_s22 + $0x44] sm:$0x1] }
  0xe4   : > { %v6507_v21 = vpop.permute.xlu0 %1380  ;;  %5380 = vmatmul.msk.bf16.vlgmr.msra.gmra.mxu0 %vm1611_vm9, %v1572_v5  ;;  %v5704_v5 = vld [vmem:[%s5989_s22 + $0x38] sm:$0x1]  ;;  %v3188_v16 = vor.u32 %v3187_v6, %v3184_v63  ;;  %v3201_v29 = vshll.u32 %v5565_v11, 16  ;;  %v3199_v2 = vrot.slane %v3198_v7, 4  ;;  %v1980_v6 = vld [vmem:[%s5989_s22 + $0x28] sm:$0xf] }
  0xe5   : > { %3609 = vrot.lane.b32.xlu1 %v5853_v59, %s5938_s24  ;;  %v2505_v59 = vunpack.c.l.b16 %v2294_v44  ;;  %v4310_v19 = vrot.slane %v4308_v55, 4  ;;  %v4311_v56 = vrot.slane %v5704_v5, 5  ;;  %v4309_v52 = vsel %vm6370_vm5, %v5746_v27, %v4308_v55  ;;  %v1979_v5 = vld [vmem:[%s5989_s22 + $0x24] sm:$0xe]  ;;  %v5422_v27 = vld [vmem:[%s5989_s22 + $0x34] sm:$0xf] }
  0xe6   : > { %v3189_v61 = vrot.slane %v3188_v16, 4  ;;  %v3203_v44 = vrot.slane %v3201_v29, 5  ;;  %v2092_v11 = vrot.slane %v1980_v6, 5  ;;  %v5538_v7 = vld [vmem:[%s5989_s22 + $0x48] sm:$0xf] }
  0xe7   : > { %v6517_v0 = vpop.permute.xlu1 %1388  ;;  %v2535_v12 = vpack.c.b16 %v2506_v10, %v2505_v59  ;;  %v4312_v63 = vsel %vm6370_vm5, %v4310_v19, %v4311_v56  ;;  %v1981_v59 = vld [vmem:[%s5989_s22 + $0x2c] sm:$0x1]  ;;  %v5399_v19 = vrot.slane %v1979_v5, 9  ;;  %v5423_v6 = vld [vmem:[%s5989_s22 + $0x38] sm:$0x1]  ;;  %v3206_v3 = vshrl.u32 %v5538_v7, 16 }
  0xe8   : > { %2441 = vrot.lane.b32.xlu2 %v2423_v50, %s5937_s23  ;;  %v4472_v50 = vunpack.c.l.b16 %v4309_v52  ;;  %v3194_v30 = vsel %vm6001_vm2, %v3189_v61, %v3193_v1  ;;  %v3204_v55 = vsel %vm6001_vm2, %v3199_v2, %v3203_v44  ;;  %v2094_v56 = vrot.slane %v2092_v11, 4  ;;  %v5539_v61 = vld [vmem:[%s5989_s22 + $0x4c] sm:$0xf] }
  0xe9   : > { %v3643_v16 = vunpack.c.l.b16 %v3194_v30  ;;  %v3644_v1 = vunpack.c.l.b16 %v3204_v55  ;;  %v2095_v52 = vrot.slane %v1981_v59, 5  ;;  %v2300_v44 = vrot.slane %v5422_v27, 5 }
  0xea   : > { %3497 = vrot.lane.b32.xlu0 %v6249_v25, %s5937_s23  ;;  %v6524_v14 = vpop.permute.xlu2 %1462  ;;  %v3215_v53 = vshll.u32 %v5539_v61, 16  ;;  %v3219_v8 = vshrl.u32 %v5539_v61, 16  ;;  %v2303_v59 = vrot.slane %v5423_v6, 5 }
  0xeb   : > { %v3672_v57 = vpack.c.b16 %v3644_v1, %v3643_v16  ;;  %v2302_v5 = vrot.slane %v2300_v44, 4  ;;  %v5706_v16 = vld [vmem:[%s5989_s22 + $0x40] sm:$0xf]  ;;  %v3208_v1 = vrot.slane %v3206_v3, 4  ;;  %v5705_v3 = vld [vmem:[%s5989_s22 + $0x3c] sm:$0xe] }
  0xec   : > { %v6526_v62 = vpop.permute.xlu0 %1386 }
  0xed   : > { %4440 = vrot.lane.b32.xlu1 %v3671_v22, %s5938_s24  ;;  %v4473_v22 = vunpack.c.l.b16 %v4312_v63  ;;  %v5421_v63 = vld [vmem:[%s5989_s22 + $0x30] sm:$0xe]  ;;  %v2304_v6 = vsel %vm6370_vm5, %v2302_v5, %v2303_v59 }
  0xee   : > { %v5463_v55 = vrot.slane %v5421_v63, 9 }
  0xef   : > { %v6532_v32 = vpop.permute.xlu1 %1394  ;;  %v4502_v29 = vpack.c.b16 %v4473_v22, %v4472_v50  ;;  %v2093_v50 = vsel %vm6370_vm5, %v5399_v19, %v2092_v11  ;;  %v2096_v22 = vsel %vm6370_vm5, %v2094_v56, %v2095_v52  ;;  %v3217_v19 = vrot.slane %v3215_v53, 5  ;;  %v5566_v52 = vld [vmem:[%s5989_s22 + $0x50] sm:$0x1] }
  0xf0   : > { %2553 = vrot.lane.b32.xlu2 %v2535_v12, %s5939_s25  ;;  %v2395_v11 = vunpack.c.l.b16 %v2093_v50  ;;  %v3221_v56 = vrot.slane %v3219_v8, 4  ;;  %v2301_v63 = vsel %vm6370_vm5, %v5463_v55, %v2300_v44  ;;  %v3225_v50 = vshll.u32 %v5566_v52, 16 }
  0xf1   : > { %v2507_v53 = vunpack.c.l.b16 %v2301_v63  ;;  %v2508_v8 = vunpack.c.l.b16 %v2304_v6  ;;  %v1982_v6 = vld [vmem:[%s5989_s22 + $0x30] sm:$0xe] }
  0xf2   : > { %4408 = vrot.lane.b32.xlu0 %v2535_v12, %s5937_s23  ;;  %v6538_v31 = vpop.permute.xlu2 %1468  ;;  %v3209_v12 = vshll.u32 %v5538_v7, 16 }
  0xf4   : > { %v6546_v10 = vpop.permute.xlu0 %1392  ;;  %v3211_v7 = vrot.slane %v3209_v12, 5  ;;  %v5707_v12 = vld [vmem:[%s5989_s22 + $0x44] sm:$0x1] }
  0xf5   : > { %2473 = vrot.lane.b32.xlu1 %v6249_v25, %s5938_s24  ;;  %v4318_v44 = vrot.slane %v5707_v12, 5 }
  0xf7   : > { %v6554_v2 = vpop.permute.xlu1 %1400 }
  0xf8   : > { %8631 = vst [vmem:[#allocation28_spill] sm:$0xff] %v6554_v2  ;;  %3691 = vrot.lane.b32.xlu2 %v3672_v57, %s5939_s25  ;;  %v3212_v2 = vor.u32 %v3211_v7, %v3208_v1  ;;  %v3227_v1 = vrot.slane %v3225_v50, 5  ;;  %v1983_v7 = vld [vmem:[%s5989_s22 + $0x34] sm:$0xf] }
  0xf9   : > { %v2099_v63 = vrot.slane %v1983_v7, 5  ;;  %v5867_v50 = vld [vmem:[%s8575_s1 + $0x10] sm:$0xff]  ;;  %v5541_v7 = vld [vmem:[%s5989_s22 + $0x58] sm:$0xf] }
  0xfa   : > { %4520 = vrot.lane.b32.xlu0 %v4502_v29, %s5939_s25  ;;  %v6564_v30 = vpop.permute.xlu2 %1474  ;;  %v2396_v29 = vunpack.c.l.b16 %v2096_v22  ;;  %v5747_v22 = vrot.slane %v5705_v3, 9  ;;  %v3213_v5 = vrot.slane %v3212_v2, 4  ;;  %v1984_v3 = vld [vmem:[%s5989_s22 + $0x38] sm:$0x1]  ;;  %3877 = vmatpush.bf16.msra.mxu2 %v5867_v50  ;;  %v3243_v50 = vshrl.u32 %v5541_v7, 16 }
  0xfb   : > { %8632 = vst [vmem:[#allocation29_spill] sm:$0xff] %v6564_v30 }
  0xfc   : > { %v6566_v27 = vpop.permute.xlu0 %1398  ;;  %v2424_v47 = vpack.c.b16 %v2396_v29, %v2395_v11  ;;  %v5818_v11 = vld [vmem:[%s5989_s22 + $0xc] sm:$0xff]  ;;  %v2536_v29 = vpack.c.b16 %v2508_v8, %v2507_v53 }
  0xfd   : > { %8633 = vst [vmem:[#allocation30_spill] sm:$0xff] %v6566_v27  ;;  %3611 = vrot.lane.b32.xlu1 %v5854_v54, %s5938_s24  ;;  %v4315_v27 = vrot.slane %v5706_v16, 5  ;;  %v3222_v54 = vor.u32 %v3221_v56, %v3217_v19  ;;  %v1494_v12 = vsel %vm1488_vm6, %v5818_v11, %v6394_v4  ;;  %v5425_v4 = vld [vmem:[%s5989_s22 + $0x40] sm:$0xf] }
  0xff   : > { %v6572_v61 = vpop.permute.xlu1 %1406  ;;  %v3223_v16 = vrot.slane %v3222_v54, 4  ;;  %v4316_v52 = vsel %vm6370_vm5, %v5747_v22, %v4315_v27  ;;  %v5400_v22 = vrot.slane %v1982_v6, 9  ;;  %v5424_v6 = vld [vmem:[%s5989_s22 + $0x3c] sm:$0xe] }
 0x100   : > { %8634 = vst [vmem:[#allocation31_spill] sm:$0xff] %v6572_v61  ;;  %v4317_v61 = vrot.slane %v4315_v27, 4  ;;  %2443 = vrot.lane.b32.xlu2 %v2424_v47, %s5937_s23  ;;  %v3218_v47 = vsel %vm6001_vm2, %v3213_v5, %v3217_v19  ;;  %v4474_v54 = vunpack.c.l.b16 %v4316_v52  ;;  %v2102_v5 = vrot.slane %v1984_v3, 5  ;;  %v5426_v3 = vld [vmem:[%s5989_s22 + $0x44] sm:$0x1] }
 0x101   : > { %v3645_v19 = vunpack.c.l.b16 %v3218_v47 }
 0x102   : > { %3499 = vrot.lane.b32.xlu0 %v6247_v24, %s5937_s23  ;;  %v6586_v59 = vpop.permute.xlu2 %1480  ;;  %v4319_v2 = vsel %vm6370_vm5, %v4317_v61, %v4318_v44  ;;  %v1541_v61 = vsel %vm1537_vm7, %v1494_v12, %v6405_v23  ;;  %v2101_v44 = vrot.slane %v2099_v63, 4  ;;  %v5855_v12 = vld [vmem:[%s5989_s22 + $0x48] sm:$0xff] }
 0x103   : > { %8636 = vst [vmem:[#allocation33_spill] sm:$0xff] %v6586_v59  ;;  %v4475_v27 = vunpack.c.l.b16 %v4319_v2  ;;  %v2307_v2 = vrot.slane %v5425_v4, 5 }
 0x104   : > { %v6582_v55 = vpop.permute.xlu0 %1404 }
 0x105   : > { %8635 = vst [vmem:[#allocation32_spill] sm:$0xff] %v6582_v55  ;;  %4442 = vrot.lane.b32.xlu1 %v3672_v57, %s5938_s24  ;;  %v3228_v57 = vsel %vm6001_vm2, %v3223_v16, %v3227_v1  ;;  %v4503_v23 = vpack.c.b16 %v4475_v27, %v4474_v54  ;;  %v5540_v1 = vld [vmem:[%s5989_s22 + $0x54] sm:$0xf]  ;;  %v5567_v55 = vld [vmem:[%s5989_s22 + $0x5c] sm:$0x1] }
 0x106   : > { %v3646_v8 = vunpack.c.l.b16 %v3228_v57  ;;  %v2100_v57 = vsel %vm6370_vm5, %v5400_v22, %v2099_v63  ;;  %v3230_v54 = vshrl.u32 %v5540_v1, 16  ;;  %v3233_v27 = vshll.u32 %v5540_v1, 16 }
 0x107   : > { %v6590_v56 = vpop.permute.xlu1 %1460  ;;  %v2397_v63 = vunpack.c.l.b16 %v2100_v57 }
 0x108   : > { %2555 = vrot.lane.b32.xlu2 %v2536_v29, %s5939_s25  ;;  %v3673_v47 = vpack.c.b16 %v3646_v8, %v3645_v19  ;;  %v2309_v19 = vrot.slane %v2307_v2, 4  ;;  %v2310_v8 = vrot.slane %v5426_v3, 5 }
 0x10a   : > { %4410 = vrot.lane.b32.xlu0 %v2536_v29, %s5937_s23  ;;  %v6618_v11 = vpop.permute.xlu2 %3685  ;;  %v2103_v29 = vsel %vm6370_vm5, %v2101_v44, %v2102_v5  ;;  %v5709_v44 = vld [vmem:[%s5989_s22 + $0x4c] sm:$0xf]  ;;  %v3232_v5 = vrot.slane %v3230_v54, 4 }
 0x10b   : > { %v2398_v22 = vunpack.c.l.b16 %v2103_v29  ;;  %v2311_v29 = vsel %vm6370_vm5, %v2309_v19, %v2310_v8  ;;  %v4322_v59 = vrot.slane %v5709_v44, 5  ;;  %v5748_v19 = vrot.slane %v5708_v38, 9 }
 0x10c   : > { %v1459_v53 = vpop.permute.xlu0 %1458 }
 0x10d   : > { %v1574_v16 = vsel %vm1570_vm8, %v1541_v61, %v1459_v53  ;;  %2475 = vrot.lane.b32.xlu1 %v6247_v24, %s5938_s24  ;;  %v3239_v61 = vshll.u32 %v5541_v7, 16  ;;  %v5464_v53 = vrot.slane %v5424_v6, 9  ;;  %v3245_v7 = vrot.slane %v3243_v50, 4  ;;  %v5868_v50 = vld [vmem:[%s8575_s1 + $0x18] sm:$0xff] }
 0x10e   : > { %5381 = vmatmul.msk.bf16.gmra.mxu0 %vm1611_vm9, %v1574_v16  ;;  %v3235_v16 = vrot.slane %v3233_v27, 5  ;;  %v2510_v24 = vunpack.c.l.b16 %v2311_v29  ;;  %v4324_v8 = vrot.slane %v4322_v59, 4  ;;  %4708 = vmatpush.bf16.msra.mxu3 %v5868_v50  ;;  %v1985_v29 = vld [vmem:[%s5989_s22 + $0x3c] sm:$0xe] }
 0x10f   : > { %v6620_v52 = vpop.permute.xlu1 %1466  ;;  %v3241_v1 = vrot.slane %v3239_v61, 5  ;;  %v2308_v57 = vsel %vm6370_vm5, %v5464_v53, %v2307_v2  ;;  %v3249_v61 = vshll.u32 %v5567_v55, 16  ;;  %v5850_v2 = vld [vmem:[%s8575_s1 + $0x8] sm:$0xff] }
 0x110   : > { %3693 = vrot.lane.b32.xlu2 %v3673_v47, %s5939_s25  ;;  %v3236_v54 = vor.u32 %v3235_v16, %v3232_v5  ;;  %v2509_v30 = vunpack.c.l.b16 %v2308_v57  ;;  %2741 = vmatpush.bf16.msra.mxu1 %v5850_v2  ;;  %v5401_v2 = vrot.slane %v1985_v29, 9 }
 0x111   : > { %v3246_v27 = vor.u32 %v3245_v7, %v3241_v1  ;;  %v1986_v7 = vld [vmem:[%s5989_s22 + $0x40] sm:$0xf] }
 0x112   : > { %4522 = vrot.lane.b32.xlu0 %v4503_v23, %s5939_s25  ;;  %v5819_v23 = vld [vmem:[%s5989_s22 + $0x18] sm:$0xff]  ;;  %v6637_v6 = vpop.permute.xlu2 %2437 }
 0x113   : > { %v1497_v53 = vsel %vm1488_vm6, %v5819_v23, %v6344_v17  ;;  %v3237_v17 = vrot.slane %v3236_v54, 4  ;;  %v3247_v38 = vrot.slane %v3246_v27, 4  ;;  %v1987_v54 = vld [vmem:[%s5989_s22 + $0x44] sm:$0x1] }
 0x114   : > { %v6630_v4 = vpop.permute.xlu0 %1464  ;;  %v1543_v55 = vsel %vm1537_vm7, %v1497_v53, %v6507_v21  ;;  %v2537_v21 = vpack.c.b16 %v2510_v24, %v2509_v30  ;;  %v5820_v27 = vld [vmem:[%s5989_s22 + $0x24] sm:$0xff] }
 0x115   : > { %3613 = vrot.lane.b32.xlu1 %v5855_v12, %s5938_s24  ;;  %v2425_v12 = vpack.c.b16 %v2398_v22, %v2397_v63  ;;  %v4325_v63 = vrot.slane %v5710_v58, 5  ;;  %v1576_v44 = vsel %vm1570_vm8, %v1543_v55, %v6590_v56  ;;  %v3251_v58 = vrot.slane %v3249_v61, 5  ;;  %v5427_v53 = vld [vmem:[%s5989_s22 + $0x48] sm:$0xe] }
 0x116   : > { %v4323_v56 = vsel %vm6370_vm5, %v5748_v19, %v4322_v59  ;;  %v3242_v23 = vsel %vm6001_vm2, %v3237_v17, %v3241_v1  ;;  %v5428_v59 = vld [vmem:[%s5989_s22 + $0x4c] sm:$0xf]  ;;  %v2109_v55 = vrot.slane %v1987_v54, 5  ;;  %v5542_v17 = vld [vmem:[%s5989_s22 + $0x60] sm:$0xf] }
 0x117   : > { %v6639_v3 = vpop.permute.xlu1 %1472  ;;  %v3252_v57 = vsel %vm6001_vm2, %v3247_v38, %v3251_v58  ;;  %v4476_v24 = vunpack.c.l.b16 %v4323_v56  ;;  %v3647_v50 = vunpack.c.l.b16 %v3242_v23  ;;  %v2314_v19 = vrot.slane %v5428_v59, 5  ;;  %v5543_v56 = vld [vmem:[%s5989_s22 + $0x64] sm:$0xf]  ;;  %v5856_v23 = vld [vmem:[%s5989_s22 + $0x54] sm:$0xff] }
 0x118   : > { %2445 = vrot.lane.b32.xlu2 %v2425_v12, %s5937_s23  ;;  %v2106_v12 = vrot.slane %v1986_v7, 5  ;;  %v3648_v1 = vunpack.c.l.b16 %v3252_v57  ;;  %v5465_v7 = vrot.slane %v5427_v53, 9  ;;  %v3254_v29 = vshrl.u32 %v5542_v17, 16  ;;  %v5897_v53 = vld [vmem:[%s5989_s22 + $0xc] sm:$0xff] }
 0x119   : > { %v3257_v54 = vshll.u32 %v5542_v17, 16 }
 0x11a   : > { %3501 = vrot.lane.b32.xlu0 %v6289_v49, %s5937_s23  ;;  %v6666_v5 = vpop.permute.xlu2 %2549  ;;  %v2107_v57 = vsel %vm6370_vm5, %v5401_v2, %v2106_v12  ;;  %v5712_v2 = vld [vmem:[%s5989_s22 + $0x58] sm:$0xf] }
 0x11c   : > { %v6659_v22 = vpop.permute.xlu0 %1470 }
 0x11d   : > { %4444 = vrot.lane.b32.xlu1 %v3673_v47, %s5938_s24  ;;  %v4326_v47 = vsel %vm6370_vm5, %v4324_v8, %v4325_v63  ;;  %v2108_v63 = vrot.slane %v2106_v12, 4  ;;  %v2315_v12 = vsel %vm6370_vm5, %v5465_v7, %v2314_v19 }
 0x11e   : > { %5382 = vmatmul.msk.bf16.gmra.mxu0 %vm1611_vm9, %v1576_v44  ;;  %v4477_v30 = vunpack.c.l.b16 %v4326_v47  ;;  %v5429_v44 = vld [vmem:[%s5989_s22 + $0x50] sm:$0x1]  ;;  %v1500_v47 = vsel %vm1488_vm6, %v5820_v27, %v6379_v37 }
 0x11f   : > { %v6668_v16 = vpop.permute.xlu1 %1478  ;;  %v2110_v59 = vsel %vm6370_vm5, %v2108_v63, %v2109_v55  ;;  %v1545_v37 = vsel %vm1537_vm7, %v1500_v47, %v6496_v45  ;;  %v3259_v55 = vrot.slane %v3257_v54, 5 }
 0x120   : > { %8637 = vst [vmem:[#allocation34_spill] sm:$0xff] %v6668_v16  ;;  %2557 = vrot.lane.b32.xlu2 %v2537_v21, %s5939_s25  ;;  %v4504_v8 = vpack.c.b16 %v4477_v30, %v4476_v24  ;;  %v2316_v24 = vrot.slane %v2314_v19, 4  ;;  %v2317_v30 = vrot.slane %v5429_v44, 5  ;;  %v3263_v16 = vshll.u32 %v5543_v56, 16 }
 0x121   : > { %v2400_v45 = vunpack.c.l.b16 %v2110_v59  ;;  %v5568_v59 = vld [vmem:[%s5989_s22 + $0x68] sm:$0x1] }
 0x122   : > { %4412 = vrot.lane.b32.xlu0 %v2537_v21, %s5937_s23  ;;  %v6692_v38 = vpop.permute.xlu2 %3687  ;;  %v3674_v21 = vpack.c.b16 %v3648_v1, %v3647_v50  ;;  %v1578_v50 = vsel %vm1570_vm8, %v1545_v37, %v6524_v14  ;;  %v2399_v1 = vunpack.c.l.b16 %v2107_v57  ;;  %v2318_v63 = vsel %vm6370_vm5, %v2316_v24, %v2317_v30  ;;  %v5713_v24 = vld [vmem:[%s5989_s22 + $0x5c] sm:$0x1] }
 0x123   : > { %v3256_v14 = vrot.slane %v3254_v29, 4  ;;  %v3265_v44 = vrot.slane %v3263_v16, 5  ;;  %v4329_v57 = vrot.slane %v5712_v2, 5  ;;  %v2511_v29 = vunpack.c.l.b16 %v2315_v12 }
 0x124   : > { %v6684_v61 = vpop.permute.xlu0 %1476  ;;  %v2426_v30 = vpack.c.b16 %v2400_v45, %v2399_v1  ;;  %v2512_v37 = vunpack.c.l.b16 %v2318_v63  ;;  %v2583_v63 = vsel %vm1488_vm6, %v6033_v28, %v6637_v6 }
 0x125   : > { %2477 = vrot.lane.b32.xlu1 %v6289_v49, %s5938_s24  ;;  %v3267_v49 = vshrl.u32 %v5543_v56, 16  ;;  %v3260_v16 = vor.u32 %v3259_v55, %v3256_v14  ;;  %v4331_v54 = vrot.slane %v4329_v57, 4 }
 0x126   : > { %v2538_v2 = vpack.c.b16 %v2512_v37, %v2511_v29  ;;  %v1990_v29 = vld [vmem:[%s5989_s22 + $0x50] sm:$0x1] }
 0x127   : > { %v3606_v58 = vpop.permute.xlu1 %3605  ;;  %v3269_v17 = vrot.slane %v3267_v49, 4  ;;  %v3261_v12 = vrot.slane %v3260_v16, 4  ;;  %v5431_v16 = vld [vmem:[%s5989_s22 + $0x58] sm:$0xf] }
 0x128   : > { %3695 = vrot.lane.b32.xlu2 %v3674_v21, %s5939_s25 }
 0x12a   : > { %4524 = vrot.lane.b32.xlu0 %v4504_v8, %s5939_s25  ;;  %v6720_v47 = vpop.permute.xlu2 %2439 }
 0x12c   : > { %v3494_v27 = vpop.permute.xlu0 %3493 }
 0x12d   : > { %v3719_v8 = vsel %vm1488_vm6, %v5897_v53, %v3494_v27  ;;  %3615 = vrot.lane.b32.xlu1 %v5856_v23, %s5938_s24  ;;  %v5711_v23 = vld [vmem:[%s5989_s22 + $0x54] sm:$0xe]  ;;  %v4332_v27 = vrot.slane %v5713_v24, 5  ;;  %v1988_v24 = vld [vmem:[%s5989_s22 + $0x48] sm:$0xe] }
 0x12e   : > { %5383 = vmatmul.msk.bf16.gmra.mxu0 %vm1611_vm9, %v1578_v50  ;;  %v3766_v19 = vsel %vm1537_vm7, %v3719_v8, %v3606_v58  ;;  %v5749_v49 = vrot.slane %v5711_v23, 9  ;;  %v3270_v58 = vor.u32 %v3269_v17, %v3265_v44  ;;  %v5821_v53 = vld [vmem:[%s5989_s22 + $0x30] sm:$0xff] }
 0x12f   : > { %v3798_v56 = vsel %vm1570_vm8, %v3766_v19, %v6618_v11  ;;  %v4437_v7 = vpop.permute.xlu1 %4436  ;;  %v3273_v11 = vshll.u32 %v5568_v59, 16  ;;  %v4333_v55 = vsel %vm6370_vm5, %v4331_v54, %v4332_v27  ;;  %v3266_v59 = vsel %vm6001_vm2, %v3261_v12, %v3265_v44  ;;  %v5544_v54 = vld [vmem:[%s5989_s22 + $0x6c] sm:$0xf]  ;;  %v5430_v12 = vld [vmem:[%s5989_s22 + $0x54] sm:$0xe] }
 0x130   : > { %5648 = vmatmul.msk.bf16.vlgmr.msra.gmra.mxu2 %vm1611_vm9, %v3798_v56  ;;  %2447 = vrot.lane.b32.xlu2 %v2426_v30, %s5937_s23  ;;  %v4330_v1 = vsel %vm6370_vm5, %v5749_v49, %v4329_v57  ;;  %v3271_v8 = vrot.slane %v3270_v58, 4  ;;  %v1503_v56 = vsel %vm1488_vm6, %v5821_v53, %v6264_v40  ;;  %v4479_v57 = vunpack.c.l.b16 %v4333_v55  ;;  %v5857_v55 = vld [vmem:[%s5989_s22 + $0x60] sm:$0xff] }
 0x131   : > { %v3275_v45 = vrot.slane %v3273_v11, 5  ;;  %v4478_v6 = vunpack.c.l.b16 %v4330_v1  ;;  %v3649_v58 = vunpack.c.l.b16 %v3266_v59  ;;  %v5402_v11 = vrot.slane %v1988_v24, 9  ;;  %v5715_v24 = vld [vmem:[%s5989_s22 + $0x64] sm:$0xf] }
 0x132   : > { %3503 = vrot.lane.b32.xlu0 %v6280_v36, %s5937_s23  ;;  %v6736_v14 = vpop.permute.xlu2 %2551  ;;  %v2116_v27 = vrot.slane %v1990_v29, 5  ;;  %v2321_v1 = vrot.slane %v5431_v16, 5 }
 0x133   : > { %v3276_v40 = vsel %vm6001_vm2, %v3271_v8, %v3275_v45  ;;  %v5432_v8 = vld [vmem:[%s5989_s22 + $0x5c] sm:$0x1]  ;;  %v3278_v45 = vshrl.u32 %v5544_v54, 16 }
 0x134   : > { %v4405_v50 = vpop.permute.xlu0 %4404 }
 0x135   : > { %4446 = vrot.lane.b32.xlu1 %v3674_v21, %s5938_s24  ;;  %v1989_v21 = vld [vmem:[%s5989_s22 + $0x4c] sm:$0xf]  ;;  %v4550_v23 = vsel %vm1488_vm6, %v6209_v43, %v4405_v50  ;;  %v1547_v43 = vsel %vm1537_vm7, %v1503_v56, %v6420_v35  ;;  %v3650_v35 = vunpack.c.l.b16 %v3276_v40  ;;  %v5545_v50 = vld [vmem:[%s5989_s22 + $0x70] sm:$0xf] }
 0x136   : > { %v2113_v30 = vrot.slane %v1989_v21, 5  ;;  %v1580_v37 = vsel %vm1570_vm8, %v1547_v43, %v6630_v4  ;;  %v4597_v49 = vsel %vm1537_vm7, %v4550_v23, %v4437_v7  ;;  %v4505_v4 = vpack.c.b16 %v4479_v57, %v4478_v6 }
 0x137   : > { %v2470_v19 = vpop.permute.xlu1 %2469  ;;  %v3291_v56 = vshrl.u32 %v5545_v50, 16  ;;  %v2323_v6 = vrot.slane %v2321_v1, 4  ;;  %v2324_v57 = vrot.slane %v5432_v8, 5  ;;  %v3280_v43 = vrot.slane %v3278_v45, 4  ;;  %v5716_v8 = vld [vmem:[%s5989_s22 + $0x68] sm:$0x1] }
 0x138   : > { %v2630_v17 = vsel %vm1537_vm7, %v2583_v63, %v2470_v19  ;;  %2559 = vrot.lane.b32.xlu2 %v2538_v2, %s5939_s25  ;;  %v2115_v7 = vrot.slane %v2113_v30, 4  ;;  %v3281_v63 = vshll.u32 %v5544_v54, 16  ;;  %v3675_v19 = vpack.c.b16 %v3650_v35, %v3649_v58  ;;  %v5569_v58 = vld [vmem:[%s5989_s22 + $0x74] sm:$0x1]  ;;  %v5822_v35 = vld [vmem:[%s5989_s22 + $0x3c] sm:$0xff] }
 0x139   : > { %v2662_v28 = vsel %vm1570_vm8, %v2630_v17, %v6666_v5  ;;  %v2114_v21 = vsel %vm6370_vm5, %v5402_v11, %v2113_v30  ;;  %v3287_v17 = vshll.u32 %v5545_v50, 16  ;;  %v3293_v16 = vrot.slane %v3291_v56, 4 }
 0x13a   : > { %4414 = vrot.lane.b32.xlu0 %v2538_v2, %s5937_s23  ;;  %5482 = vmatmul.msk.bf16.vlgmr.msra.gmra.mxu1 %vm1611_vm9, %v2662_v28  ;;  %v6770_v53 = vpop.permute.xlu2 %3689  ;;  %v2117_v23 = vsel %vm6370_vm5, %v2115_v7, %v2116_v27  ;;  %v5466_v28 = vrot.slane %v5430_v12, 9  ;;  %v2401_v40 = vunpack.c.l.b16 %v2114_v21  ;;  %v3283_v29 = vrot.slane %v3281_v63, 5  ;;  %v5714_v12 = vld [vmem:[%s5989_s22 + $0x60] sm:$0xe] }
 0x13b   : > { %v2325_v27 = vsel %vm6370_vm5, %v2323_v6, %v2324_v57  ;;  %v4336_v50 = vrot.slane %v5715_v24, 5 }
 0x13c   : > { %v4517_v5 = vpop.permute.xlu0 %4516  ;;  %v2322_v7 = vsel %vm6370_vm5, %v5466_v28, %v2321_v1  ;;  %v2514_v21 = vunpack.c.l.b16 %v2325_v27  ;;  %v1506_v1 = vsel %vm1488_vm6, %v5822_v35, %v6291_v51 }
 0x13d   : > { %v4629_v44 = vsel %vm1570_vm8, %v4597_v49, %v4517_v5  ;;  %2479 = vrot.lane.b32.xlu1 %v6280_v36, %s5938_s24  ;;  %v5898_v5 = vld [vmem:[%s5989_s22 + $0x18] sm:$0xff]  ;;  %v3289_v49 = vrot.slane %v3287_v17, 5  ;;  %v5750_v17 = vrot.slane %v5714_v12, 9  ;;  %v4338_v56 = vrot.slane %v4336_v50, 4 }
 0x13e   : > { %5384 = vmatmul.msk.bf16.gmra.mxu0 %vm1611_vm9, %v1580_v37  ;;  %5766 = vmatmul.msk.bf16.vlgmr.msra.gmra.mxu3 %vm1611_vm9, %v4629_v44  ;;  %v2402_v37 = vunpack.c.l.b16 %v2117_v23  ;;  %v4339_v23 = vrot.slane %v5716_v8, 5  ;;  %v1549_v28 = vsel %vm1537_vm7, %v1506_v1, %v6526_v62  ;;  %v2586_v62 = vsel %vm1488_vm6, %v6067_v42, %v6720_v47  ;;  %v5546_v1 = vld [vmem:[%s5989_s22 + $0x78] sm:$0xf] }
 0x13f   : > { %v3608_v2 = vpop.permute.xlu1 %3607  ;;  %v3294_v63 = vor.u32 %v3293_v16, %v3289_v49 }
 0x140   : > { %3697 = vrot.lane.b32.xlu2 %v3675_v19, %s5939_s25  ;;  %v2427_v45 = vpack.c.b16 %v2402_v37, %v2401_v40 }
 0x141   : > { %v3295_v40 = vrot.slane %v3294_v63, 4 }
 0x142   : > { %4526 = vrot.lane.b32.xlu0 %v4505_v4, %s5939_s25  ;;  %v6790_v54 = vpop.permute.xlu2 %2441 }
 0x144   : > { %v3496_v59 = vpop.permute.xlu0 %3495 }
 0x145   : > { %v3722_v30 = vsel %vm1488_vm6, %v5898_v5, %v3496_v59  ;;  %3617 = vrot.lane.b32.xlu1 %v5857_v55, %s5938_s24  ;;  %v3297_v55 = vshll.u32 %v5569_v58, 16  ;;  %v1582_v59 = vsel %vm1570_vm8, %v1549_v28, %v6620_v52  ;;  %v4337_v5 = vsel %vm6370_vm5, %v5750_v17, %v4336_v50  ;;  %v5434_v58 = vld [vmem:[%s5989_s22 + $0x64] sm:$0xf] }
 0x146   : > { %v3768_v44 = vsel %vm1537_vm7, %v3722_v30, %v3608_v2  ;;  %v3284_v2 = vor.u32 %v3283_v29, %v3280_v43  ;;  %v1992_v43 = vld [vmem:[%s5989_s22 + $0x58] sm:$0xf]  ;;  %v4480_v35 = vunpack.c.l.b16 %v4337_v5  ;;  %v2328_v12 = vrot.slane %v5434_v58, 5  ;;  %v5899_v58 = vld [vmem:[%s5989_s22 + $0x24] sm:$0xff] }
 0x147   : > { %v3800_v11 = vsel %vm1570_vm8, %v3768_v44, %v6692_v38  ;;  %v4439_v4 = vpop.permute.xlu1 %4438  ;;  %v2513_v38 = vunpack.c.l.b16 %v2322_v7  ;;  %v3299_v24 = vrot.slane %v3297_v55, 5  ;;  %v2120_v44 = vrot.slane %v1992_v43, 5  ;;  %v1993_v7 = vld [vmem:[%s5989_s22 + $0x5c] sm:$0x1]  ;;  %v5433_v55 = vld [vmem:[%s5989_s22 + $0x60] sm:$0xe] }
 0x148   : > { %5649 = vmatmul.msk.bf16.gmra.mxu2 %vm1611_vm9, %v3800_v11  ;;  %v3285_v57 = vrot.slane %v3284_v2, 4  ;;  %2449 = vrot.lane.b32.xlu2 %v2427_v45, %s5937_s23  ;;  %v2123_v63 = vrot.slane %v1993_v7, 5  ;;  %v3302_v43 = vshrl.u32 %v5546_v1, 16  ;;  %v3305_v5 = vshll.u32 %v5546_v1, 16 }
 0x149   : > { %v2539_v51 = vpack.c.b16 %v2514_v21, %v2513_v38  ;;  %v3300_v47 = vsel %vm6001_vm2, %v3295_v40, %v3299_v24  ;;  %v2122_v45 = vrot.slane %v2120_v44, 4  ;;  %v5823_v38 = vld [vmem:[%s5989_s22 + $0x48] sm:$0xff] }
 0x14a   : > { %3505 = vrot.lane.b32.xlu0 %v6256_v34, %s5937_s23  ;;  %v6814_v29 = vpop.permute.xlu2 %2553  ;;  %v3290_v37 = vsel %vm6001_vm2, %v3285_v57, %v3289_v49  ;;  %v1991_v49 = vld [vmem:[%s5989_s22 + $0x54] sm:$0xe]  ;;  %v3652_v50 = vunpack.c.l.b16 %v3300_v47  ;;  %v5435_v21 = vld [vmem:[%s5989_s22 + $0x68] sm:$0x1]  ;;  %v2330_v57 = vrot.slane %v2328_v12, 4  ;;  %v3304_v7 = vrot.slane %v3302_v43, 4 }
 0x14b   : > { %v3651_v27 = vunpack.c.l.b16 %v3290_v37  ;;  %v5403_v2 = vrot.slane %v1991_v49, 9  ;;  %v2124_v24 = vsel %vm6370_vm5, %v2122_v45, %v2123_v63  ;;  %v5570_v45 = vld [vmem:[%s5989_s22 + $0x80] sm:$0x1] }
 0x14c   : > { %v4407_v6 = vpop.permute.xlu0 %4406 }
 0x14d   : > { %4448 = vrot.lane.b32.xlu1 %v3675_v19, %s5938_s24  ;;  %v4340_v19 = vsel %vm6370_vm5, %v4338_v56, %v4339_v23  ;;  %v4553_v16 = vsel %vm1488_vm6, %v6254_v33, %v4407_v6  ;;  %v5547_v23 = vld [vmem:[%s5989_s22 + $0x7c] sm:$0xf]  ;;  %v3676_v28 = vpack.c.b16 %v3652_v50, %v3651_v27  ;;  %v5467_v6 = vrot.slane %v5433_v55, 9 }
 0x14e   : > { %5385 = vmatmul.msk.bf16.gmra.mxu0 %vm1611_vm9, %v1582_v59  ;;  %v4481_v11 = vunpack.c.l.b16 %v4340_v19  ;;  %v5858_v59 = vld [vmem:[%s5989_s22 + $0x6c] sm:$0xff]  ;;  %v2121_v40 = vsel %vm6370_vm5, %v5403_v2, %v2120_v44  ;;  %v3311_v19 = vshll.u32 %v5547_v23, 16  ;;  %v2404_v44 = vunpack.c.l.b16 %v2124_v24 }
 0x14f   : > { %v2472_v52 = vpop.permute.xlu1 %2471  ;;  %v2403_v47 = vunpack.c.l.b16 %v2121_v40 }
 0x150   : > { %v2632_v30 = vsel %vm1537_vm7, %v2586_v62, %v2472_v52  ;;  %2561 = vrot.lane.b32.xlu2 %v2539_v51, %s5939_s25  ;;  %v1509_v62 = vsel %vm1488_vm6, %v5823_v38, %v6416_v20  ;;  %v5718_v52 = vld [vmem:[%s5989_s22 + $0x70] sm:$0xf]  ;;  %v2329_v20 = vsel %vm6370_vm5, %v5467_v6, %v2328_v12  ;;  %v3313_v27 = vrot.slane %v3311_v19, 5 }
 0x151   : > { %v2664_v42 = vsel %vm1570_vm8, %v2632_v30, %v6736_v14  ;;  %v4599_v14 = vsel %vm1537_vm7, %v4553_v16, %v4439_v4  ;;  %v4506_v4 = vpack.c.b16 %v4481_v11, %v4480_v35  ;;  %v3315_v30 = vshrl.u32 %v5547_v23, 16  ;;  %v5717_v11 = vld [vmem:[%s5989_s22 + $0x6c] sm:$0xe] }
 0x152   : > { %4416 = vrot.lane.b32.xlu0 %v2539_v51, %s5937_s23  ;;  %5483 = vmatmul.msk.bf16.gmra.mxu1 %vm1611_vm9, %v2664_v42  ;;  %v6844_v17 = vpop.permute.xlu2 %3691  ;;  %v2331_v51 = vrot.slane %v5435_v21, 5  ;;  %v1551_v37 = vsel %vm1537_vm7, %v1509_v62, %v6517_v0  ;;  %v4343_v49 = vrot.slane %v5718_v52, 5  ;;  %v2428_v63 = vpack.c.b16 %v2404_v44, %v2403_v47 }
 0x153   : > { %v1584_v42 = vsel %vm1570_vm8, %v1551_v37, %v6538_v31  ;;  %v3317_v50 = vrot.slane %v3315_v30, 4  ;;  %v2515_v55 = vunpack.c.l.b16 %v2329_v20  ;;  %v2589_v19 = vsel %vm1488_vm6, %v6025_v9, %v6790_v54 }
 0x154   : > { %v4519_v33 = vpop.permute.xlu0 %4518  ;;  %v2332_v0 = vsel %vm6370_vm5, %v2330_v57, %v2331_v51  ;;  %v4345_v21 = vrot.slane %v4343_v49, 4  ;;  %v3321_v57 = vshll.u32 %v5570_v45, 16  ;;  %v5436_v45 = vld [vmem:[%s5989_s22 + $0x6c] sm:$0xe] }
 0x155   : > { %v4631_v8 = vsel %vm1570_vm8, %v4599_v14, %v4519_v33  ;;  %2481 = vrot.lane.b32.xlu1 %v6256_v34, %s5938_s24  ;;  %v5719_v33 = vld [vmem:[%s5989_s22 + $0x74] sm:$0x1]  ;;  %v3307_v14 = vrot.slane %v3305_v5, 5  ;;  %v2516_v38 = vunpack.c.l.b16 %v2332_v0  ;;  %v3318_v6 = vor.u32 %v3317_v50, %v3313_v27 }
 0x156   : > { %5767 = vmatmul.msk.bf16.gmra.mxu3 %vm1611_vm9, %v4631_v8  ;;  %v4346_v1 = vrot.slane %v5719_v33, 5  ;;  %v3323_v5 = vrot.slane %v3321_v57, 5  ;;  %v5437_v33 = vld [vmem:[%s5989_s22 + $0x70] sm:$0xf]  ;;  %v5468_v57 = vrot.slane %v5436_v45, 9 }
 0x157   : > { %v3610_v56 = vpop.permute.xlu1 %3609  ;;  %v3308_v23 = vor.u32 %v3307_v14, %v3304_v7  ;;  %v2540_v24 = vpack.c.b16 %v2516_v38, %v2515_v55  ;;  %v3319_v52 = vrot.slane %v3318_v6, 4 }
 0x158   : > { %3699 = vrot.lane.b32.xlu2 %v3676_v28, %s5939_s25  ;;  %v4347_v43 = vsel %vm6370_vm5, %v4345_v21, %v4346_v1  ;;  %v5549_v21 = vld [vmem:[%s5989_s22 + $0x88] sm:$0xf]  ;;  %v5438_v1 = vld [vmem:[%s5989_s22 + $0x74] sm:$0x1] }
 0x159   : > { %v3309_v62 = vrot.slane %v3308_v23, 4  ;;  %v4483_v9 = vunpack.c.l.b16 %v4347_v43  ;;  %v5859_v23 = vld [vmem:[%s5989_s22 + $0x78] sm:$0xff]  ;;  %v3339_v43 = vshrl.u32 %v5549_v21, 16 }
 0x15a   : > { %4528 = vrot.lane.b32.xlu0 %v4506_v4, %s5939_s25  ;;  %v6875_v8 = vpop.permute.xlu2 %2443 }
 0x15c   : > { %v3498_v16 = vpop.permute.xlu0 %3497 }
 0x15d   : > { %v3725_v35 = vsel %vm1488_vm6, %v5899_v58, %v3498_v16  ;;  %3619 = vrot.lane.b32.xlu1 %v5858_v59, %s5938_s24  ;;  %v5824_v59 = vld [vmem:[%s5989_s22 + $0x54] sm:$0xff]  ;;  %v1995_v16 = vld [vmem:[%s5989_s22 + $0x64] sm:$0xf]  ;;  %v3314_v58 = vsel %vm6001_vm2, %v3309_v62, %v3313_v27 }
 0x15e   : > { %5386 = vmatmul.msk.bf16.gmra.mxu0 %vm1611_vm9, %v1584_v42  ;;  %v3770_v31 = vsel %vm1537_vm7, %v3725_v35, %v3610_v56  ;;  %v2127_v35 = vrot.slane %v1995_v16, 5  ;;  %v5900_v16 = vld [vmem:[%s5989_s22 + $0x30] sm:$0xff] }
 0x15f   : > { %v3802_v12 = vsel %vm1570_vm8, %v3770_v31, %v6770_v53  ;;  %v4441_v2 = vpop.permute.xlu1 %4440  ;;  %v5751_v53 = vrot.slane %v5717_v11, 9  ;;  %v1996_v11 = vld [vmem:[%s5989_s22 + $0x68] sm:$0x1] }
 0x160   : > { %5650 = vmatmul.msk.bf16.gmra.mxu2 %vm1611_vm9, %v3802_v12  ;;  %2451 = vrot.lane.b32.xlu2 %v2428_v63, %s5937_s23  ;;  %v2129_v12 = vrot.slane %v2127_v35, 4  ;;  %v5548_v63 = vld [vmem:[%s5989_s22 + $0x84] sm:$0xf] }
 0x161   : > { %v6884_v4 = vpop.f32.mrf.mxu0  ;;  %v4344_v51 = vsel %vm6370_vm5, %v5751_v53, %v4343_v49  ;;  %v2335_v53 = vrot.slane %v5437_v33, 5  ;;  %v5722_v33 = vld [vmem:[%s5989_s22 + $0x80] sm:$0x1] }
 0x162   : > { %3507 = vrot.lane.b32.xlu0 %v6336_v46, %s5937_s23  ;;  %v1733_v56 = vpack.c.bf16 %v6884_v4, %v6884_v4  ;;  %v6902_v30 = vpop.permute.xlu2 %2555  ;;  %v4482_v20 = vunpack.c.l.b16 %v4344_v51  ;;  %v3335_v51 = vshll.u32 %v5549_v21, 16 }
 0x163   : > { %v2337_v62 = vrot.slane %v2335_v53, 4 }
 0x164   : > { %v4409_v40 = vpop.permute.xlu0 %4408  ;;  %1766 = vst.msk [vmem:[%s6882_s11] sm:$0xf] %vm1765_vm10, %v1733_v56 }
 0x165   : > { %4450 = vrot.lane.b32.xlu1 %v3676_v28, %s5938_s24  ;;  %v1512_v28 = vsel %vm1488_vm6, %v5824_v59, %v6407_v48  ;;  %v4556_v47 = vsel %vm1488_vm6, %v6249_v25, %v4409_v40  ;;  %v3324_v25 = vsel %vm6001_vm2, %v3319_v52, %v3323_v5  ;;  %v3326_v59 = vshrl.u32 %v5548_v63, 16 }
 0x166   : > { %v1553_v0 = vsel %vm1537_vm7, %v1512_v28, %v6448_v41  ;;  %v4601_v31 = vsel %vm1537_vm7, %v4556_v47, %v4441_v2  ;;  %v3653_v41 = vunpack.c.l.b16 %v3314_v58  ;;  %v3654_v27 = vunpack.c.l.b16 %v3324_v25  ;;  %v5825_v25 = vld [vmem:[%s5989_s22 + $0x60] sm:$0xff] }
 0x167   : > { %v2474_v37 = vpop.permute.xlu1 %2473  ;;  %v1586_v7 = vsel %vm1570_vm8, %v1553_v0, %v6659_v22  ;;  %v4507_v22 = vpack.c.b16 %v4483_v9, %v4482_v20  ;;  %v2130_v2 = vrot.slane %v1996_v11, 5  ;;  %v2338_v52 = vrot.slane %v5438_v1, 5 }
 0x168   : > { %v2634_v42 = vsel %vm1537_vm7, %v2589_v19, %v2474_v37  ;;  %2563 = vrot.lane.b32.xlu2 %v2540_v24, %s5939_s25  ;;  %v3677_v56 = vpack.c.b16 %v3654_v27, %v3653_v41  ;;  %v5721_v37 = vld [vmem:[%s5989_s22 + $0x7c] sm:$0xf]  ;;  %v2336_v47 = vsel %vm6370_vm5, %v5468_v57, %v2335_v53  ;;  %v3341_v58 = vrot.slane %v3339_v43, 4 }
 0x169   : > { %v2666_v44 = vsel %vm1570_vm8, %v2634_v42, %v6814_v29  ;;  %v6912_v54 = vpop.f32.mrf.mxu0  ;;  %v1994_v29 = vld [vmem:[%s5989_s22 + $0x60] sm:$0xe]  ;;  %v2131_v40 = vsel %vm6370_vm5, %v2129_v12, %v2130_v2  ;;  %v2339_v11 = vsel %vm6370_vm5, %v2337_v62, %v2338_v52  ;;  %v2517_v41 = vunpack.c.l.b16 %v2336_v47  ;;  %v5826_v2 = vld [vmem:[%s5989_s22 + $0x6c] sm:$0xff] }
 0x16a   : > { %4418 = vrot.lane.b32.xlu0 %v2540_v24, %s5937_s23  ;;  %5484 = vmatmul.msk.bf16.gmra.mxu1 %vm1611_vm9, %v2666_v44  ;;  %v1734_v48 = vpack.c.bf16 %v6912_v54, %v6912_v54  ;;  %v5404_v50 = vrot.slane %v1994_v29, 9  ;;  %v6940_v55 = vpop.permute.xlu2 %3693  ;;  %v3329_v24 = vshll.u32 %v5548_v63, 16  ;;  %v2406_v42 = vunpack.c.l.b16 %v2131_v40 }
 0x16b   : > { %v3328_v44 = vrot.slane %v3326_v59, 4  ;;  %v1515_v12 = vsel %vm1488_vm6, %v5825_v25, %v6319_v60 }
 0x16c   : > { %v4521_v49 = vpop.permute.xlu0 %4520  ;;  %1767 = vst.msk [vmem:[%s6882_s11 + $0x4] sm:$0xf] %vm1765_vm10, %v1734_v48  ;;  %v2128_v6 = vsel %vm6370_vm5, %v5404_v50, %v2127_v35  ;;  %v3331_v9 = vrot.slane %v3329_v24, 5  ;;  %v6958_v48 = vrot.slane %v3335_v51, 5  ;;  %v1555_v53 = vsel %vm1537_vm7, %v1515_v12, %v6546_v10  ;;  %v7037_v12 = vld [vmem:[%s5989_s22 + $0x88] sm:$0xf] }
 0x16d   : > { %v4633_v14 = vsel %vm1570_vm8, %v4601_v31, %v4521_v49  ;;  %2483 = vrot.lane.b32.xlu1 %v6336_v46, %s5938_s24  ;;  %v2405_v19 = vunpack.c.l.b16 %v2128_v6  ;;  %v4350_v49 = vrot.slane %v5721_v37, 5  ;;  %v5720_v31 = vld [vmem:[%s5989_s22 + $0x78] sm:$0xe]  ;;  %v1588_v1 = vsel %vm1570_vm8, %v1555_v53, %v6639_v3 }
 0x16e   : > { %5387 = vmatmul.msk.bf16.gmra.mxu0 %vm1611_vm9, %v1586_v7  ;;  %5768 = vmatmul.msk.bf16.gmra.mxu3 %vm1611_vm9, %v4633_v14  ;;  %v5571_v7 = vld [vmem:[%s5989_s22 + $0x8c] sm:$0x1]  ;;  %v3332_v27 = vor.u32 %v3331_v9, %v3328_v44  ;;  %v3342_v50 = vor.u32 %v3341_v58, %v6958_v48  ;;  %v5752_v45 = vrot.slane %v5720_v31, 9  ;;  %v1518_v10 = vsel %vm1488_vm6, %v5826_v2, %v6446_v18  ;;  %v7000_v18 = vld [vmem:[%s5989_s22 + $0x7c] sm:$0xf] }
 0x16f   : > { %v3612_v38 = vpop.permute.xlu1 %3611  ;;  %v2429_v14 = vpack.c.b16 %v2406_v42, %v2405_v19  ;;  %v4352_v63 = vrot.slane %v4350_v49, 4  ;;  %v2592_v3 = vsel %vm1488_vm6, %v6056_v13, %v6875_v8  ;;  %v1557_v43 = vsel %vm1537_vm7, %v1518_v10, %v6532_v32  ;;  %v8638_v13 = vld [vmem:[#allocation14_spill] sm:$0xff]  ;;  %v8639_v37 = vld [vmem:[#allocation29_spill] sm:$0xff]  ;;  %v1999_v42 = vld [vmem:[%s5989_s22 + $0x74] sm:$0x1] }
 0x170   : > { %3701 = vrot.lane.b32.xlu2 %v3677_v56, %s5939_s25  ;;  %v3333_v6 = vrot.slane %v3332_v27, 4  ;;  %v3343_v57 = vrot.slane %v3342_v50, 4  ;;  %v4351_v24 = vsel %vm6370_vm5, %v5752_v45, %v4350_v49  ;;  %v2342_v9 = vrot.slane %v7000_v18, 5  ;;  %v5551_v58 = vld [vmem:[%s5989_s22 + $0x94] sm:$0xf] }
 0x171   : > { %v4484_v32 = vunpack.c.l.b16 %v4351_v24  ;;  %v5441_v50 = vld [vmem:[%s5989_s22 + $0x80] sm:$0x1]  ;;  %v3359_v2 = vshll.u32 %v5551_v58, 16  ;;  %v3363_v45 = vshrl.u32 %v5551_v58, 16  ;;  %v4357_v24 = vrot.slane %v7037_v12, 5 }
 0x172   : > { %4530 = vrot.lane.b32.xlu0 %v4507_v22, %s5939_s25  ;;  %v6963_v35 = vpop.permute.xlu2 %2445  ;;  %v3345_v22 = vshll.u32 %v5571_v7, 16  ;;  %v3338_v44 = vsel %vm6001_vm2, %v3333_v6, %v6958_v48  ;;  %v5439_v48 = vld [vmem:[%s5989_s22 + $0x78] sm:$0xe]  ;;  %v2344_v6 = vrot.slane %v2342_v9, 4  ;;  %v5901_v58 = vld [vmem:[%s5989_s22 + $0x3c] sm:$0xff] }
 0x173   : > { %v3365_v18 = vrot.slane %v3363_v45, 4  ;;  %v8640_v45 = vld [vmem:[#allocation22_spill] sm:$0xff] }
 0x174   : > { %v3500_v5 = vpop.permute.xlu0 %3499  ;;  %v3347_v59 = vrot.slane %v3345_v22, 5 }
 0x175   : > { %v3728_v28 = vsel %vm1488_vm6, %v5900_v16, %v3500_v5  ;;  %3621 = vrot.lane.b32.xlu1 %v5859_v23, %s5938_s24  ;;  %v1998_v23 = vld [vmem:[%s5989_s22 + $0x70] sm:$0xf]  ;;  %v7009_v16 = vsel %vm1570_vm8, %v1557_v43, %v8639_v37 }
 0x176   : > { %v3772_v20 = vsel %vm1537_vm7, %v3728_v28, %v3612_v38  ;;  %v4353_v38 = vrot.slane %v5722_v33, 5  ;;  %v2134_v52 = vrot.slane %v1998_v23, 5  ;;  %v5550_v5 = vld [vmem:[%s5989_s22 + $0x90] sm:$0xf]  ;;  %v1997_v28 = vld [vmem:[%s5989_s22 + $0x6c] sm:$0xe] }
 0x177   : > { %v3804_v29 = vsel %vm1570_vm8, %v3772_v20, %v6844_v17  ;;  %v4443_v0 = vpop.permute.xlu1 %4442  ;;  %v2518_v17 = vunpack.c.l.b16 %v2339_v11  ;;  %v1869_v20 = vmul.f32 %v6912_v54, %v6912_v54  ;;  %v3350_v25 = vshrl.u32 %v5550_v5, 16 }
 0x178   : > { %5651 = vmatmul.msk.bf16.gmra.mxu2 %vm1611_vm9, %v3804_v29  ;;  %2453 = vrot.lane.b32.xlu2 %v2429_v14, %s5937_s23  ;;  %v4354_v51 = vsel %vm6370_vm5, %v4352_v63, %v4353_v38  ;;  %v3353_v29 = vshll.u32 %v5550_v5, 16  ;;  %v5405_v7 = vrot.slane %v1997_v28, 9  ;;  %v2136_v31 = vrot.slane %v2134_v52, 4 }
 0x179   : > { %v2541_v60 = vpack.c.b16 %v2518_v17, %v2517_v41  ;;  %v4485_v47 = vunpack.c.l.b16 %v4354_v51  ;;  %v2137_v33 = vrot.slane %v1999_v42, 5  ;;  %v1868_v14 = vmul.f32 %v6884_v4, %v6884_v4 }
 0x17a   : > { %3509 = vrot.lane.b32.xlu0 %v6309_v39, %s5937_s23  ;;  %v6990_v40 = vpop.permute.xlu2 %2557  ;;  %v3655_v17 = vunpack.c.l.b16 %v3338_v44  ;;  %v1901_v63 = vsel %vm1537_vm7, %v1869_v20, 0.0  ;;  %v3355_v23 = vrot.slane %v3353_v29, 5  ;;  %v4359_v29 = vrot.slane %v4357_v24, 4 }
 0x17b   : > { %v4508_v22 = vpack.c.b16 %v4485_v47, %v4484_v32  ;;  %v1900_v10 = vsel %vm1537_vm7, %v1868_v14, 0.0 }
 0x17c   : > { %v4411_v21 = vpop.permute.xlu0 %4410  ;;  %v1902_v43 = vadd.f32 %v1901_v63, %v1900_v10  ;;  %v8643_v10 = vld [vmem:[#allocation18_spill] sm:$0xff] }
 0x17d   : > { %4452 = vrot.lane.b32.xlu1 %v3677_v56, %s5938_s24  ;;  %v4559_v8 = vsel %vm1488_vm6, %v8638_v13, %v4411_v21  ;;  %v5469_v21 = vrot.slane %v5439_v48, 9 }
 0x17e   : > { %5388 = vmatmul.msk.bf16.gmra.mxu0 %vm1611_vm9, %v1588_v1  ;;  %v4603_v49 = vsel %vm1537_vm7, %v4559_v8, %v4443_v0  ;;  %v1799_v0 = vsel %vm1537_vm7, %v6912_v54, 0.0  ;;  %v3352_v1 = vrot.slane %v3350_v25, 4  ;;  %v2135_v54 = vsel %vm6370_vm5, %v5405_v7, %v2134_v52 }
 0x17f   : > { %v2476_v56 = vpop.permute.xlu1 %2475  ;;  %v7055_v52 = vrot.slane %v3359_v2, 5  ;;  %v2407_v13 = vunpack.c.l.b16 %v2135_v54  ;;  %v2343_v8 = vsel %vm6370_vm5, %v5469_v21, %v2342_v9  ;;  %v7090_v2 = vld [vmem:[%s5989_s22 + $0x7c] sm:$0xf]  ;;  %v8642_v54 = vld [vmem:[#allocation24_spill] sm:$0xff] }
 0x180   : > { %v2636_v62 = vsel %vm1537_vm7, %v2592_v3, %v2476_v56  ;;  %2565 = vrot.lane.b32.xlu2 %v2541_v60, %s5939_s25  ;;  %v5860_v56 = vld [vmem:[%s5989_s22 + $0x84] sm:$0xff]  ;;  %v3356_v37 = vor.u32 %v3355_v23, %v3352_v1 }
 0x181   : > { %v2668_v19 = vsel %vm1570_vm8, %v2636_v62, %v6902_v30  ;;  %v3348_v30 = vsel %vm6001_vm2, %v3343_v57, %v3347_v59  ;;  %v2345_v57 = vrot.slane %v5441_v50, 5  ;;  %v1798_v59 = vsel %vm1537_vm7, %v6884_v4, 0.0  ;;  %v5723_v62 = vld [vmem:[%s5989_s22 + $0x84] sm:$0xe]  ;;  %v7105_v23 = vld [vmem:[%s5989_s22 + $0x88] sm:$0xf] }
 0x182   : > { %4420 = vrot.lane.b32.xlu0 %v2541_v60, %s5937_s23  ;;  %5485 = vmatmul.msk.bf16.gmra.mxu1 %vm1611_vm9, %v2668_v19  ;;  %v3656_v27 = vunpack.c.l.b16 %v3348_v30  ;;  %v7040_v38 = vpop.permute.xlu2 %3695  ;;  %v2138_v60 = vsel %vm6370_vm5, %v2136_v31, %v2137_v33  ;;  %v1800_v51 = vadd.f32 %v1799_v0, %v1798_v59  ;;  %v5572_v19 = vld [vmem:[%s5989_s22 + $0x98] sm:$0x1]  ;;  %v5725_v30 = vld [vmem:[%s5989_s22 + $0x8c] sm:$0x1]  ;;  %v5753_v9 = vrot.slane %v5723_v62, 9  ;;  %v5828_v0 = vld [vmem:[%s5989_s22 + $0x84] sm:$0xff] }
 0x183   : > { %v2408_v4 = vunpack.c.l.b16 %v2138_v60  ;;  %v2346_v44 = vsel %vm6370_vm5, %v2344_v6, %v2345_v57  ;;  %v3366_v31 = vor.u32 %v3365_v18, %v7055_v52  ;;  %v3369_v33 = vshll.u32 %v5572_v19, 16  ;;  %v7123_v62 = vld [vmem:[%s5989_s22 + $0x78] sm:$0xe] }
 0x184   : > { %v4523_v11 = vpop.permute.xlu0 %4522  ;;  %v7049_v3 = vpack.c.b16 %v3656_v27, %v3655_v17  ;;  %v4360_v27 = vrot.slane %v5725_v30, 5  ;;  %v3357_v50 = vrot.slane %v3356_v37, 4  ;;  %v2520_v12 = vunpack.c.l.b16 %v2346_v44 }
 0x185   : > { %v4635_v41 = vsel %vm1570_vm8, %v4603_v49, %v4523_v11  ;;  %2485 = vrot.lane.b32.xlu1 %v6309_v39, %s5938_s24  ;;  %v5827_v11 = vld [vmem:[%s5989_s22 + $0x78] sm:$0xff]  ;;  %v7100_v21 = vrot.slane %v3366_v31, 4  ;;  %v7102_v1 = vrot.slane %v3369_v33, 5  ;;  %v2141_v18 = vrot.slane %v7090_v2, 5 }
 0x186   : > { %5769 = vmatmul.msk.bf16.gmra.mxu3 %vm1611_vm9, %v4635_v41  ;;  %v1521_v63 = vsel %vm1488_vm6, %v5827_v11, %v8640_v45  ;;  %v7111_v57 = vsel %vm6370_vm5, %v4359_v29, %v4360_v27  ;;  %v3362_v59 = vsel %vm6001_vm2, %v3357_v50, %v7055_v52  ;;  %v2349_v19 = vrot.slane %v7105_v23, 5  ;;  %v8645_v11 = vld [vmem:[#allocation15_spill] sm:$0xff] }
 0x187   : > { %v3614_v53 = vpop.permute.xlu1 %3613  ;;  %v1559_v60 = vsel %vm1537_vm7, %v1521_v63, %v8642_v54  ;;  %v2143_v31 = vrot.slane %v2141_v18, 4 }
 0x188   : > { %3703 = vrot.lane.b32.xlu2 %v7049_v3, %s5939_s25 }
 0x18a   : > { %4532 = vrot.lane.b32.xlu0 %v4508_v22, %s5939_s25  ;;  %v7083_v41 = vpop.permute.xlu2 %2447  ;;  %v2519_v22 = vunpack.c.l.b16 %v2343_v8  ;;  %v7137_v8 = vld [vmem:[%s5989_s22 + $0x84] sm:$0xe] }
 0x18b   : > { %v1658_v5 = vpop.f32.mrf.mxu0  ;;  %v5470_v50 = vrot.slane %v7137_v8, 9 }
 0x18c   : > { %v1735_v28 = vpack.c.bf16 %v1658_v5, %v1658_v5  ;;  %v1801_v42 = vsel %vm1537_vm7, %v1658_v5, 0.0  ;;  %v1870_v32 = vmul.f32 %v1658_v5, %v1658_v5  ;;  %v3502_v47 = vpop.permute.xlu0 %3501  ;;  %v8644_v5 = vld [vmem:[#allocation2_spill] sm:$0xff]  ;;  %v2542_v52 = vpack.c.b16 %v2520_v12, %v2519_v22 }
 0x18d   : > { %v7064_v20 = vadd.f32 %v1801_v42, %v1800_v51  ;;  %v3731_v25 = vsel %vm1488_vm6, %v5901_v58, %v3502_v47  ;;  %3623 = vrot.lane.b32.xlu1 %v5860_v56, %s5938_s24  ;;  %v7118_v56 = vsel %vm1488_vm6, %v5828_v0, %v8643_v10  ;;  %v5444_v42 = vld [vmem:[%s5989_s22 + $0x8c] sm:$0x1]  ;;  %v5406_v58 = vrot.slane %v7123_v62, 9 }
 0x18e   : > { %1768 = vst.msk [vmem:[%s6882_s11 + $0x8] sm:$0xf] %vm1765_vm10, %v1735_v28  ;;  %v1903_v49 = vsel %vm1537_vm7, %v1870_v32, 0.0  ;;  %5389 = vmatmul.msk.bf16.gmra.mxu0 %vm1611_vm9, %v7009_v16  ;;  %v3774_v7 = vsel %vm1537_vm7, %v3731_v25, %v3614_v53  ;;  %v2430_v16 = vpack.c.b16 %v2408_v4, %v2407_v13  ;;  %v7098_v53 = vsel %vm6370_vm5, %v5753_v9, %v4357_v24  ;;  %v5552_v32 = vld [vmem:[%s5989_s22 + $0x9c] sm:$0xf] }
 0x18f   : > { %v7079_v48 = vadd.f32 %v1903_v49, %v1902_v43  ;;  %v3806_v14 = vsel %vm1570_vm8, %v3774_v7, %v6940_v55  ;;  %v7085_v17 = vpop.permute.xlu1 %4444  ;;  %v8641_v55 = vld [vmem:[#allocation16_spill] sm:$0xff]  ;;  %v1592_v43 = vsel %vm1570_vm8, %v1559_v60, %v6684_v61  ;;  %v2595_v13 = vsel %vm1488_vm6, %v8644_v5, %v6963_v35  ;;  %v7134_v61 = vld [vmem:[%s5989_s22 + $0x80] sm:$0x1]  ;;  %v5573_v5 = vld [vmem:[%s5989_s22 + $0xa4] sm:$0x1] }
 0x190   : > { %5652 = vmatmul.msk.bf16.gmra.mxu2 %vm1611_vm9, %v3806_v14  ;;  %2455 = vrot.lane.b32.xlu2 %v2430_v16, %s5937_s23  ;;  %v4486_v4 = vunpack.c.l.b16 %v7098_v53  ;;  %v4487_v35 = vunpack.c.l.b16 %v7111_v57  ;;  %v7147_v28 = vunpack.c.l.b16 %v3362_v59  ;;  %v5553_v25 = vld [vmem:[%s5989_s22 + $0xa0] sm:$0xf]  ;;  %v3374_v9 = vshrl.u32 %v5552_v32, 16  ;;  %v5829_v16 = vld [vmem:[%s5989_s22 + $0x90] sm:$0xff] }
 0x191   : > { %v3377_v29 = vshll.u32 %v5552_v32, 16  ;;  %v3383_v33 = vshll.u32 %v5553_v25, 16  ;;  %v2144_v27 = vrot.slane %v7134_v61, 5  ;;  %v2351_v0 = vrot.slane %v2349_v19, 4 }
 0x192   : > { %3511 = vrot.lane.b32.xlu0 %v8641_v55, %s5937_s23  ;;  %v7152_v44 = vpop.permute.xlu2 %2559  ;;  %v2352_v45 = vrot.slane %v5444_v42, 5  ;;  %v3387_v63 = vshrl.u32 %v5553_v25, 16  ;;  %v2142_v32 = vsel %vm6370_vm5, %v5406_v58, %v2141_v18  ;;  %v8648_v58 = vld [vmem:[#allocation30_spill] sm:$0xff] }
 0x193   : > { %v1660_v6 = vpop.f32.mrf.mxu0  ;;  %v3379_v54 = vrot.slane %v3377_v29, 5  ;;  %v7177_v60 = vrot.slane %v3383_v33, 5  ;;  %v8647_v29 = vld [vmem:[#allocation28_spill] sm:$0xff] }
 0x194   : > { %v1736_v24 = vpack.c.bf16 %v1660_v6, %v1660_v6  ;;  %v4413_v51 = vpop.permute.xlu0 %4412  ;;  %v1871_v37 = vmul.f32 %v1660_v6, %v1660_v6  ;;  %v1803_v47 = vsel %vm1537_vm7, %v1660_v6, 0.0  ;;  %v3389_v10 = vrot.slane %v3387_v63, 4 }
 0x195   : > { %4454 = vrot.lane.b32.xlu1 %v7049_v3, %s5938_s24  ;;  %v3372_v3 = vsel %vm6001_vm2, %v7100_v21, %v7102_v1  ;;  %v4562_v49 = vsel %vm1488_vm6, %v8645_v11, %v4413_v51  ;;  %v1804_v12 = vadd.f32 %v1803_v47, %v7064_v20  ;;  %v7175_v21 = vld [vmem:[%s5989_s22 + $0x94] sm:$0xf]  ;;  %v3376_v1 = vrot.slane %v3374_v9, 4 }
 0x196   : > { %1769 = vst.msk [vmem:[%s6882_s11 + $0xc] sm:$0xf] %vm1765_vm10, %v1736_v24  ;;  %v1905_v22 = vsel %vm1537_vm7, %v1871_v37, 0.0  ;;  %v3658_v62 = vunpack.c.l.b16 %v3372_v3  ;;  %v2145_v47 = vsel %vm6370_vm5, %v2143_v31, %v2144_v27  ;;  %v2353_v25 = vsel %vm6370_vm5, %v2351_v0, %v2352_v45 }
 0x197   : > { %v2478_v30 = vpop.permute.xlu1 %2477  ;;  %v1906_v51 = vadd.f32 %v1905_v22, %v7079_v48  ;;  %v4509_v48 = vpack.c.b16 %v4487_v35, %v4486_v4  ;;  %v3380_v4 = vor.u32 %v3379_v54, %v3376_v1  ;;  %v2350_v35 = vsel %vm6370_vm5, %v5470_v50, %v2349_v19  ;;  %v5902_v1 = vld [vmem:[%s5989_s22 + $0x48] sm:$0xff] }
 0x198   : > { %v2638_v7 = vsel %vm1537_vm7, %v2595_v13, %v2478_v30  ;;  %2567 = vrot.lane.b32.xlu2 %v2542_v52, %s5939_s25  ;;  %v8646_v13 = vld [vmem:[#allocation25_spill] sm:$0xff]  ;;  %v3390_v2 = vor.u32 %v3389_v10, %v7177_v60  ;;  %v3393_v9 = vshll.u32 %v5573_v5, 16  ;;  %v1561_v11 = vsel %vm1537_vm7, %v7118_v56, %v8648_v58  ;;  %v7229_v56 = vld [vmem:[%s5989_s22 + $0x94] sm:$0xf] }
 0x199   : > { %v2670_v14 = vsel %vm1570_vm8, %v2638_v7, %v6990_v40  ;;  %v4605_v40 = vsel %vm1537_vm7, %v4562_v49, %v7085_v17  ;;  %v1527_v61 = vsel %vm1488_vm6, %v5829_v16, %v8646_v13  ;;  %v5728_v30 = vld [vmem:[%s5989_s22 + $0x98] sm:$0x1]  ;;  %v7223_v23 = vpack.c.b16 %v3658_v62, %v7147_v28  ;;  %v5861_v49 = vld [vmem:[%s5989_s22 + $0x90] sm:$0xff] }
 0x19a   : > { %4422 = vrot.lane.b32.xlu0 %v2542_v52, %s5937_s23  ;;  %5486 = vmatmul.msk.bf16.gmra.mxu1 %vm1611_vm9, %v2670_v14  ;;  %v4364_v52 = vrot.slane %v7175_v21, 5  ;;  %v7198_v42 = vpop.permute.xlu2 %3697  ;;  %v7217_v18 = vsel %vm1537_vm7, %v1527_v61, %v8647_v29  ;;  %v2409_v19 = vunpack.c.l.b16 %v2142_v32  ;;  %v4367_v33 = vrot.slane %v5728_v30, 5  ;;  %v2004_v14 = vld [vmem:[%s5989_s22 + $0x88] sm:$0xf]  ;;  %v5447_v32 = vld [vmem:[%s5989_s22 + $0x98] sm:$0x1] }
 0x19b   : > { %v1663_v53 = vpop.f32.mrf.mxu0  ;;  %v2410_v50 = vunpack.c.l.b16 %v2145_v47  ;;  %v2521_v0 = vunpack.c.l.b16 %v2350_v35  ;;  %v2522_v16 = vunpack.c.l.b16 %v2353_v25  ;;  %v3381_v22 = vrot.slane %v3380_v4, 4 }
 0x19c   : > { %v1737_v6 = vpack.c.bf16 %v1663_v53, %v1663_v53  ;;  %v1805_v57 = vsel %vm1537_vm7, %v1663_v53, 0.0  ;;  %v1872_v20 = vmul.f32 %v1663_v53, %v1663_v53  ;;  %v4525_v59 = vpop.permute.xlu0 %4524  ;;  %v4366_v31 = vrot.slane %v4364_v52, 4 }
 0x19d   : > { %v7180_v24 = vadd.f32 %v1805_v57, %v1804_v12  ;;  %v4637_v17 = vsel %vm1570_vm8, %v4605_v40, %v4525_v59  ;;  %2487 = vrot.lane.b32.xlu1 %v8641_v55, %s5938_s24  ;;  %v3391_v63 = vrot.slane %v3390_v2, 4  ;;  %v3395_v53 = vrot.slane %v3393_v9, 5  ;;  %v8649_v40 = vld [vmem:[#allocation3_spill] sm:$0xff] }
 0x19e   : > { %1770 = vst.msk [vmem:[%s6882_s11 + $0x10] sm:$0xf] %vm1765_vm10, %v1737_v6  ;;  %v1907_v8 = vsel %vm1537_vm7, %v1872_v20, 0.0  ;;  %5390 = vmatmul.msk.bf16.gmra.mxu0 %vm1611_vm9, %v1592_v43  ;;  %5770 = vmatmul.msk.bf16.gmra.mxu3 %vm1611_vm9, %v4637_v17  ;;  %v5726_v43 = vld [vmem:[%s5989_s22 + $0x90] sm:$0xe]  ;;  %v7234_v21 = vsel %vm1488_vm6, %v8649_v40, %v7083_v41  ;;  %v8650_v6 = vld [vmem:[#allocation34_spill] sm:$0xff] }
 0x19f   : > { %v7196_v37 = vadd.f32 %v1907_v8, %v1906_v51  ;;  %v3616_v3 = vpop.permute.xlu1 %3615  ;;  %v5754_v7 = vrot.slane %v5726_v43, 9  ;;  %v1594_v57 = vsel %vm1570_vm8, %v1561_v11, %v8650_v6  ;;  %v2003_v20 = vld [vmem:[%s5989_s22 + $0x84] sm:$0xe]  ;;  %v2148_v59 = vrot.slane %v2004_v14, 5  ;;  %v2005_v17 = vld [vmem:[%s5989_s22 + $0x8c] sm:$0x1] }
 0x1a0   : > { %3705 = vrot.lane.b32.xlu2 %v7223_v23, %s5939_s25  ;;  %v7253_v51 = vsel %vm6370_vm5, %v4366_v31, %v4367_v33  ;;  %v2356_v62 = vrot.slane %v7229_v56, 5  ;;  %v2431_v8 = vpack.c.b16 %v2410_v50, %v2409_v19  ;;  %v5407_v30 = vrot.slane %v2003_v20, 9  ;;  %v5729_v56 = vld [vmem:[%s5989_s22 + $0x9c] sm:$0xe] }
 0x1a1   : > { %v7249_v10 = vsel %vm6370_vm5, %v5754_v7, %v4364_v52  ;;  %v3386_v52 = vsel %vm6001_vm2, %v3381_v22, %v7177_v60  ;;  %v4489_v35 = vunpack.c.l.b16 %v7253_v51  ;;  %v2150_v25 = vrot.slane %v2148_v59, 4  ;;  %v8651_v60 = vld [vmem:[#allocation20_spill] sm:$0xff] }
 0x1a2   : > { %4534 = vrot.lane.b32.xlu0 %v4509_v48, %s5939_s25  ;;  %v7259_v13 = vpop.permute.xlu2 %2449  ;;  %v7263_v48 = vpack.c.b16 %v2522_v16, %v2521_v0  ;;  %v4488_v4 = vunpack.c.l.b16 %v7249_v10  ;;  %v2151_v2 = vrot.slane %v2005_v17, 5  ;;  %v7279_v9 = vunpack.c.l.b16 %v3386_v52 }
 0x1a3   : > { %v1665_v27 = vpop.f32.mrf.mxu0  ;;  %v2358_v58 = vrot.slane %v2356_v62, 4  ;;  %v2359_v11 = vrot.slane %v5447_v32, 5  ;;  %v7289_v22 = vsel %vm6370_vm5, %v5407_v30, %v2148_v59  ;;  %v5574_v30 = vld [vmem:[%s5989_s22 + $0xb0] sm:$0x1] }
 0x1a4   : > { %v1738_v28 = vpack.c.bf16 %v1665_v27, %v1665_v27  ;;  %v1873_v12 = vmul.f32 %v1665_v27, %v1665_v27  ;;  %v3504_v45 = vpop.permute.xlu0 %3503  ;;  %v1807_v47 = vsel %vm1537_vm7, %v1665_v27, 0.0 }
 0x1a5   : > { %v3734_v54 = vsel %vm1488_vm6, %v5902_v1, %v3504_v45  ;;  %3625 = vrot.lane.b32.xlu1 %v5861_v49, %s5938_s24  ;;  %v5730_v49 = vld [vmem:[%s5989_s22 + $0xa0] sm:$0xf]  ;;  %v1808_v7 = vadd.f32 %v1807_v47, %v7180_v24  ;;  %v2152_v24 = vsel %vm6370_vm5, %v2150_v25, %v2151_v2  ;;  %v2360_v40 = vsel %vm6370_vm5, %v2358_v58, %v2359_v11 }
 0x1a6   : > { %1771 = vst.msk [vmem:[%s6882_s11 + $0x14] sm:$0xf] %vm1765_vm10, %v1738_v28  ;;  %v3776_v41 = vsel %vm1537_vm7, %v3734_v54, %v3616_v3  ;;  %v5445_v3 = vld [vmem:[%s5989_s22 + $0x90] sm:$0xe]  ;;  %v1909_v43 = vsel %vm1537_vm7, %v1873_v12, 0.0  ;;  %v4371_v14 = vrot.slane %v5730_v49, 5 }
 0x1a7   : > { %v3808_v5 = vsel %vm1570_vm8, %v3776_v41, %v7040_v38  ;;  %v7261_v61 = vpop.permute.xlu1 %4446  ;;  %v3396_v38 = vsel %vm6001_vm2, %v3391_v63, %v3395_v53  ;;  %v5471_v29 = vrot.slane %v5445_v3, 9  ;;  %v1910_v31 = vadd.f32 %v1909_v43, %v7196_v37  ;;  %v5731_v28 = vld [vmem:[%s5989_s22 + $0xa4] sm:$0x1]  ;;  %v5554_v54 = vld [vmem:[%s5989_s22 + $0xa8] sm:$0xf] }
 0x1a8   : > { %5653 = vmatmul.msk.bf16.gmra.mxu2 %vm1611_vm9, %v3808_v5  ;;  %v7284_v33 = vunpack.c.l.b16 %v3396_v38  ;;  %2457 = vrot.lane.b32.xlu2 %v2431_v8, %s5937_s23  ;;  %v5755_v37 = vrot.slane %v5729_v56, 9  ;;  %v4373_v45 = vrot.slane %v4371_v14, 4  ;;  %v4374_v1 = vrot.slane %v5731_v28, 5  ;;  %v5555_v41 = vld [vmem:[%s5989_s22 + $0xac] sm:$0xf] }
 0x1a9   : > { %v2357_v53 = vsel %vm6370_vm5, %v5471_v29, %v2356_v62  ;;  %v3398_v17 = vshrl.u32 %v5554_v54, 16  ;;  %v3407_v52 = vshll.u32 %v5555_v41, 16  ;;  %v2411_v3 = vunpack.c.l.b16 %v7289_v22 }
 0x1aa   : > { %3513 = vrot.lane.b32.xlu0 %v8651_v60, %s5937_s23  ;;  %v7313_v20 = vpop.permute.xlu2 %2561  ;;  %v4372_v5 = vsel %vm6370_vm5, %v5755_v37, %v4371_v14  ;;  %v4375_v8 = vsel %vm6370_vm5, %v4373_v45, %v4374_v1  ;;  %v2523_v43 = vunpack.c.l.b16 %v2357_v53  ;;  %v2524_v38 = vunpack.c.l.b16 %v2360_v40 }
 0x1ab   : > { %v1668_v19 = vpop.f32.mrf.mxu0  ;;  %v3400_v32 = vrot.slane %v3398_v17, 4  ;;  %v3411_v25 = vshrl.u32 %v5555_v41, 16  ;;  %v4490_v58 = vunpack.c.l.b16 %v4372_v5  ;;  %v4491_v11 = vunpack.c.l.b16 %v4375_v8  ;;  %v2007_v5 = vld [vmem:[%s5989_s22 + $0x94] sm:$0xf] }
 0x1ac   : > { %v1739_v27 = vpack.c.bf16 %v1668_v19, %v1668_v19  ;;  %v1809_v50 = vsel %vm1537_vm7, %v1668_v19, 0.0  ;;  %v1874_v0 = vmul.f32 %v1668_v19, %v1668_v19  ;;  %v4415_v16 = vpop.permute.xlu0 %4414  ;;  %v3417_v22 = vshll.u32 %v5574_v30, 16 }
 0x1ad   : > { %v7293_v12 = vadd.f32 %v1809_v50, %v1808_v7  ;;  %4456 = vrot.lane.b32.xlu1 %v7223_v23, %s5938_s24  ;;  %v4565_v6 = vsel %vm1488_vm6, %v6280_v36, %v4415_v16  ;;  %v8652_v50 = vld [vmem:[#allocation33_spill] sm:$0xff]  ;;  %v7362_v45 = vpack.c.b16 %v2524_v38, %v2523_v43 }
 0x1ae   : > { %1772 = vst.msk [vmem:[%s6882_s11 + $0x18] sm:$0xf] %vm1765_vm10, %v1739_v27  ;;  %v1911_v63 = vsel %vm1537_vm7, %v1874_v0, 0.0  ;;  %5391 = vmatmul.msk.bf16.gmra.mxu0 %vm1611_vm9, %v1594_v57  ;;  %v3401_v57 = vshll.u32 %v5554_v54, 16  ;;  %v3409_v27 = vrot.slane %v3407_v52, 5  ;;  %v1596_v0 = vsel %vm1570_vm8, %v7217_v18, %v8652_v50 }
 0x1af   : > { %v7309_v23 = vadd.f32 %v1911_v63, %v1910_v31  ;;  %v2480_v59 = vpop.permute.xlu1 %2479 }
 0x1b0   : > { %v2640_v62 = vsel %vm1537_vm7, %v7234_v21, %v2480_v59  ;;  %v3403_v47 = vrot.slane %v3401_v57, 5  ;;  %v2412_v21 = vunpack.c.l.b16 %v2152_v24  ;;  %2569 = vrot.lane.b32.xlu2 %v7263_v48, %s5939_s25  ;;  %v3413_v24 = vrot.slane %v3411_v25, 4  ;;  %v5862_v59 = vld [vmem:[%s5989_s22 + $0x9c] sm:$0xff] }
 0x1b1   : > { %v2672_v36 = vsel %vm1570_vm8, %v2640_v62, %v7152_v44  ;;  %v4607_v44 = vsel %vm1537_vm7, %v4565_v6, %v7261_v61  ;;  %v4510_v61 = vpack.c.b16 %v4489_v35, %v4488_v4  ;;  %v7358_v4 = vpack.c.b16 %v7284_v33, %v7279_v9 }
 0x1b2   : > { %4424 = vrot.lane.b32.xlu0 %v7263_v48, %s5937_s23  ;;  %5487 = vmatmul.msk.bf16.gmra.mxu1 %vm1611_vm9, %v2672_v36  ;;  %v3404_v49 = vor.u32 %v3403_v47, %v3400_v32  ;;  %v8653_v48 = vld [vmem:[#allocation6_spill] sm:$0xff]  ;;  %v7354_v10 = vpop.permute.xlu2 %3699  ;;  %v7360_v35 = vpack.c.b16 %v2412_v21, %v2411_v3  ;;  %v3414_v1 = vor.u32 %v3413_v24, %v3409_v27  ;;  %v3419_v62 = vrot.slane %v3417_v22, 5  ;;  %v8654_v22 = vld [vmem:[#allocation5_spill] sm:$0xff] }
 0x1b3   : > { %v1670_v2 = vpop.f32.mrf.mxu0  ;;  %v3879_v29 = vpop.f32.mrf.mxu2  ;;  %v7350_v37 = vsel %vm1488_vm6, %v8653_v48, %v7259_v13  ;;  %v7365_v13 = vpack.c.b16 %v4491_v11, %v4490_v58  ;;  %v2155_v32 = vrot.slane %v2007_v5, 5  ;;  %v7385_v47 = vld [vmem:[%s5989_s22 + $0xa0] sm:$0xf]  ;;  %v2006_v11 = vld [vmem:[%s5989_s22 + $0x90] sm:$0xe] }
 0x1b4   : > { %v1740_v19 = vpack.c.bf16 %v1670_v2, %v1670_v2  ;;  %v1875_v7 = vmul.f32 %v1670_v2, %v1670_v2  ;;  %v3959_v31 = vpack.c.bf16 %v3879_v29, %v3879_v29  ;;  %v4527_v14 = vpop.permute.xlu0 %4526  ;;  %v1811_v56 = vsel %vm1537_vm7, %v1670_v2, 0.0  ;;  %v2008_v48 = vld [vmem:[%s5989_s22 + $0x98] sm:$0x1] }
 0x1b5   : > { %v4639_v16 = vsel %vm1570_vm8, %v4607_v44, %v4527_v14  ;;  %2489 = vrot.lane.b32.xlu1 %v8651_v60, %s5938_s24  ;;  %v4094_v28 = vmul.f32 %v3879_v29, %v3879_v29  ;;  %v3405_v18 = vrot.slane %v3404_v49, 4  ;;  %v4024_v54 = vsel %vm1537_vm7, %v3879_v29, 0.0  ;;  %v5903_v44 = vld [vmem:[%s5989_s22 + $0x54] sm:$0xff] }
 0x1b6   : > { %1773 = vst.msk [vmem:[%s6882_s11 + $0x1c] sm:$0xf] %vm1765_vm10, %v1740_v19  ;;  %5771 = vmatmul.msk.bf16.gmra.mxu3 %vm1611_vm9, %v4639_v16  ;;  %v1913_v63 = vsel %vm1537_vm7, %v1875_v7, 0.0  ;;  %v1812_v9 = vadd.f32 %v1811_v56, %v7293_v12  ;;  %v3415_v57 = vrot.slane %v3414_v1, 4 }
 0x1b7   : > { %5664 = vst.msk [vmem:[%s6882_s11 + $0x100] sm:$0xf] %vm1765_vm10, %v3959_v31  ;;  %v3618_v51 = vpop.permute.xlu1 %3617  ;;  %v2743_v53 = vpop.f32.mrf.mxu1  ;;  %v3410_v40 = vsel %vm6001_vm2, %v3405_v18, %v3409_v27  ;;  %v4126_v41 = vsel %vm1537_vm7, %v4094_v28, 0.0  ;;  %v1914_v52 = vadd.f32 %v1913_v63, %v7309_v23  ;;  %v2363_v31 = vrot.slane %v7385_v47, 5  ;;  %v5448_v63 = vld [vmem:[%s5989_s22 + $0x9c] sm:$0xe] }
 0x1b8   : > { %v2823_v33 = vpack.c.bf16 %v2743_v53, %v2743_v53  ;;  %v2958_v6 = vmul.f32 %v2743_v53, %v2743_v53  ;;  %v7375_v17 = vsel %vm1537_vm7, %v2743_v53, 0.0  ;;  %v3661_v3 = vunpack.c.l.b16 %v3410_v40  ;;  %3707 = vrot.lane.b32.xlu2 %v7358_v4, %s5939_s25 }
 0x1b9   : > { %v3420_v7 = vsel %vm6001_vm2, %v3415_v57, %v3419_v62 }
 0x1ba   : > { %4536 = vrot.lane.b32.xlu0 %v4510_v61, %s5939_s25  ;;  %5498 = vst.msk [vmem:[%s6882_s11 + $0x80] sm:$0xf] %vm1765_vm10, %v2823_v33  ;;  %v7382_v12 = vsel %vm1537_vm7, %v2958_v6, 0.0  ;;  %v2452_v16 = vpop.permute.xlu2 %2451 }
 0x1bb   : > { %v1673_v8 = vpop.f32.mrf.mxu0  ;;  %v3881_v36 = vpop.f32.mrf.mxu2  ;;  %v7411_v56 = vsel %vm1488_vm6, %v8654_v22, %v2452_v16 }
 0x1bc   : > { %v1741_v21 = vpack.c.bf16 %v1673_v8, %v1673_v8  ;;  %v1813_v43 = vsel %vm1537_vm7, %v1673_v8, 0.0  ;;  %v1876_v38 = vmul.f32 %v1673_v8, %v1673_v8  ;;  %v3960_v30 = vpack.c.bf16 %v3881_v36, %v3881_v36  ;;  %v3506_v25 = vpop.permute.xlu0 %3505 }
 0x1bd   : > { %v1814_v23 = vadd.f32 %v1813_v43, %v1812_v9  ;;  %v4025_v2 = vsel %vm1537_vm7, %v3881_v36, 0.0  ;;  %v4095_v29 = vmul.f32 %v3881_v36, %v3881_v36  ;;  %v3737_v58 = vsel %vm1488_vm6, %v5903_v44, %v3506_v25  ;;  %3627 = vrot.lane.b32.xlu1 %v5862_v59, %s5938_s24  ;;  %v5733_v44 = vld [vmem:[%s5989_s22 + $0xac] sm:$0xf] }
 0x1be   : > { %1774 = vst.msk [vmem:[%s6882_s11 + $0x20] sm:$0xf] %vm1765_vm10, %v1741_v21  ;;  %v1915_v49 = vsel %vm1537_vm7, %v1876_v38, 0.0  ;;  %5392 = vmatmul.msk.bf16.gmra.mxu0 %vm1611_vm9, %v1596_v0  ;;  %v3778_v19 = vsel %vm1537_vm7, %v3737_v58, %v3618_v51  ;;  %v3662_v0 = vunpack.c.l.b16 %v3420_v7  ;;  %v7413_v18 = vadd.f32 %v4025_v2, %v4024_v54  ;;  %v8655_v54 = vld [vmem:[#allocation19_spill] sm:$0xff]  ;;  %v5450_v38 = vld [vmem:[%s5989_s22 + $0xa4] sm:$0x1] }
 0x1bf   : > { %v1916_v14 = vadd.f32 %v1915_v49, %v1914_v52  ;;  %5665 = vst.msk [vmem:[%s6882_s11 + $0x104] sm:$0xf] %vm1765_vm10, %v3960_v30  ;;  %v4127_v27 = vsel %vm1537_vm7, %v4095_v29, 0.0  ;;  %v3810_v50 = vsel %vm1570_vm8, %v3778_v19, %v7198_v42  ;;  %v4449_v61 = vpop.permute.xlu1 %4448  ;;  %v2745_v28 = vpop.f32.mrf.mxu1  ;;  %v5408_v51 = vrot.slane %v2006_v11, 9  ;;  %v5732_v29 = vld [vmem:[%s5989_s22 + $0xa8] sm:$0xe] }
 0x1c0   : > { %5654 = vmatmul.msk.bf16.gmra.mxu2 %vm1611_vm9, %v3810_v50  ;;  %v7415_v24 = vadd.f32 %v4127_v27, %v4126_v41  ;;  %v2824_v42 = vpack.c.bf16 %v2745_v28, %v2745_v28  ;;  %v2889_v40 = vsel %vm1537_vm7, %v2745_v28, 0.0  ;;  %v2959_v1 = vmul.f32 %v2745_v28, %v2745_v28  ;;  %2459 = vrot.lane.b32.xlu2 %v7360_v35, %s5937_s23  ;;  %v5734_v27 = vld [vmem:[%s5989_s22 + $0xb0] sm:$0x1] }
 0x1c1   : > { %v4710_v53 = vpop.f32.mrf.mxu3  ;;  %v2157_v9 = vrot.slane %v2155_v32, 4  ;;  %v7423_v41 = vpack.c.b16 %v3662_v0, %v3661_v3  ;;  %v2156_v5 = vsel %vm6370_vm5, %v5408_v51, %v2155_v32  ;;  %v2158_v8 = vrot.slane %v2008_v48, 5 }
 0x1c2   : > { %v4790_v33 = vpack.c.bf16 %v4710_v53, %v4710_v53  ;;  %v4855_v6 = vsel %vm1537_vm7, %v4710_v53, 0.0  ;;  %v4925_v59 = vmul.f32 %v4710_v53, %v4710_v53  ;;  %3515 = vrot.lane.b32.xlu0 %v8655_v54, %s5937_s23  ;;  %5499 = vst.msk [vmem:[%s6882_s11 + $0x84] sm:$0xf] %vm1765_vm10, %v2824_v42  ;;  %v2991_v62 = vsel %vm1537_vm7, %v2959_v1, 0.0  ;;  %v7458_v11 = vpop.permute.xlu2 %2563 }
 0x1c3   : > { %v1675_v57 = vpop.f32.mrf.mxu0  ;;  %v5472_v52 = vrot.slane %v5448_v63, 9  ;;  %v7434_v43 = vadd.f32 %v2889_v40, %v7375_v17  ;;  %v2413_v2 = vunpack.c.l.b16 %v2156_v5  ;;  %v7452_v58 = vadd.f32 %v2991_v62, %v7382_v12 }
 0x1c4   : > { %5782 = vst.msk [vmem:[%s6882_s11 + $0x180] sm:$0xf] %vm1765_vm10, %v4790_v33  ;;  %v1742_v36 = vpack.c.bf16 %v1675_v57, %v1675_v57  ;;  %v1815_v47 = vsel %vm1537_vm7, %v1675_v57, 0.0  ;;  %v1877_v3 = vmul.f32 %v1675_v57, %v1675_v57  ;;  %v4417_v21 = vpop.permute.xlu0 %4416  ;;  %v7438_v30 = vsel %vm1537_vm7, %v4925_v59, 0.0  ;;  %v5556_v33 = vld [vmem:[%s5989_s22 + $0xb4] sm:$0xf] }
 0x1c5   : > { %v1816_v32 = vadd.f32 %v1815_v47, %v1814_v23  ;;  %v4568_v25 = vsel %vm1488_vm6, %v6256_v34, %v4417_v21  ;;  %4458 = vrot.lane.b32.xlu1 %v7358_v4, %s5938_s24  ;;  %v2159_v34 = vsel %vm6370_vm5, %v2157_v9, %v2158_v8  ;;  %v2364_v35 = vsel %vm6370_vm5, %v5472_v52, %v2363_v31 }
 0x1c6   : > { %1775 = vst.msk [vmem:[%s6882_s11 + $0x24] sm:$0xf] %vm1765_vm10, %v1742_v36  ;;  %v1917_v17 = vsel %vm1537_vm7, %v1877_v3, 0.0  ;;  %v2414_v49 = vunpack.c.l.b16 %v2159_v34  ;;  %v2365_v19 = vrot.slane %v2363_v31, 4  ;;  %v2366_v7 = vrot.slane %v5450_v38, 5 }
 0x1c7   : > { %v1918_v23 = vadd.f32 %v1917_v17, %v1916_v14  ;;  %v2482_v4 = vpop.permute.xlu1 %2481  ;;  %v4609_v12 = vsel %vm1537_vm7, %v4568_v25, %v4449_v61  ;;  %v5756_v16 = vrot.slane %v5732_v29, 9  ;;  %v4378_v0 = vrot.slane %v5733_v44, 5  ;;  %v5557_v17 = vld [vmem:[%s5989_s22 + $0xb8] sm:$0xf] }
 0x1c8   : > { %v2642_v50 = vsel %vm1537_vm7, %v7350_v37, %v2482_v4  ;;  %v7466_v14 = vpack.c.b16 %v2414_v49, %v2413_v2  ;;  %v2367_v31 = vsel %vm6370_vm5, %v2365_v19, %v2366_v7  ;;  %v2525_v48 = vunpack.c.l.b16 %v2364_v35  ;;  %2571 = vrot.lane.b32.xlu2 %v7362_v45, %s5939_s25  ;;  %v7511_v19 = vld [vmem:[%s5989_s22 + $0xbc] sm:$0x1] }
 0x1c9   : > { %v4712_v22 = vpop.f32.mrf.mxu3  ;;  %v2674_v28 = vsel %vm1570_vm8, %v2642_v50, %v7313_v20  ;;  %v4381_v61 = vrot.slane %v5734_v27, 5  ;;  %v2526_v40 = vunpack.c.l.b16 %v2367_v31  ;;  %v4379_v1 = vsel %vm6370_vm5, %v5756_v16, %v4378_v0  ;;  %v5863_v50 = vld [vmem:[%s5989_s22 + $0xa8] sm:$0xff] }
 0x1ca   : > { %v4791_v51 = vpack.c.bf16 %v4712_v22, %v4712_v22  ;;  %v4856_v63 = vsel %vm1537_vm7, %v4712_v22, 0.0  ;;  %v4926_v37 = vmul.f32 %v4712_v22, %v4712_v22  ;;  %4426 = vrot.lane.b32.xlu0 %v7362_v45, %s5937_s23  ;;  %5488 = vmatmul.msk.bf16.gmra.mxu1 %vm1611_vm9, %v2674_v28  ;;  %v4380_v9 = vrot.slane %v4378_v0, 4  ;;  %v7499_v45 = vpop.permute.xlu2 %3701  ;;  %v7521_v28 = vld [vmem:[%s5989_s22 + $0xa8] sm:$0xf] }
 0x1cb   : > { %v1678_v53 = vpop.f32.mrf.mxu0  ;;  %v3884_v20 = vpop.f32.mrf.mxu2  ;;  %v7474_v42 = vadd.f32 %v4856_v63, %v4855_v6  ;;  %v4492_v4 = vunpack.c.l.b16 %v4379_v1  ;;  %v3431_v22 = vshll.u32 %v5557_v17, 16 }
 0x1cc   : > { %5783 = vst.msk [vmem:[%s6882_s11 + $0x184] sm:$0xf] %vm1765_vm10, %v4791_v51  ;;  %v4958_v59 = vsel %vm1537_vm7, %v4926_v37, 0.0  ;;  %v1743_v57 = vpack.c.bf16 %v1678_v53, %v1678_v53  ;;  %v1817_v62 = vsel %vm1537_vm7, %v1678_v53, 0.0  ;;  %v1878_v5 = vmul.f32 %v1678_v53, %v1678_v53  ;;  %v4529_v8 = vpop.permute.xlu0 %4528 }
 0x1cd   : > { %v1818_v52 = vadd.f32 %v1817_v62, %v1816_v32  ;;  %v3961_v6 = vpack.c.bf16 %v3884_v20, %v3884_v20  ;;  %v4027_v36 = vsel %vm1537_vm7, %v3884_v20, 0.0  ;;  %v4096_v47 = vmul.f32 %v3884_v20, %v3884_v20  ;;  %2491 = vrot.lane.b32.xlu1 %v8655_v54, %s5938_s24 }
 0x1ce   : > { %1776 = vst.msk [vmem:[%s6882_s11 + $0x28] sm:$0xf] %vm1765_vm10, %v1743_v57  ;;  %v1919_v3 = vsel %vm1537_vm7, %v1878_v5, 0.0  ;;  %v7492_v21 = vadd.f32 %v4027_v36, %v7413_v18  ;;  %v4641_v38 = vsel %vm1570_vm8, %v4609_v12, %v4529_v8  ;;  %v3422_v32 = vshrl.u32 %v5556_v33, 16 }
 0x1cf   : > { %v1920_v25 = vadd.f32 %v1919_v3, %v1918_v23  ;;  %5666 = vst.msk [vmem:[%s6882_s11 + $0x108] sm:$0xf] %vm1765_vm10, %v3961_v6  ;;  %v4129_v2 = vsel %vm1537_vm7, %v4096_v47, 0.0  ;;  %5772 = vmatmul.msk.bf16.gmra.mxu3 %vm1611_vm9, %v4641_v38  ;;  %v3620_v29 = vpop.permute.xlu1 %3619  ;;  %v7502_v44 = vadd.f32 %v4958_v59, %v7438_v30  ;;  %v4382_v18 = vsel %vm6370_vm5, %v4380_v9, %v4381_v61  ;;  %v2748_v35 = vpop.f32.mrf.mxu1  ;;  %v5904_v59 = vld [vmem:[%s5989_s22 + $0x60] sm:$0xff] }
 0x1d0   : > { %v4130_v34 = vadd.f32 %v4129_v2, %v7415_v24  ;;  %v7508_v23 = vpack.c.b16 %v2526_v40, %v2525_v48  ;;  %v4493_v49 = vunpack.c.l.b16 %v4382_v18  ;;  %v2825_v7 = vpack.c.bf16 %v2748_v35, %v2748_v35  ;;  %3709 = vrot.lane.b32.xlu2 %v7423_v41, %s5939_s25  ;;  %v8656_v2 = vld [vmem:[#allocation4_spill] sm:$0xff] }
 0x1d1   : > { %v2891_v27 = vsel %vm1537_vm7, %v2748_v35, 0.0  ;;  %v2960_v30 = vmul.f32 %v2748_v35, %v2748_v35  ;;  %v3425_v12 = vshll.u32 %v5556_v33, 16  ;;  %v3424_v0 = vrot.slane %v3422_v32, 4 }
 0x1d2   : > { %4538 = vrot.lane.b32.xlu0 %v7365_v13, %s5939_s25  ;;  %v2892_v24 = vadd.f32 %v2891_v27, %v7434_v43  ;;  %v7518_v16 = vpack.c.b16 %v4493_v49, %v4492_v4  ;;  %5500 = vst.msk [vmem:[%s6882_s11 + $0x88] sm:$0xf] %vm1765_vm10, %v2825_v7  ;;  %v3435_v37 = vshrl.u32 %v5557_v17, 16  ;;  %v3441_v13 = vshll.u32 %v7511_v19, 16  ;;  %v2454_v3 = vpop.permute.xlu2 %2453 }
 0x1d3   : > { %v1680_v31 = vpop.f32.mrf.mxu0  ;;  %v3886_v48 = vpop.f32.mrf.mxu2  ;;  %v2993_v51 = vsel %vm1537_vm7, %v2960_v30, 0.0  ;;  %v3427_v63 = vrot.slane %v3425_v12, 5  ;;  %v3433_v18 = vrot.slane %v3431_v22, 5  ;;  %v8657_v12 = vld [vmem:[#allocation17_spill] sm:$0xff] }
 0x1d4   : > { %v1744_v61 = vpack.c.bf16 %v1680_v31, %v1680_v31  ;;  %v1819_v43 = vsel %vm1537_vm7, %v1680_v31, 0.0  ;;  %v1879_v53 = vmul.f32 %v1680_v31, %v1680_v31  ;;  %v3962_v20 = vpack.c.bf16 %v3886_v48, %v3886_v48  ;;  %v3508_v40 = vpop.permute.xlu0 %3507 }
 0x1d5   : > { %v1820_v1 = vadd.f32 %v1819_v43, %v1818_v52  ;;  %v4029_v9 = vsel %vm1537_vm7, %v3886_v48, 0.0  ;;  %v4097_v33 = vmul.f32 %v3886_v48, %v3886_v48  ;;  %v3740_v57 = vsel %vm1488_vm6, %v5904_v59, %v3508_v40  ;;  %3629 = vrot.lane.b32.xlu1 %v5863_v50, %s5938_s24  ;;  %v5227_v40 = vld [vmem:[%s5989_s22 + $0xac] sm:$0xf] }
 0x1d6   : > { %1777 = vst.msk [vmem:[%s6882_s11 + $0x2c] sm:$0xf] %vm1765_vm10, %v1744_v61  ;;  %v1921_v62 = vsel %vm1537_vm7, %v1879_v53, 0.0  ;;  %v2994_v5 = vadd.f32 %v2993_v51, %v7452_v58  ;;  %v3780_v8 = vsel %vm1537_vm7, %v3740_v57, %v3620_v29  ;;  %v1065_v52 = vshrl.u32 %v7521_v28, 16 }
 0x1d7   : > { %v1922_v6 = vadd.f32 %v1921_v62, %v1920_v25  ;;  %5667 = vst.msk [vmem:[%s6882_s11 + $0x10c] sm:$0xf] %vm1765_vm10, %v3962_v20  ;;  %v4131_v36 = vsel %vm1537_vm7, %v4097_v33, 0.0  ;;  %v3812_v47 = vsel %vm1570_vm8, %v3780_v8, %v7354_v10  ;;  %v4451_v38 = vpop.permute.xlu1 %4450  ;;  %v3428_v32 = vor.u32 %v3427_v63, %v3424_v0  ;;  %v2750_v29 = vpop.f32.mrf.mxu1 }
 0x1d8   : > { %5655 = vmatmul.msk.bf16.gmra.mxu2 %vm1611_vm9, %v3812_v47  ;;  %v7548_v58 = vsel %vm1488_vm6, %v8656_v2, %v2454_v3  ;;  %v7551_v25 = vadd.f32 %v4029_v9, %v7492_v21  ;;  %v3437_v17 = vrot.slane %v3435_v37, 4  ;;  %v2826_v4 = vpack.c.bf16 %v2750_v29, %v2750_v29  ;;  %2461 = vrot.lane.b32.xlu2 %v7466_v14, %s5937_s23 }
 0x1d9   : > { %v4715_v35 = vpop.f32.mrf.mxu3  ;;  %v2893_v10 = vsel %vm1537_vm7, %v2750_v29, 0.0  ;;  %v2961_v49 = vmul.f32 %v2750_v29, %v2750_v29  ;;  %v7554_v7 = vadd.f32 %v4131_v36, %v4130_v34  ;;  %v3429_v0 = vrot.slane %v3428_v32, 4 }
 0x1da   : > { %v4792_v27 = vpack.c.bf16 %v4715_v35, %v4715_v35  ;;  %v4858_v30 = vsel %vm1537_vm7, %v4715_v35, 0.0  ;;  %v4927_v50 = vmul.f32 %v4715_v35, %v4715_v35  ;;  %3517 = vrot.lane.b32.xlu0 %v8657_v12, %s5937_s23  ;;  %5501 = vst.msk [vmem:[%s6882_s11 + $0x8c] sm:$0xf] %vm1765_vm10, %v2826_v4  ;;  %v7563_v48 = vadd.f32 %v2893_v10, %v2892_v24  ;;  %v7587_v59 = vpop.permute.xlu2 %2565 }
 0x1db   : > { %v4859_v21 = vadd.f32 %v4858_v30, %v7474_v42  ;;  %v1683_v22 = vpop.f32.mrf.mxu0  ;;  %v2995_v31 = vsel %vm1537_vm7, %v2961_v49, 0.0  ;;  %v3438_v34 = vor.u32 %v3437_v17, %v3433_v18  ;;  %v1067_v62 = vrot.slane %v1065_v52, 4 }
 0x1dc   : > { %5784 = vst.msk [vmem:[%s6882_s11 + $0x188] sm:$0xf] %vm1765_vm10, %v4792_v27  ;;  %v4960_v51 = vsel %vm1537_vm7, %v4927_v50, 0.0  ;;  %v1745_v63 = vpack.c.bf16 %v1683_v22, %v1683_v22  ;;  %v1821_v37 = vsel %vm1537_vm7, %v1683_v22, 0.0  ;;  %v1880_v61 = vmul.f32 %v1683_v22, %v1683_v22  ;;  %v4419_v43 = vpop.permute.xlu0 %4418 }
 0x1dd   : > { %v7570_v42 = vadd.f32 %v4960_v51, %v7502_v44  ;;  %v1822_v53 = vadd.f32 %v1821_v37, %v1820_v1  ;;  %v4571_v20 = vsel %vm1488_vm6, %v6336_v46, %v4419_v43  ;;  %4460 = vrot.lane.b32.xlu1 %v7423_v41, %s5938_s24  ;;  %v3439_v24 = vrot.slane %v3438_v34, 4  ;;  %v7592_v41 = vld [vmem:[%s5989_s22 + $0xb0] sm:$0x1]  ;;  %v2009_v34 = vld [vmem:[%s5989_s22 + $0x9c] sm:$0xe] }
 0x1de   : > { %1778 = vst.msk [vmem:[%s6882_s11 + $0x30] sm:$0xf] %vm1765_vm10, %v1745_v63  ;;  %v1923_v9 = vsel %vm1537_vm7, %v1880_v61, 0.0  ;;  %v4611_v44 = vsel %vm1537_vm7, %v4571_v20, %v4451_v38  ;;  %v3434_v1 = vsel %vm6001_vm2, %v3429_v0, %v3433_v18  ;;  %v3443_v46 = vrot.slane %v3441_v13, 5  ;;  %v2010_v51 = vld [vmem:[%s5989_s22 + $0xa0] sm:$0xf] }
 0x1df   : > { %v1924_v33 = vadd.f32 %v1923_v9, %v1922_v6  ;;  %v2484_v14 = vpop.permute.xlu1 %2483  ;;  %v7589_v57 = vadd.f32 %v2995_v31, %v2994_v5  ;;  %v1068_v8 = vshll.u32 %v7521_v28, 16  ;;  %v1074_v3 = vshll.u32 %v5227_v40, 16 }
 0x1e0   : > { %v2644_v36 = vsel %vm1537_vm7, %v7411_v56, %v2484_v14  ;;  %v3444_v47 = vsel %vm6001_vm2, %v3439_v24, %v3443_v46  ;;  %v1078_v19 = vshrl.u32 %v5227_v40, 16  ;;  %v3663_v5 = vunpack.c.l.b16 %v3434_v1  ;;  %2573 = vrot.lane.b32.xlu2 %v7508_v23, %s5939_s25  ;;  %v2011_v46 = vld [vmem:[%s5989_s22 + $0xa4] sm:$0x1] }
 0x1e1   : > { %v4717_v13 = vpop.f32.mrf.mxu3  ;;  %v2676_v6 = vsel %vm1570_vm8, %v2644_v36, %v7458_v11  ;;  %v3664_v38 = vunpack.c.l.b16 %v3444_v47  ;;  %v1070_v32 = vrot.slane %v1068_v8, 5  ;;  %v1084_v56 = vshll.u32 %v7592_v41, 16  ;;  %v5864_v36 = vld [vmem:[%s5989_s22 + $0xb4] sm:$0xff] }
 0x1e2   : > { %v4793_v2 = vpack.c.bf16 %v4717_v13, %v4717_v13  ;;  %v4860_v52 = vsel %vm1537_vm7, %v4717_v13, 0.0  ;;  %v4928_v28 = vmul.f32 %v4717_v13, %v4717_v13  ;;  %4428 = vrot.lane.b32.xlu0 %v7508_v23, %s5937_s23  ;;  %5489 = vmatmul.msk.bf16.gmra.mxu1 %vm1611_vm9, %v2676_v6  ;;  %v1076_v35 = vrot.slane %v1074_v3, 5  ;;  %v7632_v20 = vpop.permute.xlu2 %3703 }
 0x1e3   : > { %v1685_v29 = vpop.f32.mrf.mxu0  ;;  %v3889_v18 = vpop.f32.mrf.mxu2  ;;  %v7606_v17 = vadd.f32 %v4860_v52, %v4859_v21  ;;  %v1071_v11 = vor.u32 %v1070_v32, %v1067_v62  ;;  %v1080_v4 = vrot.slane %v1078_v19, 4  ;;  %v7626_v43 = vpack.c.b16 %v3664_v38, %v3663_v5 }
 0x1e4   : > { %5785 = vst.msk [vmem:[%s6882_s11 + $0x18c] sm:$0xf] %vm1765_vm10, %v4793_v2  ;;  %v4962_v10 = vsel %vm1537_vm7, %v4928_v28, 0.0  ;;  %v1746_v49 = vpack.c.bf16 %v1685_v29, %v1685_v29  ;;  %v1823_v27 = vsel %vm1537_vm7, %v1685_v29, 0.0  ;;  %v1881_v30 = vmul.f32 %v1685_v29, %v1685_v29  ;;  %v4531_v50 = vpop.permute.xlu0 %4530 }
 0x1e5   : > { %v1824_v0 = vadd.f32 %v1823_v27, %v1822_v53  ;;  %v3963_v22 = vpack.c.bf16 %v3889_v18, %v3889_v18  ;;  %v4031_v21 = vsel %vm1537_vm7, %v3889_v18, 0.0  ;;  %v4098_v31 = vmul.f32 %v3889_v18, %v3889_v18  ;;  %2493 = vrot.lane.b32.xlu1 %v8657_v12, %s5938_s24 }
 0x1e6   : > { %1779 = vst.msk [vmem:[%s6882_s11 + $0x34] sm:$0xf] %vm1765_vm10, %v1746_v49  ;;  %v1925_v63 = vsel %vm1537_vm7, %v1881_v30, 0.0  ;;  %v7623_v37 = vadd.f32 %v4031_v21, %v7551_v25  ;;  %v4643_v61 = vsel %vm1570_vm8, %v4611_v44, %v4531_v50  ;;  %v1072_v40 = vrot.slane %v1071_v11, 4  ;;  %v5905_v11 = vld [vmem:[%s5989_s22 + $0x6c] sm:$0xff] }
 0x1e7   : > { %v1926_v53 = vadd.f32 %v1925_v63, %v1924_v33  ;;  %5668 = vst.msk [vmem:[%s6882_s11 + $0x110] sm:$0xf] %vm1765_vm10, %v3963_v22  ;;  %v4133_v23 = vsel %vm1537_vm7, %v4098_v31, 0.0  ;;  %5773 = vmatmul.msk.bf16.gmra.mxu3 %vm1611_vm9, %v4643_v61  ;;  %v3622_v24 = vpop.permute.xlu1 %3621  ;;  %v1081_v9 = vor.u32 %v1080_v4, %v1076_v35  ;;  %v2753_v1 = vpop.f32.mrf.mxu1  ;;  %v7638_v44 = vadd.f32 %v4962_v10, %v7570_v42  ;;  %v5451_v10 = vld [vmem:[%s5989_s22 + $0xa8] sm:$0xe] }
 0x1e8   : > { %v7635_v25 = vadd.f32 %v4133_v23, %v7554_v7  ;;  %v5409_v33 = vrot.slane %v2009_v34, 9  ;;  %v2162_v14 = vrot.slane %v2010_v51, 5  ;;  %v2827_v41 = vpack.c.bf16 %v2753_v1, %v2753_v1  ;;  %3711 = vrot.lane.b32.xlu2 %v7626_v43, %s5939_s25  ;;  %v5452_v49 = vld [vmem:[%s5989_s22 + $0xac] sm:$0xf] }
 0x1e9   : > { %v2895_v62 = vsel %vm1537_vm7, %v2753_v1, 0.0  ;;  %v2962_v8 = vmul.f32 %v2753_v1, %v2753_v1  ;;  %v1077_v47 = vsel %vm6001_vm2, %v1072_v40, %v1076_v35  ;;  %v1082_v42 = vrot.slane %v1081_v9, 4  ;;  %v8658_v1 = vld [vmem:[#allocation9_spill] sm:$0xff] }
 0x1ea   : > { %4540 = vrot.lane.b32.xlu0 %v7518_v16, %s5939_s25  ;;  %v7648_v7 = vadd.f32 %v2895_v62, %v7563_v48  ;;  %v1086_v3 = vrot.slane %v1084_v56, 5  ;;  %v7652_v19 = vsel %vm6370_vm5, %v5409_v33, %v2162_v14  ;;  %5502 = vst.msk [vmem:[%s6882_s11 + $0x90] sm:$0xf] %vm1765_vm10, %v2827_v41  ;;  %v1434_v38 = vunpack.c.l.b16 %v1077_v47  ;;  %v2456_v51 = vpop.permute.xlu2 %2455 }
 0x1eb   : > { %v1688_v13 = vpop.f32.mrf.mxu0  ;;  %v3891_v6 = vpop.f32.mrf.mxu2  ;;  %v2997_v5 = vsel %vm1537_vm7, %v2962_v8, 0.0  ;;  %v2164_v16 = vrot.slane %v2162_v14, 4  ;;  %v2165_v48 = vrot.slane %v2011_v46, 5  ;;  %v2415_v4 = vunpack.c.l.b16 %v7652_v19 }
 0x1ec   : > { %v1747_v32 = vpack.c.bf16 %v1688_v13, %v1688_v13  ;;  %v1825_v2 = vsel %vm1537_vm7, %v1688_v13, 0.0  ;;  %v1882_v52 = vmul.f32 %v1688_v13, %v1688_v13  ;;  %v3964_v28 = vpack.c.bf16 %v3891_v6, %v3891_v6  ;;  %v3510_v56 = vpop.permute.xlu0 %3509 }
 0x1ed   : > { %v1826_v29 = vadd.f32 %v1825_v2, %v1824_v0  ;;  %v4099_v18 = vmul.f32 %v3891_v6, %v3891_v6  ;;  %v3743_v35 = vsel %vm1488_vm6, %v5905_v11, %v3510_v56  ;;  %3631 = vrot.lane.b32.xlu1 %v5864_v36, %s5938_s24  ;;  %v7670_v30 = vadd.f32 %v2997_v5, %v7589_v57  ;;  %v5736_v56 = vld [vmem:[%s5989_s22 + $0xb8] sm:$0xf] }
 0x1ee   : > { %1780 = vst.msk [vmem:[%s6882_s11 + $0x38] sm:$0xf] %vm1765_vm10, %v1747_v32  ;;  %v1927_v27 = vsel %vm1537_vm7, %v1882_v52, 0.0  ;;  %v3782_v50 = vsel %vm1537_vm7, %v3743_v35, %v3622_v24  ;;  %v1087_v0 = vsel %vm6001_vm2, %v1082_v42, %v1086_v3  ;;  %v4033_v21 = vsel %vm1537_vm7, %v3891_v6, 0.0  ;;  %v5453_v3 = vld [vmem:[%s5989_s22 + $0xb0] sm:$0x1] }
 0x1ef   : > { %v1928_v22 = vadd.f32 %v1927_v27, %v1926_v53  ;;  %5669 = vst.msk [vmem:[%s6882_s11 + $0x114] sm:$0xf] %vm1765_vm10, %v3964_v28  ;;  %v3814_v31 = vsel %vm1570_vm8, %v3782_v50, %v7499_v45  ;;  %v1435_v34 = vunpack.c.l.b16 %v1087_v0  ;;  %v4453_v63 = vpop.permute.xlu1 %4452  ;;  %v4135_v61 = vsel %vm1537_vm7, %v4099_v18, 0.0  ;;  %v2755_v57 = vpop.f32.mrf.mxu1  ;;  %v5737_v18 = vld [vmem:[%s5989_s22 + $0xbc] sm:$0x1] }
 0x1f0   : > { %5656 = vmatmul.msk.bf16.gmra.mxu2 %vm1611_vm9, %v3814_v31  ;;  %v2166_v23 = vsel %vm6370_vm5, %v2164_v16, %v2165_v48  ;;  %v5473_v53 = vrot.slane %v5451_v10, 9  ;;  %v2370_v24 = vrot.slane %v5452_v49, 5  ;;  %v7688_v45 = vsel %vm1488_vm6, %v8658_v1, %v2456_v51  ;;  %v5735_v48 = vld [vmem:[%s5989_s22 + $0xb4] sm:$0xe] }
 0x1f1   : > { %v4720_v40 = vpop.f32.mrf.mxu3  ;;  %v7684_v9 = vpack.c.b16 %v1435_v34, %v1434_v38  ;;  %v2828_v46 = vpack.c.bf16 %v2755_v57, %v2755_v57  ;;  %v2963_v33 = vmul.f32 %v2755_v57, %v2755_v57  ;;  %v2416_v8 = vunpack.c.l.b16 %v2166_v23 }
 0x1f2   : > { %v4794_v14 = vpack.c.bf16 %v4720_v40, %v4720_v40  ;;  %v4862_v41 = vsel %vm1537_vm7, %v4720_v40, 0.0  ;;  %v4929_v62 = vmul.f32 %v4720_v40, %v4720_v40  ;;  %v2897_v42 = vsel %vm1537_vm7, %v2755_v57, 0.0 }
 0x1f3   : > { %v4863_v36 = vadd.f32 %v4862_v41, %v7606_v17  ;;  %3519 = vrot.lane.b32.xlu0 %v7684_v9, %s5937_s23  ;;  %v1690_v47 = vpop.f32.mrf.mxu0  ;;  %5503 = vst.msk [vmem:[%s6882_s11 + $0x94] sm:$0xf] %vm1765_vm10, %v2828_v46  ;;  %v2371_v19 = vsel %vm6370_vm5, %v5473_v53, %v2370_v24  ;;  %v2372_v13 = vrot.slane %v2370_v24, 4  ;;  %v2434_v28 = vpack.c.b16 %v2416_v8, %v2415_v4  ;;  %v7721_v4 = vpop.permute.xlu2 %2567 }
 0x1f4   : > { %5786 = vst.msk [vmem:[%s6882_s11 + $0x190] sm:$0xf] %vm1765_vm10, %v4794_v14  ;;  %v4964_v17 = vsel %vm1537_vm7, %v4929_v62, 0.0  ;;  %v1748_v6 = vpack.c.bf16 %v1690_v47, %v1690_v47  ;;  %v1827_v5 = vsel %vm1537_vm7, %v1690_v47, 0.0  ;;  %v1883_v38 = vmul.f32 %v1690_v47, %v1690_v47  ;;  %v4421_v16 = vpop.permute.xlu0 %4420 }
 0x1f5   : > { %v7706_v32 = vadd.f32 %v4964_v17, %v7638_v44  ;;  %v1828_v2 = vadd.f32 %v1827_v5, %v1826_v29  ;;  %v4574_v52 = vsel %vm1488_vm6, %v6309_v39, %v4421_v16  ;;  %4462 = vrot.lane.b32.xlu1 %v7626_v43, %s5938_s24  ;;  %v2999_v35 = vsel %vm1537_vm7, %v2963_v33, 0.0  ;;  %2463 = vrot.lane.b32.xlu2 %v2434_v28, %s5937_s23 }
 0x1f6   : > { %1781 = vst.msk [vmem:[%s6882_s11 + $0x3c] sm:$0xf] %vm1765_vm10, %v1748_v6  ;;  %v1929_v11 = vsel %vm1537_vm7, %v1883_v38, 0.0  ;;  %v2373_v10 = vrot.slane %v5453_v3, 5  ;;  %v2527_v49 = vunpack.c.l.b16 %v2371_v19  ;;  %v4034_v29 = vadd.f32 %v4033_v21, %v7623_v37  ;;  %v5229_v3 = vld [vmem:[%s5989_s22 + $0xb8] sm:$0xf] }
 0x1f7   : > { %v1930_v44 = vadd.f32 %v1929_v11, %v1928_v22  ;;  %v4136_v39 = vadd.f32 %v4135_v61, %v7635_v25  ;;  %v2486_v43 = vpop.permute.xlu1 %2485  ;;  %v5757_v27 = vrot.slane %v5735_v48, 9  ;;  %v4613_v31 = vsel %vm1537_vm7, %v4574_v52, %v4453_v63 }
 0x1f8   : > { %v2374_v50 = vsel %vm6370_vm5, %v2372_v13, %v2373_v10  ;;  %v2646_v0 = vsel %vm1537_vm7, %v7548_v58, %v2486_v43  ;;  %v4385_v34 = vrot.slane %v5736_v56, 5  ;;  %v4388_v25 = vrot.slane %v5737_v18, 5  ;;  %v5246_v56 = vld [vmem:[%s5989_s22 + $0xbc] sm:$0x1] }
 0x1f9   : > { %v4722_v22 = vpop.f32.mrf.mxu3  ;;  %v2528_v51 = vunpack.c.l.b16 %v2374_v50  ;;  %v2678_v37 = vsel %vm1570_vm8, %v2646_v0, %v7587_v59  ;;  %v2898_v21 = vadd.f32 %v2897_v42, %v7648_v7  ;;  %v7736_v63 = vadd.f32 %v2999_v35, %v7670_v30  ;;  %v5228_v42 = vld [vmem:[%s5989_s22 + $0xb4] sm:$0xf] }
 0x1fa   : > { %v4795_v61 = vpack.c.bf16 %v4722_v22, %v4722_v22  ;;  %v4864_v57 = vsel %vm1537_vm7, %v4722_v22, 0.0  ;;  %5490 = vmatmul.msk.bf16.gmra.mxu1 %vm1611_vm9, %v2678_v37  ;;  %v4386_v58 = vsel %vm6370_vm5, %v5757_v27, %v4385_v34  ;;  %v4930_v23 = vmul.f32 %v4722_v22, %v4722_v22 }
 0x1fb   : > { %v7738_v53 = vpack.c.b16 %v2528_v51, %v2527_v49  ;;  %v1693_v24 = vpop.f32.mrf.mxu0  ;;  %v3894_v59 = vpop.f32.mrf.mxu2  ;;  %v4387_v40 = vrot.slane %v4385_v34, 4  ;;  %v4494_v7 = vunpack.c.l.b16 %v4386_v58  ;;  %v7743_v41 = vadd.f32 %v4864_v57, %v4863_v36 }
 0x1fc   : > { %5787 = vst.msk [vmem:[%s6882_s11 + $0x194] sm:$0xf] %vm1765_vm10, %v4795_v61  ;;  %v1749_v1 = vpack.c.bf16 %v1693_v24, %v1693_v24  ;;  %v1829_v46 = vsel %vm1537_vm7, %v1693_v24, 0.0  ;;  %v1884_v33 = vmul.f32 %v1693_v24, %v1693_v24  ;;  %v4533_v14 = vpop.permute.xlu0 %4532  ;;  %v3965_v62 = vpack.c.bf16 %v3894_v59, %v3894_v59  ;;  %v7767_v48 = vpop.permute.xlu2 %3705 }
 0x1fd   : > { %4430 = vrot.lane.b32.xlu0 %v7738_v53, %s5937_s23  ;;  %v1830_v30 = vadd.f32 %v1829_v46, %v1828_v2  ;;  %v4035_v8 = vsel %vm1537_vm7, %v3894_v59, 0.0  ;;  %v4100_v47 = vmul.f32 %v3894_v59, %v3894_v59  ;;  %2495 = vrot.lane.b32.xlu1 %v7684_v9, %s5938_s24  ;;  %v4645_v13 = vsel %vm1570_vm8, %v4613_v31, %v4533_v14  ;;  %v5906_v59 = vld [vmem:[%s5989_s22 + $0x78] sm:$0xff] }
 0x1fe   : > { %1782 = vst.msk [vmem:[%s6882_s11 + $0x40] sm:$0xf] %vm1765_vm10, %v1749_v1  ;;  %v1931_v36 = vsel %vm1537_vm7, %v1884_v33, 0.0  ;;  %v7755_v19 = vadd.f32 %v4035_v8, %v4034_v29  ;;  %v4389_v17 = vsel %vm6370_vm5, %v4387_v40, %v4388_v25  ;;  %v4966_v6 = vsel %vm1537_vm7, %v4930_v23, 0.0  ;;  %5774 = vmatmul.msk.bf16.gmra.mxu3 %vm1611_vm9, %v4645_v13  ;;  %1482 = vrot.lane.b32.xlu2 %v7684_v9, %s5939_s25 }
 0x1ff   : > { %v1932_v5 = vadd.f32 %v1931_v36, %v1930_v44  ;;  %5670 = vst.msk [vmem:[%s6882_s11 + $0x118] sm:$0xf] %vm1765_vm10, %v3965_v62  ;;  %v4137_v38 = vsel %vm1537_vm7, %v4100_v47, 0.0  ;;  %v4495_v16 = vunpack.c.l.b16 %v4389_v17  ;;  %v3624_v2 = vpop.permute.xlu1 %3623  ;;  %v2758_v28 = vpop.f32.mrf.mxu1  ;;  %v1089_v18 = vshrl.u32 %v5228_v42, 16 }
 0x200   : > { %v7769_v52 = vadd.f32 %v4137_v38, %v4136_v39  ;;  %v1092_v11 = vshll.u32 %v5228_v42, 16  ;;  %v1098_v35 = vshll.u32 %v5229_v3, 16  ;;  %v2829_v49 = vpack.c.bf16 %v2758_v28, %v2758_v28  ;;  %v7779_v39 = vld [vmem:[%s5989_s22 + $0xb4] sm:$0xe] }
 0x201   : > { %v4513_v10 = vpack.c.b16 %v4495_v16, %v4494_v7  ;;  %v2899_v44 = vsel %vm1537_vm7, %v2758_v28, 0.0  ;;  %v2964_v29 = vmul.f32 %v2758_v28, %v2758_v28  ;;  %v7776_v27 = vadd.f32 %v4966_v6, %v7706_v32  ;;  %v5455_v7 = vld [vmem:[%s5989_s22 + $0xb8] sm:$0xf] }
 0x202   : > { %v7773_v43 = vadd.f32 %v2899_v44, %v2898_v21  ;;  %v1091_v50 = vrot.slane %v1089_v18, 4  ;;  %v1094_v0 = vrot.slane %v1092_v11, 5  ;;  %5504 = vst.msk [vmem:[%s6882_s11 + $0x98] sm:$0xf] %vm1765_vm10, %v2829_v49  ;;  %v1100_v51 = vrot.slane %v1098_v35, 5 }
 0x203   : > { %v1695_v31 = vpop.f32.mrf.mxu0  ;;  %v3896_v34 = vpop.f32.mrf.mxu2  ;;  %v3001_v22 = vsel %vm1537_vm7, %v2964_v29, 0.0  ;;  %v1102_v37 = vshrl.u32 %v5229_v3, 16  ;;  %v1108_v25 = vshll.u32 %v5246_v56, 16  ;;  %v5474_v1 = vrot.slane %v7779_v39, 9 }
 0x204   : > { %v1750_v21 = vpack.c.bf16 %v1695_v31, %v1695_v31  ;;  %v1831_v32 = vsel %vm1537_vm7, %v1695_v31, 0.0  ;;  %v1885_v61 = vmul.f32 %v1695_v31, %v1695_v31  ;;  %v3966_v57 = vpack.c.bf16 %v3896_v34, %v3896_v34  ;;  %v3512_v58 = vpop.permute.xlu0 %3511  ;;  %v7802_v3 = vpop.permute.xlu2 %2457 }
 0x205   : > { %4542 = vrot.lane.b32.xlu0 %v4513_v10, %s5939_s25  ;;  %v1832_v23 = vadd.f32 %v1831_v32, %v1830_v30  ;;  %v4101_v24 = vmul.f32 %v3896_v34, %v3896_v34  ;;  %v3746_v40 = vsel %vm1488_vm6, %v5906_v59, %v3512_v58  ;;  %v7794_v33 = vadd.f32 %v3001_v22, %v7736_v63 }
 0x206   : > { %1783 = vst.msk [vmem:[%s6882_s11 + $0x44] sm:$0xf] %vm1765_vm10, %v1750_v21  ;;  %v1933_v46 = vsel %vm1537_vm7, %v1885_v61, 0.0  ;;  %v3784_v14 = vsel %vm1537_vm7, %v3746_v40, %v3624_v2  ;;  %v1095_v62 = vor.u32 %v1094_v0, %v1091_v50  ;;  %v4037_v30 = vsel %vm1537_vm7, %v3896_v34, 0.0  ;;  %v5558_v0 = vld [vmem:[%s5989_s22 + $0xc0] sm:$0xf] }
 0x207   : > { %v1934_v8 = vadd.f32 %v1933_v46, %v1932_v5  ;;  %5671 = vst.msk [vmem:[%s6882_s11 + $0x11c] sm:$0xf] %vm1765_vm10, %v3966_v57  ;;  %v3816_v47 = vsel %vm1570_vm8, %v3784_v14, %v7632_v20  ;;  %v1104_v42 = vrot.slane %v1102_v37, 4  ;;  %v7804_v36 = vpop.permute.xlu1 %4454  ;;  %v7807_v13 = vsel %vm1537_vm7, %v4101_v24, 0.0  ;;  %v2760_v6 = vpop.f32.mrf.mxu1  ;;  %v5559_v61 = vld [vmem:[%s5989_s22 + $0xc4] sm:$0xf] }
 0x208   : > { %5657 = vmatmul.msk.bf16.gmra.mxu2 %vm1611_vm9, %v3816_v47  ;;  %v1096_v63 = vrot.slane %v1095_v62, 4  ;;  %v1110_v17 = vrot.slane %v1108_v25, 5  ;;  %v2377_v5 = vrot.slane %v5455_v7, 5  ;;  %v2830_v20 = vpack.c.bf16 %v2760_v6, %v2760_v6  ;;  %v5576_v57 = vld [vmem:[%s5989_s22 + $0xc8] sm:$0x1]  ;;  %v5865_v40 = vld [vmem:[%s5989_s22 + $0xc0] sm:$0xff] }
 0x209   : > { %v4725_v38 = vpop.f32.mrf.mxu3  ;;  %v1105_v16 = vor.u32 %v1104_v42, %v1100_v51  ;;  %v7811_v2 = vsel %vm1537_vm7, %v2760_v6, 0.0  ;;  %v2965_v28 = vmul.f32 %v2760_v6, %v2760_v6  ;;  %v3449_v47 = vshll.u32 %v5558_v0, 16  ;;  %3633 = vrot.lane.b32.xlu2 %v5865_v40, %s5938_s24 }
 0x20a   : > { %v4796_v56 = vpack.c.bf16 %v4725_v38, %v4725_v38  ;;  %v4866_v18 = vsel %vm1537_vm7, %v4725_v38, 0.0  ;;  %v4931_v11 = vmul.f32 %v4725_v38, %v4725_v38  ;;  %v1101_v35 = vsel %vm6001_vm2, %v1096_v63, %v1100_v51  ;;  %5505 = vst.msk [vmem:[%s6882_s11 + $0x9c] sm:$0xf] %vm1765_vm10, %v2830_v20  ;;  %v5456_v51 = vld [vmem:[%s5989_s22 + $0xbc] sm:$0x1] }
 0x20b   : > { %v7817_v10 = vadd.f32 %v4866_v18, %v7743_v41  ;;  %v1106_v49 = vrot.slane %v1105_v16, 4  ;;  %v1436_v44 = vunpack.c.l.b16 %v1101_v35  ;;  %v1698_v29 = vpop.f32.mrf.mxu0  ;;  %v7822_v50 = vsel %vm1537_vm7, %v2965_v28, 0.0 }
 0x20c   : > { %5788 = vst.msk [vmem:[%s6882_s11 + $0x198] sm:$0xf] %vm1765_vm10, %v4796_v56  ;;  %v4968_v39 = vsel %vm1537_vm7, %v4931_v11, 0.0  ;;  %v1751_v31 = vpack.c.bf16 %v1698_v29, %v1698_v29  ;;  %v1833_v41 = vsel %vm1537_vm7, %v1698_v29, 0.0  ;;  %v1886_v34 = vmul.f32 %v1698_v29, %v1698_v29  ;;  %v4423_v22 = vpop.permute.xlu0 %4422  ;;  %v7849_v14 = vpop.permute.xlu2 %2569 }
 0x20d   : > { %v7831_v37 = vadd.f32 %v4968_v39, %v7776_v27  ;;  %v1111_v25 = vsel %vm6001_vm2, %v1106_v49, %v1110_v17  ;;  %2575 = vrot.lane.b32.xlu0 %v7738_v53, %s5939_s25  ;;  %v1834_v21 = vadd.f32 %v1833_v41, %v1832_v23  ;;  %v7839_v32 = vsel %vm1488_vm6, %v8641_v55, %v4423_v22 }
 0x20e   : > { %v1437_v58 = vunpack.c.l.b16 %v1111_v25  ;;  %1784 = vst.msk [vmem:[%s6882_s11 + $0x48] sm:$0xf] %vm1765_vm10, %v1751_v31  ;;  %v1935_v24 = vsel %vm1537_vm7, %v1886_v34, 0.0  ;;  %v2378_v27 = vsel %vm6370_vm5, %v5474_v1, %v2377_v5  ;;  %v2379_v59 = vrot.slane %v2377_v5, 4 }
 0x20f   : > { %v1936_v7 = vadd.f32 %v1935_v24, %v1934_v8  ;;  %v2380_v46 = vrot.slane %v5456_v51, 5  ;;  %v2529_v53 = vunpack.c.l.b16 %v2378_v27  ;;  %v3446_v23 = vshrl.u32 %v5558_v0, 16  ;;  %v2488_v55 = vpop.permute.xlu1 %2487  ;;  %v5738_v51 = vld [vmem:[%s5989_s22 + $0xc0] sm:$0xe]  ;;  %v5739_v24 = vld [vmem:[%s5989_s22 + $0xc4] sm:$0xf] }
 0x210   : > { %v7851_v62 = vpack.c.b16 %v1437_v58, %v1436_v44  ;;  %v3455_v42 = vshll.u32 %v5559_v61, 16  ;;  %v3459_v63 = vshrl.u32 %v5559_v61, 16  ;;  %v3465_v8 = vshll.u32 %v5576_v57, 16  ;;  %v5740_v27 = vld [vmem:[%s5989_s22 + $0xc8] sm:$0x1] }
 0x211   : > { %v4727_v17 = vpop.f32.mrf.mxu3  ;;  %v2381_v1 = vsel %vm6370_vm5, %v2379_v59, %v2380_v46  ;;  %v3448_v6 = vrot.slane %v3446_v23, 4  ;;  %v4038_v5 = vadd.f32 %v4037_v30, %v7755_v19  ;;  %v3451_v56 = vrot.slane %v3449_v47, 5 }
 0x212   : > { %3521 = vrot.lane.b32.xlu1 %v7851_v62, %s5937_s23  ;;  %v4797_v38 = vpack.c.bf16 %v4727_v17, %v4727_v17  ;;  %v7860_v16 = vsel %vm1537_vm7, %v4727_v17, 0.0  ;;  %v4932_v20 = vmul.f32 %v4727_v17, %v4727_v17  ;;  %v2530_v28 = vunpack.c.l.b16 %v2381_v1  ;;  %v2013_v17 = vld [vmem:[%s5989_s22 + $0xac] sm:$0xf] }
 0x213   : > { %v3457_v18 = vrot.slane %v3455_v42, 5  ;;  %v3461_v11 = vrot.slane %v3459_v63, 4  ;;  %v3467_v35 = vrot.slane %v3465_v8, 5  ;;  %v1700_v49 = vpop.f32.mrf.mxu0  ;;  %v3899_v44 = vpop.f32.mrf.mxu2  ;;  %v3452_v31 = vor.u32 %v3451_v56, %v3448_v6 }
 0x214   : > { %5789 = vst.msk [vmem:[%s6882_s11 + $0x19c] sm:$0xf] %vm1765_vm10, %v4797_v38  ;;  %v7865_v19 = vsel %vm1537_vm7, %v4932_v20, 0.0  ;;  %v7867_v30 = vpack.c.b16 %v2530_v28, %v2529_v53  ;;  %v1752_v29 = vpack.c.bf16 %v1700_v49, %v1700_v49  ;;  %v1835_v0 = vsel %vm1537_vm7, %v1700_v49, 0.0  ;;  %v4535_v39 = vpop.permute.xlu0 %4534  ;;  %v2012_v53 = vld [vmem:[%s5989_s22 + $0xa8] sm:$0xe]  ;;  %v7880_v23 = vpop.permute.xlu2 %3707 }
 0x215   : > { %v3462_v41 = vor.u32 %v3461_v11, %v3457_v18  ;;  %v1836_v34 = vadd.f32 %v1835_v0, %v1834_v21  ;;  %v1887_v22 = vmul.f32 %v1700_v49, %v1700_v49  ;;  %v3967_v25 = vpack.c.bf16 %v3899_v44, %v3899_v44 }
 0x216   : > { %1785 = vst.msk [vmem:[%s6882_s11 + $0x4c] sm:$0xf] %vm1765_vm10, %v1752_v29  ;;  %v4039_v61 = vsel %vm1537_vm7, %v3899_v44, 0.0  ;;  %v4102_v57 = vmul.f32 %v3899_v44, %v3899_v44  ;;  %v4140_v58 = vadd.f32 %v7807_v13, %v7769_v52  ;;  %v3453_v59 = vrot.slane %v3452_v31, 4 }
 0x217   : > { %v3463_v40 = vrot.slane %v3462_v41, 4  ;;  %v1937_v21 = vsel %vm1537_vm7, %v1887_v22, 0.0  ;;  %v4040_v46 = vadd.f32 %v4039_v61, %v4038_v5  ;;  %v7882_v47 = vpop.permute.xlu1 %3625  ;;  %5672 = vst.msk [vmem:[%s6882_s11 + $0x120] sm:$0xf] %vm1765_vm10, %v3967_v25  ;;  %v2648_v52 = vsel %vm1537_vm7, %v7688_v45, %v2488_v55  ;;  %v2014_v5 = vld [vmem:[%s5989_s22 + $0xb0] sm:$0x1]  ;;  %v2763_v11 = vpop.f32.mrf.mxu1 }
 0x218   : > { %v1938_v42 = vadd.f32 %v1937_v21, %v1936_v7  ;;  %v4141_v63 = vsel %vm1537_vm7, %v4102_v57, 0.0  ;;  %v4615_v13 = vsel %vm1537_vm7, %v7839_v32, %v7804_v36  ;;  %v3458_v1 = vsel %vm6001_vm2, %v3453_v59, %v3457_v18 }
 0x219   : > { %v3468_v6 = vsel %vm6001_vm2, %v3463_v40, %v3467_v35  ;;  %v4142_v8 = vadd.f32 %v4141_v63, %v4140_v58  ;;  %v4647_v7 = vsel %vm1570_vm8, %v4615_v13, %v4535_v39  ;;  %v3665_v38 = vunpack.c.l.b16 %v3458_v1  ;;  %v5907_v1 = vld [vmem:[%s5989_s22 + $0x84] sm:$0xff] }
 0x21a   : > { %4432 = vrot.lane.b32.xlu1 %v7867_v30, %s5937_s23  ;;  %v3666_v45 = vunpack.c.l.b16 %v3468_v6  ;;  %5775 = vmatmul.msk.bf16.gmra.mxu3 %vm1611_vm9, %v4647_v7  ;;  %v2680_v36 = vsel %vm1570_vm8, %v2648_v52, %v7721_v4  ;;  %v5758_v32 = vrot.slane %v5738_v51, 9  ;;  %v4392_v55 = vrot.slane %v5739_v24, 5 }
 0x21b   : > { %5491 = vmatmul.msk.bf16.gmra.mxu1 %vm1611_vm9, %v2680_v36  ;;  %v4395_v20 = vrot.slane %v5740_v27, 5  ;;  %v5410_v28 = vrot.slane %v2012_v53, 9  ;;  %v2169_v56 = vrot.slane %v2013_v17, 5  ;;  %v1703_v18 = vpop.f32.mrf.mxu0  ;;  %v2172_v49 = vrot.slane %v2014_v5, 5  ;;  %v3901_v0 = vpop.f32.mrf.mxu2 }
 0x21c   : > { %v3683_v35 = vpack.c.b16 %v3666_v45, %v3665_v38  ;;  %v1753_v44 = vpack.c.bf16 %v1703_v18, %v1703_v18  ;;  %v1837_v29 = vsel %vm1537_vm7, %v1703_v18, 0.0  ;;  %v3514_v39 = vpop.permute.xlu0 %3513  ;;  %v4393_v4 = vsel %vm6370_vm5, %v5758_v32, %v4392_v55  ;;  %v7919_v40 = vpop.permute.xlu2 %2459 }
 0x21d   : > { %v4394_v31 = vrot.slane %v4392_v55, 4  ;;  %v2170_v41 = vsel %vm6370_vm5, %v5410_v28, %v2169_v56  ;;  %v2171_v22 = vrot.slane %v2169_v56, 4  ;;  %v4496_v51 = vunpack.c.l.b16 %v4393_v4 }
 0x21e   : > { %3713 = vrot.lane.b32.xlu0 %v3683_v35, %s5939_s25  ;;  %v2417_v25 = vunpack.c.l.b16 %v2170_v41  ;;  %1786 = vst.msk [vmem:[%s6882_s11 + $0x50] sm:$0xf] %vm1765_vm10, %v1753_v44  ;;  %v1838_v61 = vadd.f32 %v1837_v29, %v1836_v34  ;;  %v1888_v57 = vmul.f32 %v1703_v18, %v1703_v18  ;;  %4464 = vrot.lane.b32.xlu2 %v3683_v35, %s5938_s24  ;;  %v4041_v59 = vsel %vm1537_vm7, %v3901_v0, 0.0 }
 0x21f   : > { %v4396_v58 = vsel %vm6370_vm5, %v4394_v31, %v4395_v20  ;;  %v2173_v24 = vsel %vm6370_vm5, %v2171_v22, %v2172_v49  ;;  %v3968_v27 = vpack.c.bf16 %v3901_v0, %v3901_v0  ;;  %v7921_v21 = vpop.permute.xlu1 %4456  ;;  %v7924_v52 = vadd.f32 %v4041_v59, %v4040_v46  ;;  %v2765_v49 = vpop.f32.mrf.mxu1  ;;  %v8659_v22 = vld [vmem:[#allocation8_spill] sm:$0xff] }
 0x220   : > { %v4497_v53 = vunpack.c.l.b16 %v4396_v58  ;;  %v2418_v34 = vunpack.c.l.b16 %v2173_v24  ;;  %v1939_v63 = vsel %vm1537_vm7, %v1888_v57, 0.0  ;;  %v4103_v17 = vmul.f32 %v3901_v0, %v3901_v0  ;;  %v5560_v0 = vld [vmem:[%s5989_s22 + $0xcc] sm:$0xf] }
 0x221   : > { %v1940_v13 = vadd.f32 %v1939_v63, %v1938_v42  ;;  %5673 = vst.msk [vmem:[%s6882_s11 + $0x124] sm:$0xf] %vm1765_vm10, %v3968_v27  ;;  %v3749_v6 = vsel %vm1488_vm6, %v5907_v1, %v3514_v39  ;;  %v2831_v7 = vpack.c.bf16 %v2763_v11, %v2763_v11  ;;  %v4730_v5 = vpop.f32.mrf.mxu3  ;;  %v2902_v36 = vadd.f32 %v7811_v2, %v7773_v43  ;;  %v5561_v27 = vld [vmem:[%s5989_s22 + $0xd0] sm:$0xf] }
 0x222   : > { %v4514_v38 = vpack.c.b16 %v4497_v53, %v4496_v51  ;;  %v2435_v45 = vpack.c.b16 %v2418_v34, %v2417_v25  ;;  %v2903_v32 = vsel %vm1537_vm7, %v2763_v11, 0.0  ;;  %v4143_v55 = vsel %vm1537_vm7, %v4103_v17, 0.0  ;;  %v5577_v17 = vld [vmem:[%s5989_s22 + $0xd4] sm:$0x1] }
 0x223   : > { %5506 = vst.msk [vmem:[%s6882_s11 + $0xa0] sm:$0xf] %vm1765_vm10, %v2831_v7  ;;  %v2966_v46 = vmul.f32 %v2763_v11, %v2763_v11  ;;  %v3004_v42 = vadd.f32 %v7822_v50, %v7794_v33  ;;  %v3786_v20 = vsel %vm1537_vm7, %v3749_v6, %v7882_v47  ;;  %v1705_v28 = vpop.f32.mrf.mxu0  ;;  %v7941_v56 = vadd.f32 %v4143_v55, %v4142_v8 }
 0x224   : > { %4544 = vrot.lane.b32.xlu1 %v4514_v38, %s5939_s25  ;;  %v2904_v43 = vadd.f32 %v2903_v32, %v2902_v36  ;;  %v3818_v2 = vsel %vm1570_vm8, %v3786_v20, %v7767_v48  ;;  %v4798_v18 = vpack.c.bf16 %v4730_v5, %v4730_v5  ;;  %v4425_v35 = vpop.permute.xlu0 %4424  ;;  %v4869_v33 = vadd.f32 %v7860_v16, %v7817_v10  ;;  %v7958_v31 = vpop.permute.xlu2 %2571 }
 0x225   : > { %v3005_v11 = vsel %vm1537_vm7, %v2966_v46, 0.0  ;;  %5658 = vmatmul.msk.bf16.gmra.mxu2 %vm1611_vm9, %v3818_v2  ;;  %v4870_v50 = vsel %vm1537_vm7, %v4730_v5, 0.0  ;;  %v4933_v47 = vmul.f32 %v4730_v5, %v4730_v5  ;;  %v4971_v48 = vadd.f32 %v7865_v19, %v7831_v37 }
 0x226   : > { %2465 = vrot.lane.b32.xlu0 %v2435_v45, %s5937_s23  ;;  %v3006_v8 = vadd.f32 %v3005_v11, %v3004_v42  ;;  %5790 = vst.msk [vmem:[%s6882_s11 + $0x1a0] sm:$0xf] %vm1765_vm10, %v4798_v18  ;;  %v1754_v44 = vpack.c.bf16 %v1705_v28, %v1705_v28  ;;  %v1839_v29 = vsel %vm1537_vm7, %v1705_v28, 0.0  ;;  %v4871_v39 = vadd.f32 %v4870_v50, %v4869_v33 }
 0x227   : > { %v4972_v10 = vsel %vm1537_vm7, %v4933_v47, 0.0  ;;  %v1840_v16 = vadd.f32 %v1839_v29, %v1838_v61  ;;  %v1889_v4 = vmul.f32 %v1705_v28, %v1705_v28  ;;  %v2490_v41 = vpop.permute.xlu1 %2489  ;;  %2497 = vrot.lane.b32.xlu2 %v7851_v62, %s5938_s24  ;;  %v2613_v37 = vsel %vm1488_vm6, %v8659_v22, %v7802_v3 }
 0x228   : > { %v4973_v19 = vadd.f32 %v4972_v10, %v4971_v48  ;;  %1787 = vst.msk [vmem:[%s6882_s11 + $0x54] sm:$0xf] %vm1765_vm10, %v1754_v44  ;;  %v4580_v51 = vsel %vm1488_vm6, %v8651_v60, %v4425_v35  ;;  %v2832_v25 = vpack.c.bf16 %v2765_v49, %v2765_v49  ;;  %v2905_v57 = vsel %vm1537_vm7, %v2765_v49, 0.0 }
 0x229   : > { %v1941_v61 = vsel %vm1537_vm7, %v1889_v4, 0.0  ;;  %v2967_v58 = vmul.f32 %v2765_v49, %v2765_v49  ;;  %v4732_v24 = vpop.f32.mrf.mxu3  ;;  %v3470_v59 = vshrl.u32 %v5560_v0, 16  ;;  %v7974_v3 = vadd.f32 %v2905_v57, %v2904_v43  ;;  %v5866_v57 = vld [vmem:[%s5989_s22 + $0xcc] sm:$0xff] }
 0x22a   : > { %v1942_v53 = vadd.f32 %v1941_v61, %v1940_v13  ;;  %5507 = vst.msk [vmem:[%s6882_s11 + $0xa4] sm:$0xf] %vm1765_vm10, %v2832_v25  ;;  %v4799_v34 = vpack.c.bf16 %v4732_v24, %v4732_v24  ;;  %v4872_v63 = vsel %vm1537_vm7, %v4732_v24, 0.0  ;;  %v4934_v6 = vmul.f32 %v4732_v24, %v4732_v24 }
 0x22b   : > { %v3007_v60 = vsel %vm1537_vm7, %v2967_v58, 0.0  ;;  %v7979_v1 = vadd.f32 %v4872_v63, %v4871_v39  ;;  %v3472_v7 = vrot.slane %v3470_v59, 4  ;;  %v1708_v5 = vpop.f32.mrf.mxu0  ;;  %v3904_v38 = vpop.f32.mrf.mxu2  ;;  %v3473_v45 = vshll.u32 %v5560_v0, 16  ;;  %v2015_v0 = vld [vmem:[%s5989_s22 + $0xb4] sm:$0xe] }
 0x22c   : > { %2577 = vrot.lane.b32.xlu1 %v7867_v30, %s5939_s25  ;;  %v7983_v13 = vadd.f32 %v3007_v60, %v3006_v8  ;;  %5791 = vst.msk [vmem:[%s6882_s11 + $0x1a4] sm:$0xf] %vm1765_vm10, %v4799_v34  ;;  %v3479_v36 = vshll.u32 %v5561_v27, 16  ;;  %v3483_v32 = vshrl.u32 %v5561_v27, 16  ;;  %v4537_v55 = vpop.permute.xlu0 %4536  ;;  %v4974_v46 = vsel %vm1537_vm7, %v4934_v6, 0.0  ;;  %v7995_v47 = vpop.permute.xlu2 %3709 }
 0x22d   : > { %v3489_v42 = vshll.u32 %v5577_v17, 16  ;;  %v1755_v20 = vpack.c.bf16 %v1708_v5, %v1708_v5  ;;  %v1841_v28 = vsel %vm1537_vm7, %v1708_v5, 0.0  ;;  %v7991_v30 = vadd.f32 %v4974_v46, %v4973_v19  ;;  %v2016_v39 = vld [vmem:[%s5989_s22 + $0xb8] sm:$0xf]  ;;  %v2017_v19 = vld [vmem:[%s5989_s22 + $0xbc] sm:$0x1] }
 0x22e   : > { %1484 = vrot.lane.b32.xlu0 %v7851_v62, %s5939_s25  ;;  %v3475_v43 = vrot.slane %v3473_v45, 5  ;;  %v3481_v2 = vrot.slane %v3479_v36, 5  ;;  %v3485_v18 = vrot.slane %v3483_v32, 4  ;;  %v1842_v11 = vadd.f32 %v1841_v28, %v1840_v16 }
 0x22f   : > { %v3491_v35 = vrot.slane %v3489_v42, 5  ;;  %1788 = vst.msk [vmem:[%s6882_s11 + $0x58] sm:$0xf] %vm1765_vm10, %v1755_v20  ;;  %v1890_v33 = vmul.f32 %v1708_v5, %v1708_v5  ;;  %v3969_v50 = vpack.c.bf16 %v3904_v38, %v3904_v38  ;;  %v7997_v49 = vpop.permute.xlu1 %3627  ;;  %v4043_v44 = vsel %vm1537_vm7, %v3904_v38, 0.0 }
 0x230   : > { %v3476_v8 = vor.u32 %v3475_v43, %v3472_v7  ;;  %v3486_v48 = vor.u32 %v3485_v18, %v3481_v2  ;;  %v4104_v29 = vmul.f32 %v3904_v38, %v3904_v38  ;;  %v4044_v16 = vadd.f32 %v4043_v44, %v7924_v52 }
 0x231   : > { %v1943_v10 = vsel %vm1537_vm7, %v1890_v33, 0.0  ;;  %5674 = vst.msk [vmem:[%s6882_s11 + $0x128] sm:$0xf] %vm1765_vm10, %v3969_v50  ;;  %v2650_v4 = vsel %vm1537_vm7, %v2613_v37, %v2490_v41  ;;  %v4617_v22 = vsel %vm1537_vm7, %v4580_v51, %v7921_v21  ;;  %v5411_v52 = vrot.slane %v2015_v0, 9  ;;  %v2768_v41 = vpop.f32.mrf.mxu1  ;;  %v5908_v50 = vld [vmem:[%s5989_s22 + $0x90] sm:$0xff] }
 0x232   : > { %v3477_v25 = vrot.slane %v3476_v8, 4  ;;  %v3487_v61 = vrot.slane %v3486_v48, 4  ;;  %v1944_v58 = vadd.f32 %v1943_v10, %v1942_v53  ;;  %v4145_v24 = vsel %vm1537_vm7, %v4104_v29, 0.0 }
 0x233   : > { %v4146_v27 = vadd.f32 %v4145_v24, %v7941_v56  ;;  %v4649_v59 = vsel %vm1570_vm8, %v4617_v22, %v4537_v55  ;;  %v2682_v34 = vsel %vm1570_vm8, %v2650_v4, %v7849_v14  ;;  %v1710_v63 = vpop.f32.mrf.mxu0  ;;  %v2176_v56 = vrot.slane %v2016_v39, 5  ;;  %v3906_v53 = vpop.f32.mrf.mxu2 }
 0x234   : > { %v3482_v21 = vsel %vm6001_vm2, %v3477_v25, %v3481_v2  ;;  %v3492_v37 = vsel %vm6001_vm2, %v3487_v61, %v3491_v35  ;;  %5776 = vmatmul.msk.bf16.gmra.mxu3 %vm1611_vm9, %v4649_v59  ;;  %5492 = vmatmul.msk.bf16.gmra.mxu1 %vm1611_vm9, %v2682_v34  ;;  %v2179_v51 = vrot.slane %v2017_v19, 5  ;;  %v3516_v17 = vpop.permute.xlu0 %3515  ;;  %v1756_v6 = vpack.c.bf16 %v1710_v63, %v1710_v63  ;;  %v8031_v20 = vpop.permute.xlu2 %2461  ;;  %v5231_v61 = vld [vmem:[%s5989_s22 + $0xc4] sm:$0xf] }
 0x235   : > { %v3667_v60 = vunpack.c.l.b16 %v3482_v21  ;;  %v3668_v14 = vunpack.c.l.b16 %v3492_v37  ;;  %v1843_v7 = vsel %vm1537_vm7, %v1710_v63, 0.0  ;;  %v2177_v5 = vsel %vm6370_vm5, %v5411_v52, %v2176_v56 }
 0x236   : > { %3635 = vrot.lane.b32.xlu0 %v5866_v57, %s5938_s24  ;;  %v2178_v38 = vrot.slane %v2176_v56, 4  ;;  %v8026_v45 = vadd.f32 %v1843_v7, %v1842_v11  ;;  %v1891_v36 = vmul.f32 %v1710_v63, %v1710_v63  ;;  %v2419_v55 = vunpack.c.l.b16 %v2177_v5  ;;  %1789 = vst.msk [vmem:[%s6882_s11 + $0x5c] sm:$0xf] %vm1765_vm10, %v1756_v6  ;;  %v5247_v57 = vld [vmem:[%s5989_s22 + $0xc8] sm:$0x1] }
 0x237   : > { %v3684_v32 = vpack.c.b16 %v3668_v14, %v3667_v60  ;;  %v3970_v46 = vpack.c.bf16 %v3906_v53, %v3906_v53  ;;  %v4045_v42 = vsel %vm1537_vm7, %v3906_v53, 0.0  ;;  %v8033_v28 = vpop.permute.xlu1 %4458  ;;  %v4105_v35 = vmul.f32 %v3906_v53, %v3906_v53 }
 0x238   : > { %v2180_v43 = vsel %vm6370_vm5, %v2178_v38, %v2179_v51  ;;  %v1945_v2 = vsel %vm1537_vm7, %v1891_v36, 0.0  ;;  %v8038_v18 = vadd.f32 %v4045_v42, %v4044_v16  ;;  %v3752_v8 = vsel %vm1488_vm6, %v5908_v50, %v3516_v17  ;;  %v5230_v16 = vld [vmem:[%s5989_s22 + $0xc0] sm:$0xf] }
 0x239   : > { %3715 = vrot.lane.b32.xlu1 %v3684_v32, %s5939_s25  ;;  %v2420_v11 = vunpack.c.l.b16 %v2180_v43  ;;  %v8041_v33 = vadd.f32 %v1945_v2, %v1944_v58  ;;  %5675 = vst.msk [vmem:[%s6882_s11 + $0x12c] sm:$0xf] %vm1765_vm10, %v3970_v46  ;;  %v2833_v48 = vpack.c.bf16 %v2768_v41, %v2768_v41  ;;  %v4735_v44 = vpop.f32.mrf.mxu3  ;;  %v4147_v29 = vsel %vm1537_vm7, %v4105_v35, 0.0  ;;  %v2770_v51 = vpop.f32.mrf.mxu1 }
 0x23a   : > { %v2907_v0 = vsel %vm1537_vm7, %v2768_v41, 0.0  ;;  %v2968_v39 = vmul.f32 %v2768_v41, %v2768_v41  ;;  %v3788_v10 = vsel %vm1537_vm7, %v3752_v8, %v7997_v49  ;;  %v8052_v22 = vadd.f32 %v4147_v29, %v4146_v27  ;;  %v5457_v8 = vld [vmem:[%s5989_s22 + $0xc0] sm:$0xe] }
 0x23b   : > { %v2436_v4 = vpack.c.b16 %v2420_v11, %v2419_v55  ;;  %5508 = vst.msk [vmem:[%s6882_s11 + $0xa8] sm:$0xf] %vm1765_vm10, %v2833_v48  ;;  %v2908_v19 = vadd.f32 %v2907_v0, %v7974_v3  ;;  %v3820_v25 = vsel %vm1570_vm8, %v3788_v10, %v7880_v23  ;;  %v1713_v58 = vpop.f32.mrf.mxu0  ;;  %v4800_v49 = vpack.c.bf16 %v4735_v44, %v4735_v44  ;;  %v5458_v48 = vld [vmem:[%s5989_s22 + $0xc4] sm:$0xf]  ;;  %v5459_v10 = vld [vmem:[%s5989_s22 + $0xc8] sm:$0x1] }
 0x23c   : > { %v3009_v24 = vsel %vm1537_vm7, %v2968_v39, 0.0  ;;  %5659 = vmatmul.msk.bf16.gmra.mxu2 %vm1611_vm9, %v3820_v25  ;;  %v4874_v59 = vsel %vm1537_vm7, %v4735_v44, 0.0  ;;  %v4935_v27 = vmul.f32 %v4735_v44, %v4735_v44  ;;  %v8064_v34 = vpop.permute.xlu0 %4426  ;;  %v1113_v63 = vshrl.u32 %v5230_v16, 16  ;;  %v8073_v14 = vpop.permute.xlu2 %2573 }
 0x23d   : > { %v3010_v52 = vadd.f32 %v3009_v24, %v7983_v13  ;;  %v4875_v3 = vadd.f32 %v4874_v59, %v7979_v1  ;;  %v1116_v41 = vshll.u32 %v5230_v16, 16  ;;  %5792 = vst.msk [vmem:[%s6882_s11 + $0x1a8] sm:$0xf] %vm1765_vm10, %v4800_v49  ;;  %v1122_v21 = vshll.u32 %v5231_v61, 16 }
 0x23e   : > { %4466 = vrot.lane.b32.xlu0 %v3684_v32, %s5938_s24  ;;  %v4976_v23 = vsel %vm1537_vm7, %v4935_v27, 0.0  ;;  %v1126_v37 = vshrl.u32 %v5231_v61, 16  ;;  %v1132_v56 = vshll.u32 %v5247_v57, 16  ;;  %v1115_v17 = vrot.slane %v1113_v63, 4 }
 0x23f   : > { %v4977_v53 = vadd.f32 %v4976_v23, %v7991_v30  ;;  %v1118_v60 = vrot.slane %v1116_v41, 5  ;;  %v1757_v13 = vpack.c.bf16 %v1713_v58, %v1713_v58  ;;  %v8075_v1 = vpop.permute.xlu1 %2491  ;;  %v1124_v6 = vrot.slane %v1122_v21, 5 }
 0x240   : > { %v1128_v7 = vrot.slane %v1126_v37, 4  ;;  %v1845_v5 = vsel %vm1537_vm7, %v1713_v58, 0.0  ;;  %v1892_v36 = vmul.f32 %v1713_v58, %v1713_v58  ;;  %v2909_v32 = vsel %vm1537_vm7, %v2770_v51, 0.0 }
 0x241   : > { %2467 = vrot.lane.b32.xlu1 %v2436_v4, %s5937_s23  ;;  %v1119_v38 = vor.u32 %v1118_v60, %v1115_v17  ;;  %1790 = vst.msk [vmem:[%s6882_s11 + $0x60] sm:$0xf] %vm1765_vm10, %v1757_v13  ;;  %v8082_v30 = vadd.f32 %v1845_v5, %v8026_v45  ;;  %v4737_v55 = vpop.f32.mrf.mxu3  ;;  %v1134_v42 = vrot.slane %v1132_v56, 5  ;;  %v2834_v43 = vpack.c.bf16 %v2770_v51, %v2770_v51  ;;  %v5742_v13 = vld [vmem:[%s5989_s22 + $0xd0] sm:$0xf] }
 0x242   : > { %v1129_v46 = vor.u32 %v1128_v7, %v1124_v6  ;;  %v1947_v35 = vsel %vm1537_vm7, %v1892_v36, 0.0  ;;  %v8086_v11 = vadd.f32 %v2909_v32, %v2908_v19  ;;  %v2969_v50 = vmul.f32 %v2770_v51, %v2770_v51 }
 0x243   : > { %v1120_v2 = vrot.slane %v1119_v38, 4  ;;  %v3909_v44 = vpop.f32.mrf.mxu2  ;;  %v8091_v29 = vadd.f32 %v1947_v35, %v8041_v33  ;;  %5509 = vst.msk [vmem:[%s6882_s11 + $0xac] sm:$0xf] %vm1765_vm10, %v2834_v43  ;;  %v4801_v0 = vpack.c.bf16 %v4737_v55, %v4737_v55  ;;  %v4876_v39 = vsel %vm1537_vm7, %v4737_v55, 0.0  ;;  %v8102_v57 = vpop.f32.mrf.mxu0  ;;  %v5743_v38 = vld [vmem:[%s5989_s22 + $0xd4] sm:$0x1] }
 0x244   : > { %v1130_v45 = vrot.slane %v1129_v46, 4  ;;  %v4539_v16 = vpop.permute.xlu0 %4538  ;;  %v3011_v19 = vsel %vm1537_vm7, %v2969_v50, 0.0  ;;  %v8100_v25 = vadd.f32 %v4876_v39, %v4875_v3  ;;  %v4936_v61 = vmul.f32 %v4737_v55, %v4737_v55  ;;  %v8111_v41 = vpop.permute.xlu2 %3711 }
 0x245   : > { %v1125_v4 = vsel %vm6001_vm2, %v1120_v2, %v1124_v6  ;;  %v8106_v24 = vadd.f32 %v3011_v19, %v3010_v52  ;;  %5793 = vst.msk [vmem:[%s6882_s11 + $0x1ac] sm:$0xf] %vm1765_vm10, %v4801_v0  ;;  %v5475_v49 = vrot.slane %v5457_v8, 9  ;;  %v2384_v3 = vrot.slane %v5458_v48, 5  ;;  %v5741_v52 = vld [vmem:[%s5989_s22 + $0xcc] sm:$0xe] }
 0x246   : > { %v1135_v33 = vsel %vm6001_vm2, %v1130_v45, %v1134_v42  ;;  %v1438_v58 = vunpack.c.l.b16 %v1125_v4  ;;  %v4978_v27 = vsel %vm1537_vm7, %v4936_v61, 0.0  ;;  %v2387_v63 = vrot.slane %v5459_v10, 5  ;;  %v5909_v4 = vld [vmem:[%s5989_s22 + $0x9c] sm:$0xff] }
 0x247   : > { %v1439_v59 = vunpack.c.l.b16 %v1135_v33  ;;  %v3630_v23 = vpop.permute.xlu1 %3629  ;;  %v8113_v21 = vadd.f32 %v4978_v27, %v4977_v53  ;;  %v1758_v26 = vpack.c.bf16 %v8102_v57, %v8102_v57  ;;  %v2773_v37 = vpop.f32.mrf.mxu1  ;;  %v4583_v51 = vsel %vm1488_vm6, %v8655_v54, %v8064_v34  ;;  %v8660_v53 = vld [vmem:[#allocation7_spill] sm:$0xff] }
 0x248   : > { %v2385_v17 = vsel %vm6370_vm5, %v5475_v49, %v2384_v3  ;;  %v2386_v60 = vrot.slane %v2384_v3, 4  ;;  %v2616_v6 = vsel %vm1488_vm6, %v8660_v53, %v7919_v40  ;;  %v3971_v7 = vpack.c.bf16 %v3909_v44, %v3909_v44 }
 0x249   : > { %v8118_v56 = vpack.c.b16 %v1439_v59, %v1438_v58  ;;  %1791 = vst.msk [vmem:[%s6882_s11 + $0x64] sm:$0xf] %vm1765_vm10, %v1758_v26  ;;  %v4047_v5 = vsel %vm1537_vm7, %v3909_v44, 0.0  ;;  %v2531_v34 = vunpack.c.l.b16 %v2385_v17  ;;  %v5759_v32 = vrot.slane %v5741_v52, 9 }
 0x24a   : > { %v2388_v54 = vsel %vm6370_vm5, %v2386_v60, %v2387_v63  ;;  %v4048_v36 = vadd.f32 %v4047_v5, %v8038_v18  ;;  %5676 = vst.msk [vmem:[%s6882_s11 + $0x130] sm:$0xf] %vm1765_vm10, %v3971_v7  ;;  %v4106_v46 = vmul.f32 %v3909_v44, %v3909_v44  ;;  %v2652_v42 = vsel %vm1537_vm7, %v2616_v6, %v8075_v1  ;;  %v5830_v60 = vld [vmem:[%s5989_s22 + $0x9c] sm:$0xff] }
 0x24b   : > { %1486 = vrot.lane.b32.xlu1 %v8118_v56, %s5939_s25  ;;  %2499 = vrot.lane.b32.xlu0 %v8118_v56, %s5938_s24  ;;  %v3911_v40 = vpop.f32.mrf.mxu2  ;;  %v2532_v55 = vunpack.c.l.b16 %v2388_v54  ;;  %v4619_v43 = vsel %vm1537_vm7, %v4583_v51, %v8033_v28  ;;  %v2684_v18 = vsel %vm1570_vm8, %v2652_v42, %v7958_v31  ;;  %v4399_v50 = vrot.slane %v5742_v13, 5 }
 0x24c   : > { %3523 = vrot.lane.b32.xlu2 %v8118_v56, %s5937_s23  ;;  %v3518_v2 = vpop.permute.xlu0 %3517  ;;  %v4651_v35 = vsel %vm1570_vm8, %v4619_v43, %v4539_v16  ;;  %v4402_v8 = vrot.slane %v5743_v38, 5  ;;  %v4149_v48 = vsel %vm1537_vm7, %v4106_v46, 0.0  ;;  %5493 = vmatmul.msk.bf16.gmra.mxu1 %vm1611_vm9, %v2684_v18  ;;  %v3972_v1 = vpack.c.bf16 %v3911_v40, %v3911_v40 }
 0x24d   : > { %5777 = vmatmul.msk.bf16.gmra.mxu3 %vm1611_vm9, %v4651_v35  ;;  %v4049_v44 = vsel %vm1537_vm7, %v3911_v40, 0.0  ;;  %v4150_v28 = vadd.f32 %v4149_v48, %v8052_v22  ;;  %v4400_v45 = vsel %vm6370_vm5, %v5759_v32, %v4399_v50  ;;  %v4401_v0 = vrot.slane %v4399_v50, 4  ;;  %v8663_v35 = vld [vmem:[#allocation26_spill] sm:$0xff] }
 0x24e   : > { %v8158_v31 = vadd.f32 %v4049_v44, %v4048_v36  ;;  %v8160_v10 = vpack.c.b16 %v2532_v55, %v2531_v34  ;;  %5677 = vst.msk [vmem:[%s6882_s11 + $0x134] sm:$0xf] %vm1765_vm10, %v3972_v1  ;;  %v4107_v16 = vmul.f32 %v3911_v40, %v3911_v40  ;;  %v3755_v19 = vsel %vm1488_vm6, %v5909_v4, %v3518_v2  ;;  %v8661_v36 = vld [vmem:[#allocation12_spill] sm:$0xff]  ;;  %v8662_v55 = vld [vmem:[#allocation23_spill] sm:$0xff] }
 0x24f   : > { %v4461_v39 = vpop.permute.xlu1 %4460  ;;  %v2835_v61 = vpack.c.bf16 %v2773_v37, %v2773_v37  ;;  %v4403_v22 = vsel %vm6370_vm5, %v4401_v0, %v4402_v8  ;;  %v3790_v33 = vsel %vm1537_vm7, %v3755_v19, %v3630_v23  ;;  %v2911_v58 = vsel %vm1537_vm7, %v2773_v37, 0.0  ;;  %v8170_v59 = vpop.permute.xlu2 %2463 }
 0x250   : > { %v2970_v49 = vmul.f32 %v2773_v37, %v2773_v37  ;;  %v4498_v27 = vunpack.c.l.b16 %v4400_v45  ;;  %v4151_v3 = vsel %vm1537_vm7, %v4107_v16, 0.0  ;;  %v2912_v63 = vadd.f32 %v2911_v58, %v8086_v11  ;;  %v2775_v52 = vpop.f32.mrf.mxu1 }
 0x251   : > { %5510 = vst.msk [vmem:[%s6882_s11 + $0xb0] sm:$0xf] %vm1765_vm10, %v2835_v61  ;;  %v3822_v15 = vsel %vm1570_vm8, %v3790_v33, %v7995_v47  ;;  %v4152_v23 = vadd.f32 %v4151_v3, %v4150_v28  ;;  %v4499_v11 = vunpack.c.l.b16 %v4403_v22  ;;  %v2836_v7 = vpack.c.bf16 %v2775_v52, %v2775_v52 }
 0x252   : > { %v4740_v26 = vpop.f32.mrf.mxu3  ;;  %v3013_v51 = vsel %vm1537_vm7, %v2970_v49, 0.0  ;;  %5660 = vmatmul.msk.bf16.gmra.mxu2 %vm1611_vm9, %v3822_v15  ;;  %v2913_v5 = vsel %vm1537_vm7, %v2775_v52, 0.0  ;;  %v2971_v34 = vmul.f32 %v2775_v52, %v2775_v52  ;;  %v2619_v32 = vsel %vm1488_vm6, %v8661_v36, %v8031_v20 }
 0x253   : > { %v4802_v37 = vpack.c.bf16 %v4740_v26, %v4740_v26  ;;  %v4878_v17 = vsel %vm1537_vm7, %v4740_v26, 0.0  ;;  %v3014_v13 = vadd.f32 %v3013_v51, %v8106_v24  ;;  %v4937_v53 = vmul.f32 %v4740_v26, %v4740_v26  ;;  %5511 = vst.msk [vmem:[%s6882_s11 + $0xb4] sm:$0xf] %vm1765_vm10, %v2836_v7 }
 0x254   : > { %4434 = vrot.lane.b32.xlu2 %v8160_v10, %s5937_s23  ;;  %v4879_v47 = vadd.f32 %v4878_v17, %v8100_v25  ;;  %v4429_v6 = vpop.permute.xlu0 %4428  ;;  %v2914_v54 = vadd.f32 %v2913_v5, %v2912_v63  ;;  %v1530_v46 = vsel %vm1488_vm6, %v5830_v60, %v8662_v55  ;;  %v4515_v42 = vpack.c.b16 %v4499_v11, %v4498_v27 }
 0x255   : > { %5794 = vst.msk [vmem:[%s6882_s11 + $0x1b0] sm:$0xf] %vm1765_vm10, %v4802_v37  ;;  %v4980_v38 = vsel %vm1537_vm7, %v4937_v53, 0.0  ;;  %v4586_v25 = vsel %vm1488_vm6, %v8657_v12, %v4429_v6  ;;  %v3015_v43 = vsel %vm1537_vm7, %v2971_v34, 0.0  ;;  %v1565_v18 = vsel %vm1537_vm7, %v1530_v46, %v8663_v35  ;;  %v5910_v53 = vld [vmem:[%s5989_s22 + $0xa8] sm:$0xff] }
 0x256   : > { %v4981_v40 = vadd.f32 %v4980_v38, %v8113_v21  ;;  %v3016_v20 = vadd.f32 %v3015_v43, %v3014_v13  ;;  %v4621_v8 = vsel %vm1537_vm7, %v4586_v25, %v4461_v39 }
 0x257   : > { %v2494_v24 = vpop.permute.xlu1 %2493 }
 0x258   : > { %v2654_v2 = vsel %vm1537_vm7, %v2619_v32, %v2494_v24  ;;  %v1483_v50 = vpop.permute.xlu2 %1482 }
 0x259   : > { %v1598_v12 = vsel %vm1570_vm8, %v1565_v18, %v1483_v50  ;;  %v2686_v45 = vsel %vm1570_vm8, %v2654_v2, %v8073_v14 }
 0x25a   : > { %v4742_v21 = vpop.f32.mrf.mxu3  ;;  %5393 = vmatmul.msk.bf16.gmra.mxu0 %vm1611_vm9, %v1598_v12 }
 0x25b   : > { %v4803_v48 = vpack.c.bf16 %v4742_v21, %v4742_v21  ;;  %v4880_v1 = vsel %vm1537_vm7, %v4742_v21, 0.0  ;;  %v4938_v44 = vmul.f32 %v4742_v21, %v4742_v21  ;;  %v3914_v28 = vpop.f32.mrf.mxu2 }
 0x25c   : > { %4546 = vrot.lane.b32.xlu2 %v4515_v42, %s5939_s25  ;;  %v4881_v0 = vadd.f32 %v4880_v1, %v4879_v47  ;;  %v3973_v16 = vpack.c.bf16 %v3914_v28, %v3914_v28  ;;  %v4051_v4 = vsel %vm1537_vm7, %v3914_v28, 0.0  ;;  %v4108_v19 = vmul.f32 %v3914_v28, %v3914_v28  ;;  %v4541_v61 = vpop.permute.xlu0 %4540  ;;  %5494 = vmatmul.msk.bf16.gmra.mxu1 %vm1611_vm9, %v2686_v45 }
 0x25d   : > { %5795 = vst.msk [vmem:[%s6882_s11 + $0x1b4] sm:$0xf] %vm1765_vm10, %v4803_v48  ;;  %v4982_v39 = vsel %vm1537_vm7, %v4938_v44, 0.0  ;;  %v4052_v22 = vadd.f32 %v4051_v4, %v8158_v31  ;;  %v4653_v33 = vsel %vm1570_vm8, %v4621_v8, %v4541_v61 }
 0x25e   : > { %v4983_v58 = vadd.f32 %v4982_v39, %v4981_v40  ;;  %5678 = vst.msk [vmem:[%s6882_s11 + $0x138] sm:$0xf] %vm1765_vm10, %v3973_v16  ;;  %v4153_v14 = vsel %vm1537_vm7, %v4108_v19, 0.0  ;;  %5778 = vmatmul.msk.bf16.gmra.mxu3 %vm1611_vm9, %v4653_v33 }
 0x25f   : > { %v4154_v49 = vadd.f32 %v4153_v14, %v4152_v23  ;;  %v2778_v27 = vpop.f32.mrf.mxu1  ;;  %v3632_v60 = vpop.permute.xlu1 %3631 }
 0x260   : > { %v2837_v3 = vpack.c.bf16 %v2778_v27, %v2778_v27  ;;  %v2915_v63 = vsel %vm1537_vm7, %v2778_v27, 0.0  ;;  %v2972_v15 = vmul.f32 %v2778_v27, %v2778_v27 }
 0x261   : > { %v2916_v31 = vadd.f32 %v2915_v63, %v2914_v54 }
 0x262   : > { %5512 = vst.msk [vmem:[%s6882_s11 + $0xb8] sm:$0xf] %vm1765_vm10, %v2837_v3  ;;  %v3017_v26 = vsel %vm1537_vm7, %v2972_v15, 0.0 }
 0x263   : > { %v3916_v52 = vpop.f32.mrf.mxu2  ;;  %v3018_v51 = vadd.f32 %v3017_v26, %v3016_v20 }
 0x264   : > { %2579 = vrot.lane.b32.xlu2 %v8160_v10, %s5939_s25  ;;  %v3974_v37 = vpack.c.bf16 %v3916_v52, %v3916_v52  ;;  %v4053_v23 = vsel %vm1537_vm7, %v3916_v52, 0.0  ;;  %v4109_v17 = vmul.f32 %v3916_v52, %v3916_v52 }
 0x265   : > { %v4054_v11 = vadd.f32 %v4053_v23, %v4052_v22  ;;  %v3520_v13 = vpop.permute.xlu0 %3519  ;;  %v8664_v23 = vld [vmem:[#allocation11_spill] sm:$0xff] }
 0x266   : > { %5679 = vst.msk [vmem:[%s6882_s11 + $0x13c] sm:$0xf] %vm1765_vm10, %v3974_v37  ;;  %v4155_v47 = vsel %vm1537_vm7, %v4109_v17, 0.0  ;;  %v3758_v6 = vsel %vm1488_vm6, %v5910_v53, %v3520_v13  ;;  %v2622_v17 = vsel %vm1488_vm6, %v8664_v23, %v8170_v59 }
 0x267   : > { %v4156_v7 = vadd.f32 %v4155_v47, %v4154_v49  ;;  %v3792_v5 = vsel %vm1537_vm7, %v3758_v6, %v3632_v60  ;;  %v2780_v10 = vpop.f32.mrf.mxu1  ;;  %v4463_v18 = vpop.permute.xlu1 %4462 }
 0x268   : > { %v3824_v38 = vsel %vm1570_vm8, %v3792_v5, %v8111_v41  ;;  %v2838_v54 = vpack.c.bf16 %v2780_v10, %v2780_v10  ;;  %v2917_v34 = vsel %vm1537_vm7, %v2780_v10, 0.0  ;;  %v2973_v36 = vmul.f32 %v2780_v10, %v2780_v10 }
 0x269   : > { %5661 = vmatmul.msk.bf16.gmra.mxu2 %vm1611_vm9, %v3824_v38  ;;  %v2918_v32 = vadd.f32 %v2917_v34, %v2916_v31 }
 0x26a   : > { %v4745_v40 = vpop.f32.mrf.mxu3  ;;  %5513 = vst.msk [vmem:[%s6882_s11 + $0xbc] sm:$0xf] %vm1765_vm10, %v2838_v54  ;;  %v3019_v25 = vsel %vm1537_vm7, %v2973_v36, 0.0 }
 0x26b   : > { %v4804_v24 = vpack.c.bf16 %v4745_v40, %v4745_v40  ;;  %v4882_v55 = vsel %vm1537_vm7, %v4745_v40, 0.0  ;;  %v4939_v46 = vmul.f32 %v4745_v40, %v4745_v40  ;;  %v3020_v42 = vadd.f32 %v3019_v25, %v3018_v51 }
 0x26c   : > { %v4883_v43 = vadd.f32 %v4882_v55, %v4881_v0 }
 0x26d   : > { %5796 = vst.msk [vmem:[%s6882_s11 + $0x1b8] sm:$0xf] %vm1765_vm10, %v4804_v24  ;;  %v4984_v41 = vsel %vm1537_vm7, %v4939_v46, 0.0 }
 0x26e   : > { %v4985_v2 = vadd.f32 %v4984_v41, %v4983_v58 }
 0x26f   : > { %v4431_v35 = vpop.permute.xlu0 %4430  ;;  %v2496_v3 = vpop.permute.xlu1 %2495 }
 0x270   : > { %v4589_v50 = vsel %vm1488_vm6, %v7684_v9, %v4431_v35 }
 0x271   : > { %v4623_v61 = vsel %vm1537_vm7, %v4589_v50, %v4463_v18 }
 0x272   : > { %v4747_v20 = vpop.f32.mrf.mxu3 }
 0x273   : > { %v4805_v21 = vpack.c.bf16 %v4747_v20, %v4747_v20  ;;  %v4884_v12 = vsel %vm1537_vm7, %v4747_v20, 0.0  ;;  %v4940_v8 = vmul.f32 %v4747_v20, %v4747_v20  ;;  %v3919_v48 = vpop.f32.mrf.mxu2 }
 0x274   : > { %v4885_v1 = vadd.f32 %v4884_v12, %v4883_v43  ;;  %v3975_v44 = vpack.c.bf16 %v3919_v48, %v3919_v48  ;;  %v4055_v28 = vsel %vm1537_vm7, %v3919_v48, 0.0  ;;  %v4110_v45 = vmul.f32 %v3919_v48, %v3919_v48  ;;  %v5911_v48 = vld [vmem:[%s5989_s22 + $0xb4] sm:$0xff] }
 0x275   : > { %5797 = vst.msk [vmem:[%s6882_s11 + $0x1bc] sm:$0xf] %vm1765_vm10, %v4805_v21  ;;  %v4986_v0 = vsel %vm1537_vm7, %v4940_v8, 0.0  ;;  %v4056_v16 = vadd.f32 %v4055_v28, %v4054_v11  ;;  %v2656_v11 = vsel %vm1537_vm7, %v2622_v17, %v2496_v3  ;;  %v5831_v17 = vld [vmem:[%s5989_s22 + $0xa8] sm:$0xff] }
 0x276   : > { %v4987_v4 = vadd.f32 %v4986_v0, %v4985_v2  ;;  %5680 = vst.msk [vmem:[%s6882_s11 + $0x140] sm:$0xf] %vm1765_vm10, %v3975_v44  ;;  %v4157_v9 = vsel %vm1537_vm7, %v4110_v45, 0.0 }
 0x277   : > { %v4158_v19 = vadd.f32 %v4157_v9, %v4156_v7  ;;  %v4543_v39 = vpop.permute.xlu0 %4542  ;;  %v2783_v22 = vpop.f32.mrf.mxu1 }
 0x278   : > { %v4655_v33 = vsel %vm1570_vm8, %v4623_v61, %v4543_v39  ;;  %v2839_v58 = vpack.c.bf16 %v2783_v22, %v2783_v22  ;;  %v2919_v14 = vsel %vm1537_vm7, %v2783_v22, 0.0  ;;  %v2974_v49 = vmul.f32 %v2783_v22, %v2783_v22 }
 0x279   : > { %5779 = vmatmul.msk.bf16.gmra.mxu3 %vm1611_vm9, %v4655_v33  ;;  %v2920_v27 = vadd.f32 %v2919_v14, %v2918_v32 }
 0x27a   : > { %5514 = vst.msk [vmem:[%s6882_s11 + $0xc0] sm:$0xf] %vm1765_vm10, %v2839_v58  ;;  %v3021_v63 = vsel %vm1537_vm7, %v2974_v49, 0.0 }
 0x27b   : > { %v3921_v15 = vpop.f32.mrf.mxu2  ;;  %v3022_v31 = vadd.f32 %v3021_v63, %v3020_v42  ;;  %v3634_v42 = vpop.permute.xlu2 %3633 }
 0x27c   : > { %v3976_v26 = vpack.c.bf16 %v3921_v15, %v3921_v15  ;;  %v4057_v52 = vsel %vm1537_vm7, %v3921_v15, 0.0  ;;  %v4111_v51 = vmul.f32 %v3921_v15, %v3921_v15 }
 0x27d   : > { %v4058_v37 = vadd.f32 %v4057_v52, %v4056_v16 }
 0x27e   : > { %5681 = vst.msk [vmem:[%s6882_s11 + $0x144] sm:$0xf] %vm1765_vm10, %v3976_v26  ;;  %v4159_v60 = vsel %vm1537_vm7, %v4111_v51, 0.0 }
 0x27f   : > { %v4160_v13 = vadd.f32 %v4159_v60, %v4158_v19  ;;  %v2576_v47 = vpop.permute.xlu0 %2575  ;;  %v2785_v53 = vpop.f32.mrf.mxu1  ;;  %v8665_v60 = vld [vmem:[#allocation10_spill] sm:$0xff] }
 0x280   : > { %v2688_v6 = vsel %vm1570_vm8, %v2656_v11, %v2576_v47  ;;  %v2840_v7 = vpack.c.bf16 %v2785_v53, %v2785_v53  ;;  %v2921_v5 = vsel %vm1537_vm7, %v2785_v53, 0.0  ;;  %v2975_v10 = vmul.f32 %v2785_v53, %v2785_v53 }
 0x281   : > { %5495 = vmatmul.msk.bf16.gmra.mxu1 %vm1611_vm9, %v2688_v6  ;;  %v2922_v38 = vadd.f32 %v2921_v5, %v2920_v27  ;;  %v4750_v59 = vpop.f32.mrf.mxu3 }
 0x282   : > { %5515 = vst.msk [vmem:[%s6882_s11 + $0xc4] sm:$0xf] %vm1765_vm10, %v2840_v7  ;;  %v3023_v54 = vsel %vm1537_vm7, %v2975_v10, 0.0  ;;  %v4806_v34 = vpack.c.bf16 %v4750_v59, %v4750_v59  ;;  %v4886_v36 = vsel %vm1537_vm7, %v4750_v59, 0.0  ;;  %v4941_v32 = vmul.f32 %v4750_v59, %v4750_v59 }
 0x283   : > { %v3024_v40 = vadd.f32 %v3023_v54, %v3022_v31  ;;  %v4887_v24 = vadd.f32 %v4886_v36, %v4885_v1  ;;  %v4465_v61 = vpop.permute.xlu2 %4464 }
 0x284   : > { %v3522_v25 = vpop.permute.xlu1 %3521  ;;  %5798 = vst.msk [vmem:[%s6882_s11 + $0x1c0] sm:$0xf] %vm1765_vm10, %v4806_v34  ;;  %v4988_v55 = vsel %vm1537_vm7, %v4941_v32, 0.0 }
 0x285   : > { %v4989_v46 = vadd.f32 %v4988_v55, %v4987_v4  ;;  %v3761_v1 = vsel %vm1488_vm6, %v5911_v48, %v3522_v25  ;;  %v8667_v25 = vld [vmem:[#allocation32_spill] sm:$0xff] }
 0x286   : > { %v3794_v4 = vsel %vm1537_vm7, %v3761_v1, %v3634_v42 }
 0x289   : > { %v4752_v43 = vpop.f32.mrf.mxu3 }
 0x28a   : > { %v4807_v41 = vpack.c.bf16 %v4752_v43, %v4752_v43  ;;  %v4888_v2 = vsel %vm1537_vm7, %v4752_v43, 0.0  ;;  %v4942_v35 = vmul.f32 %v4752_v43, %v4752_v43 }
 0x28b   : > { %v3924_v18 = vpop.f32.mrf.mxu2  ;;  %v4889_v50 = vadd.f32 %v4888_v2, %v4887_v24 }
 0x28c   : > { %v4433_v20 = vpop.permute.xlu1 %4432  ;;  %v3977_v21 = vpack.c.bf16 %v3924_v18, %v3924_v18  ;;  %v4059_v12 = vsel %vm1537_vm7, %v3924_v18, 0.0  ;;  %v4112_v8 = vmul.f32 %v3924_v18, %v3924_v18  ;;  %5799 = vst.msk [vmem:[%s6882_s11 + $0x1c4] sm:$0xf] %vm1765_vm10, %v4807_v41  ;;  %v4990_v44 = vsel %vm1537_vm7, %v4942_v35, 0.0 }
 0x28d   : > { %v4060_v28 = vadd.f32 %v4059_v12, %v4058_v37  ;;  %v4991_v45 = vadd.f32 %v4990_v44, %v4989_v46  ;;  %v4592_v39 = vsel %vm1488_vm6, %v7851_v62, %v4433_v20 }
 0x28e   : > { %5682 = vst.msk [vmem:[%s6882_s11 + $0x148] sm:$0xf] %vm1765_vm10, %v3977_v21  ;;  %v4161_v0 = vsel %vm1537_vm7, %v4112_v8, 0.0  ;;  %v4625_v27 = vsel %vm1537_vm7, %v4592_v39, %v4465_v61 }
 0x28f   : > { %v4162_v16 = vadd.f32 %v4161_v0, %v4160_v13  ;;  %v2498_v13 = vpop.permute.xlu2 %2497 }
 0x290   : > { %v3714_v9 = vpop.permute.xlu0 %3713 }
 0x291   : > { %v3826_v19 = vsel %vm1570_vm8, %v3794_v4, %v3714_v9 }
 0x292   : > { %5662 = vmatmul.msk.bf16.gmra.mxu2 %vm1611_vm9, %v3826_v19 }
 0x293   : > { %v3926_v22 = vpop.f32.mrf.mxu2 }
 0x294   : > { %v3978_v33 = vpack.c.bf16 %v3926_v22, %v3926_v22  ;;  %v4061_v58 = vsel %vm1537_vm7, %v3926_v22, 0.0  ;;  %v4113_v14 = vmul.f32 %v3926_v22, %v3926_v22 }
 0x295   : > { %v4062_v49 = vadd.f32 %v4061_v58, %v4060_v28  ;;  %v5912_v28 = vld [vmem:[%s5989_s22 + $0xc0] sm:$0xff] }
 0x296   : > { %v4545_v3 = vpop.permute.xlu1 %4544  ;;  %5683 = vst.msk [vmem:[%s6882_s11 + $0x14c] sm:$0xf] %vm1765_vm10, %v3978_v33  ;;  %v4163_v63 = vsel %vm1537_vm7, %v4113_v14, 0.0 }
 0x297   : > { %v4657_v15 = vsel %vm1570_vm8, %v4625_v27, %v4545_v3  ;;  %v4164_v31 = vadd.f32 %v4163_v63, %v4162_v16 }
 0x298   : > { %v2466_v26 = vpop.permute.xlu0 %2465  ;;  %5780 = vmatmul.msk.bf16.gmra.mxu3 %vm1611_vm9, %v4657_v15  ;;  %v2788_v62 = vpop.f32.mrf.mxu1 }
 0x299   : > { %v2841_v52 = vpack.c.bf16 %v2788_v62, %v2788_v62  ;;  %v2923_v51 = vsel %vm1537_vm7, %v2788_v62, 0.0  ;;  %v2976_v37 = vmul.f32 %v2788_v62, %v2788_v62  ;;  %v2625_v11 = vsel %vm1488_vm6, %v8665_v60, %v2466_v26 }
 0x29a   : > { %v2924_v23 = vadd.f32 %v2923_v51, %v2922_v38  ;;  %v2658_v7 = vsel %vm1537_vm7, %v2625_v11, %v2498_v13  ;;  %v8666_v38 = vld [vmem:[#allocation21_spill] sm:$0xff] }
 0x29b   : > { %5516 = vst.msk [vmem:[%s6882_s11 + $0xc8] sm:$0xf] %vm1765_vm10, %v2841_v52  ;;  %v3025_v47 = vsel %vm1537_vm7, %v2976_v37, 0.0  ;;  %v1533_v34 = vsel %vm1488_vm6, %v5831_v17, %v8666_v38 }
 0x29c   : > { %v3026_v53 = vadd.f32 %v3025_v47, %v3024_v40  ;;  %v1567_v24 = vsel %vm1537_vm7, %v1533_v34, %v8667_v25 }
 0x29d   : > { %v4755_v6 = vpop.f32.mrf.mxu3 }
 0x29e   : > { %v2578_v5 = vpop.permute.xlu1 %2577  ;;  %v4808_v10 = vpack.c.bf16 %v4755_v6, %v4755_v6  ;;  %v4890_v59 = vsel %vm1537_vm7, %v4755_v6, 0.0  ;;  %v4943_v54 = vmul.f32 %v4755_v6, %v4755_v6 }
 0x29f   : > { %v2690_v36 = vsel %vm1570_vm8, %v2658_v7, %v2578_v5  ;;  %v4891_v32 = vadd.f32 %v4890_v59, %v4889_v50 }
 0x2a0   : > { %v1485_v55 = vpop.permute.xlu0 %1484  ;;  %5496 = vmatmul.msk.bf16.gmra.mxu1 %vm1611_vm9, %v2690_v36  ;;  %5800 = vst.msk [vmem:[%s6882_s11 + $0x1c8] sm:$0xf] %vm1765_vm10, %v4808_v10  ;;  %v4992_v40 = vsel %vm1537_vm7, %v4943_v54, 0.0  ;;  %v2790_v46 = vpop.f32.mrf.mxu1 }
 0x2a1   : > { %v1600_v42 = vsel %vm1570_vm8, %v1567_v24, %v1485_v55  ;;  %v4993_v43 = vadd.f32 %v4992_v40, %v4991_v45  ;;  %v2842_v41 = vpack.c.bf16 %v2790_v46, %v2790_v46  ;;  %v2925_v2 = vsel %vm1537_vm7, %v2790_v46, 0.0 }
 0x2a2   : > { %5394 = vmatmul.msk.bf16.gmra.mxu0 %vm1611_vm9, %v1600_v42  ;;  %v2926_v35 = vadd.f32 %v2925_v2, %v2924_v23  ;;  %v2977_v18 = vmul.f32 %v2790_v46, %v2790_v46 }
 0x2a3   : > { %5517 = vst.msk [vmem:[%s6882_s11 + $0xcc] sm:$0xf] %vm1765_vm10, %v2842_v41  ;;  %v8668_v41 = vld [vmem:[#allocation27_spill] sm:$0xff] }
 0x2a4   : > { %v3027_v20 = vsel %vm1537_vm7, %v2977_v18, 0.0  ;;  %v8669_v18 = vld [vmem:[#allocation31_spill] sm:$0xff] }
 0x2a5   : > { %v3028_v50 = vadd.f32 %v3027_v20, %v3026_v53  ;;  %v4757_v21 = vpop.f32.mrf.mxu3 }
 0x2a6   : > { %v3524_v12 = vpop.permute.xlu2 %3523  ;;  %v4809_v8 = vpack.c.bf16 %v4757_v21, %v4757_v21  ;;  %v4892_v48 = vsel %vm1537_vm7, %v4757_v21, 0.0  ;;  %v4944_v1 = vmul.f32 %v4757_v21, %v4757_v21 }
 0x2a7   : > { %v4893_v44 = vadd.f32 %v4892_v48, %v4891_v32  ;;  %v3764_v45 = vsel %vm1488_vm6, %v5912_v28, %v3524_v12 }
 0x2a8   : > { %v3636_v0 = vpop.permute.xlu0 %3635  ;;  %5801 = vst.msk [vmem:[%s6882_s11 + $0x1cc] sm:$0xf] %vm1765_vm10, %v4809_v8  ;;  %v4994_v16 = vsel %vm1537_vm7, %v4944_v1, 0.0  ;;  %v3929_v4 = vpop.f32.mrf.mxu2 }
 0x2a9   : > { %v3796_v9 = vsel %vm1537_vm7, %v3764_v45, %v3636_v0  ;;  %v4995_v19 = vadd.f32 %v4994_v16, %v4993_v43  ;;  %v3979_v61 = vpack.c.bf16 %v3929_v4, %v3929_v4  ;;  %v4063_v39 = vsel %vm1537_vm7, %v3929_v4, 0.0 }
 0x2aa   : > { %v4064_v22 = vadd.f32 %v4063_v39, %v4062_v49  ;;  %v4114_v33 = vmul.f32 %v3929_v4, %v3929_v4 }
 0x2ab   : > { %v3716_v58 = vpop.permute.xlu1 %3715  ;;  %5684 = vst.msk [vmem:[%s6882_s11 + $0x150] sm:$0xf] %vm1765_vm10, %v3979_v61 }
 0x2ac   : > { %v3828_v14 = vsel %vm1570_vm8, %v3796_v9, %v3716_v58  ;;  %v4165_v27 = vsel %vm1537_vm7, %v4114_v33, 0.0 }
 0x2ad   : > { %5663 = vmatmul.msk.bf16.gmra.mxu2 %vm1611_vm9, %v3828_v14  ;;  %v4166_v3 = vadd.f32 %v4165_v27, %v4164_v31 }
 0x2ae   : > { %v4435_v63 = vpop.permute.xlu2 %4434 }
 0x2af   : > { %v4595_v11 = vsel %vm1488_vm6, %v8118_v56, %v4435_v63  ;;  %v5832_v56 = vld [vmem:[%s5989_s22 + $0xb4] sm:$0xff] }
 0x2b0   : > { %v3931_v15 = vpop.f32.mrf.mxu2  ;;  %v4467_v26 = vpop.permute.xlu0 %4466  ;;  %v1536_v2 = vsel %vm1488_vm6, %v5832_v56, %v8668_v41 }
 0x2b1   : > { %v3980_v62 = vpack.c.bf16 %v3931_v15, %v3931_v15  ;;  %v4065_v52 = vsel %vm1537_vm7, %v3931_v15, 0.0  ;;  %v4115_v49 = vmul.f32 %v3931_v15, %v3931_v15  ;;  %v2793_v51 = vpop.f32.mrf.mxu1  ;;  %v4627_v53 = vsel %vm1537_vm7, %v4595_v11, %v4467_v26 }
 0x2b2   : > { %v4066_v37 = vadd.f32 %v4065_v52, %v4064_v22  ;;  %v2843_v23 = vpack.c.bf16 %v2793_v51, %v2793_v51  ;;  %v2927_v17 = vsel %vm1537_vm7, %v2793_v51, 0.0  ;;  %v2978_v60 = vmul.f32 %v2793_v51, %v2793_v51 }
 0x2b3   : > { %v2468_v13 = vpop.permute.xlu1 %2467  ;;  %5685 = vst.msk [vmem:[%s6882_s11 + $0x154] sm:$0xf] %vm1765_vm10, %v3980_v62  ;;  %v4167_v31 = vsel %vm1537_vm7, %v4115_v49, 0.0  ;;  %v2928_v47 = vadd.f32 %v2927_v17, %v2926_v35  ;;  %v1569_v20 = vsel %vm1537_vm7, %v1536_v2, %v8669_v18 }
 0x2b4   : > { %v4168_v6 = vadd.f32 %v4167_v31, %v4166_v3  ;;  %5518 = vst.msk [vmem:[%s6882_s11 + $0xd0] sm:$0xf] %vm1765_vm10, %v2843_v23  ;;  %v3029_v7 = vsel %vm1537_vm7, %v2978_v60, 0.0 }
 0x2b5   : > { %v3030_v5 = vadd.f32 %v3029_v7, %v3028_v50  ;;  %v8670_v50 = vld [vmem:[#allocation13_spill] sm:$0xff] }
 0x2b6   : > { %v4547_v10 = vpop.permute.xlu2 %4546  ;;  %v2628_v21 = vsel %vm1488_vm6, %v8670_v50, %v2468_v13 }
 0x2b7   : > { %v4659_v59 = vsel %vm1570_vm8, %v4627_v53, %v4547_v10  ;;  %v4760_v54 = vpop.f32.mrf.mxu3  ;;  %v1893_v53 = vmul.f32 %v8102_v57, %v8102_v57 }
 0x2b8   : > { %5781 = vmatmul.msk.bf16.gmra.mxu3 %vm1611_vm9, %v4659_v59  ;;  %v4810_v38 = vpack.c.bf16 %v4760_v54, %v4760_v54  ;;  %v4894_v34 = vsel %vm1537_vm7, %v4760_v54, 0.0  ;;  %v4945_v36 = vmul.f32 %v4760_v54, %v4760_v54 }
 0x2b9   : > { %v4895_v32 = vadd.f32 %v4894_v34, %v4893_v44  ;;  %v2795_v25 = vpop.f32.mrf.mxu1 }
 0x2ba   : > { %5802 = vst.msk [vmem:[%s6882_s11 + $0x1d0] sm:$0xf] %vm1765_vm10, %v4810_v38  ;;  %v4996_v24 = vsel %vm1537_vm7, %v4945_v36, 0.0  ;;  %v2844_v55 = vpack.c.bf16 %v2795_v25, %v2795_v25  ;;  %v2929_v40 = vsel %vm1537_vm7, %v2795_v25, 0.0  ;;  %v2979_v46 = vmul.f32 %v2795_v25, %v2795_v25 }
 0x2bb   : > { %v4997_v42 = vadd.f32 %v4996_v24, %v4995_v19  ;;  %v2930_v43 = vadd.f32 %v2929_v40, %v2928_v47  ;;  %v1949_v25 = vsel %vm1537_vm7, %v1893_v53, 0.0 }
 0x2bc   : > { %5519 = vst.msk [vmem:[%s6882_s11 + $0xd4] sm:$0xf] %vm1765_vm10, %v2844_v55  ;;  %v3031_v35 = vsel %vm1537_vm7, %v2979_v46, 0.0 }
 0x2bd   : > { %v1487_v12 = vpop.permute.xlu1 %1486  ;;  %v2500_v8 = vpop.permute.xlu0 %2499  ;;  %v3032_v48 = vadd.f32 %v3031_v35, %v3030_v5 }
 0x2be   : > { %v1602_v1 = vsel %vm1570_vm8, %v1569_v20, %v1487_v12  ;;  %v2660_v44 = vsel %vm1537_vm7, %v2628_v21, %v2500_v8  ;;  %v2580_v28 = vpop.permute.xlu2 %2579 }
 0x2bf   : > { %v2692_v45 = vsel %vm1570_vm8, %v2660_v44, %v2580_v28  ;;  %5395 = vmatmul.msk.bf16.gmra.mxu0 %vm1611_vm9, %v1602_v1  ;;  %v4762_v0 = vpop.f32.mrf.mxu3  ;;  %v3934_v16 = vpop.f32.mrf.mxu2 }
 0x2c0   : > { %5497 = vmatmul.msk.bf16.gmra.mxu1 %vm1611_vm9, %v2692_v45  ;;  %v4811_v4 = vpack.c.bf16 %v4762_v0, %v4762_v0  ;;  %v4896_v9 = vsel %vm1537_vm7, %v4762_v0, 0.0  ;;  %v4946_v19 = vmul.f32 %v4762_v0, %v4762_v0  ;;  %v3981_v61 = vpack.c.bf16 %v3934_v16, %v3934_v16 }
 0x2c1   : > { %v4897_v39 = vadd.f32 %v4896_v9, %v4895_v32  ;;  %v4067_v22 = vsel %vm1537_vm7, %v3934_v16, 0.0  ;;  %v4116_v33 = vmul.f32 %v3934_v16, %v3934_v16  ;;  %v1847_v32 = vsel %vm1537_vm7, %v8102_v57, 0.0 }
 0x2c2   : > { %5803 = vst.msk [vmem:[%s6882_s11 + $0x1d4] sm:$0xf] %vm1765_vm10, %v4811_v4  ;;  %v4998_v58 = vsel %vm1537_vm7, %v4946_v19, 0.0  ;;  %v4068_v14 = vadd.f32 %v4067_v22, %v4066_v37  ;;  %v1848_v35 = vadd.f32 %v1847_v32, %v8082_v30  ;;  %v1950_v57 = vadd.f32 %v1949_v25, %v8091_v29 }
 0x2c3   : > { %v4999_v27 = vadd.f32 %v4998_v58, %v4997_v42  ;;  %5686 = vst.msk [vmem:[%s6882_s11 + $0x158] sm:$0xf] %vm1765_vm10, %v3981_v61  ;;  %v4169_v3 = vsel %vm1537_vm7, %v4116_v33, 0.0 }
 0x2c4   : > { %v4170_v63 = vadd.f32 %v4169_v3, %v4168_v6 }
 0x2c7   : > { %v3936_v15 = vpop.f32.mrf.mxu2 }
 0x2c8   : > { %v3982_v26 = vpack.c.bf16 %v3936_v15, %v3936_v15  ;;  %v4069_v62 = vsel %vm1537_vm7, %v3936_v15, 0.0  ;;  %v4117_v52 = vmul.f32 %v3936_v15, %v3936_v15 }
 0x2c9   : > { %v4070_v49 = vadd.f32 %v4069_v62, %v4068_v14  ;;  %v2798_v37 = vpop.f32.mrf.mxu1 }
 0x2ca   : > { %5687 = vst.msk [vmem:[%s6882_s11 + $0x15c] sm:$0xf] %vm1765_vm10, %v3982_v26  ;;  %v4171_v51 = vsel %vm1537_vm7, %v4117_v52, 0.0  ;;  %v2845_v17 = vpack.c.bf16 %v2798_v37, %v2798_v37  ;;  %v2931_v60 = vsel %vm1537_vm7, %v2798_v37, 0.0  ;;  %v2980_v11 = vmul.f32 %v2798_v37, %v2798_v37 }
 0x2cb   : > { %v4172_v23 = vadd.f32 %v4171_v51, %v4170_v63  ;;  %v2932_v13 = vadd.f32 %v2931_v60, %v2930_v43 }
 0x2cc   : > { %5520 = vst.msk [vmem:[%s6882_s11 + $0xd8] sm:$0xf] %vm1765_vm10, %v2845_v17  ;;  %v3033_v31 = vsel %vm1537_vm7, %v2980_v11, 0.0 }
 0x2cd   : > { %v3034_v47 = vadd.f32 %v3033_v31, %v3032_v48 }
 0x2d0   : > { %v4765_v6 = vpop.f32.mrf.mxu3 }
 0x2d1   : > { %v4812_v7 = vpack.c.bf16 %v4765_v6, %v4765_v6  ;;  %v4898_v5 = vsel %vm1537_vm7, %v4765_v6, 0.0  ;;  %v4947_v10 = vmul.f32 %v4765_v6, %v4765_v6  ;;  %v2800_v54 = vpop.f32.mrf.mxu1 }
 0x2d2   : > { %v4899_v59 = vadd.f32 %v4898_v5, %v4897_v39  ;;  %v2846_v38 = vpack.c.bf16 %v2800_v54, %v2800_v54  ;;  %v2933_v34 = vsel %vm1537_vm7, %v2800_v54, 0.0  ;;  %v2981_v36 = vmul.f32 %v2800_v54, %v2800_v54 }
 0x2d3   : > { %5804 = vst.msk [vmem:[%s6882_s11 + $0x1d8] sm:$0xf] %vm1765_vm10, %v4812_v7  ;;  %v5000_v56 = vsel %vm1537_vm7, %v4947_v10, 0.0  ;;  %v2934_v55 = vadd.f32 %v2933_v34, %v2932_v13 }
 0x2d4   : > { %v5001_v24 = vadd.f32 %v5000_v56, %v4999_v27  ;;  %5521 = vst.msk [vmem:[%s6882_s11 + $0xdc] sm:$0xf] %vm1765_vm10, %v2846_v38  ;;  %v3035_v40 = vsel %vm1537_vm7, %v2981_v36, 0.0 }
 0x2d5   : > { %v3939_v46 = vpop.f32.mrf.mxu2  ;;  %v3036_v42 = vadd.f32 %v3035_v40, %v3034_v47 }
 0x2d6   : > { %v3983_v43 = vpack.c.bf16 %v3939_v46, %v3939_v46  ;;  %v4071_v41 = vsel %vm1537_vm7, %v3939_v46, 0.0  ;;  %v4118_v2 = vmul.f32 %v3939_v46, %v3939_v46 }
 0x2d7   : > { %v4072_v18 = vadd.f32 %v4071_v41, %v4070_v49  ;;  %v1718_v20 = vpop.f32.mrf.mxu0 }
 0x2d8   : > { %v4767_v50 = vpop.f32.mrf.mxu3  ;;  %5688 = vst.msk [vmem:[%s6882_s11 + $0x160] sm:$0xf] %vm1765_vm10, %v3983_v43  ;;  %v4173_v21 = vsel %vm1537_vm7, %v4118_v2, 0.0  ;;  %v1759_v12 = vpack.c.bf16 %v1718_v20, %v1718_v20  ;;  %v1849_v8 = vsel %vm1537_vm7, %v1718_v20, 0.0  ;;  %v1894_v48 = vmul.f32 %v1718_v20, %v1718_v20 }
 0x2d9   : > { %v4813_v1 = vpack.c.bf16 %v4767_v50, %v4767_v50  ;;  %v4900_v44 = vsel %vm1537_vm7, %v4767_v50, 0.0  ;;  %v4948_v28 = vmul.f32 %v4767_v50, %v4767_v50  ;;  %v4174_v30 = vadd.f32 %v4173_v21, %v4172_v23  ;;  %v2803_v16 = vpop.f32.mrf.mxu1 }
 0x2da   : > { %v4901_v45 = vadd.f32 %v4900_v44, %v4899_v59  ;;  %1792 = vst.msk [vmem:[%s6882_s11 + $0x68] sm:$0xf] %vm1765_vm10, %v1759_v12  ;;  %v1850_v29 = vadd.f32 %v1849_v8, %v1848_v35  ;;  %v1951_v0 = vsel %vm1537_vm7, %v1894_v48, 0.0  ;;  %v2847_v19 = vpack.c.bf16 %v2803_v16, %v2803_v16 }
 0x2db   : > { %5805 = vst.msk [vmem:[%s6882_s11 + $0x1dc] sm:$0xf] %vm1765_vm10, %v4813_v1  ;;  %v5002_v4 = vsel %vm1537_vm7, %v4948_v28, 0.0  ;;  %v1952_v9 = vadd.f32 %v1951_v0, %v1950_v57  ;;  %v2935_v61 = vsel %vm1537_vm7, %v2803_v16, 0.0  ;;  %v2982_v33 = vmul.f32 %v2803_v16, %v2803_v16 }
 0x2dc   : > { %v5003_v39 = vadd.f32 %v5002_v4, %v5001_v24  ;;  %v2936_v22 = vadd.f32 %v2935_v61, %v2934_v55  ;;  %5522 = vst.msk [vmem:[%s6882_s11 + $0xe0] sm:$0xf] %vm1765_vm10, %v2847_v19 }
 0x2dd   : > { %v3941_v58 = vpop.f32.mrf.mxu2  ;;  %v3037_v63 = vsel %vm1537_vm7, %v2982_v33, 0.0 }
 0x2de   : > { %v3984_v14 = vpack.c.bf16 %v3941_v58, %v3941_v58  ;;  %v4073_v27 = vsel %vm1537_vm7, %v3941_v58, 0.0  ;;  %v4119_v3 = vmul.f32 %v3941_v58, %v3941_v58  ;;  %v3038_v26 = vadd.f32 %v3037_v63, %v3036_v42 }
 0x2df   : > { %v4074_v15 = vadd.f32 %v4073_v27, %v4072_v18  ;;  %v1720_v62 = vpop.f32.mrf.mxu0 }
 0x2e0   : > { %5689 = vst.msk [vmem:[%s6882_s11 + $0x164] sm:$0xf] %vm1765_vm10, %v3984_v14  ;;  %v4175_v52 = vsel %vm1537_vm7, %v4119_v3, 0.0  ;;  %v1760_v51 = vpack.c.bf16 %v1720_v62, %v1720_v62  ;;  %v1851_v23 = vsel %vm1537_vm7, %v1720_v62, 0.0  ;;  %v1895_v37 = vmul.f32 %v1720_v62, %v1720_v62 }
 0x2e1   : > { %v4770_v49 = vpop.f32.mrf.mxu3  ;;  %v4176_v17 = vadd.f32 %v4175_v52, %v4174_v30  ;;  %v8428_v47 = vadd.f32 %v1851_v23, %v1850_v29  ;;  %v2805_v6 = vpop.f32.mrf.mxu1 }
 0x2e2   : > { %v4814_v60 = vpack.c.bf16 %v4770_v49, %v4770_v49  ;;  %v4902_v11 = vsel %vm1537_vm7, %v4770_v49, 0.0  ;;  %v4949_v13 = vmul.f32 %v4770_v49, %v4770_v49  ;;  %1793 = vst.msk [vmem:[%s6882_s11 + $0x6c] sm:$0xf] %vm1765_vm10, %v1760_v51  ;;  %v1953_v53 = vsel %vm1537_vm7, %v1895_v37, 0.0 }
 0x2e3   : > { %v4903_v31 = vadd.f32 %v4902_v11, %v4901_v45  ;;  %v8434_v5 = vadd.f32 %v1953_v53, %v1952_v9  ;;  %v2848_v10 = vpack.c.bf16 %v2805_v6, %v2805_v6  ;;  %v2937_v59 = vsel %vm1537_vm7, %v2805_v6, 0.0 }
 0x2e4   : > { %5806 = vst.msk [vmem:[%s6882_s11 + $0x1e0] sm:$0xf] %vm1765_vm10, %v4814_v60  ;;  %v5004_v7 = vsel %vm1537_vm7, %v4949_v13, 0.0  ;;  %v8437_v56 = vadd.f32 %v2937_v59, %v2936_v22  ;;  %v2983_v38 = vmul.f32 %v2805_v6, %v2805_v6 }
 0x2e5   : > { %v5005_v54 = vadd.f32 %v5004_v7, %v5003_v39  ;;  %5523 = vst.msk [vmem:[%s6882_s11 + $0xe4] sm:$0xf] %vm1765_vm10, %v2848_v10 }
 0x2e6   : > { %v3039_v34 = vsel %vm1537_vm7, %v2983_v38, 0.0 }
 0x2e7   : > { %v3040_v36 = vadd.f32 %v3039_v34, %v3038_v26 }
 0x2e9   : > { %v4772_v32 = vpop.f32.mrf.mxu3 }
 0x2ea   : > { %v4815_v25 = vpack.c.bf16 %v4772_v32, %v4772_v32  ;;  %v4904_v24 = vsel %vm1537_vm7, %v4772_v32, 0.0  ;;  %v4950_v55 = vmul.f32 %v4772_v32, %v4772_v32 }
 0x2eb   : > { %v4905_v40 = vadd.f32 %v4904_v24, %v4903_v31 }
 0x2ec   : > { %5807 = vst.msk [vmem:[%s6882_s11 + $0x1e4] sm:$0xf] %vm1765_vm10, %v4815_v25  ;;  %v5006_v46 = vsel %vm1537_vm7, %v4950_v55, 0.0  ;;  %v3944_v42 = vpop.f32.mrf.mxu2 }
 0x2ed   : > { %v5007_v43 = vadd.f32 %v5006_v46, %v5005_v54  ;;  %v3985_v41 = vpack.c.bf16 %v3944_v42, %v3944_v42  ;;  %v4075_v2 = vsel %vm1537_vm7, %v3944_v42, 0.0  ;;  %v4120_v35 = vmul.f32 %v3944_v42, %v3944_v42 }
 0x2ee   : > { %v4076_v57 = vadd.f32 %v4075_v2, %v4074_v15 }
 0x2ef   : > { %5690 = vst.msk [vmem:[%s6882_s11 + $0x168] sm:$0xf] %vm1765_vm10, %v3985_v41  ;;  %v4177_v18 = vsel %vm1537_vm7, %v4120_v35, 0.0 }
 0x2f0   : > { %v4178_v20 = vadd.f32 %v4177_v18, %v4176_v17 }
 0x2f4   : > { %v3946_v50 = vpop.f32.mrf.mxu2 }
 0x2f5   : > { %v3986_v21 = vpack.c.bf16 %v3946_v50, %v3946_v50  ;;  %v4077_v12 = vsel %vm1537_vm7, %v3946_v50, 0.0  ;;  %v4121_v8 = vmul.f32 %v3946_v50, %v3946_v50 }
 0x2f6   : > { %v8451_v48 = vadd.f32 %v4077_v12, %v4076_v57 }
 0x2f7   : > { %5691 = vst.msk [vmem:[%s6882_s11 + $0x16c] sm:$0xf] %vm1765_vm10, %v3986_v21  ;;  %v4179_v1 = vsel %vm1537_vm7, %v4121_v8, 0.0 }
 0x2f8   : > { %v8456_v44 = vadd.f32 %v4179_v1, %v4178_v20 }
 0x2fc   : > { %v4775_v28 = vpop.f32.mrf.mxu3 }
 0x2fd   : > { %v4816_v30 = vpack.c.bf16 %v4775_v28, %v4775_v28  ;;  %v4906_v45 = vsel %vm1537_vm7, %v4775_v28, 0.0  ;;  %v4951_v29 = vmul.f32 %v4775_v28, %v4775_v28 }
 0x2fe   : > { %v4907_v0 = vadd.f32 %v4906_v45, %v4905_v40  ;;  %v2808_v16 = vpop.f32.mrf.mxu1 }
 0x2ff   : > { %5808 = vst.msk [vmem:[%s6882_s11 + $0x1e8] sm:$0xf] %vm1765_vm10, %v4816_v30  ;;  %v5008_v4 = vsel %vm1537_vm7, %v4951_v29, 0.0  ;;  %v2849_v9 = vpack.c.bf16 %v2808_v16, %v2808_v16  ;;  %v2984_v19 = vmul.f32 %v2808_v16, %v2808_v16  ;;  %v2939_v38 = vsel %vm1537_vm7, %v2808_v16, 0.0 }
 0x300   : > { %v5009_v61 = vadd.f32 %v5008_v4, %v5007_v43  ;;  %v2940_v46 = vadd.f32 %v2939_v38, %v8437_v56 }
 0x301   : > { %5524 = vst.msk [vmem:[%s6882_s11 + $0xe8] sm:$0xf] %vm1765_vm10, %v2849_v9  ;;  %v3041_v39 = vsel %vm1537_vm7, %v2984_v19, 0.0 }
 0x302   : > { %v3042_v22 = vadd.f32 %v3041_v39, %v3040_v36 }
 0x304   : > { %v4777_v33 = vpop.f32.mrf.mxu3 }
 0x305   : > { %v4817_v58 = vpack.c.bf16 %v4777_v33, %v4777_v33  ;;  %v4952_v14 = vmul.f32 %v4777_v33, %v4777_v33  ;;  %v4908_v36 = vsel %vm1537_vm7, %v4777_v33, 0.0 }
 0x306   : > { %v2810_v27 = vpop.f32.mrf.mxu1  ;;  %v4909_v2 = vadd.f32 %v4908_v36, %v4907_v0 }
 0x307   : > { %5809 = vst.msk [vmem:[%s6882_s11 + $0x1ec] sm:$0xf] %vm1765_vm10, %v4817_v58  ;;  %v5010_v3 = vsel %vm1537_vm7, %v4952_v14, 0.0  ;;  %v2850_v63 = vpack.c.bf16 %v2810_v27, %v2810_v27  ;;  %v2985_v59 = vmul.f32 %v2810_v27, %v2810_v27  ;;  %v2941_v24 = vsel %vm1537_vm7, %v2810_v27, 0.0 }
 0x308   : > { %v5011_v15 = vadd.f32 %v5010_v3, %v5009_v61  ;;  %v2942_v18 = vadd.f32 %v2941_v24, %v2940_v46 }
 0x309   : > { %5525 = vst.msk [vmem:[%s6882_s11 + $0xec] sm:$0xf] %vm1765_vm10, %v2850_v63  ;;  %v3043_v55 = vsel %vm1537_vm7, %v2985_v59, 0.0 }
 0x30a   : > { %v3044_v20 = vadd.f32 %v3043_v55, %v3042_v22 }
 0x315   : > { %v3949_v26 = vpop.f32.mrf.mxu2 }
 0x316   : > { %v3987_v62 = vpack.c.bf16 %v3949_v26, %v3949_v26  ;;  %v4122_v54 = vmul.f32 %v3949_v26, %v3949_v26  ;;  %v4079_v40 = vsel %vm1537_vm7, %v3949_v26, 0.0 }
 0x317   : > { %v4080_v50 = vadd.f32 %v4079_v40, %v8451_v48 }
 0x318   : > { %5692 = vst.msk [vmem:[%s6882_s11 + $0x170] sm:$0xf] %vm1765_vm10, %v3987_v62  ;;  %v4181_v42 = vsel %vm1537_vm7, %v4122_v54, 0.0 }
 0x319   : > { %v4182_v12 = vadd.f32 %v4181_v42, %v8456_v44 }
 0x31b   : > { %v4780_v52 = vpop.f32.mrf.mxu3 }
 0x31c   : > { %v4818_v49 = vpack.c.bf16 %v4780_v52, %v4780_v52  ;;  %v4953_v32 = vmul.f32 %v4780_v52, %v4780_v52  ;;  %v4910_v41 = vsel %vm1537_vm7, %v4780_v52, 0.0 }
 0x31d   : > { %v3951_v51 = vpop.f32.mrf.mxu2  ;;  %v2813_v23 = vpop.f32.mrf.mxu1  ;;  %v4911_v56 = vadd.f32 %v4910_v41, %v4909_v2 }
 0x31e   : > { %v3988_v37 = vpack.c.bf16 %v3951_v51, %v3951_v51  ;;  %5810 = vst.msk [vmem:[%s6882_s11 + $0x1f0] sm:$0xf] %vm1765_vm10, %v4818_v49  ;;  %v2851_v60 = vpack.c.bf16 %v2813_v23, %v2813_v23  ;;  %v4123_v43 = vmul.f32 %v3951_v51, %v3951_v51  ;;  %v4081_v35 = vsel %vm1537_vm7, %v3951_v51, 0.0 }
 0x31f   : > { %v1723_v17 = vpop.f32.mrf.mxu0  ;;  %v5012_v21 = vsel %vm1537_vm7, %v4953_v32, 0.0  ;;  %v4082_v28 = vadd.f32 %v4081_v35, %v4080_v50  ;;  %v2986_v29 = vmul.f32 %v2813_v23, %v2813_v23  ;;  %v2943_v48 = vsel %vm1537_vm7, %v2813_v23, 0.0 }
 0x320   : > { %5693 = vst.msk [vmem:[%s6882_s11 + $0x174] sm:$0xf] %vm1765_vm10, %v3988_v37  ;;  %v1761_v11 = vpack.c.bf16 %v1723_v17, %v1723_v17  ;;  %v1896_v57 = vmul.f32 %v1723_v17, %v1723_v17  ;;  %v4183_v30 = vsel %vm1537_vm7, %v4123_v43, 0.0  ;;  %v1853_v45 = vsel %vm1537_vm7, %v1723_v17, 0.0 }
 0x321   : > { %5526 = vst.msk [vmem:[%s6882_s11 + $0xf0] sm:$0xf] %vm1765_vm10, %v2851_v60  ;;  %v5013_v0 = vadd.f32 %v5012_v21, %v5011_v15  ;;  %v4184_v22 = vadd.f32 %v4183_v30, %v4182_v12  ;;  %v1854_v33 = vadd.f32 %v1853_v45, %v8428_v47  ;;  %v2944_v3 = vadd.f32 %v2943_v48, %v2942_v18 }
 0x322   : > { %1794 = vst.msk [vmem:[%s6882_s11 + $0x70] sm:$0xf] %vm1765_vm10, %v1761_v11  ;;  %v1955_v16 = vsel %vm1537_vm7, %v1896_v57, 0.0  ;;  %v3045_v63 = vsel %vm1537_vm7, %v2986_v29, 0.0 }
 0x323   : > { %v4782_v13 = vpop.f32.mrf.mxu3  ;;  %v1956_v27 = vadd.f32 %v1955_v16, %v8434_v5 }
 0x324   : > { %v4819_v31 = vpack.c.bf16 %v4782_v13, %v4782_v13  ;;  %v4954_v4 = vmul.f32 %v4782_v13, %v4782_v13  ;;  %v4912_v62 = vsel %vm1537_vm7, %v4782_v13, 0.0 }
 0x325   : > { %v8480_v53 = vpop.f32.mrf.mxu1  ;;  %v4913_v36 = vadd.f32 %v4912_v62, %v4911_v56 }
 0x326   : > { %5811 = vst.msk [vmem:[%s6882_s11 + $0x1f4] sm:$0xf] %vm1765_vm10, %v4819_v31  ;;  %v2852_v6 = vpack.c.bf16 %v8480_v53, %v8480_v53  ;;  %v5014_v52 = vsel %vm1537_vm7, %v4954_v4, 0.0  ;;  %v2945_v5 = vsel %vm1537_vm7, %v8480_v53, 0.0  ;;  %v2987_v13 = vmul.f32 %v8480_v53, %v8480_v53 }
 0x327   : > { %v8486_v7 = vpop.f32.mrf.mxu0  ;;  %v5015_v32 = vadd.f32 %v5014_v52, %v5013_v0  ;;  %v2946_v24 = vadd.f32 %v2945_v5, %v2944_v3 }
 0x328   : > { %v1762_v10 = vpack.c.bf16 %v8486_v7, %v8486_v7  ;;  %5527 = vst.msk [vmem:[%s6882_s11 + $0xf4] sm:$0xf] %vm1765_vm10, %v2852_v6  ;;  %v1897_v58 = vmul.f32 %v8486_v7, %v8486_v7  ;;  %v1855_v11 = vsel %vm1537_vm7, %v8486_v7, 0.0  ;;  %v3047_v46 = vsel %vm1537_vm7, %v2987_v13, 0.0 }
 0x32a   : > { %1795 = vst.msk [vmem:[%s6882_s11 + $0x74] sm:$0xf] %vm1765_vm10, %v1762_v10  ;;  %v1957_v31 = vsel %vm1537_vm7, %v1897_v58, 0.0 }
 0x32b   : > { %v1958_v40 = vadd.f32 %v1957_v31, %v1956_v27 }
 0x330   : > { %v3954_v34 = vpop.f32.mrf.mxu2 }
 0x331   : > { %v3989_v25 = vpack.c.bf16 %v3954_v34, %v3954_v34  ;;  %v4083_v8 = vsel %vm1537_vm7, %v3954_v34, 0.0  ;;  %v4124_v1 = vmul.f32 %v3954_v34, %v3954_v34  ;;  %v3046_v34 = vadd.f32 %v3045_v63, %v3044_v20 }
 0x332   : > { %v4084_v19 = vadd.f32 %v4083_v8, %v4082_v28 }
 0x333   : > { %5694 = vst.msk [vmem:[%s6882_s11 + $0x178] sm:$0xf] %vm1765_vm10, %v3989_v25  ;;  %v4185_v14 = vsel %vm1537_vm7, %v4124_v1, 0.0  ;;  %v1856_v25 = vadd.f32 %v1855_v11, %v1854_v33 }
 0x334   : > { %v4186_v23 = vadd.f32 %v4185_v14, %v4184_v22 }
 0x338   : > { %v3956_v9 = vpop.f32.mrf.mxu2 }
 0x339   : > { %v3990_v44 = vpack.c.bf16 %v3956_v9, %v3956_v9  ;;  %v4085_v61 = vsel %vm1537_vm7, %v3956_v9, 0.0  ;;  %v4125_v39 = vmul.f32 %v3956_v9, %v3956_v9 }
 0x33a   : > { %v4086_v15 = vadd.f32 %v4085_v61, %v4084_v19  ;;  %v3048_v61 = vadd.f32 %v3047_v46, %v3046_v34 }
 0x33b   : > { %5695 = vst.msk [vmem:[%s6882_s11 + $0x17c] sm:$0xf] %vm1765_vm10, %v3990_v44  ;;  %v4785_v26 = vpop.f32.mrf.mxu3  ;;  %v4187_v47 = vsel %vm1537_vm7, %v4125_v39, 0.0 }
 0x33c   : > { %v4820_v49 = vpack.c.bf16 %v4785_v26, %v4785_v26  ;;  %v1728_v51 = vpop.f32.mrf.mxu0  ;;  %v4955_v37 = vmul.f32 %v4785_v26, %v4785_v26  ;;  %v4087_v10 = vrot.slane %v4086_v15, 4  ;;  %v4188_v59 = vadd.f32 %v4187_v47, %v4186_v23 }
 0x33d   : > { %v1763_v17 = vpack.c.bf16 %v1728_v51, %v1728_v51  ;;  %v2818_v60 = vpop.f32.mrf.mxu1  ;;  %v1898_v6 = vmul.f32 %v1728_v51, %v1728_v51  ;;  %v4914_v54 = vsel %vm1537_vm7, %v4785_v26, 0.0  ;;  %v1857_v7 = vsel %vm1537_vm7, %v1728_v51, 0.0 }
 0x33e   : > { %5812 = vst.msk [vmem:[%s6882_s11 + $0x1f8] sm:$0xf] %vm1765_vm10, %v4820_v49  ;;  %v2853_v38 = vpack.c.bf16 %v2818_v60, %v2818_v60  ;;  %v5016_v53 = vsel %vm1537_vm7, %v4955_v37, 0.0  ;;  %v4915_v42 = vadd.f32 %v4914_v54, %v4913_v36  ;;  %v2988_v43 = vmul.f32 %v2818_v60, %v2818_v60 }
 0x33f   : > { %1796 = vst.msk [vmem:[%s6882_s11 + $0x78] sm:$0xf] %vm1765_vm10, %v1763_v17  ;;  %v1959_v55 = vsel %vm1537_vm7, %v1898_v6, 0.0  ;;  %v4088_v41 = vadd.f32 %v4087_v10, %v4086_v15  ;;  %v4189_v2 = vrot.slane %v4188_v59, 4  ;;  %v1858_v35 = vadd.f32 %v1857_v7, %v1856_v25 }
 0x340   : > { %5528 = vst.msk [vmem:[%s6882_s11 + $0xf8] sm:$0xf] %vm1765_vm10, %v2853_v38  ;;  %v2947_v57 = vsel %vm1537_vm7, %v2818_v60, 0.0  ;;  %v5017_v20 = vadd.f32 %v5016_v53, %v5015_v32  ;;  %v1960_v50 = vadd.f32 %v1959_v55, %v1958_v40  ;;  %v3049_v0 = vsel %vm1537_vm7, %v2988_v43, 0.0 }
 0x341   : > { %v2948_v29 = vadd.f32 %v2947_v57, %v2946_v24  ;;  %v4190_v63 = vadd.f32 %v4189_v2, %v4188_v59  ;;  %v3050_v15 = vadd.f32 %v3049_v0, %v3048_v61  ;;  %v4089_v52 = vrot.slane %v4088_v41, 2 }
 0x343   : > { %v4787_v18 = vpop.f32.mrf.mxu3  ;;  %v4191_v31 = vrot.slane %v4190_v63, 2  ;;  %v4090_v10 = vadd.f32 %v4089_v52, %v4088_v41 }
 0x344   : > { %v4821_v21 = vpack.c.bf16 %v4787_v18, %v4787_v18  ;;  %v4916_v12 = vsel %vm1537_vm7, %v4787_v18, 0.0  ;;  %v1730_v56 = vpop.f32.mrf.mxu0  ;;  %v4956_v1 = vmul.f32 %v4787_v18, %v4787_v18 }
 0x345   : > { %v4917_v8 = vadd.f32 %v4916_v12, %v4915_v42  ;;  %v1764_v28 = vpack.c.bf16 %v1730_v56, %v1730_v56  ;;  %v1859_v30 = vsel %vm1537_vm7, %v1730_v56, 0.0  ;;  %v2820_v45 = vpop.f32.mrf.mxu1  ;;  %v1899_v48 = vmul.f32 %v1730_v56, %v1730_v56 }
 0x346   : > { %5813 = vst.msk [vmem:[%s6882_s11 + $0x1fc] sm:$0xf] %vm1765_vm10, %v4821_v21  ;;  %v1860_v16 = vadd.f32 %v1859_v30, %v1858_v35  ;;  %v5018_v9 = vsel %vm1537_vm7, %v4956_v1, 0.0  ;;  %v2854_v19 = vpack.c.bf16 %v2820_v45, %v2820_v45  ;;  %v2949_v44 = vsel %vm1537_vm7, %v2820_v45, 0.0 }
 0x347   : > { %v4918_v4 = vrot.slane %v4917_v8, 4  ;;  %1797 = vst.msk [vmem:[%s6882_s11 + $0x7c] sm:$0xf] %vm1765_vm10, %v1764_v28  ;;  %v5019_v39 = vadd.f32 %v5018_v9, %v5017_v20  ;;  %v1961_v33 = vsel %vm1537_vm7, %v1899_v48, 0.0  ;;  %v2950_v27 = vadd.f32 %v2949_v44, %v2948_v29 }
 0x348   : > { %v1861_v22 = vrot.slane %v1860_v16, 4  ;;  %v1962_v14 = vadd.f32 %v1961_v33, %v1960_v50  ;;  %5529 = vst.msk [vmem:[%s6882_s11 + $0xfc] sm:$0xf] %vm1765_vm10, %v2854_v19  ;;  %v2989_v3 = vmul.f32 %v2820_v45, %v2820_v45  ;;  %v4192_v24 = vadd.f32 %v4191_v31, %v4190_v63 }
 0x349   : > { %v4919_v58 = vadd.f32 %v4918_v4, %v4917_v8  ;;  %v5020_v26 = vrot.slane %v5019_v39, 4  ;;  %v2951_v49 = vrot.slane %v2950_v27, 4  ;;  %v4091_v55 = vrot.slane %v4090_v10, 1 }
 0x34a   : > { %v1862_v62 = vadd.f32 %v1861_v22, %v1860_v16  ;;  %v1963_v47 = vrot.slane %v1962_v14, 4  ;;  %v3051_v51 = vsel %vm1537_vm7, %v2989_v3, 0.0  ;;  %v4193_v41 = vrot.slane %v4192_v24, 1 }
 0x34b   : > { %v5021_v5 = vadd.f32 %v5020_v26, %v5019_v39  ;;  %v3052_v37 = vadd.f32 %v3051_v51, %v3050_v15  ;;  %v4920_v17 = vrot.slane %v4919_v58, 2  ;;  %v2952_v11 = vadd.f32 %v2951_v49, %v2950_v27 }
 0x34c   : > { %v1863_v23 = vrot.slane %v1862_v62, 2  ;;  %v1964_v60 = vadd.f32 %v1963_v47, %v1962_v14  ;;  %v4092_v50 = vadd.f32 %v4091_v55, %v4090_v10  ;;  %v4194_v28 = vadd.f32 %v4193_v41, %v4192_v24 }
 0x34d   : > { %v3053_v6 = vrot.slane %v3052_v37, 4  ;;  %v2953_v59 = vrot.slane %v2952_v11, 2  ;;  %v5022_v38 = vrot.slane %v5021_v5, 2  ;;  %v4921_v32 = vadd.f32 %v4920_v17, %v4919_v58 }
 0x34e   : > { %v1864_v13 = vadd.f32 %v1863_v23, %v1862_v62  ;;  %v1965_v54 = vrot.slane %v1964_v60, 2 }
 0x34f   : > { %v3054_v36 = vadd.f32 %v3053_v6, %v3052_v37  ;;  %v2954_v25 = vadd.f32 %v2953_v59, %v2952_v11  ;;  %v5023_v43 = vadd.f32 %v5022_v38, %v5021_v5  ;;  %v4922_v35 = vrot.slane %v4921_v32, 1 }
 0x350   : > { %v1865_v34 = vrot.slane %v1864_v13, 1  ;;  %v1966_v7 = vadd.f32 %v1965_v54, %v1964_v60 }
 0x351   : > { %v3055_v53 = vrot.slane %v3054_v36, 2  ;;  %v2955_v42 = vrot.slane %v2954_v25, 1  ;;  %v5024_v12 = vrot.slane %v5023_v43, 1  ;;  %v4923_v8 = vadd.f32 %v4922_v35, %v4921_v32 }
 0x352   : > { %v1866_v40 = vadd.f32 %v1865_v34, %v1864_v13  ;;  %v1967_v46 = vrot.slane %v1966_v7, 1 }
 0x353   : > { %v3056_v2 = vadd.f32 %v3055_v53, %v3054_v36  ;;  %v2956_v57 = vadd.f32 %v2955_v42, %v2954_v25  ;;  %v5025_v29 = vadd.f32 %v5024_v12, %v5023_v43 }
 0x354   : > { %v1968_v18 = vadd.f32 %v1967_v46, %v1966_v7 }
 0x355   : > { %v3057_v20 = vrot.slane %v3056_v2, 1  ;;  %v2957_v21 = vadd.f32 %v2956_v57, %v1866_v40 }
 0x357   : > { %v3058_v56 = vadd.f32 %v3057_v20, %v3056_v2  ;;  %v4093_v1 = vadd.f32 %v4092_v50, %v2957_v21 }
 0x359   : > { %v3059_v30 = vadd.f32 %v3058_v56, %v1968_v18  ;;  %v4924_v45 = vadd.f32 %v4923_v8, %v4093_v1 }
 0x35b   : > { %v4195_v0 = vadd.f32 %v4194_v28, %v3059_v30  ;;  %5028 = vst.msk [vmem:[%s260_s14] sm:$0x1] %vm5027_vm11, %v4924_v45 }
 0x35d   : > { %v5026_v16 = vadd.f32 %v5025_v29, %v4195_v0 }
 0x35f   : > { %5029 = vst.msk [vmem:[%s266_s21] sm:$0x1] %vm5027_vm11, %v5026_v16 }
 0x360 PF: > { %s15_s17 = sadd.s32 1, %s5935_s17   ;;  %s8671_s15 = smov %s5931_s16 }
 0x361   : > { %p12_p5 = scmp.ge.s32.totalorder %s15_s17, 4   ;;  %s8672_s16 = smov %s8674_s18 }
 0x363   :  { %14 = sbr.rel (!%p12_p5) target bundleno = 2 (0x2), region = 90 }

</bundles_post_ra>
